<compile_context>
chip_gen: v7x
topology: tpu7x:2x2x1
jax: 0.10.0
libtpu: 0.0.40
codegen_flags: <defaults>
</compile_context>

<pallas_src>
import functools
import math

import jax
import jax.numpy as jnp
from jax.experimental import pallas as pl
from jax.experimental.pallas import tpu as pltpu

# MXU operand dtype.  float32 keeps the 1e-4 self-check tight; set to
# jnp.bfloat16 on v6e/v7x to halve im2col bytes (accumulation stays f32,
# expect ~1e-3 error vs the f32 reference).
_MXU_DTYPE = jnp.float32


def _round8(v):
    return ((v + 7) // 8) * 8


def _make_plan(h_img, w_img):
    """Static per-layer spatial sizes + the constant stored row width W.

    Logical column c of an activation whose column stride is cs lives at
    stored column c*cs; stride-2 pools double cs instead of decimating, so all
    in-kernel reads stay unit-stride.
    """
    h1, v1 = (h_img - 3) // 2 + 1, (w_img - 3) // 2 + 1   # c1 (folded in XLA)
    h2, v2 = h1 - 2, v1 - 2                               # c2
    h3, v3 = h2, v2                                       # c3 (pad=1)
    h4, v4 = (h3 - 3) // 2 + 1, (v3 - 3) // 2 + 1         # mp1 (cs 1->2)
    h5, v5 = h4 - 2, v4 - 2                               # c5
    h6, v6 = (h5 - 3) // 2 + 1, (v5 - 3) // 2 + 1         # mp2 (cs 2->4)
    W = _round8(max(v1, v2, v3 + 2,                       # +2: c3 zero frame
                    (v4 - 1) * 2 + 1, (v5 - 1) * 2 + 1, (v6 - 1) * 4 + 1))
    return dict(h1=h1, v1=v1, h2=h2, v2=v2, h3=h3, v3=v3,
                h4=h4, v4=v4, h5=h5, v5=v5, h6=h6, v6=v6, W=W)


# ------------------------------ kernel helpers -------------------------------

def _grow_rows(a, n_rows):
    """Append zero rows so `a` has at least n_rows rows (tap tail)."""
    cur = a.shape[0]
    if cur >= n_rows:
        return a
    pad = _round8(n_rows - cur)
    return jnp.concatenate([a, jnp.zeros((pad, a.shape[1]), a.dtype)], axis=0)


def _conv3_s1(act, *, h_in, h_out, cs, W, w_ref, b_ref):
    """3x3 stride-1 conv on a constant-row-width activation.

    Width taps: 3 shifted full-array slices, lane-concatenated once (one
    materialized LHS of contraction depth 3*Cin).  Kernel-height taps: 3
    accumulated matmuls whose LHS is an aligned contiguous sublane band.
    """
    L = h_in * W
    act = _grow_rows(act, L + 2 * cs)
    lhs = jnp.concatenate([act[j * cs:j * cs + L, :] for j in range(3)],
                          axis=-1).astype(_MXU_DTYPE)
    M = h_out * W
    acc = None
    for i in range(3):
        part = jnp.dot(lhs[i * W:i * W + M, :], w_ref[i].astype(_MXU_DTYPE),
                       preferred_element_type=jnp.float32)
        acc = part if acc is None else acc + part
    return acc + b_ref[...]


def _maxpool3_s2(act, *, h_in, h_out, cs, W):
    """3x3 stride-2 max-pool: bulk width-max over 3 shifted slices, then a
    small per-output-row height max (stride 2 rows are not contiguous)."""
    L = h_in * W
    act = _grow_rows(act, L + 2 * cs)
    wmax = act[0:L, :]
    for j in range(1, 3):
        wmax = jnp.maximum(wmax, act[j * cs:j * cs + L, :])
    rows = []
    for r in range(h_out):
        rm = wmax[(2 * r) * W:(2 * r) * W + W, :]
        for i in range(1, 3):
            rm = jnp.maximum(rm, wmax[(2 * r + i) * W:(2 * r + i) * W + W, :])
        rows.append(rm)
    return rows[0] if h_out == 1 else jnp.concatenate(rows, axis=0)


# -------------------------------- the kernel ---------------------------------

def _stem_kernel(x_ref, cm_ref, w1, b1, w2, b2, w3, b3, w4, b4, w5, b5,
                 o_ref, *, plan):
    """Whole stem for one image; all intermediates stay in VMEM / vregs."""
    W = plan["W"]

    # c1: pre-folded 3x3xCin im2col -> ONE matmul (9*Cin -> 32).
    act = jnp.dot(x_ref[...].astype(_MXU_DTYPE), w1[...].astype(_MXU_DTYPE),
                  preferred_element_type=jnp.float32) + b1[...]

    # c2: 3x3 s1 (32 -> 32).
    act = _conv3_s1(act, h_in=plan["h1"], h_out=plan["h2"], cs=1, W=W,
                    w_ref=w2, b_ref=b2)

    # c3: 3x3 s1 pad=1 (32 -> 64).  Zero frame in two bulk ops:
    #  - zero the garbage columns (stored col >= v2) so the right pad and the
    #    wrap-around left pad are real zeros,
    #  - prepend W+1 zero rows = one top pad row + a 1-column right shift
    #    (the constant row width turns the shift into the left pad); the
    #    bottom pad row is supplied by the zero tail inside _conv3_s1.
    act = act * cm_ref[...]
    act = jnp.concatenate(
        [jnp.zeros((W + 1, act.shape[1]), act.dtype), act], axis=0)
    act = _conv3_s1(act, h_in=plan["h2"] + 2, h_out=plan["h3"], cs=1, W=W,
                    w_ref=w3, b_ref=b3)

    # mp1: 3x3 s2 max-pool (column stride 1 -> 2).
    act = _maxpool3_s2(act, h_in=plan["h3"], h_out=plan["h4"], cs=1, W=W)

    # c4: 1x1 conv (64 -> 80) -- plain matmul on the live activation.
    act = jnp.dot(act.astype(_MXU_DTYPE), w4[...].astype(_MXU_DTYPE),
                  preferred_element_type=jnp.float32) + b4[...]

    # c5: 3x3 s1 (80 -> 192, zero-padded to 256 output lanes).
    act = _conv3_s1(act, h_in=plan["h4"], h_out=plan["h5"], cs=2, W=W,
                    w_ref=w5, b_ref=b5)

    # mp2: 3x3 s2 max-pool (column stride 2 -> 4).
    act = _maxpool3_s2(act, h_in=plan["h5"], h_out=plan["h6"], cs=2, W=W)

    o_ref[...] = act.astype(o_ref.dtype)


# ------------------------------- JAX wrapper ---------------------------------

def _fold_params(params):
    f = jnp.float32
    w1, b1 = params["c1"]
    w2, b2 = params["c2"]
    w3, b3 = params["c3"]
    w4, b4 = params["c4"]
    w5, b5 = params["c5"]
    kc = w1.shape[0] * w1.shape[1] * w1.shape[2]          # 9 * Cin
    w1f = jnp.asarray(w1, f).reshape(kc, 32)
    w2f = jnp.asarray(w2, f).reshape(3, 3 * 32, 32)
    w3f = jnp.asarray(w3, f).reshape(3, 3 * 32, 64)
    w4f = jnp.asarray(w4, f).reshape(64, 80)
    w5f = jnp.pad(jnp.asarray(w5, f).reshape(3, 3 * 80, 192),
                  ((0, 0), (0, 0), (0, 64)))              # 192 -> 256 lanes
    b5f = jnp.pad(jnp.asarray(b5, f), (0, 64))
    return [w1f, jnp.asarray(b1, f).reshape(1, -1),
            w2f, jnp.asarray(b2, f).reshape(1, -1),
            w3f, jnp.asarray(b3, f).reshape(1, -1),
            w4f, jnp.asarray(b4, f).reshape(1, -1),
            w5f, b5f.reshape(1, -1)]


@jax.jit
def stem_forward(params, x_nchw):
    """Exact forward of the PyTorch `Stem`: takes NCHW, returns NCHW."""
    x = jnp.transpose(x_nchw, (0, 2, 3, 1)).astype(jnp.float32)    # NHWC
    n, h_img, w_img, c_in = x.shape
    plan = _make_plan(h_img, w_img)
    W, h1, v1 = plan["W"], plan["h1"], plan["v1"]

    # Pre-fold c1's im2col (absorbs c1's stride 2): cheap in XLA, Cin is tiny.
    taps = []
    for i in range(3):
        for j in range(3):
            taps.append(x[:, i:i + 2 * h1 - 1:2, j:j + 2 * v1 - 1:2, :])
    x_i2c = jnp.concatenate(taps, axis=-1)                          # (n,h1,v1,9C)
    x_i2c = jnp.pad(x_i2c, ((0, 0), (0, 0), (0, W - v1), (0, 0)))
    x_i2c = x_i2c.reshape(n, h1 * W, 9 * c_in)

    # Static 0/1 column mask used to zero c2's garbage columns before c3's pad.
    cmask = (jnp.arange(plan["h2"] * W) % W < plan["v2"]).astype(jnp.float32)
    cmask = cmask.reshape(plan["h2"] * W, 1)

    flat = _fold_params(params)
    m_out = plan["h6"] * W

    def _full(a):
        if a.ndim == 3:
            return pl.BlockSpec(a.shape, lambda b: (0, 0, 0))
        return pl.BlockSpec(a.shape, lambda b: (0, 0))

    in_specs = ([pl.BlockSpec((None, h1 * W, 9 * c_in), lambda b: (b, 0, 0)),
                 _full(cmask)] + [_full(a) for a in flat])

    # VMEM limit derived from the plan (lane dims pad to 128), not hardcoded.
    def _lanes(c):
        return ((c + 127) // 128) * 128
    est = 4 * (h1 * W * (_lanes(9 * c_in) + _lanes(32) + _lanes(96))
               + plan["h2"] * W * _lanes(96)
               + plan["h4"] * W * (_lanes(240) + _lanes(256))
               + m_out * 256)
    vmem_limit = int(min(96 * 2**20, max(32 * 2**20, 4 * est)))

    out = pl.pallas_call(
        functools.partial(_stem_kernel, plan=plan),
        out_shape=jax.ShapeDtypeStruct((n, m_out, 256), jnp.float32),
        grid=(n,),
        in_specs=in_specs,
        out_specs=pl.BlockSpec((None, m_out, 256), lambda b: (b, 0, 0)),
        compiler_params=pltpu.CompilerParams(
            dimension_semantics=("parallel",),          # one image per TC
            vmem_limit_bytes=vmem_limit),
    )(x_i2c, cmask, *flat)

    # Keep logical columns (stored at stride 4) and the real 192 channels.
    out = out.reshape(n, plan["h6"], W, 256)
    out = out[:, :, 0:plan["v6"] * 4:4, :192]
    return jnp.transpose(out, (0, 3, 1, 2))             # NHWC -> NCHW


# ------------------------------- param init ----------------------------------

def init_stem_params(key, in_channels):
    """PyTorch Conv2d default init: uniform +/- 1/sqrt(fan_in)."""
    def conv_init(k, kh, kw, c_in, c_out):
        k_w, k_b = jax.random.split(k)
        bound = 1.0 / math.sqrt(c_in * kh * kw)
        w = jax.random.uniform(k_w, (kh, kw, c_in, c_out), jnp.float32,
                               -bound, bound)
        b = jax.random.uniform(k_b, (c_out,), jnp.float32, -bound, bound)
        return w, b

    keys = jax.random.split(key, 5)
    return {
        "c1": conv_init(keys[0], 3, 3, in_channels, 32),
        "c2": conv_init(keys[1], 3, 3, 32, 32),
        "c3": conv_init(keys[2], 3, 3, 32, 64),
        "c4": conv_init(keys[3], 1, 1, 64, 80),
        "c5": conv_init(keys[4], 3, 3, 80, 192),
    }


# --------------------------- pure-JAX reference ------------------------------

def stem_reference(params, x_nchw):
    def conv(x, w, b, stride, padding):
        w_oihw = jnp.transpose(w, (3, 2, 0, 1))
        y = jax.lax.conv_general_dilated(
            x, w_oihw, (stride, stride),
            [(padding, padding), (padding, padding)],
            dimension_numbers=("NCHW", "OIHW", "NCHW"),
            precision=jax.lax.Precision.HIGHEST)
        return y + b[None, :, None, None]

    def maxpool(x):
        return jax.lax.reduce_window(x, -jnp.inf, jax.lax.max,
                                     (1, 1, 3, 3), (1, 1, 2, 2), "VALID")

    w, b = params["c1"]; x = conv(x_nchw, w, b, 2, 0)
    w, b = params["c2"]; x = conv(x, w, b, 1, 0)
    w, b = params["c3"]; x = conv(x, w, b, 1, 1)
    x = maxpool(x)
    w, b = params["c4"]; x = conv(x, w, b, 1, 0)
    w, b = params["c5"]; x = conv(x, w, b, 1, 0)
    return maxpool(x)


# ----------------------------------- main ------------------------------------

if __name__ == "__main__":
    key = jax.random.PRNGKey(0)
    k_params, k_x = jax.random.split(key)

    in_channels = 3
    # 35x35 -> c1:17 -> c2:15 -> c3:15 -> mp1:7 -> c4:7 -> c5:5 -> mp2:2
    x = jax.random.normal(k_x, (2, in_channels, 35, 35), jnp.float32)
    params = init_stem_params(k_params, in_channels)

    y = jax.block_until_ready(stem_forward(params, x))
    assert y.shape == (2, 192, 2, 2), y.shape

    y_ref = stem_reference(params, x)
    max_err = float(jnp.max(jnp.abs(y - y_ref)))
    assert jnp.allclose(y, y_ref, atol=1e-4, rtol=1e-4), max_err

    print("KERNEL_OK")
</pallas_src>

<mosaic_0001>
module attributes {stable_mosaic.version = 11 : i64} {
  func.func @_stem_kernel(%arg0: i32, %arg1: memref<1x408x27xf32, #tpu.memory_space<vmem>>, %arg2: memref<360x1xf32, #tpu.memory_space<vmem>>, %arg3: memref<27x32xf32, #tpu.memory_space<vmem>>, %arg4: memref<1x32xf32, #tpu.memory_space<vmem>>, %arg5: memref<3x96x32xf32, #tpu.memory_space<vmem>>, %arg6: memref<1x32xf32, #tpu.memory_space<vmem>>, %arg7: memref<3x96x64xf32, #tpu.memory_space<vmem>>, %arg8: memref<1x64xf32, #tpu.memory_space<vmem>>, %arg9: memref<64x80xf32, #tpu.memory_space<vmem>>, %arg10: memref<1x80xf32, #tpu.memory_space<vmem>>, %arg11: memref<3x240x256xf32, #tpu.memory_space<vmem>>, %arg12: memref<1x256xf32, #tpu.memory_space<vmem>>, %arg13: memref<1x48x256xf32, #tpu.memory_space<vmem>>) attributes {dimension_semantics = [#tpu.dimension_semantics<parallel>], iteration_bounds = array<i64: 2>, scalar_prefetch = 0 : i64, scratch_operands = 0 : i64, tpu.core_type = #tpu.core_type<tc>, window_params = [{transform_indices = @transform_0, window_bounds = array<i64: 1, 408, 27>}, {pipeline_mode = #tpu.pipeline_mode<synchronous>, transform_indices = @transform_1, window_bounds = array<i64: 360, 1>}, {pipeline_mode = #tpu.pipeline_mode<synchronous>, transform_indices = @transform_2, window_bounds = array<i64: 27, 32>}, {pipeline_mode = #tpu.pipeline_mode<synchronous>, transform_indices = @transform_3, window_bounds = array<i64: 1, 32>}, {pipeline_mode = #tpu.pipeline_mode<synchronous>, transform_indices = @transform_4, window_bounds = array<i64: 3, 96, 32>}, {pipeline_mode = #tpu.pipeline_mode<synchronous>, transform_indices = @transform_5, window_bounds = array<i64: 1, 32>}, {pipeline_mode = #tpu.pipeline_mode<synchronous>, transform_indices = @transform_6, window_bounds = array<i64: 3, 96, 64>}, {pipeline_mode = #tpu.pipeline_mode<synchronous>, transform_indices = @transform_7, window_bounds = array<i64: 1, 64>}, {pipeline_mode = #tpu.pipeline_mode<synchronous>, transform_indices = @transform_8, window_bounds = array<i64: 64, 80>}, {pipeline_mode = #tpu.pipeline_mode<synchronous>, transform_indices = @transform_9, window_bounds = array<i64: 1, 80>}, {pipeline_mode = #tpu.pipeline_mode<synchronous>, transform_indices = @transform_10, window_bounds = array<i64: 3, 240, 256>}, {pipeline_mode = #tpu.pipeline_mode<synchronous>, transform_indices = @transform_11, window_bounds = array<i64: 1, 256>}, {transform_indices = @transform_12, window_bounds = array<i64: 1, 48, 256>}]} {
    %c0 = arith.constant 0 : index
    %c0_0 = arith.constant 0 : index
    %c0_1 = arith.constant 0 : index
    %0 = vector.load %arg1[%c0, %c0_0, %c0_1] : memref<1x408x27xf32, #tpu.memory_space<vmem>>, vector<1x408x27xf32>
    %1 = vector.shape_cast %0 : vector<1x408x27xf32> to vector<408x27xf32>
    %c0_2 = arith.constant 0 : index
    %c0_3 = arith.constant 0 : index
    %2 = vector.load %arg3[%c0_2, %c0_3] : memref<27x32xf32, #tpu.memory_space<vmem>>, vector<27x32xf32>
    %cst = arith.constant dense<0.000000e+00> : vector<408x32xf32>
    %3 = tpu.matmul %1, %2, %cst {dimension_numbers = #tpu.dot_dimension_numbers<[1], [0], [0], [1], [0, 0, 1, 1], [], []>} : vector<408x27xf32>, vector<27x32xf32>, vector<408x32xf32> -> vector<408x32xf32>
    %c0_4 = arith.constant 0 : index
    %c0_5 = arith.constant 0 : index
    %4 = vector.load %arg4[%c0_4, %c0_5] : memref<1x32xf32, #tpu.memory_space<vmem>>, vector<1x32xf32>
    %5 = vector.broadcast %4 : vector<1x32xf32> to vector<408x32xf32>
    %6 = arith.addf %3, %5 : vector<408x32xf32>
    %cst_6 = arith.constant 0.000000e+00 : f32
    %7 = vector.broadcast %cst_6 : f32 to vector<8x32xf32>
    %8 = tpu.concatenate %6, %7 in 0 : vector<408x32xf32>, vector<8x32xf32> -> vector<416x32xf32>
    %9 = vector.extract_strided_slice %8 {offsets = [0, 0], sizes = [408, 32], strides = [1, 1]} : vector<416x32xf32> to vector<408x32xf32>
    %10 = vector.extract_strided_slice %8 {offsets = [1, 0], sizes = [408, 32], strides = [1, 1]} : vector<416x32xf32> to vector<408x32xf32>
    %11 = vector.extract_strided_slice %8 {offsets = [2, 0], sizes = [408, 32], strides = [1, 1]} : vector<416x32xf32> to vector<408x32xf32>
    %12 = tpu.concatenate %9, %10, %11 in 1 : vector<408x32xf32>, vector<408x32xf32>, vector<408x32xf32> -> vector<408x96xf32>
    %13 = vector.extract_strided_slice %12 {offsets = [0, 0], sizes = [360, 96], strides = [1, 1]} : vector<408x96xf32> to vector<360x96xf32>
    %c0_7 = arith.constant 0 : index
    %c0_8 = arith.constant 0 : index
    %c0_9 = arith.constant 0 : index
    %14 = vector.load %arg5[%c0_7, %c0_8, %c0_9] : memref<3x96x32xf32, #tpu.memory_space<vmem>>, vector<1x96x32xf32>
    %15 = vector.shape_cast %14 : vector<1x96x32xf32> to vector<96x32xf32>
    %cst_10 = arith.constant dense<0.000000e+00> : vector<360x32xf32>
    %16 = tpu.matmul %13, %15, %cst_10 {dimension_numbers = #tpu.dot_dimension_numbers<[1], [0], [0], [1], [0, 0, 1, 1], [], []>} : vector<360x96xf32>, vector<96x32xf32>, vector<360x32xf32> -> vector<360x32xf32>
    %17 = vector.extract_strided_slice %12 {offsets = [24, 0], sizes = [360, 96], strides = [1, 1]} : vector<408x96xf32> to vector<360x96xf32>
    %c1 = arith.constant 1 : index
    %c0_11 = arith.constant 0 : index
    %c0_12 = arith.constant 0 : index
    %18 = vector.load %arg5[%c1, %c0_11, %c0_12] : memref<3x96x32xf32, #tpu.memory_space<vmem>>, vector<1x96x32xf32>
    %19 = vector.shape_cast %18 : vector<1x96x32xf32> to vector<96x32xf32>
    %cst_13 = arith.constant dense<0.000000e+00> : vector<360x32xf32>
    %20 = tpu.matmul %17, %19, %cst_13 {dimension_numbers = #tpu.dot_dimension_numbers<[1], [0], [0], [1], [0, 0, 1, 1], [], []>} : vector<360x96xf32>, vector<96x32xf32>, vector<360x32xf32> -> vector<360x32xf32>
    %21 = arith.addf %16, %20 : vector<360x32xf32>
    %22 = vector.extract_strided_slice %12 {offsets = [48, 0], sizes = [360, 96], strides = [1, 1]} : vector<408x96xf32> to vector<360x96xf32>
    %c2 = arith.constant 2 : index
    %c0_14 = arith.constant 0 : index
    %c0_15 = arith.constant 0 : index
    %23 = vector.load %arg5[%c2, %c0_14, %c0_15] : memref<3x96x32xf32, #tpu.memory_space<vmem>>, vector<1x96x32xf32>
    %24 = vector.shape_cast %23 : vector<1x96x32xf32> to vector<96x32xf32>
    %cst_16 = arith.constant dense<0.000000e+00> : vector<360x32xf32>
    %25 = tpu.matmul %22, %24, %cst_16 {dimension_numbers = #tpu.dot_dimension_numbers<[1], [0], [0], [1], [0, 0, 1, 1], [], []>} : vector<360x96xf32>, vector<96x32xf32>, vector<360x32xf32> -> vector<360x32xf32>
    %26 = arith.addf %21, %25 : vector<360x32xf32>
    %c0_17 = arith.constant 0 : index
    %c0_18 = arith.constant 0 : index
    %27 = vector.load %arg6[%c0_17, %c0_18] : memref<1x32xf32, #tpu.memory_space<vmem>>, vector<1x32xf32>
    %28 = vector.broadcast %27 : vector<1x32xf32> to vector<360x32xf32>
    %29 = arith.addf %26, %28 : vector<360x32xf32>
    %c0_19 = arith.constant 0 : index
    %c0_20 = arith.constant 0 : index
    %30 = vector.load %arg2[%c0_19, %c0_20] : memref<360x1xf32, #tpu.memory_space<vmem>>, vector<360x1xf32>
    %31 = vector.broadcast %30 : vector<360x1xf32> to vector<360x32xf32>
    %32 = arith.mulf %29, %31 : vector<360x32xf32>
    %cst_21 = arith.constant 0.000000e+00 : f32
    %33 = vector.broadcast %cst_21 : f32 to vector<25x32xf32>
    %34 = tpu.concatenate %33, %32 in 0 : vector<25x32xf32>, vector<360x32xf32> -> vector<385x32xf32>
    %cst_22 = arith.constant 0.000000e+00 : f32
    %35 = vector.broadcast %cst_22 : f32 to vector<32x32xf32>
    %36 = tpu.concatenate %34, %35 in 0 : vector<385x32xf32>, vector<32x32xf32> -> vector<417x32xf32>
    %37 = vector.extract_strided_slice %36 {offsets = [0, 0], sizes = [408, 32], strides = [1, 1]} : vector<417x32xf32> to vector<408x32xf32>
    %38 = vector.extract_strided_slice %36 {offsets = [1, 0], sizes = [408, 32], strides = [1, 1]} : vector<417x32xf32> to vector<408x32xf32>
    %39 = vector.extract_strided_slice %36 {offsets = [2, 0], sizes = [408, 32], strides = [1, 1]} : vector<417x32xf32> to vector<408x32xf32>
    %40 = tpu.concatenate %37, %38, %39 in 1 : vector<408x32xf32>, vector<408x32xf32>, vector<408x32xf32> -> vector<408x96xf32>
    %41 = vector.extract_strided_slice %40 {offsets = [0, 0], sizes = [360, 96], strides = [1, 1]} : vector<408x96xf32> to vector<360x96xf32>
    %c0_23 = arith.constant 0 : index
    %c0_24 = arith.constant 0 : index
    %c0_25 = arith.constant 0 : index
    %42 = vector.load %arg7[%c0_23, %c0_24, %c0_25] : memref<3x96x64xf32, #tpu.memory_space<vmem>>, vector<1x96x64xf32>
    %43 = vector.shape_cast %42 : vector<1x96x64xf32> to vector<96x64xf32>
    %cst_26 = arith.constant dense<0.000000e+00> : vector<360x64xf32>
    %44 = tpu.matmul %41, %43, %cst_26 {dimension_numbers = #tpu.dot_dimension_numbers<[1], [0], [0], [1], [0, 0, 1, 1], [], []>} : vector<360x96xf32>, vector<96x64xf32>, vector<360x64xf32> -> vector<360x64xf32>
    %45 = vector.extract_strided_slice %40 {offsets = [24, 0], sizes = [360, 96], strides = [1, 1]} : vector<408x96xf32> to vector<360x96xf32>
    %c1_27 = arith.constant 1 : index
    %c0_28 = arith.constant 0 : index
    %c0_29 = arith.constant 0 : index
    %46 = vector.load %arg7[%c1_27, %c0_28, %c0_29] : memref<3x96x64xf32, #tpu.memory_space<vmem>>, vector<1x96x64xf32>
    %47 = vector.shape_cast %46 : vector<1x96x64xf32> to vector<96x64xf32>
    %cst_30 = arith.constant dense<0.000000e+00> : vector<360x64xf32>
    %48 = tpu.matmul %45, %47, %cst_30 {dimension_numbers = #tpu.dot_dimension_numbers<[1], [0], [0], [1], [0, 0, 1, 1], [], []>} : vector<360x96xf32>, vector<96x64xf32>, vector<360x64xf32> -> vector<360x64xf32>
    %49 = arith.addf %44, %48 : vector<360x64xf32>
    %50 = vector.extract_strided_slice %40 {offsets = [48, 0], sizes = [360, 96], strides = [1, 1]} : vector<408x96xf32> to vector<360x96xf32>
    %c2_31 = arith.constant 2 : index
    %c0_32 = arith.constant 0 : index
    %c0_33 = arith.constant 0 : index
    %51 = vector.load %arg7[%c2_31, %c0_32, %c0_33] : memref<3x96x64xf32, #tpu.memory_space<vmem>>, vector<1x96x64xf32>
    %52 = vector.shape_cast %51 : vector<1x96x64xf32> to vector<96x64xf32>
    %cst_34 = arith.constant dense<0.000000e+00> : vector<360x64xf32>
    %53 = tpu.matmul %50, %52, %cst_34 {dimension_numbers = #tpu.dot_dimension_numbers<[1], [0], [0], [1], [0, 0, 1, 1], [], []>} : vector<360x96xf32>, vector<96x64xf32>, vector<360x64xf32> -> vector<360x64xf32>
    %54 = arith.addf %49, %53 : vector<360x64xf32>
    %c0_35 = arith.constant 0 : index
    %c0_36 = arith.constant 0 : index
    %55 = vector.load %arg8[%c0_35, %c0_36] : memref<1x64xf32, #tpu.memory_space<vmem>>, vector<1x64xf32>
    %56 = vector.broadcast %55 : vector<1x64xf32> to vector<360x64xf32>
    %57 = arith.addf %54, %56 : vector<360x64xf32>
    %cst_37 = arith.constant 0.000000e+00 : f32
    %58 = vector.broadcast %cst_37 : f32 to vector<8x64xf32>
    %59 = tpu.concatenate %57, %58 in 0 : vector<360x64xf32>, vector<8x64xf32> -> vector<368x64xf32>
    %60 = vector.extract_strided_slice %59 {offsets = [0, 0], sizes = [360, 64], strides = [1, 1]} : vector<368x64xf32> to vector<360x64xf32>
    %61 = vector.extract_strided_slice %59 {offsets = [1, 0], sizes = [360, 64], strides = [1, 1]} : vector<368x64xf32> to vector<360x64xf32>
    %62 = arith.maximumf %60, %61 : vector<360x64xf32>
    %63 = vector.extract_strided_slice %59 {offsets = [2, 0], sizes = [360, 64], strides = [1, 1]} : vector<368x64xf32> to vector<360x64xf32>
    %64 = arith.maximumf %62, %63 : vector<360x64xf32>
    %65 = vector.extract_strided_slice %64 {offsets = [0, 0], sizes = [24, 64], strides = [1, 1]} : vector<360x64xf32> to vector<24x64xf32>
    %66 = vector.extract_strided_slice %64 {offsets = [24, 0], sizes = [24, 64], strides = [1, 1]} : vector<360x64xf32> to vector<24x64xf32>
    %67 = arith.maximumf %65, %66 : vector<24x64xf32>
    %68 = vector.extract_strided_slice %64 {offsets = [48, 0], sizes = [24, 64], strides = [1, 1]} : vector<360x64xf32> to vector<24x64xf32>
    %69 = arith.maximumf %67, %68 : vector<24x64xf32>
    %70 = vector.extract_strided_slice %64 {offsets = [48, 0], sizes = [24, 64], strides = [1, 1]} : vector<360x64xf32> to vector<24x64xf32>
    %71 = vector.extract_strided_slice %64 {offsets = [72, 0], sizes = [24, 64], strides = [1, 1]} : vector<360x64xf32> to vector<24x64xf32>
    %72 = arith.maximumf %70, %71 : vector<24x64xf32>
    %73 = vector.extract_strided_slice %64 {offsets = [96, 0], sizes = [24, 64], strides = [1, 1]} : vector<360x64xf32> to vector<24x64xf32>
    %74 = arith.maximumf %72, %73 : vector<24x64xf32>
    %75 = vector.extract_strided_slice %64 {offsets = [96, 0], sizes = [24, 64], strides = [1, 1]} : vector<360x64xf32> to vector<24x64xf32>
    %76 = vector.extract_strided_slice %64 {offsets = [120, 0], sizes = [24, 64], strides = [1, 1]} : vector<360x64xf32> to vector<24x64xf32>
    %77 = arith.maximumf %75, %76 : vector<24x64xf32>
    %78 = vector.extract_strided_slice %64 {offsets = [144, 0], sizes = [24, 64], strides = [1, 1]} : vector<360x64xf32> to vector<24x64xf32>
    %79 = arith.maximumf %77, %78 : vector<24x64xf32>
    %80 = vector.extract_strided_slice %64 {offsets = [144, 0], sizes = [24, 64], strides = [1, 1]} : vector<360x64xf32> to vector<24x64xf32>
    %81 = vector.extract_strided_slice %64 {offsets = [168, 0], sizes = [24, 64], strides = [1, 1]} : vector<360x64xf32> to vector<24x64xf32>
    %82 = arith.maximumf %80, %81 : vector<24x64xf32>
    %83 = vector.extract_strided_slice %64 {offsets = [192, 0], sizes = [24, 64], strides = [1, 1]} : vector<360x64xf32> to vector<24x64xf32>
    %84 = arith.maximumf %82, %83 : vector<24x64xf32>
    %85 = vector.extract_strided_slice %64 {offsets = [192, 0], sizes = [24, 64], strides = [1, 1]} : vector<360x64xf32> to vector<24x64xf32>
    %86 = vector.extract_strided_slice %64 {offsets = [216, 0], sizes = [24, 64], strides = [1, 1]} : vector<360x64xf32> to vector<24x64xf32>
    %87 = arith.maximumf %85, %86 : vector<24x64xf32>
    %88 = vector.extract_strided_slice %64 {offsets = [240, 0], sizes = [24, 64], strides = [1, 1]} : vector<360x64xf32> to vector<24x64xf32>
    %89 = arith.maximumf %87, %88 : vector<24x64xf32>
    %90 = vector.extract_strided_slice %64 {offsets = [240, 0], sizes = [24, 64], strides = [1, 1]} : vector<360x64xf32> to vector<24x64xf32>
    %91 = vector.extract_strided_slice %64 {offsets = [264, 0], sizes = [24, 64], strides = [1, 1]} : vector<360x64xf32> to vector<24x64xf32>
    %92 = arith.maximumf %90, %91 : vector<24x64xf32>
    %93 = vector.extract_strided_slice %64 {offsets = [288, 0], sizes = [24, 64], strides = [1, 1]} : vector<360x64xf32> to vector<24x64xf32>
    %94 = arith.maximumf %92, %93 : vector<24x64xf32>
    %95 = vector.extract_strided_slice %64 {offsets = [288, 0], sizes = [24, 64], strides = [1, 1]} : vector<360x64xf32> to vector<24x64xf32>
    %96 = vector.extract_strided_slice %64 {offsets = [312, 0], sizes = [24, 64], strides = [1, 1]} : vector<360x64xf32> to vector<24x64xf32>
    %97 = arith.maximumf %95, %96 : vector<24x64xf32>
    %98 = vector.extract_strided_slice %64 {offsets = [336, 0], sizes = [24, 64], strides = [1, 1]} : vector<360x64xf32> to vector<24x64xf32>
    %99 = arith.maximumf %97, %98 : vector<24x64xf32>
    %100 = tpu.concatenate %69, %74, %79, %84, %89, %94, %99 in 0 : vector<24x64xf32>, vector<24x64xf32>, vector<24x64xf32>, vector<24x64xf32>, vector<24x64xf32>, vector<24x64xf32>, vector<24x64xf32> -> vector<168x64xf32>
    %c0_38 = arith.constant 0 : index
    %c0_39 = arith.constant 0 : index
    %101 = vector.load %arg9[%c0_38, %c0_39] : memref<64x80xf32, #tpu.memory_space<vmem>>, vector<64x80xf32>
    %cst_40 = arith.constant dense<0.000000e+00> : vector<168x80xf32>
    %102 = tpu.matmul %100, %101, %cst_40 {dimension_numbers = #tpu.dot_dimension_numbers<[1], [0], [0], [1], [0, 0, 1, 1], [], []>} : vector<168x64xf32>, vector<64x80xf32>, vector<168x80xf32> -> vector<168x80xf32>
    %c0_41 = arith.constant 0 : index
    %c0_42 = arith.constant 0 : index
    %103 = vector.load %arg10[%c0_41, %c0_42] : memref<1x80xf32, #tpu.memory_space<vmem>>, vector<1x80xf32>
    %104 = vector.broadcast %103 : vector<1x80xf32> to vector<168x80xf32>
    %105 = arith.addf %102, %104 : vector<168x80xf32>
    %cst_43 = arith.constant 0.000000e+00 : f32
    %106 = vector.broadcast %cst_43 : f32 to vector<8x80xf32>
    %107 = tpu.concatenate %105, %106 in 0 : vector<168x80xf32>, vector<8x80xf32> -> vector<176x80xf32>
    %108 = vector.extract_strided_slice %107 {offsets = [0, 0], sizes = [168, 80], strides = [1, 1]} : vector<176x80xf32> to vector<168x80xf32>
    %109 = vector.extract_strided_slice %107 {offsets = [2, 0], sizes = [168, 80], strides = [1, 1]} : vector<176x80xf32> to vector<168x80xf32>
    %110 = vector.extract_strided_slice %107 {offsets = [4, 0], sizes = [168, 80], strides = [1, 1]} : vector<176x80xf32> to vector<168x80xf32>
    %111 = tpu.concatenate %108, %109, %110 in 1 : vector<168x80xf32>, vector<168x80xf32>, vector<168x80xf32> -> vector<168x240xf32>
    %112 = vector.extract_strided_slice %111 {offsets = [0, 0], sizes = [120, 240], strides = [1, 1]} : vector<168x240xf32> to vector<120x240xf32>
    %c0_44 = arith.constant 0 : index
    %c0_45 = arith.constant 0 : index
    %c0_46 = arith.constant 0 : index
    %113 = vector.load %arg11[%c0_44, %c0_45, %c0_46] : memref<3x240x256xf32, #tpu.memory_space<vmem>>, vector<1x240x256xf32>
    %114 = vector.shape_cast %113 : vector<1x240x256xf32> to vector<240x256xf32>
    %cst_47 = arith.constant dense<0.000000e+00> : vector<120x256xf32>
    %115 = tpu.matmul %112, %114, %cst_47 {dimension_numbers = #tpu.dot_dimension_numbers<[1], [0], [0], [1], [0, 0, 1, 1], [], []>} : vector<120x240xf32>, vector<240x256xf32>, vector<120x256xf32> -> vector<120x256xf32>
    %116 = vector.extract_strided_slice %111 {offsets = [24, 0], sizes = [120, 240], strides = [1, 1]} : vector<168x240xf32> to vector<120x240xf32>
    %c1_48 = arith.constant 1 : index
    %c0_49 = arith.constant 0 : index
    %c0_50 = arith.constant 0 : index
    %117 = vector.load %arg11[%c1_48, %c0_49, %c0_50] : memref<3x240x256xf32, #tpu.memory_space<vmem>>, vector<1x240x256xf32>
    %118 = vector.shape_cast %117 : vector<1x240x256xf32> to vector<240x256xf32>
    %cst_51 = arith.constant dense<0.000000e+00> : vector<120x256xf32>
    %119 = tpu.matmul %116, %118, %cst_51 {dimension_numbers = #tpu.dot_dimension_numbers<[1], [0], [0], [1], [0, 0, 1, 1], [], []>} : vector<120x240xf32>, vector<240x256xf32>, vector<120x256xf32> -> vector<120x256xf32>
    %120 = arith.addf %115, %119 : vector<120x256xf32>
    %121 = vector.extract_strided_slice %111 {offsets = [48, 0], sizes = [120, 240], strides = [1, 1]} : vector<168x240xf32> to vector<120x240xf32>
    %c2_52 = arith.constant 2 : index
    %c0_53 = arith.constant 0 : index
    %c0_54 = arith.constant 0 : index
    %122 = vector.load %arg11[%c2_52, %c0_53, %c0_54] : memref<3x240x256xf32, #tpu.memory_space<vmem>>, vector<1x240x256xf32>
    %123 = vector.shape_cast %122 : vector<1x240x256xf32> to vector<240x256xf32>
    %cst_55 = arith.constant dense<0.000000e+00> : vector<120x256xf32>
    %124 = tpu.matmul %121, %123, %cst_55 {dimension_numbers = #tpu.dot_dimension_numbers<[1], [0], [0], [1], [0, 0, 1, 1], [], []>} : vector<120x240xf32>, vector<240x256xf32>, vector<120x256xf32> -> vector<120x256xf32>
    %125 = arith.addf %120, %124 : vector<120x256xf32>
    %c0_56 = arith.constant 0 : index
    %c0_57 = arith.constant 0 : index
    %126 = vector.load %arg12[%c0_56, %c0_57] : memref<1x256xf32, #tpu.memory_space<vmem>>, vector<1x256xf32>
    %127 = vector.broadcast %126 : vector<1x256xf32> to vector<120x256xf32>
    %128 = arith.addf %125, %127 : vector<120x256xf32>
    %cst_58 = arith.constant 0.000000e+00 : f32
    %129 = vector.broadcast %cst_58 : f32 to vector<8x256xf32>
    %130 = tpu.concatenate %128, %129 in 0 : vector<120x256xf32>, vector<8x256xf32> -> vector<128x256xf32>
    %131 = vector.extract_strided_slice %130 {offsets = [0, 0], sizes = [120, 256], strides = [1, 1]} : vector<128x256xf32> to vector<120x256xf32>
    %132 = vector.extract_strided_slice %130 {offsets = [2, 0], sizes = [120, 256], strides = [1, 1]} : vector<128x256xf32> to vector<120x256xf32>
    %133 = arith.maximumf %131, %132 : vector<120x256xf32>
    %134 = vector.extract_strided_slice %130 {offsets = [4, 0], sizes = [120, 256], strides = [1, 1]} : vector<128x256xf32> to vector<120x256xf32>
    %135 = arith.maximumf %133, %134 : vector<120x256xf32>
    %136 = vector.extract_strided_slice %135 {offsets = [0, 0], sizes = [24, 256], strides = [1, 1]} : vector<120x256xf32> to vector<24x256xf32>
    %137 = vector.extract_strided_slice %135 {offsets = [24, 0], sizes = [24, 256], strides = [1, 1]} : vector<120x256xf32> to vector<24x256xf32>
    %138 = arith.maximumf %136, %137 : vector<24x256xf32>
    %139 = vector.extract_strided_slice %135 {offsets = [48, 0], sizes = [24, 256], strides = [1, 1]} : vector<120x256xf32> to vector<24x256xf32>
    %140 = arith.maximumf %138, %139 : vector<24x256xf32>
    %141 = vector.extract_strided_slice %135 {offsets = [48, 0], sizes = [24, 256], strides = [1, 1]} : vector<120x256xf32> to vector<24x256xf32>
    %142 = vector.extract_strided_slice %135 {offsets = [72, 0], sizes = [24, 256], strides = [1, 1]} : vector<120x256xf32> to vector<24x256xf32>
    %143 = arith.maximumf %141, %142 : vector<24x256xf32>
    %144 = vector.extract_strided_slice %135 {offsets = [96, 0], sizes = [24, 256], strides = [1, 1]} : vector<120x256xf32> to vector<24x256xf32>
    %145 = arith.maximumf %143, %144 : vector<24x256xf32>
    %146 = tpu.concatenate %140, %145 in 0 : vector<24x256xf32>, vector<24x256xf32> -> vector<48x256xf32>
    %c0_59 = arith.constant 0 : index
    %c0_60 = arith.constant 0 : index
    %c0_61 = arith.constant 0 : index
    %147 = vector.load %arg13[%c0_59, %c0_60, %c0_61] : memref<1x48x256xf32, #tpu.memory_space<vmem>>, vector<1x48x256xf32>
    %148 = vector.shape_cast %147 : vector<1x48x256xf32> to vector<48x256xf32>
    %149 = vector.shape_cast %146 : vector<48x256xf32> to vector<1x48x256xf32>
    tpu.vector_store %arg13[%c0_59, %c0_60, %c0_61], %149 {strides = array<i32>} : memref<1x48x256xf32, #tpu.memory_space<vmem>>, vector<1x48x256xf32>,
    return
  }
  func.func @transform_0(%arg0: i32) -> (i32, i32, i32) {
    %c0_i32 = arith.constant 0 : i32
    %c0_i32_0 = arith.constant 0 : i32
    %c0_i32_1 = arith.constant 0 : i32
    return %arg0, %c0_i32, %c0_i32_0 : i32, i32, i32
  }
  func.func @transform_1(%arg0: i32) -> (i32, i32) {
    %c0_i32 = arith.constant 0 : i32
    %c0_i32_0 = arith.constant 0 : i32
    %c0_i32_1 = arith.constant 0 : i32
    return %c0_i32, %c0_i32_0 : i32, i32
  }
  func.func @transform_2(%arg0: i32) -> (i32, i32) {
    %c0_i32 = arith.constant 0 : i32
    %c0_i32_0 = arith.constant 0 : i32
    %c0_i32_1 = arith.constant 0 : i32
    return %c0_i32, %c0_i32_0 : i32, i32
  }
  func.func @transform_3(%arg0: i32) -> (i32, i32) {
    %c0_i32 = arith.constant 0 : i32
    %c0_i32_0 = arith.constant 0 : i32
    %c0_i32_1 = arith.constant 0 : i32
    return %c0_i32, %c0_i32_0 : i32, i32
  }
  func.func @transform_4(%arg0: i32) -> (i32, i32, i32) {
    %c0_i32 = arith.constant 0 : i32
    %c0_i32_0 = arith.constant 0 : i32
    %c0_i32_1 = arith.constant 0 : i32
    %c0_i32_2 = arith.constant 0 : i32
    return %c0_i32, %c0_i32_0, %c0_i32_1 : i32, i32, i32
  }
  func.func @transform_5(%arg0: i32) -> (i32, i32) {
    %c0_i32 = arith.constant 0 : i32
    %c0_i32_0 = arith.constant 0 : i32
    %c0_i32_1 = arith.constant 0 : i32
    return %c0_i32, %c0_i32_0 : i32, i32
  }
  func.func @transform_6(%arg0: i32) -> (i32, i32, i32) {
    %c0_i32 = arith.constant 0 : i32
    %c0_i32_0 = arith.constant 0 : i32
    %c0_i32_1 = arith.constant 0 : i32
    %c0_i32_2 = arith.constant 0 : i32
    return %c0_i32, %c0_i32_0, %c0_i32_1 : i32, i32, i32
  }
  func.func @transform_7(%arg0: i32) -> (i32, i32) {
    %c0_i32 = arith.constant 0 : i32
    %c0_i32_0 = arith.constant 0 : i32
    %c0_i32_1 = arith.constant 0 : i32
    return %c0_i32, %c0_i32_0 : i32, i32
  }
  func.func @transform_8(%arg0: i32) -> (i32, i32) {
    %c0_i32 = arith.constant 0 : i32
    %c0_i32_0 = arith.constant 0 : i32
    %c0_i32_1 = arith.constant 0 : i32
    return %c0_i32, %c0_i32_0 : i32, i32
  }
  func.func @transform_9(%arg0: i32) -> (i32, i32) {
    %c0_i32 = arith.constant 0 : i32
    %c0_i32_0 = arith.constant 0 : i32
    %c0_i32_1 = arith.constant 0 : i32
    return %c0_i32, %c0_i32_0 : i32, i32
  }
  func.func @transform_10(%arg0: i32) -> (i32, i32, i32) {
    %c0_i32 = arith.constant 0 : i32
    %c0_i32_0 = arith.constant 0 : i32
    %c0_i32_1 = arith.constant 0 : i32
    %c0_i32_2 = arith.constant 0 : i32
    return %c0_i32, %c0_i32_0, %c0_i32_1 : i32, i32, i32
  }
  func.func @transform_11(%arg0: i32) -> (i32, i32) {
    %c0_i32 = arith.constant 0 : i32
    %c0_i32_0 = arith.constant 0 : i32
    %c0_i32_1 = arith.constant 0 : i32
    return %c0_i32, %c0_i32_0 : i32, i32
  }
  func.func @transform_12(%arg0: i32) -> (i32, i32, i32) {
    %c0_i32 = arith.constant 0 : i32
    %c0_i32_0 = arith.constant 0 : i32
    %c0_i32_1 = arith.constant 0 : i32
    return %arg0, %c0_i32, %c0_i32_0 : i32, i32, i32
  }
}

</mosaic_0001>

<bundles_post_ra>
// kernel: stem_forward.1
= control target key start
LH: loop header
LB: loop body
LE: loop exit
PB: predicated region body
PF: predicated region fallthrough
CT: control target
= control target key end

     0   :  { %s9783_s21 = smov 0   ;;  %s15006_s0 = inlined_call_operand.vmem [shape: f32[2,408,27], index: 0, kind: input, shape index: {}]   ;;  %s15007_s1 = inlined_call_operand.vmem [shape: f32[360,1], index: 1, kind: input, shape index: {}]   ;;  %s15008_s2 = inlined_call_operand.vmem [shape: f32[27,32], index: 2, kind: input, shape index: {}]   ;;  %s15009_s3 = inlined_call_operand.vmem [shape: f32[1,32], index: 3, kind: input, shape index: {}]   ;;  %s15010_s4 = inlined_call_operand.vmem [shape: f32[3,96,32], index: 4, kind: input, shape index: {}]   ;;  %s15011_s5 = inlined_call_operand.vmem [shape: f32[1,32], index: 5, kind: input, shape index: {}]   ;;  %s15012_s6 = inlined_call_operand.vmem [shape: f32[3,96,64], index: 6, kind: input, shape index: {}]   ;;  %s15013_s7 = inlined_call_operand.vmem [shape: f32[1,64], index: 7, kind: input, shape index: {}]   ;;  %s15014_s8 = inlined_call_operand.vmem [shape: f32[64,80], index: 8, kind: input, shape index: {}]   ;;  %s15015_s9 = inlined_call_operand.vmem [shape: f32[1,80], index: 9, kind: input, shape index: {}]   ;;  %s15016_s10 = inlined_call_operand.vmem [shape: f32[3,240,256], index: 10, kind: input, shape index: {}]   ;;  %s15017_s11 = inlined_call_operand.vmem [shape: f32[1,256], index: 11, kind: input, shape index: {}]   ;;  %s15018_s12 = inlined_call_operand.vmem [shape: f32[2,48,256], index: 12, kind: output, shape index: {}]  }
   0x1 LB: > { %s7119_s22 = sadd.s32 4294967295, %s9708_s21   ;;  %p7123_p0 = scmp.ge.s32.totalorder %s9708_s21, 1  ;;  %s9708_s21 = sphi %s9783_s21, %s22_s21  }
   0x2   : > { %p362_p1 = scmp.lt.s32.totalorder %s9708_s21, 3 }
   0x4   : > { %p363_p2 = pnand %p7123_p0, %p362_p1 }
   0x6   : > { %366 = sbr.rel (%p363_p2) target bundleno = 2169 (0x879), region = 68 }
   0xd   : > { %v465_v0 = vld [vmem:[%s15008_s2] sm:$0xff]  ;;  %v466_v1 = vld [vmem:[%s15008_s2 + $0x8] sm:$0xff]  ;;  %v467_v2 = vld [vmem:[%s15008_s2 + $0x10] sm:$0xff]  ;;  %vm630_vm0 = vcmask 1042432   ;;  %v15021_v3 = vmov 0.0|0.0   ;;  %p404_p3 = scmp.lt.s32.totalorder %s7119_s22, 1 }
   0xe   : > { %9308 = vmatprep.subr.bf16.mxu0 %v15021_v3  ;;  %v9309_v4 = vpack.c.bf16 %v466_v1, %v465_v0  ;;  %v468_v5 = vld [vmem:[%s15008_s2 + $0x18] sm:$0x7]  ;;  %9615 = vmatprep.subr.bf16.mxu1 %v15021_v3  ;;  %vm9711_vm1 = vmmov 0   ;;  %v15023_v6 = vmov 0.0   ;;  %vm9713_vm2 = vmmov 1   ;;  %v7179_v59 = vld [vmem:[%s15010_s4 + $0x60] sm:$0xff] }
   0xf   : > { %8122 = vmatprep.mubr.msk.f32.mxu0 %vm9711_vm1, %v15023_v6  ;;  %8236 = vmatprep.mubr.msk.f32.mxu1 %vm9711_vm1, %v15023_v6  ;;  %v9312_v7 = vpack.c.bf16 %v468_v5, %v467_v2  ;;  %s15197_s22 = smov (!%p404_p3, %s7119_s22), 1  ;;  %vm9313_vm3 = vmpackc.low %vm630_vm0, %vm9713_vm2  ;;  %vm476_vm4 = vcmask 220160   ;;  %v7180_v60 = vld [vmem:[%s15010_s4 + $0x68] sm:$0xff]  ;;  %v7181_v62 = vld [vmem:[%s15010_s4 + $0x70] sm:$0xff]  ;;  %vm1006_vm5 = vcmask 1046528   ;;  %s9714_s19 = smov 32  }
  0x10   : > { %9310 = vmatpush3.bf16.msra.mxu0 %v9309_v4  ;;  %9617 = vmatpush3.bf16.msra.mxu1 %v9309_v4  ;;  %s9679_s13 = smul.u32 408, %s15197_s22  ;;  %v9316_v61 = vpack.c.bf16 %v7180_v60, %v7179_v59  ;;  %v7182_v63 = vld [vmem:[%s15010_s4 + $0x78] sm:$0xff]  ;;  %v7183_v1 = vld [vmem:[%s15010_s4 + $0x80] sm:$0xff]  ;;  %v7184_v2 = vld [vmem:[%s15010_s4 + $0x88] sm:$0xff]  ;;  %vm1263_vm6 = vcmask 1045504   ;;  %s9715_s20 = smov 64  }
  0x11   : > { %9311 = vmatprep.subr.bf16.mxu0 %v15021_v3  ;;  %9616 = vmatprep.subr.bf16.mxu1 %v15021_v3  ;;  %v9319_v0 = vpack.c.bf16 %v7182_v63, %v7181_v62  ;;  %v9322_v4 = vpack.c.bf16 %v7184_v2, %v7183_v1  ;;  %v7185_v5 = vld [vmem:[%s15010_s4 + $0x90] sm:$0xff]  ;;  %vm1520_vm7 = vcmask 261120   ;;  %vm1572_vm8 = vcmask 523264   ;;  %s9717_s25 = smov 80   ;;  %s9680_s17 = smul.u32 96, %s15197_s22 }
  0x12   : > { %s9818_s16 = scalar_lea.vmem %s15006_s0, %s9679_s13  ;;  %vm1649_vm9 = vcmask 785408   ;;  %vm3143_vm10 = vcmask 1040384   ;;  %vm5825_vm11 = vcmask 1043456   ;;  %vm5932_vm12 = vcmask 654336  }
  0x13   : > { %v414_v8 = vld [vmem:[%s9818_s16] sm:$0xff]  ;;  %v415_v9 = vld [vmem:[%s9818_s16 + $0x8] sm:$0xff]  ;;  %v416_v10 = vld [vmem:[%s9818_s16 + $0x10] sm:$0xff]  ;;  %vm6096_vm13 = vcmask 916480  }
  0x14   : > { %9314 = vmatpush3.bf16.msk.msra.mxu0 %vm9313_vm3, %v9312_v7  ;;  %9618 = vmatpush3.bf16.msk.msra.mxu1 %vm9313_vm3, %v9312_v7  ;;  %v417_v11 = vld [vmem:[%s9818_s16 + $0x18] sm:$0xff]  ;;  %v418_v12 = vld [vmem:[%s9818_s16 + $0x20] sm:$0xff]  ;;  %v419_v13 = vld [vmem:[%s9818_s16 + $0x28] sm:$0xff] }
  0x15   : > { %9315 = vmatprep.subr.bf16.mxu1 %v15021_v3  ;;  %9351 = vmatprep.subr.bf16.mxu0 %v15021_v3  ;;  %v452_v14 = vld [vmem:[%s9818_s16 + $0x130] sm:$0xff]  ;;  %v453_v16 = vld [vmem:[%s9818_s16 + $0x138] sm:$0xff]  ;;  %v454_v18 = vld [vmem:[%s9818_s16 + $0x140] sm:$0xff] }
  0x16   : > { %v420_v15 = vld [vmem:[%s9818_s16 + $0x30] sm:$0xff]  ;;  %v421_v17 = vld [vmem:[%s9818_s16 + $0x38] sm:$0xff]  ;;  %v422_v19 = vld [vmem:[%s9818_s16 + $0x40] sm:$0xff] }
  0x17   : > { %8123 = vmatmul.mubr.msk.f32.vlgmr.msra.gmra.mrb[0].mxu0 %vm476_vm4, %v414_v8  ;;  %8237 = vmatmul.mubr.msk.f32.vlgmr.msra.gmra.mrb[0].mxu1 %vm476_vm4, %v452_v14  ;;  %v455_v20 = vld [vmem:[%s9818_s16 + $0x148] sm:$0xff]  ;;  %v456_v22 = vld [vmem:[%s9818_s16 + $0x150] sm:$0xff]  ;;  %v457_v24 = vld [vmem:[%s9818_s16 + $0x158] sm:$0xff] }
  0x18   : > { %8125 = vmatprep.mubr.msk.f32.mxu0 %vm9711_vm1, %v15023_v6  ;;  %8239 = vmatprep.mubr.msk.f32.mxu1 %vm9711_vm1, %v15023_v6  ;;  %v423_v21 = vld [vmem:[%s9818_s16 + $0x48] sm:$0xff]  ;;  %v424_v23 = vld [vmem:[%s9818_s16 + $0x50] sm:$0xff]  ;;  %v425_v25 = vld [vmem:[%s9818_s16 + $0x58] sm:$0xff] }
  0x19   : > { %v458_v26 = vld [vmem:[%s9818_s16 + $0x160] sm:$0xff]  ;;  %v459_v28 = vld [vmem:[%s9818_s16 + $0x168] sm:$0xff]  ;;  %v460_v30 = vld [vmem:[%s9818_s16 + $0x170] sm:$0xff]  ;;  %9317 = vmatpush3.bf16.msra.mxu1 %v9316_v61 }
  0x1a   : > { %v426_v27 = vld [vmem:[%s9818_s16 + $0x60] sm:$0xff]  ;;  %v427_v29 = vld [vmem:[%s9818_s16 + $0x68] sm:$0xff]  ;;  %v428_v31 = vld [vmem:[%s9818_s16 + $0x70] sm:$0xff]  ;;  %9318 = vmatprep.subr.bf16.mxu1 %v15021_v3 }
  0x1b   : > { %8126 = vmatmul.mubr.msk.f32.gmra.mrb[2].mxu0 %vm476_vm4, %v415_v9  ;;  %8240 = vmatmul.mubr.msk.f32.gmra.mrb[2].mxu1 %vm476_vm4, %v453_v16  ;;  %v461_v32 = vld [vmem:[%s9818_s16 + $0x178] sm:$0xff]  ;;  %v462_v34 = vld [vmem:[%s9818_s16 + $0x180] sm:$0xff]  ;;  %v463_v36 = vld [vmem:[%s9818_s16 + $0x188] sm:$0xff] }
  0x1c   : > { %8128 = vmatprep.mubr.msk.f32.mxu0 %vm9711_vm1, %v15023_v6  ;;  %8242 = vmatprep.mubr.msk.f32.mxu1 %vm9711_vm1, %v15023_v6  ;;  %v429_v33 = vld [vmem:[%s9818_s16 + $0x78] sm:$0xff]  ;;  %v430_v35 = vld [vmem:[%s9818_s16 + $0x80] sm:$0xff]  ;;  %v431_v37 = vld [vmem:[%s9818_s16 + $0x88] sm:$0xff] }
  0x1d   : > { %v432_v38 = vld [vmem:[%s9818_s16 + $0x90] sm:$0xff]  ;;  %v433_v39 = vld [vmem:[%s9818_s16 + $0x98] sm:$0xff]  ;;  %v434_v40 = vld [vmem:[%s9818_s16 + $0xa0] sm:$0xff]  ;;  %9320 = vmatpush3.bf16.msra.mxu1 %v9319_v0 }
  0x1e   : > { %v435_v41 = vld [vmem:[%s9818_s16 + $0xa8] sm:$0xff]  ;;  %v436_v42 = vld [vmem:[%s9818_s16 + $0xb0] sm:$0xff]  ;;  %v437_v43 = vld [vmem:[%s9818_s16 + $0xb8] sm:$0xff]  ;;  %9321 = vmatprep.subr.bf16.mxu1 %v15021_v3 }
  0x1f   : > { %8129 = vmatmul.mubr.msk.f32.gmra.mrb[4].mxu0 %vm476_vm4, %v416_v10  ;;  %8243 = vmatmul.mubr.msk.f32.gmra.mrb[4].mxu1 %vm476_vm4, %v454_v18  ;;  %v438_v44 = vld [vmem:[%s9818_s16 + $0xc0] sm:$0xff]  ;;  %v464_v45 = vld [vmem:[%s9818_s16 + $0x190] sm:$0xff]  ;;  %v439_v46 = vld [vmem:[%s9818_s16 + $0xc8] sm:$0xff] }
  0x20   : > { %8131 = vmatprep.mubr.msk.f32.mxu0 %vm9711_vm1, %v15023_v6  ;;  %8245 = vmatprep.mubr.msk.f32.mxu1 %vm9711_vm1, %v15023_v6  ;;  %v440_v47 = vld [vmem:[%s9818_s16 + $0xd0] sm:$0xff]  ;;  %v441_v48 = vld [vmem:[%s9818_s16 + $0xd8] sm:$0xff]  ;;  %v442_v49 = vld [vmem:[%s9818_s16 + $0xe0] sm:$0xff] }
  0x21   : > { %v443_v50 = vld [vmem:[%s9818_s16 + $0xe8] sm:$0xff]  ;;  %v444_v51 = vld [vmem:[%s9818_s16 + $0xf0] sm:$0xff]  ;;  %v445_v52 = vld [vmem:[%s9818_s16 + $0xf8] sm:$0xff]  ;;  %9323 = vmatpush3.bf16.msra.mxu1 %v9322_v4 }
  0x22   : > { %v446_v53 = vld [vmem:[%s9818_s16 + $0x100] sm:$0xff]  ;;  %v447_v54 = vld [vmem:[%s9818_s16 + $0x108] sm:$0xff]  ;;  %v448_v55 = vld [vmem:[%s9818_s16 + $0x110] sm:$0xff]  ;;  %9324 = vmatprep.subr.bf16.mxu1 %v15021_v3 }
  0x23   : > { %8132 = vmatmul.mubr.msk.f32.gmra.mrb[6].mxu0 %vm476_vm4, %v417_v11  ;;  %8246 = vmatmul.mubr.msk.f32.gmra.mrb[6].mxu1 %vm476_vm4, %v455_v20  ;;  %v449_v56 = vld [vmem:[%s9818_s16 + $0x118] sm:$0xff]  ;;  %v450_v57 = vld [vmem:[%s9818_s16 + $0x120] sm:$0xff]  ;;  %v451_v58 = vld [vmem:[%s9818_s16 + $0x128] sm:$0xff] }
  0x24   : > { %8134 = vmatprep.mubr.msk.f32.mxu0 %vm9711_vm1, %v15023_v6  ;;  %8248 = vmatprep.mubr.msk.f32.mxu1 %vm9711_vm1, %v15023_v6  ;;  %v7186_v7 = vld [vmem:[%s15010_s4 + $0x98] sm:$0xff]  ;;  %v7187_v9 = vld [vmem:[%s15010_s4 + $0xa0] sm:$0xff]  ;;  %v7188_v10 = vld [vmem:[%s15010_s4 + $0xa8] sm:$0xff] }
  0x25   : > { %v9325_v8 = vpack.c.bf16 %v7186_v7, %v7185_v5  ;;  %v9328_v11 = vpack.c.bf16 %v7188_v10, %v7187_v9  ;;  %v7282_v14 = vld [vmem:[%s15010_s4 + $0xc8] sm:$0xff]  ;;  %v7283_v18 = vld [vmem:[%s15010_s4 + $0xd0] sm:$0xff] }
  0x27   : > { %8135 = vmatmul.mubr.msk.f32.gmra.mrb[8].mxu0 %vm476_vm4, %v418_v12  ;;  %8249 = vmatmul.mubr.msk.f32.gmra.mrb[8].mxu1 %vm476_vm4, %v456_v22  ;;  %v7190_v22 = vld [vmem:[%s15010_s4 + $0xb8] sm:$0xff] }
  0x28   : > { %8137 = vmatprep.mubr.msk.f32.mxu0 %vm9711_vm1, %v15023_v6  ;;  %8251 = vmatprep.mubr.msk.f32.mxu1 %vm9711_vm1, %v15023_v6 }
  0x29   : > { %9326 = vmatpush3.bf16.msra.mxu1 %v9325_v8 }
  0x2a   : > { %9327 = vmatprep.subr.bf16.mxu1 %v15021_v3 }
  0x2b   : > { %8138 = vmatmul.mubr.msk.f32.gmra.mrb[10].mxu0 %vm476_vm4, %v419_v13  ;;  %8252 = vmatmul.mubr.msk.f32.gmra.mrb[10].mxu1 %vm476_vm4, %v457_v24  ;;  %v7281_v13 = vld [vmem:[%s15010_s4 + $0xc0] sm:$0xff] }
  0x2c   : > { %8140 = vmatprep.mubr.msk.f32.mxu0 %vm9711_vm1, %v15023_v6  ;;  %8254 = vmatprep.mubr.msk.f32.mxu1 %vm9711_vm1, %v15023_v6  ;;  %v9352_v16 = vpack.c.bf16 %v7282_v14, %v7281_v13 }
  0x2d   : > { %9329 = vmatpush3.bf16.msra.mxu1 %v9328_v11 }
  0x2e   : > { %9330 = vmatprep.subr.bf16.mxu1 %v15021_v3  ;;  %9353 = vmatpush3.bf16.msra.mxu0 %v9352_v16 }
  0x2f   : > { %8141 = vmatmul.mubr.msk.f32.gmra.mrb[12].mxu0 %vm476_vm4, %v420_v15  ;;  %8255 = vmatmul.mubr.msk.f32.gmra.mrb[12].mxu1 %vm476_vm4, %v458_v26  ;;  %v7285_v26 = vld [vmem:[%s15010_s4 + $0xe0] sm:$0xff] }
  0x30   : > { %8143 = vmatprep.mubr.msk.f32.mxu0 %vm9711_vm1, %v15023_v6  ;;  %8257 = vmatprep.mubr.msk.f32.mxu1 %vm9711_vm1, %v15023_v6 }
  0x31   : > { %9354 = vmatprep.subr.bf16.mxu0 %v15021_v3 }
  0x33   : > { %8144 = vmatmul.mubr.msk.f32.gmra.mrb[14].mxu0 %vm476_vm4, %v421_v17  ;;  %8258 = vmatmul.mubr.msk.f32.gmra.mrb[14].mxu1 %vm476_vm4, %v459_v28 }
  0x34   : > { %8146 = vmatprep.mubr.msk.f32.mxu0 %vm9711_vm1, %v15023_v6  ;;  %8260 = vmatprep.mubr.msk.f32.mxu1 %vm9711_vm1, %v15023_v6 }
  0x37   : > { %8147 = vmatmul.mubr.msk.f32.gmra.mrb[16].mxu0 %vm476_vm4, %v422_v19  ;;  %8261 = vmatmul.mubr.msk.f32.gmra.mrb[16].mxu1 %vm476_vm4, %v460_v30  ;;  %v7284_v19 = vld [vmem:[%s15010_s4 + $0xd8] sm:$0xff] }
  0x38   : > { %8149 = vmatprep.mubr.msk.f32.mxu0 %vm9711_vm1, %v15023_v6  ;;  %8263 = vmatprep.mubr.msk.f32.mxu1 %vm9711_vm1, %v15023_v6 }
  0x3b   : > { %8150 = vmatmul.mubr.msk.f32.gmra.mrb[18].mxu0 %vm476_vm4, %v423_v21  ;;  %8264 = vmatmul.mubr.msk.f32.gmra.mrb[18].mxu1 %vm476_vm4, %v461_v32  ;;  %v7189_v21 = vld [vmem:[%s15010_s4 + $0xb0] sm:$0xff] }
  0x3c   : > { %8152 = vmatprep.mubr.msk.f32.mxu0 %vm9711_vm1, %v15023_v6  ;;  %8266 = vmatprep.mubr.msk.f32.mxu1 %vm9711_vm1, %v15023_v6  ;;  %v9331_v24 = vpack.c.bf16 %v7190_v22, %v7189_v21  ;;  %v7287_v32 = vld [vmem:[%s15010_s4 + $0xf0] sm:$0xff] }
  0x3e   : > { %9332 = vmatpush3.bf16.msra.mxu1 %v9331_v24 }
  0x3f   : > { %8153 = vmatmul.mubr.msk.f32.gmra.mrb[20].mxu0 %vm476_vm4, %v424_v23  ;;  %8267 = vmatmul.mubr.msk.f32.gmra.mrb[20].mxu1 %vm476_vm4, %v462_v34  ;;  %v9355_v23 = vpack.c.bf16 %v7284_v19, %v7283_v18  ;;  %v10104_v34 = vld [vmem:[%s15009_s3] ss:$0 sm:$0xff] }
  0x40   : > { %8155 = vmatprep.mubr.msk.f32.mxu0 %vm9711_vm1, %v15023_v6  ;;  %8269 = vmatprep.mubr.msk.f32.mxu1 %vm9711_vm1, %v15023_v6 }
  0x41   : > { %9356 = vmatpush3.bf16.msra.mxu0 %v9355_v23  ;;  %9333 = vmatprep.subr.bf16.mxu1 %v15021_v3 }
  0x42   : > { %9357 = vmatprep.subr.bf16.mxu0 %v15021_v3 }
  0x43   : > { %8156 = vmatmul.mubr.msk.f32.gmra.mrb[22].mxu0 %vm476_vm4, %v425_v25  ;;  %8270 = vmatmul.mubr.msk.f32.gmra.mrb[22].mxu1 %vm476_vm4, %v463_v36 }
  0x44   : > { %8158 = vmatprep.mubr.msk.f32.mxu0 %vm9711_vm1, %v15023_v6  ;;  %8272 = vmatprep.mubr.msk.f32.mxu1 %vm9711_vm1, %v15023_v6 }
  0x47   : > { %8159 = vmatmul.mubr.msk.f32.gmra.mrb[24].mxu0 %vm476_vm4, %v426_v27  ;;  %8273 = vmatmul.mubr.msk.f32.gmra.mrb[24].mxu1 %vm476_vm4, %v464_v45  ;;  %v7286_v27 = vld [vmem:[%s15010_s4 + $0xe8] sm:$0xff] }
  0x48   : > { %8161 = vmatprep.mubr.msk.f32.mxu0 %vm9711_vm1, %v15023_v6  ;;  %8299 = vmatprep.mubr.msk.f32.mxu1 %vm9711_vm1, %v15023_v6 }
  0x4b   : > { %8162 = vmatmul.mubr.msk.f32.gmra.mrb[26].mxu0 %vm476_vm4, %v427_v29  ;;  %v9358_v29 = vpack.c.bf16 %v7286_v27, %v7285_v26 }
  0x4c   : > { %8164 = vmatprep.mubr.msk.f32.mxu0 %vm9711_vm1, %v15023_v6 }
  0x4d   : > { %9359 = vmatpush3.bf16.msra.mxu0 %v9358_v29 }
  0x4e   : > { %9360 = vmatprep.subr.bf16.mxu0 %v15021_v3 }
  0x4f   : > { %8165 = vmatmul.mubr.msk.f32.gmra.mrb[28].mxu0 %vm476_vm4, %v428_v31 }
  0x50   : > { %8167 = vmatprep.mubr.msk.f32.mxu0 %vm9711_vm1, %v15023_v6 }
  0x53   : > { %8168 = vmatmul.mubr.msk.f32.gmra.mrb[30].mxu0 %vm476_vm4, %v429_v33  ;;  %v7288_v33 = vld [vmem:[%s15010_s4 + $0xf8] sm:$0xff] }
  0x54   : > { %8170 = vmatprep.mubr.msk.f32.mxu0 %vm9711_vm1, %v15023_v6 }
  0x57   : > { %8171 = vmatmul.mubr.msk.f32.gmra.mrb[32].mxu0 %vm476_vm4, %v430_v35  ;;  %v9361_v35 = vpack.c.bf16 %v7288_v33, %v7287_v32 }
  0x58   : > { %8173 = vmatprep.mubr.msk.f32.mxu0 %vm9711_vm1, %v15023_v6 }
  0x59   : > { %9362 = vmatpush3.bf16.msra.mxu0 %v9361_v35 }
  0x5a   : > { %9363 = vmatprep.subr.bf16.mxu0 %v15021_v3 }
  0x5b   : > { %8174 = vmatmul.mubr.msk.f32.gmra.mrb[34].mxu0 %vm476_vm4, %v431_v37 }
  0x5c   : > { %8176 = vmatprep.mubr.msk.f32.mxu0 %vm9711_vm1, %v15023_v6 }
  0x5f   : > { %8177 = vmatmul.mubr.msk.f32.gmra.mrb[36].mxu0 %vm476_vm4, %v432_v38 }
  0x60   : > { %8179 = vmatprep.mubr.msk.f32.mxu0 %vm9711_vm1, %v15023_v6 }
  0x63   : > { %8180 = vmatmul.mubr.msk.f32.gmra.mrb[38].mxu0 %vm476_vm4, %v433_v39 }
  0x64   : > { %8182 = vmatprep.mubr.msk.f32.mxu0 %vm9711_vm1, %v15023_v6 }
  0x67   : > { %8183 = vmatmul.mubr.msk.f32.gmra.mrb[40].mxu0 %vm476_vm4, %v434_v40  ;;  %v7289_v40 = vld [vmem:[%s15010_s4 + $0x100] sm:$0xff] }
  0x68   : > { %8185 = vmatprep.mubr.msk.f32.mxu0 %vm9711_vm1, %v15023_v6 }
  0x6b   : > { %8186 = vmatmul.mubr.msk.f32.gmra.mrb[42].mxu0 %vm476_vm4, %v435_v41  ;;  %v7290_v41 = vld [vmem:[%s15010_s4 + $0x108] sm:$0xff] }
  0x6c   : > { %8188 = vmatprep.mubr.msk.f32.mxu0 %vm9711_vm1, %v15023_v6 }
  0x6f   : > { %8189 = vmatmul.mubr.msk.f32.gmra.mrb[44].mxu0 %vm476_vm4, %v436_v42  ;;  %v9364_v42 = vpack.c.bf16 %v7290_v41, %v7289_v40 }
  0x70   : > { %8191 = vmatprep.mubr.msk.f32.mxu0 %vm9711_vm1, %v15023_v6 }
  0x71   : > { %9365 = vmatpush3.bf16.msra.mxu0 %v9364_v42 }
  0x72   : > { %9366 = vmatprep.subr.bf16.mxu0 %v15021_v3 }
  0x73   : > { %8192 = vmatmul.mubr.msk.f32.gmra.mrb[46].mxu0 %vm476_vm4, %v437_v43 }
  0x74   : > { %8194 = vmatprep.mubr.msk.f32.mxu0 %vm9711_vm1, %v15023_v6 }
  0x77   : > { %8195 = vmatmul.mubr.msk.f32.gmra.mrb[48].mxu0 %vm476_vm4, %v438_v44 }
  0x78   : > { %8197 = vmatprep.mubr.msk.f32.mxu0 %vm9711_vm1, %v15023_v6 }
  0x7b   : > { %8198 = vmatmul.mubr.msk.f32.gmra.mrb[50].mxu0 %vm476_vm4, %v439_v46 }
  0x7c   : > { %8200 = vmatprep.mubr.msk.f32.mxu0 %vm9711_vm1, %v15023_v6 }
  0x7f   : > { %8201 = vmatmul.mubr.msk.f32.gmra.mrb[52].mxu0 %vm476_vm4, %v440_v47 }
  0x80   : > { %8203 = vmatprep.mubr.msk.f32.mxu0 %vm9711_vm1, %v15023_v6 }
  0x83   : > { %8204 = vmatmul.mubr.msk.f32.gmra.mrb[54].mxu0 %vm476_vm4, %v441_v48 }
  0x84   : > { %8206 = vmatprep.mubr.msk.f32.mxu0 %vm9711_vm1, %v15023_v6 }
  0x87   : > { %8207 = vmatmul.mubr.msk.f32.gmra.mrb[56].mxu0 %vm476_vm4, %v442_v49 }
  0x88   : > { %8209 = vmatprep.mubr.msk.f32.mxu0 %vm9711_vm1, %v15023_v6 }
  0x8b   : > { %8210 = vmatmul.mubr.msk.f32.gmra.mrb[58].mxu0 %vm476_vm4, %v443_v50  ;;  %v7291_v50 = vld [vmem:[%s15010_s4 + $0x110] sm:$0xff] }
  0x8c   : > { %8212 = vmatprep.mubr.msk.f32.mxu0 %vm9711_vm1, %v15023_v6 }
  0x8f   : > { %8213 = vmatmul.mubr.msk.f32.gmra.mrb[60].mxu0 %vm476_vm4, %v444_v51  ;;  %v7292_v51 = vld [vmem:[%s15010_s4 + $0x118] sm:$0xff] }
  0x90   : > { %8215 = vmatprep.mubr.msk.f32.mxu0 %vm9711_vm1, %v15023_v6 }
  0x93   : > { %8216 = vmatmul.mubr.msk.f32.gmra.mrb[62].mxu0 %vm476_vm4, %v445_v52  ;;  %v9367_v52 = vpack.c.bf16 %v7292_v51, %v7291_v50 }
  0x94   : > { %8218 = vmatprep.mubr.msk.f32.mxu0 %vm9711_vm1, %v15023_v6 }
  0x95   : > { %9368 = vmatpush3.bf16.msra.mxu0 %v9367_v52 }
  0x96   : > { %9387 = vmatprep.subr.bf16.mxu0 %v15021_v3 }
  0x97   : > { %8219 = vmatmul.mubr.msk.f32.gmra.mrb[64].mxu0 %vm476_vm4, %v446_v53 }
  0x98   : > { %8221 = vmatprep.mubr.msk.f32.mxu0 %vm9711_vm1, %v15023_v6 }
  0x9b   : > { %8222 = vmatmul.mubr.msk.f32.gmra.mrb[66].mxu0 %vm476_vm4, %v447_v54 }
  0x9c   : > { %8224 = vmatprep.mubr.msk.f32.mxu0 %vm9711_vm1, %v15023_v6 }
  0x9f   : > { %8225 = vmatmul.mubr.msk.f32.gmra.mrb[68].mxu0 %vm476_vm4, %v448_v55 }
  0xa0   : > { %8227 = vmatprep.mubr.msk.f32.mxu0 %vm9711_vm1, %v15023_v6 }
  0xa3   : > { %8228 = vmatmul.mubr.msk.f32.gmra.mrb[70].mxu0 %vm476_vm4, %v449_v56 }
  0xa4   : > { %8230 = vmatprep.mubr.msk.f32.mxu0 %vm9711_vm1, %v15023_v6 }
  0xa7   : > { %8231 = vmatmul.mubr.msk.f32.gmra.mrb[72].mxu0 %vm476_vm4, %v450_v57 }
  0xa8   : > { %8233 = vmatprep.mubr.msk.f32.mxu0 %vm9711_vm1, %v15023_v6 }
  0xab   : > { %8234 = vmatmul.mubr.msk.f32.gmra.mrb[74].mxu0 %vm476_vm4, %v451_v58 }
  0xac   : > { %8617 = vmatprep.mubr.msk.f32.mxu0 %vm9711_vm1, %v15023_v6 }
  0xea   : > { %v10060_v12 = vpop.f32.mrb[0].mxu0  ;;  %v10138_v56 = vpop.f32.mrb[0].mxu1 }
  0xeb   : > { %v8124_v15 = vpop.f32.mrb[1].mxu0  ;;  %v8238_v62 = vpop.f32.mrb[1].mxu1 }
  0xee   : > { %v10069_v17 = vpop.f32.mrb[2].mxu0  ;;  %v10152_v0 = vpop.f32.mrb[2].mxu1 }
  0xef   : > { %v8127_v20 = vpop.f32.mrb[3].mxu0  ;;  %v8241_v2 = vpop.f32.mrb[3].mxu1 }
  0xf2   : > { %v10084_v25 = vpop.f32.mrb[4].mxu0  ;;  %v10163_v11 = vpop.f32.mrb[4].mxu1 }
  0xf3   : > { %v8130_v28 = vpop.f32.mrb[5].mxu0  ;;  %v8244_v14 = vpop.f32.mrb[5].mxu1 }
  0xf6   : > { %v715_v30 = vpop.f32.mrb[6].mxu0  ;;  %v10174_v22 = vpop.f32.mrb[6].mxu1 }
  0xf7   : > { %v8133_v31 = vpop.f32.mrb[7].mxu0  ;;  %v10107_v36 = vadd.f32 %v10104_v34, %v715_v30  ;;  %v8247_v24 = vpop.f32.mrb[7].mxu1 }
  0xf9   : > { %v15020_v43 = vrot.slane %v10107_v36, 1  ;;  %v15019_v53 = vrot.slane %v10107_v36, 2 }
  0xfa   : > { %v720_v37 = vpop.f32.mrb[8].mxu0  ;;  %v10185_v32 = vpop.f32.mrb[8].mxu1 }
  0xfb   : > { %v10110_v38 = vadd.f32 %v10104_v34, %v720_v37  ;;  %v8136_v39 = vpop.f32.mrb[9].mxu0  ;;  %v8250_v35 = vpop.f32.mrb[9].mxu1 }
  0xfd   : > { %v1014_v44 = vrot.slane %v10110_v38, 1  ;;  %v1271_v49 = vrot.slane %v10110_v38, 2 }
  0xfe   : > { %v725_v45 = vpop.f32.mrb[10].mxu0 }
  0xff   : > { %v10122_v46 = vadd.f32 %v10104_v34, %v725_v45  ;;  %v8139_v47 = vpop.f32.mrb[11].mxu0  ;;  %v1015_v48 = vsel %vm1006_vm5, %v15020_v43, %v1014_v44  ;;  %v1272_v58 = vsel %vm1263_vm6, %v15019_v53, %v1271_v49  ;;  %v10196_v45 = vpop.f32.mrb[10].mxu1 }
 0x100   : > { %1116 = vrot.lane.b32.xlu0 %v1015_v48, %s9714_s19  ;;  %v8253_v48 = vpop.f32.mrb[11].mxu1 }
 0x101   : > { %v1016_v54 = vrot.slane %v10122_v46, 1  ;;  %v1273_v61 = vrot.slane %v10122_v46, 2 }
 0x102   : > { %v730_v55 = vpop.f32.mrb[12].mxu0 }
 0x103   : > { %v10141_v57 = vadd.f32 %v10104_v34, %v730_v55  ;;  %v1017_v59 = vsel %vm1006_vm5, %v1014_v44, %v1016_v54  ;;  %v8142_v60 = vpop.f32.mrb[13].mxu0  ;;  %v1274_v5 = vsel %vm1263_vm6, %v1271_v49, %v1273_v61 }
 0x104   : > { %1373 = vrot.lane.b32.xlu0 %v1272_v58, %s9715_s20  ;;  %1118 = vrot.lane.b32.xlu1 %v1017_v59, %s9714_s19  ;;  %v10207_v58 = vpop.f32.mrb[12].mxu1 }
 0x105   : > { %v1018_v63 = vrot.slane %v10141_v57, 1  ;;  %v1275_v9 = vrot.slane %v10141_v57, 2  ;;  %v8256_v60 = vpop.f32.mrb[13].mxu1 }
 0x106   : > { %v735_v1 = vpop.f32.mrb[14].mxu0 }
 0x107   : > { %v10155_v4 = vadd.f32 %v10104_v34, %v735_v1  ;;  %v1019_v7 = vsel %vm1006_vm5, %v1016_v54, %v1018_v63  ;;  %v8145_v8 = vpop.f32.mrb[15].mxu0  ;;  %v1276_v16 = vsel %vm1263_vm6, %v1273_v61, %v1275_v9 }
 0x108   : > { %1375 = vrot.lane.b32.xlu1 %v1274_v5, %s9715_s20  ;;  %1120 = vrot.lane.b32.xlu0 %v1019_v7, %s9714_s19  ;;  %v10218_v7 = vpop.f32.mrb[14].mxu1 }
 0x109   : > { %v1020_v10 = vrot.slane %v10155_v4, 1  ;;  %v1277_v20 = vrot.slane %v10155_v4, 2 }
 0x10a   : > { %v740_v13 = vpop.f32.mrb[16].mxu0 }
 0x10b   : > { %v10166_v15 = vadd.f32 %v10104_v34, %v740_v13  ;;  %v1021_v18 = vsel %vm1006_vm5, %v1018_v63, %v1020_v10  ;;  %v8148_v19 = vpop.f32.mrb[17].mxu0  ;;  %v1278_v27 = vsel %vm1263_vm6, %v1275_v9, %v1277_v20  ;;  %v8259_v9 = vpop.f32.mrb[15].mxu1 }
 0x10c   : > { %1377 = vrot.lane.b32.xlu1 %v1276_v16, %s9715_s20  ;;  %1122 = vrot.lane.b32.xlu0 %v1021_v18, %s9714_s19 }
 0x10d   : > { %v1022_v21 = vrot.slane %v10166_v15, 1  ;;  %v1279_v30 = vrot.slane %v10166_v15, 2 }
 0x10e   : > { %v745_v23 = vpop.f32.mrb[18].mxu0 }
 0x10f   : > { %v10177_v26 = vadd.f32 %v10104_v34, %v745_v23  ;;  %v1023_v28 = vsel %vm1006_vm5, %v1020_v10, %v1022_v21  ;;  %v8151_v29 = vpop.f32.mrb[19].mxu0  ;;  %v1280_v39 = vsel %vm1263_vm6, %v1277_v20, %v1279_v30  ;;  %v10229_v20 = vpop.f32.mrb[16].mxu1 }
 0x110   : > { %1379 = vrot.lane.b32.xlu1 %v1278_v27, %s9715_s20  ;;  %1124 = vrot.lane.b32.xlu0 %v1023_v28, %s9714_s19  ;;  %v8262_v23 = vpop.f32.mrb[17].mxu1 }
 0x111   : > { %v1024_v31 = vrot.slane %v10177_v26, 1  ;;  %v1281_v42 = vrot.slane %v10177_v26, 2 }
 0x112   : > { %v750_v33 = vpop.f32.mrb[20].mxu0 }
 0x113   : > { %v10188_v37 = vadd.f32 %v10104_v34, %v750_v33  ;;  %v1025_v40 = vsel %vm1006_vm5, %v1022_v21, %v1024_v31  ;;  %v8154_v41 = vpop.f32.mrb[21].mxu0  ;;  %v1282_v50 = vsel %vm1263_vm6, %v1279_v30, %v1281_v42  ;;  %v10240_v33 = vpop.f32.mrb[18].mxu1 }
 0x114   : > { %1381 = vrot.lane.b32.xlu1 %v1280_v39, %s9715_s20  ;;  %1126 = vrot.lane.b32.xlu0 %v1025_v40, %s9714_s19  ;;  %v8265_v39 = vpop.f32.mrb[19].mxu1 }
 0x115   : > { %v1026_v44 = vrot.slane %v10188_v37, 1  ;;  %v1283_v54 = vrot.slane %v10188_v37, 2 }
 0x116   : > { %v755_v47 = vpop.f32.mrb[22].mxu0 }
 0x117   : > { %v10199_v49 = vadd.f32 %v10104_v34, %v755_v47  ;;  %v1027_v51 = vsel %vm1006_vm5, %v1024_v31, %v1026_v44  ;;  %v8157_v52 = vpop.f32.mrb[23].mxu0  ;;  %v1284_v62 = vsel %vm1263_vm6, %v1281_v42, %v1283_v54 }
 0x118   : > { %1383 = vrot.lane.b32.xlu1 %v1282_v50, %s9715_s20  ;;  %1128 = vrot.lane.b32.xlu0 %v1027_v51, %s9714_s19  ;;  %v10251_v50 = vpop.f32.mrb[20].mxu1 }
 0x119   : > { %v1028_v55 = vrot.slane %v10199_v49, 1  ;;  %v1285_v2 = vrot.slane %v10199_v49, 2  ;;  %v8268_v52 = vpop.f32.mrb[21].mxu1 }
 0x11a   : > { %v760_v59 = vpop.f32.mrb[24].mxu0 }
 0x11b   : > { %v10210_v61 = vadd.f32 %v10104_v34, %v760_v59  ;;  %v1029_v63 = vsel %vm1006_vm5, %v1026_v44, %v1028_v55  ;;  %v8160_v1 = vpop.f32.mrb[25].mxu0  ;;  %v1286_v13 = vsel %vm1263_vm6, %v1283_v54, %v1285_v2 }
 0x11c   : > { %1385 = vrot.lane.b32.xlu1 %v1284_v62, %s9715_s20  ;;  %1130 = vrot.lane.b32.xlu0 %v1029_v63, %s9714_s19  ;;  %v10262_v1 = vpop.f32.mrb[22].mxu1 }
 0x11d   : > { %v1030_v5 = vrot.slane %v10210_v61, 1  ;;  %v1287_v18 = vrot.slane %v10210_v61, 2 }
 0x11e   : > { %v765_v8 = vpop.f32.mrb[26].mxu0 }
 0x11f   : > { %v10221_v10 = vadd.f32 %v10104_v34, %v765_v8  ;;  %v1031_v14 = vsel %vm1006_vm5, %v1028_v55, %v1030_v5  ;;  %v8163_v16 = vpop.f32.mrb[27].mxu0  ;;  %v1288_v27 = vsel %vm1263_vm6, %v1285_v2, %v1287_v18 }
 0x120   : > { %1387 = vrot.lane.b32.xlu1 %v1286_v13, %s9715_s20  ;;  %1132 = vrot.lane.b32.xlu0 %v1031_v14, %s9714_s19 }
 0x121   : > { %v1032_v19 = vrot.slane %v10221_v10, 1  ;;  %v1289_v30 = vrot.slane %v10221_v10, 2 }
 0x122   : > { %v770_v21 = vpop.f32.mrb[28].mxu0 }
 0x123   : > { %v10232_v24 = vadd.f32 %v10104_v34, %v770_v21  ;;  %v1033_v28 = vsel %vm1006_vm5, %v1030_v5, %v1032_v19  ;;  %v8166_v29 = vpop.f32.mrb[29].mxu0  ;;  %v1290_v41 = vsel %vm1263_vm6, %v1287_v18, %v1289_v30  ;;  %v8271_v5 = vpop.f32.mrb[23].mxu1 }
 0x124   : > { %1389 = vrot.lane.b32.xlu1 %v1288_v27, %s9715_s20  ;;  %1134 = vrot.lane.b32.xlu0 %v1033_v28, %s9714_s19 }
 0x125   : > { %v1034_v31 = vrot.slane %v10232_v24, 1  ;;  %v1291_v47 = vrot.slane %v10232_v24, 2 }
 0x126   : > { %v775_v35 = vpop.f32.mrb[30].mxu0 }
 0x127   : > { %v10243_v40 = vadd.f32 %v10104_v34, %v775_v35  ;;  %v1035_v42 = vsel %vm1006_vm5, %v1032_v19, %v1034_v31  ;;  %v8169_v44 = vpop.f32.mrb[31].mxu0  ;;  %v1292_v55 = vsel %vm1263_vm6, %v1289_v30, %v1291_v47 }
 0x128   : > { %1391 = vrot.lane.b32.xlu1 %v1290_v41, %s9715_s20  ;;  %1136 = vrot.lane.b32.xlu0 %v1035_v42, %s9714_s19 }
 0x129   : > { %v1036_v48 = vrot.slane %v10243_v40, 1  ;;  %v1293_v62 = vrot.slane %v10243_v40, 2 }
 0x12a   : > { %v780_v51 = vpop.f32.mrb[32].mxu0 }
 0x12b   : > { %v10254_v54 = vadd.f32 %v10104_v34, %v780_v51  ;;  %v1037_v59 = vsel %vm1006_vm5, %v1034_v31, %v1036_v48  ;;  %v8172_v60 = vpop.f32.mrb[33].mxu0  ;;  %v1294_v9 = vsel %vm1263_vm6, %v1291_v47, %v1293_v62 }
 0x12c   : > { %1393 = vrot.lane.b32.xlu1 %v1292_v55, %s9715_s20  ;;  %1138 = vrot.lane.b32.xlu0 %v1037_v59, %s9714_s19 }
 0x12d   : > { %v1038_v63 = vrot.slane %v10254_v54, 1  ;;  %v1295_v16 = vrot.slane %v10254_v54, 2 }
 0x12e   : > { %v785_v2 = vpop.f32.mrb[34].mxu0 }
 0x12f   : > { %v10265_v8 = vadd.f32 %v10104_v34, %v785_v2  ;;  %v1039_v13 = vsel %vm1006_vm5, %v1036_v48, %v1038_v63  ;;  %v8175_v14 = vpop.f32.mrb[35].mxu0  ;;  %v1296_v23 = vsel %vm1263_vm6, %v1293_v62, %v1295_v16 }
 0x130   : > { %1395 = vrot.lane.b32.xlu1 %v1294_v9, %s9715_s20  ;;  %1140 = vrot.lane.b32.xlu0 %v1039_v13, %s9714_s19 }
 0x131   : > { %v1040_v18 = vrot.slane %v10265_v8, 1  ;;  %v1297_v29 = vrot.slane %v10265_v8, 2 }
 0x132   : > { %v790_v19 = vpop.f32.mrb[36].mxu0 }
 0x133   : > { %v10274_v21 = vadd.f32 %v10104_v34, %v790_v19  ;;  %v1041_v27 = vsel %vm1006_vm5, %v1038_v63, %v1040_v18  ;;  %v8178_v28 = vpop.f32.mrb[37].mxu0  ;;  %v1298_v39 = vsel %vm1263_vm6, %v1295_v16, %v1297_v29 }
 0x134   : > { %1397 = vrot.lane.b32.xlu1 %v1296_v23, %s9715_s20  ;;  %1142 = vrot.lane.b32.xlu0 %v1041_v27, %s9714_s19 }
 0x135   : > { %v1042_v30 = vrot.slane %v10274_v21, 1  ;;  %v1299_v44 = vrot.slane %v10274_v21, 2 }
 0x136   : > { %v795_v31 = vpop.f32.mrb[38].mxu0 }
 0x137   : > { %v10283_v35 = vadd.f32 %v10104_v34, %v795_v31  ;;  %v1043_v41 = vsel %vm1006_vm5, %v1040_v18, %v1042_v30  ;;  %v8181_v42 = vpop.f32.mrb[39].mxu0  ;;  %v1300_v52 = vsel %vm1263_vm6, %v1297_v29, %v1299_v44 }
 0x138   : > { %1399 = vrot.lane.b32.xlu1 %v1298_v39, %s9715_s20  ;;  %1144 = vrot.lane.b32.xlu0 %v1043_v41, %s9714_s19 }
 0x139   : > { %v1044_v47 = vrot.slane %v10283_v35, 1  ;;  %v1301_v60 = vrot.slane %v10283_v35, 2 }
 0x13a   : > { %v800_v48 = vpop.f32.mrb[40].mxu0 }
 0x13b   : > { %v10292_v51 = vadd.f32 %v10104_v34, %v800_v48  ;;  %v1045_v55 = vsel %vm1006_vm5, %v1042_v30, %v1044_v47  ;;  %v8184_v59 = vpop.f32.mrb[41].mxu0  ;;  %v1302_v5 = vsel %vm1263_vm6, %v1299_v44, %v1301_v60 }
 0x13c   : > { %1401 = vrot.lane.b32.xlu1 %v1300_v52, %s9715_s20  ;;  %1146 = vrot.lane.b32.xlu0 %v1045_v55, %s9714_s19 }
 0x13d   : > { %v1046_v62 = vrot.slane %v10292_v51, 1  ;;  %v1303_v14 = vrot.slane %v10292_v51, 2 }
 0x13e   : > { %v805_v63 = vpop.f32.mrb[42].mxu0 }
 0x13f   : > { %v10301_v2 = vadd.f32 %v10104_v34, %v805_v63  ;;  %v1047_v9 = vsel %vm1006_vm5, %v1044_v47, %v1046_v62  ;;  %v8187_v13 = vpop.f32.mrb[43].mxu0  ;;  %v1304_v23 = vsel %vm1263_vm6, %v1301_v60, %v1303_v14 }
 0x140   : > { %1403 = vrot.lane.b32.xlu1 %v1302_v5, %s9715_s20  ;;  %1148 = vrot.lane.b32.xlu0 %v1047_v9, %s9714_s19  ;;  %v10333_v5 = vpop.f32.mrb[24].mxu1 }
 0x141   : > { %v1048_v16 = vrot.slane %v10301_v2, 1  ;;  %v1305_v29 = vrot.slane %v10301_v2, 2  ;;  %v8274_v9 = vpop.f32.mrb[25].mxu1 }
 0x142   : > { %v810_v18 = vpop.f32.mrb[44].mxu0 }
 0x143   : > { %v10310_v19 = vadd.f32 %v10104_v34, %v810_v18  ;;  %v1049_v27 = vsel %vm1006_vm5, %v1046_v62, %v1048_v16  ;;  %v8190_v28 = vpop.f32.mrb[45].mxu0  ;;  %v1306_v41 = vsel %vm1263_vm6, %v1303_v14, %v1305_v29 }
 0x144   : > { %1405 = vrot.lane.b32.xlu1 %v1304_v23, %s9715_s20  ;;  %1150 = vrot.lane.b32.xlu0 %v1049_v27, %s9714_s19 }
 0x145   : > { %v1050_v30 = vrot.slane %v10310_v19, 1  ;;  %v1307_v47 = vrot.slane %v10310_v19, 2 }
 0x146   : > { %v815_v31 = vpop.f32.mrb[46].mxu0 }
 0x147   : > { %v10319_v39 = vadd.f32 %v10104_v34, %v815_v31  ;;  %v1051_v42 = vsel %vm1006_vm5, %v1048_v16, %v1050_v30  ;;  %v8193_v44 = vpop.f32.mrb[47].mxu0  ;;  %v1308_v59 = vsel %vm1263_vm6, %v1305_v29, %v1307_v47 }
 0x148   : > { %1407 = vrot.lane.b32.xlu1 %v1306_v41, %s9715_s20  ;;  %1152 = vrot.lane.b32.xlu0 %v1051_v42, %s9714_s19 }
 0x149   : > { %v1052_v48 = vrot.slane %v10319_v39, 1  ;;  %v1309_v63 = vrot.slane %v10319_v39, 2 }
 0x14a   : > { %v820_v52 = vpop.f32.mrb[48].mxu0 }
 0x14b   : > { %v10328_v55 = vadd.f32 %v10104_v34, %v820_v52  ;;  %v1053_v60 = vsel %vm1006_vm5, %v1050_v30, %v1052_v48  ;;  %v8196_v62 = vpop.f32.mrb[49].mxu0  ;;  %v1310_v18 = vsel %vm1263_vm6, %v1307_v47, %v1309_v63 }
 0x14c   : > { %1409 = vrot.lane.b32.xlu1 %v1308_v59, %s9715_s20  ;;  %1154 = vrot.lane.b32.xlu0 %v1053_v60, %s9714_s19 }
 0x14d   : > { %v1054_v13 = vrot.slane %v10328_v55, 1  ;;  %v1311_v28 = vrot.slane %v10328_v55, 2 }
 0x14e   : > { %v825_v14 = vpop.f32.mrb[50].mxu0 }
 0x14f   : > { %v10339_v16 = vadd.f32 %v10104_v34, %v825_v14  ;;  %v1055_v23 = vsel %vm1006_vm5, %v1052_v48, %v1054_v13  ;;  %v8199_v27 = vpop.f32.mrb[51].mxu0  ;;  %v1312_v41 = vsel %vm1263_vm6, %v1309_v63, %v1311_v28 }
 0x150   : > { %1411 = vrot.lane.b32.xlu1 %v1310_v18, %s9715_s20  ;;  %1156 = vrot.lane.b32.xlu0 %v1055_v23, %s9714_s19 }
 0x151   : > { %v1056_v29 = vrot.slane %v10339_v16, 1  ;;  %v1313_v47 = vrot.slane %v10339_v16, 2 }
 0x152   : > { %v830_v30 = vpop.f32.mrb[52].mxu0 }
 0x153   : > { %v10348_v31 = vadd.f32 %v10104_v34, %v830_v30  ;;  %v1057_v42 = vsel %vm1006_vm5, %v1054_v13, %v1056_v29  ;;  %v8202_v44 = vpop.f32.mrb[53].mxu0  ;;  %v1314_v60 = vsel %vm1263_vm6, %v1311_v28, %v1313_v47 }
 0x154   : > { %1413 = vrot.lane.b32.xlu1 %v1312_v41, %s9715_s20  ;;  %1158 = vrot.lane.b32.xlu0 %v1057_v42, %s9714_s19 }
 0x155   : > { %v1058_v48 = vrot.slane %v10348_v31, 1  ;;  %v1315_v9 = vrot.slane %v10348_v31, 2 }
 0x156   : > { %v835_v52 = vpop.f32.mrb[54].mxu0 }
 0x157   : > { %v10357_v59 = vadd.f32 %v10104_v34, %v835_v52  ;;  %v1059_v62 = vsel %vm1006_vm5, %v1056_v29, %v1058_v48  ;;  %v8205_v63 = vpop.f32.mrb[55].mxu0  ;;  %v1316_v23 = vsel %vm1263_vm6, %v1313_v47, %v1315_v9 }
 0x158   : > { %1415 = vrot.lane.b32.xlu1 %v1314_v60, %s9715_s20  ;;  %1160 = vrot.lane.b32.xlu0 %v1059_v62, %s9714_s19 }
 0x159   : > { %v1060_v13 = vrot.slane %v10357_v59, 1  ;;  %v1317_v29 = vrot.slane %v10357_v59, 2 }
 0x15a   : > { %v840_v14 = vpop.f32.mrb[56].mxu0 }
 0x15b   : > { %v10366_v18 = vadd.f32 %v10104_v34, %v840_v14  ;;  %v1061_v27 = vsel %vm1006_vm5, %v1058_v48, %v1060_v13  ;;  %v8208_v28 = vpop.f32.mrb[57].mxu0  ;;  %v1318_v44 = vsel %vm1263_vm6, %v1315_v9, %v1317_v29 }
 0x15c   : > { %1417 = vrot.lane.b32.xlu1 %v1316_v23, %s9715_s20  ;;  %1162 = vrot.lane.b32.xlu0 %v1061_v27, %s9714_s19 }
 0x15d   : > { %v1062_v30 = vrot.slane %v10366_v18, 1  ;;  %v1319_v48 = vrot.slane %v10366_v18, 2 }
 0x15e   : > { %v845_v41 = vpop.f32.mrb[58].mxu0 }
 0x15f   : > { %v10375_v42 = vadd.f32 %v10104_v34, %v845_v41  ;;  %v1063_v52 = vsel %vm1006_vm5, %v1060_v13, %v1062_v30  ;;  %v8211_v47 = vpop.f32.mrb[59].mxu0  ;;  %v1320_v14 = vsel %vm1263_vm6, %v1317_v29, %v1319_v48 }
 0x160   : > { %1419 = vrot.lane.b32.xlu1 %v1318_v44, %s9715_s20  ;;  %1164 = vrot.lane.b32.xlu0 %v1063_v52, %s9714_s19 }
 0x161   : > { %v1064_v60 = vrot.slane %v10375_v42, 1  ;;  %v1321_v13 = vrot.slane %v10375_v42, 2 }
 0x162   : > { %v850_v62 = vpop.f32.mrb[60].mxu0 }
 0x163   : > { %v10384_v63 = vadd.f32 %v10104_v34, %v850_v62  ;;  %v1065_v23 = vsel %vm1006_vm5, %v1062_v30, %v1064_v60  ;;  %v8214_v9 = vpop.f32.mrb[61].mxu0  ;;  %v1322_v44 = vsel %vm1263_vm6, %v1319_v48, %v1321_v13 }
 0x164   : > { %1421 = vrot.lane.b32.xlu1 %v1320_v14, %s9715_s20  ;;  %1166 = vrot.lane.b32.xlu0 %v1065_v23, %s9714_s19 }
 0x165   : > { %v1066_v27 = vrot.slane %v10384_v63, 1  ;;  %v1323_v30 = vrot.slane %v10384_v63, 2 }
 0x166   : > { %v855_v28 = vpop.f32.mrb[62].mxu0 }
 0x167   : > { %v10393_v41 = vadd.f32 %v10104_v34, %v855_v28  ;;  %v1067_v52 = vsel %vm1006_vm5, %v1064_v60, %v1066_v27  ;;  %v8217_v29 = vpop.f32.mrb[63].mxu0  ;;  %v1324_v23 = vsel %vm1263_vm6, %v1321_v13, %v1323_v30 }
 0x168   : > { %1423 = vrot.lane.b32.xlu1 %v1322_v44, %s9715_s20  ;;  %1168 = vrot.lane.b32.xlu0 %v1067_v52, %s9714_s19 }
 0x169   : > { %15051 = vst [vmem:[#allocation2_spill] sm:$0xff] %v10393_v41  ;;  %v1068_v47 = vrot.slane %v10393_v41, 1  ;;  %v1325_v60 = vrot.slane %v10393_v41, 2 }
 0x16a   : > { %v860_v62 = vpop.f32.mrb[64].mxu0 }
 0x16b   : > { %v10402_v14 = vadd.f32 %v10104_v34, %v860_v62  ;;  %v1069_v9 = vsel %vm1006_vm5, %v1066_v27, %v1068_v47  ;;  %v8220_v48 = vpop.f32.mrb[65].mxu0  ;;  %v1326_v29 = vsel %vm1263_vm6, %v1323_v30, %v1325_v60  ;;  %v1625_v30 = vld [vmem:[%s15010_s4 + $0x8] sm:$0xff] }
 0x16c   : > { %1425 = vrot.lane.b32.xlu1 %v1324_v23, %s9715_s20  ;;  %1170 = vrot.lane.b32.xlu0 %v1069_v9, %s9714_s19 }
 0x16d   : > { %15052 = vst [vmem:[#allocation3_spill] sm:$0xff] %v10402_v14  ;;  %v1070_v28 = vrot.slane %v10402_v14, 1  ;;  %v1327_v27 = vrot.slane %v10402_v14, 2 }
 0x16e   : > { %v865_v44 = vpop.f32.mrb[66].mxu0 }
 0x16f   : > { %v10411_v52 = vadd.f32 %v10104_v34, %v865_v44  ;;  %v1071_v62 = vsel %vm1006_vm5, %v1068_v47, %v1070_v28  ;;  %v8223_v13 = vpop.f32.mrb[67].mxu0  ;;  %v1624_v44 = vld [vmem:[%s15010_s4] sm:$0xff] }
 0x170   : > { %1427 = vrot.lane.b32.xlu1 %v1326_v29, %s9715_s20  ;;  %1172 = vrot.lane.b32.xlu0 %v1071_v62, %s9714_s19  ;;  %v1328_v29 = vsel %vm1263_vm6, %v1325_v60, %v1327_v27  ;;  %v9334_v43 = vpack.c.bf16 %v1625_v30, %v1624_v44  ;;  %v1626_v44 = vld [vmem:[%s15010_s4 + $0x10] sm:$0xff] }
 0x171   : > { %15053 = vst [vmem:[#allocation4_spill] sm:$0xff] %v10411_v52  ;;  %v1072_v23 = vrot.slane %v10411_v52, 1  ;;  %v1329_v53 = vrot.slane %v10411_v52, 2  ;;  %v15057_v52 = vmov 0.0|0.0  }
 0x172   : > { %v1117_v9 = vpop.permute.xlu0 %1116  ;;  %v870_v48 = vpop.f32.mrb[68].mxu0 }
 0x173   : > { %v10426_v47 = vadd.f32 %v10104_v34, %v870_v48  ;;  %v1073_v62 = vsel %vm1006_vm5, %v1070_v28, %v1072_v23  ;;  %v8226_v13 = vpop.f32.mrb[69].mxu0  ;;  %v1524_v48 = vsel %vm1520_vm7, %v10107_v36, %v1117_v9  ;;  %v1627_v9 = vld [vmem:[%s15010_s4 + $0x18] sm:$0xff] }
 0x174   : > { %1429 = vrot.lane.b32.xlu1 %v1328_v29, %s9715_s20  ;;  %1174 = vrot.lane.b32.xlu0 %v1073_v62, %s9714_s19  ;;  %v1330_v13 = vsel %vm1263_vm6, %v1327_v27, %v1329_v53  ;;  %v9337_v41 = vpack.c.bf16 %v1627_v9, %v1626_v44 }
 0x175   : > { %15054 = vst [vmem:[#allocation5_spill] sm:$0xff] %v10426_v47  ;;  %v1074_v3 = vrot.slane %v10426_v47, 1  ;;  %v1331_v62 = vrot.slane %v10426_v47, 2  ;;  %v15056_v47 = vmov 0.0  }
 0x176   : > { %v1374_v6 = vpop.permute.xlu0 %1373  ;;  %v1119_v14 = vpop.permute.xlu1 %1118 }
 0x177   : > { %v10437_v60 = vsel %vm1572_vm8, %v1524_v48, %v1374_v6  ;;  %v875_v28 = vpop.f32.mrb[70].mxu0  ;;  %v1075_v29 = vsel %vm1006_vm5, %v1072_v23, %v1074_v3  ;;  %v1525_v27 = vsel %vm1520_vm7, %v10110_v38, %v1119_v14  ;;  %v1628_v38 = vld [vmem:[%s15010_s4 + $0x20] sm:$0xff]  ;;  %v1629_v14 = vld [vmem:[%s15010_s4 + $0x28] sm:$0xff] }
 0x178   : > { %15055 = vst [vmem:[#allocation6_spill] sm:$0xff] %v10437_v60  ;;  %v10449_v30 = vadd.f32 %v10104_v34, %v875_v28  ;;  %8300 = vmatmul.mubr.msk.f32.vlgmr.msra.gmra.mrb[26].mxu1 %vm1649_vm9, %v10437_v60  ;;  %1431 = vrot.lane.b32.xlu1 %v1330_v13, %s9715_s20  ;;  %v8229_v6 = vpop.f32.mrb[71].mxu0 }
 0x179   : > { %9335 = vmatpush3.bf16.msra.mxu1 %v9334_v43  ;;  %1176 = vrot.lane.b32.xlu0 %v1075_v29, %s9714_s19  ;;  %v1332_v43 = vsel %vm1263_vm6, %v1329_v53, %v1331_v62 }
 0x17a   : > { %v1376_v23 = vpop.permute.xlu1 %1375  ;;  %v1121_v48 = vpop.permute.xlu0 %1120  ;;  %8302 = vmatprep.mubr.msk.f32.mxu1 %vm9711_vm1, %v15056_v47  ;;  %v1076_v28 = vrot.slane %v10449_v30, 1  ;;  %9336 = vmatprep.subr.bf16.mxu1 %v15057_v52  ;;  %v1333_v29 = vrot.slane %v10449_v30, 2 }
 0x17b   : > { %v10462_v60 = vsel %vm1572_vm8, %v1525_v27, %v1376_v23  ;;  %v880_v13 = vpop.f32.mrb[72].mxu0  ;;  %v1526_v9 = vsel %vm1520_vm7, %v10122_v46, %v1121_v48 }
 0x17c   : > { %15058 = vst [vmem:[#allocation7_spill] sm:$0xff] %v10462_v60  ;;  %v10473_v6 = vadd.f32 %v10104_v34, %v880_v13  ;;  %8303 = vmatmul.mubr.msk.f32.gmra.mrb[28].mxu1 %vm1649_vm9, %v10462_v60  ;;  %1433 = vrot.lane.b32.xlu1 %v1332_v43, %s9715_s20  ;;  %v1077_v53 = vsel %vm1006_vm5, %v1074_v3, %v1076_v28  ;;  %v8232_v44 = vpop.f32.mrb[73].mxu0 }
 0x17d   : > { %1178 = vrot.lane.b32.xlu0 %v1077_v53, %s9714_s19  ;;  %8305 = vmatprep.mubr.msk.f32.mxu1 %vm9711_vm1, %v15056_v47  ;;  %v10487_v60 = vadd.f32 %v10104_v34, %v10138_v56  ;;  %v9340_v43 = vpack.c.bf16 %v1629_v14, %v1628_v38  ;;  %v1334_v44 = vsel %vm1263_vm6, %v1331_v62, %v1333_v29  ;;  %v1630_v38 = vld [vmem:[%s15010_s4 + $0x30] sm:$0xff]  ;;  %v1631_v62 = vld [vmem:[%s15010_s4 + $0x38] sm:$0xff] }
 0x17e   : > { %v1078_v27 = vrot.slane %v10473_v6, 1  ;;  %v1378_v23 = vpop.permute.xlu1 %1377  ;;  %v1123_v13 = vpop.permute.xlu0 %1122  ;;  %9338 = vmatpush3.bf16.msra.mxu1 %v9337_v41  ;;  %v1335_v46 = vrot.slane %v10473_v6, 2 }
 0x17f   : > { %v10490_v3 = vsel %vm1572_vm8, %v1526_v9, %v1378_v23  ;;  %v885_v53 = vpop.f32.mrb[74].mxu0  ;;  %9339 = vmatprep.subr.bf16.mxu1 %v15057_v52  ;;  %v1527_v14 = vsel %vm1520_vm7, %v10141_v57, %v1123_v13 }
 0x180   : > { %15059 = vst [vmem:[#allocation8_spill] sm:$0xff] %v10490_v3  ;;  %v10496_v48 = vadd.f32 %v10104_v34, %v885_v53  ;;  %8306 = vmatmul.mubr.msk.f32.gmra.mrb[30].mxu1 %vm1649_vm9, %v10490_v3  ;;  %1435 = vrot.lane.b32.xlu1 %v1334_v44, %s9715_s20  ;;  %v1079_v56 = vsel %vm1006_vm5, %v1076_v28, %v1078_v27  ;;  %v8235_v41 = vpop.f32.mrb[75].mxu0  ;;  %v1082_v44 = vrot.slane %v10487_v60, 1 }
 0x181   : > { %1180 = vrot.lane.b32.xlu0 %v1079_v56, %s9714_s19  ;;  %8308 = vmatprep.mubr.msk.f32.mxu1 %vm9711_vm1, %v15056_v47  ;;  %v10516_v53 = vadd.f32 %v10104_v34, %v10152_v0  ;;  %v9343_v56 = vpack.c.bf16 %v1631_v62, %v1630_v38  ;;  %v1336_v57 = vsel %vm1263_vm6, %v1333_v29, %v1335_v46 }
 0x182   : > { %v1080_v9 = vrot.slane %v10496_v48, 1  ;;  %v1380_v28 = vpop.permute.xlu1 %1379  ;;  %v1125_v23 = vpop.permute.xlu0 %1124  ;;  %9341 = vmatpush3.bf16.msra.mxu1 %v9340_v43  ;;  %v1337_v3 = vrot.slane %v10496_v48, 2  ;;  %v10541_v29 = vadd.f32 %v10104_v34, %v10163_v11  ;;  %v1632_v11 = vld [vmem:[%s15010_s4 + $0x40] sm:$0xff] }
 0x183   : > { %v10520_v41 = vsel %vm1572_vm8, %v1527_v14, %v1380_v28  ;;  %9342 = vmatprep.subr.bf16.mxu1 %v15057_v52  ;;  %v1528_v13 = vsel %vm1520_vm7, %v10155_v4, %v1125_v23  ;;  %v1633_v28 = vld [vmem:[%s15010_s4 + $0x48] sm:$0xff] }
 0x184   : > { %8309 = vmatmul.mubr.msk.f32.gmra.mrb[32].mxu1 %vm1649_vm9, %v10520_v41  ;;  %8618 = vmatmul.mubr.msk.f32.vlgmr.msra.gmra.mrb[76].mxu0 %vm1649_vm9, %v10520_v41  ;;  %v1081_v0 = vsel %vm1006_vm5, %v1078_v27, %v1080_v9  ;;  %v1083_v62 = vsel %vm1006_vm5, %v1080_v9, %v1082_v44  ;;  %v1084_v27 = vrot.slane %v10516_v53, 1  ;;  %v1338_v4 = vsel %vm1263_vm6, %v1335_v46, %v1337_v3 }
 0x185   : > { %1437 = vrot.lane.b32.xlu1 %v1336_v57, %s9715_s20  ;;  %1182 = vrot.lane.b32.xlu0 %v1081_v0, %s9714_s19  ;;  %v1339_v9 = vrot.slane %v10487_v60, 2  ;;  %v10570_v0 = vadd.f32 %v10104_v34, %v10174_v22 }
 0x186   : > { %v1382_v43 = vpop.permute.xlu1 %1381  ;;  %v1127_v38 = vpop.permute.xlu0 %1126  ;;  %8311 = vmatprep.mubr.msk.f32.mxu1 %vm9711_vm1, %v15056_v47  ;;  %8620 = vmatprep.mubr.msk.f32.mxu0 %vm9711_vm1, %v15056_v47  ;;  %v1085_v46 = vsel %vm1006_vm5, %v1082_v44, %v1084_v27 }
 0x187   : > { %v10545_v14 = vsel %vm1572_vm8, %v1528_v13, %v1382_v43  ;;  %9344 = vmatpush3.bf16.msra.mxu1 %v9343_v56  ;;  %v1529_v23 = vsel %vm1520_vm7, %v10166_v15, %v1127_v38  ;;  %v1086_v13 = vrot.slane %v10541_v29, 1  ;;  %v9346_v15 = vpack.c.bf16 %v1633_v28, %v1632_v11 }
 0x188   : > { %8312 = vmatmul.mubr.msk.f32.gmra.mrb[34].mxu1 %vm1649_vm9, %v10545_v14  ;;  %8621 = vmatmul.mubr.msk.f32.gmra.mrb[78].mxu0 %vm1649_vm9, %v10545_v14  ;;  %v1340_v44 = vsel %vm1263_vm6, %v1337_v3, %v1339_v9  ;;  %v1341_v38 = vrot.slane %v10516_v53, 2  ;;  %v10594_v3 = vadd.f32 %v10104_v34, %v10185_v32  ;;  %v1088_v28 = vrot.slane %v10570_v0, 1  ;;  %v1634_v32 = vld [vmem:[%s15010_s4 + $0x50] sm:$0xff] }
 0x189   : > { %1439 = vrot.lane.b32.xlu1 %v1338_v4, %s9715_s20  ;;  %1184 = vrot.lane.b32.xlu0 %v1083_v62, %s9714_s19  ;;  %v1087_v11 = vsel %vm1006_vm5, %v1084_v27, %v1086_v13  ;;  %v1343_v27 = vrot.slane %v10541_v29, 2 }
 0x18a   : > { %v1384_v56 = vpop.permute.xlu1 %1383  ;;  %v1129_v57 = vpop.permute.xlu0 %1128  ;;  %8314 = vmatprep.mubr.msk.f32.mxu1 %vm9711_vm1, %v15056_v47  ;;  %8623 = vmatprep.mubr.msk.f32.mxu0 %vm9711_vm1, %v15056_v47 }
 0x18b   : > { %v10574_v43 = vsel %vm1572_vm8, %v1529_v23, %v1384_v56  ;;  %9345 = vmatprep.subr.bf16.mxu1 %v15057_v52  ;;  %v1530_v22 = vsel %vm1520_vm7, %v10177_v26, %v1129_v57  ;;  %v1342_v26 = vsel %vm1263_vm6, %v1339_v9, %v1341_v38  ;;  %v1635_v56 = vld [vmem:[%s15010_s4 + $0x58] sm:$0xff]  ;;  %v1089_v9 = vsel %vm1006_vm5, %v1086_v13, %v1088_v28 }
 0x18c   : > { %8315 = vmatmul.mubr.msk.f32.gmra.mrb[36].mxu1 %vm1649_vm9, %v10574_v43  ;;  %8624 = vmatmul.mubr.msk.f32.gmra.mrb[80].mxu0 %vm1649_vm9, %v10574_v43  ;;  %v1344_v13 = vsel %vm1263_vm6, %v1341_v38, %v1343_v27  ;;  %v10647_v38 = vadd.f32 %v10104_v34, %v10207_v58 }
 0x18d   : > { %1441 = vrot.lane.b32.xlu1 %v1340_v44, %s9715_s20  ;;  %1186 = vrot.lane.b32.xlu0 %v1085_v46, %s9714_s19  ;;  %v10623_v44 = vadd.f32 %v10104_v34, %v10196_v45 }
 0x18e   : > { %v1386_v62 = vpop.permute.xlu1 %1385  ;;  %v1131_v4 = vpop.permute.xlu0 %1130  ;;  %8317 = vmatprep.mubr.msk.f32.mxu1 %vm9711_vm1, %v15056_v47  ;;  %8626 = vmatprep.mubr.msk.f32.mxu0 %vm9711_vm1, %v15056_v47 }
 0x18f   : > { %v10598_v23 = vsel %vm1572_vm8, %v1530_v22, %v1386_v62  ;;  %9347 = vmatpush3.bf16.msra.mxu1 %v9346_v15  ;;  %v1531_v57 = vsel %vm1520_vm7, %v10188_v37, %v1131_v4  ;;  %v1090_v22 = vrot.slane %v10594_v3, 1  ;;  %v9349_v37 = vpack.c.bf16 %v1635_v56, %v1634_v32 }
 0x190   : > { %8318 = vmatmul.mubr.msk.f32.gmra.mrb[38].mxu1 %vm1649_vm9, %v10598_v23  ;;  %8627 = vmatmul.mubr.msk.f32.gmra.mrb[82].mxu0 %vm1649_vm9, %v10598_v23  ;;  %v1345_v4 = vrot.slane %v10570_v0, 2  ;;  %v1092_v56 = vrot.slane %v10623_v44, 1 }
 0x191   : > { %1443 = vrot.lane.b32.xlu1 %v1342_v26, %s9715_s20  ;;  %1188 = vrot.lane.b32.xlu0 %v1087_v11, %s9714_s19  ;;  %v1091_v32 = vsel %vm1006_vm5, %v1088_v28, %v1090_v22  ;;  %v1347_v28 = vrot.slane %v10594_v3, 2 }
 0x192   : > { %v1388_v46 = vpop.permute.xlu1 %1387  ;;  %v1133_v15 = vpop.permute.xlu0 %1132  ;;  %8320 = vmatprep.mubr.msk.f32.mxu1 %vm9711_vm1, %v15056_v47  ;;  %8629 = vmatprep.mubr.msk.f32.mxu0 %vm9711_vm1, %v15056_v47 }
 0x193   : > { %v10627_v62 = vsel %vm1572_vm8, %v1531_v57, %v1388_v46  ;;  %9348 = vmatprep.subr.bf16.mxu1 %v15057_v52  ;;  %v1532_v45 = vsel %vm1520_vm7, %v10199_v49, %v1133_v15  ;;  %v1346_v49 = vsel %vm1263_vm6, %v1343_v27, %v1345_v4  ;;  %v10670_v27 = vadd.f32 %v10104_v34, %v10218_v7 }
 0x194   : > { %8321 = vmatmul.mubr.msk.f32.gmra.mrb[40].mxu1 %vm1649_vm9, %v10627_v62  ;;  %8630 = vmatmul.mubr.msk.f32.gmra.mrb[84].mxu0 %vm1649_vm9, %v10627_v62 }
 0x195   : > { %1445 = vrot.lane.b32.xlu1 %v1344_v13, %s9715_s20  ;;  %1190 = vrot.lane.b32.xlu0 %v1089_v9, %s9714_s19  ;;  %v1093_v9 = vsel %vm1006_vm5, %v1090_v22, %v1092_v56  ;;  %v1349_v22 = vrot.slane %v10623_v44, 2 }
 0x196   : > { %v1390_v11 = vpop.permute.xlu1 %1389  ;;  %v1135_v26 = vpop.permute.xlu0 %1134  ;;  %8323 = vmatprep.mubr.msk.f32.mxu1 %vm9711_vm1, %v15056_v47  ;;  %8632 = vmatprep.mubr.msk.f32.mxu0 %vm9711_vm1, %v15056_v47 }
 0x197   : > { %v10651_v57 = vsel %vm1572_vm8, %v1532_v45, %v1390_v11  ;;  %9350 = vmatpush3.bf16.msra.mxu1 %v9349_v37  ;;  %v1533_v58 = vsel %vm1520_vm7, %v10210_v61, %v1135_v26  ;;  %v1094_v37 = vrot.slane %v10647_v38, 1  ;;  %v1348_v61 = vsel %vm1263_vm6, %v1345_v4, %v1347_v28 }
 0x198   : > { %8324 = vmatmul.mubr.msk.f32.gmra.mrb[42].mxu1 %vm1649_vm9, %v10651_v57  ;;  %8633 = vmatmul.mubr.msk.f32.gmra.mrb[86].mxu0 %vm1649_vm9, %v10651_v57  ;;  %v10694_v4 = vadd.f32 %v10104_v34, %v10229_v20 }
 0x199   : > { %1447 = vrot.lane.b32.xlu1 %v1346_v49, %s9715_s20  ;;  %1192 = vrot.lane.b32.xlu0 %v1091_v32, %s9714_s19  ;;  %v1095_v26 = vsel %vm1006_vm5, %v1092_v56, %v1094_v37  ;;  %v1096_v32 = vrot.slane %v10670_v27, 1 }
 0x19a   : > { %v1392_v46 = vpop.permute.xlu1 %1391  ;;  %v1137_v15 = vpop.permute.xlu0 %1136  ;;  %8326 = vmatprep.mubr.msk.f32.mxu1 %vm9711_vm1, %v15056_v47  ;;  %8635 = vmatprep.mubr.msk.f32.mxu0 %vm9711_vm1, %v15056_v47 }
 0x19b   : > { %v10674_v13 = vsel %vm1572_vm8, %v1533_v58, %v1392_v46  ;;  %9369 = vmatprep.subr.bf16.mxu1 %v15057_v52  ;;  %v1534_v7 = vsel %vm1520_vm7, %v10221_v10, %v1137_v15  ;;  %v1350_v10 = vsel %vm1263_vm6, %v1347_v28, %v1349_v22  ;;  %v1351_v58 = vrot.slane %v10647_v38, 2  ;;  %v10718_v28 = vld [vmem:[%s15009_s3] ss:$0 sm:$0xff] }
 0x19c   : > { %8327 = vmatmul.mubr.msk.f32.gmra.mrb[44].mxu1 %vm1649_vm9, %v10674_v13  ;;  %8636 = vmatmul.mubr.msk.f32.gmra.mrb[88].mxu0 %vm1649_vm9, %v10674_v13  ;;  %v1097_v46 = vsel %vm1006_vm5, %v1094_v37, %v1096_v32  ;;  %v10722_v15 = vadd.f32 %v10718_v28, %v10240_v33 }
 0x19d   : > { %1449 = vrot.lane.b32.xlu1 %v1348_v61, %s9715_s20  ;;  %1194 = vrot.lane.b32.xlu0 %v1093_v9, %s9714_s19  ;;  %v1352_v37 = vsel %vm1263_vm6, %v1349_v22, %v1351_v58  ;;  %v1353_v61 = vrot.slane %v10670_v27, 2  ;;  %v10745_v22 = vadd.f32 %v10718_v28, %v10251_v50 }
 0x19e   : > { %v1394_v45 = vpop.permute.xlu1 %1393  ;;  %v1139_v11 = vpop.permute.xlu0 %1138  ;;  %8329 = vmatprep.mubr.msk.f32.mxu1 %vm9711_vm1, %v15056_v47  ;;  %8638 = vmatprep.mubr.msk.f32.mxu0 %vm9711_vm1, %v15056_v47 }
 0x19f   : > { %v10698_v49 = vsel %vm1572_vm8, %v1534_v7, %v1394_v45  ;;  %v1535_v34 = vsel %vm1520_vm7, %v10232_v24, %v1139_v11  ;;  %v1098_v24 = vrot.slane %v10694_v4, 1 }
 0x1a0   : > { %8330 = vmatmul.mubr.msk.f32.gmra.mrb[46].mxu1 %vm1649_vm9, %v10698_v49  ;;  %8639 = vmatmul.mubr.msk.f32.gmra.mrb[90].mxu0 %vm1649_vm9, %v10698_v49 }
 0x1a1   : > { %1451 = vrot.lane.b32.xlu1 %v1350_v10, %s9715_s20  ;;  %1196 = vrot.lane.b32.xlu0 %v1095_v26, %s9714_s19  ;;  %v1099_v11 = vsel %vm1006_vm5, %v1096_v32, %v1098_v24  ;;  %v1100_v26 = vrot.slane %v10722_v15, 1 }
 0x1a2   : > { %v1396_v20 = vpop.permute.xlu1 %1395  ;;  %v1141_v56 = vpop.permute.xlu0 %1140  ;;  %8332 = vmatprep.mubr.msk.f32.mxu1 %vm9711_vm1, %v15056_v47  ;;  %8641 = vmatprep.mubr.msk.f32.mxu0 %vm9711_vm1, %v15056_v47 }
 0x1a3   : > { %v10726_v9 = vsel %vm1572_vm8, %v1535_v34, %v1396_v20  ;;  %v1536_v33 = vsel %vm1520_vm7, %v10243_v40, %v1141_v56  ;;  %v1354_v40 = vsel %vm1263_vm6, %v1351_v58, %v1353_v61  ;;  %v1355_v34 = vrot.slane %v10694_v4, 2 }
 0x1a4   : > { %8333 = vmatmul.mubr.msk.f32.gmra.mrb[48].mxu1 %vm1649_vm9, %v10726_v9  ;;  %8642 = vmatmul.mubr.msk.f32.gmra.mrb[92].mxu0 %vm1649_vm9, %v10726_v9  ;;  %v1101_v56 = vsel %vm1006_vm5, %v1098_v24, %v1100_v26  ;;  %v1102_v58 = vrot.slane %v10745_v22, 1  ;;  %v10784_v24 = vadd.f32 %v10718_v28, %v10060_v12  ;;  %v10800_v12 = vadd.f32 %v10718_v28, %v10084_v25 }
 0x1a5   : > { %1453 = vrot.lane.b32.xlu1 %v1352_v37, %s9715_s20  ;;  %1198 = vrot.lane.b32.xlu0 %v1097_v46, %s9714_s19  ;;  %v10772_v37 = vadd.f32 %v10718_v28, %v10069_v17 }
 0x1a6   : > { %v1398_v7 = vpop.permute.xlu1 %1397  ;;  %v1143_v45 = vpop.permute.xlu0 %1142  ;;  %8335 = vmatprep.mubr.msk.f32.mxu1 %vm9711_vm1, %v15056_v47  ;;  %8644 = vmatprep.mubr.msk.f32.mxu0 %vm9711_vm1, %v15056_v47 }
 0x1a7   : > { %v10749_v10 = vsel %vm1572_vm8, %v1536_v33, %v1398_v7  ;;  %v1537_v50 = vsel %vm1520_vm7, %v10254_v54, %v1143_v45  ;;  %v1356_v54 = vsel %vm1263_vm6, %v1353_v61, %v1355_v34  ;;  %v1357_v33 = vrot.slane %v10722_v15, 2 }
 0x1a8   : > { %8336 = vmatmul.mubr.msk.f32.gmra.mrb[50].mxu1 %vm1649_vm9, %v10749_v10  ;;  %8645 = vmatmul.mubr.msk.f32.gmra.mrb[94].mxu0 %vm1649_vm9, %v10749_v10  ;;  %v1103_v61 = vsel %vm1006_vm5, %v1100_v26, %v1102_v58 }
 0x1a9   : > { %1455 = vrot.lane.b32.xlu1 %v1354_v40, %s9715_s20  ;;  %1200 = vrot.lane.b32.xlu0 %v1099_v11, %s9714_s19  ;;  %v1359_v40 = vrot.slane %v10745_v22, 2 }
 0x1aa   : > { %v1400_v32 = vpop.permute.xlu1 %1399  ;;  %v1145_v20 = vpop.permute.xlu0 %1144  ;;  %8338 = vmatprep.mubr.msk.f32.mxu1 %vm9711_vm1, %v15056_v47  ;;  %8647 = vmatprep.mubr.msk.f32.mxu0 %vm9711_vm1, %v15056_v47 }
 0x1ab   : > { %v10768_v46 = vsel %vm1572_vm8, %v1537_v50, %v1400_v32  ;;  %v1538_v17 = vsel %vm1520_vm7, %v10265_v8, %v1145_v20  ;;  %v1358_v8 = vsel %vm1263_vm6, %v1355_v34, %v1357_v33  ;;  %v1008_v50 = vrot.slane %v10772_v37, 1 }
 0x1ac   : > { %8339 = vmatmul.mubr.msk.f32.gmra.mrb[52].mxu1 %vm1649_vm9, %v10768_v46  ;;  %8648 = vmatmul.mubr.msk.f32.gmra.mrb[96].mxu0 %vm1649_vm9, %v10768_v46  ;;  %v1007_v34 = vrot.slane %v10784_v24, 1 }
 0x1ad   : > { %1457 = vrot.lane.b32.xlu1 %v1356_v54, %s9715_s20  ;;  %1202 = vrot.lane.b32.xlu0 %v1101_v56, %s9714_s19  ;;  %v9716_v56 = vmov 0  }
 0x1ae   : > { %v1402_v7 = vpop.permute.xlu1 %1401  ;;  %v1147_v45 = vpop.permute.xlu0 %1146  ;;  %8341 = vmatprep.mubr.msk.f32.mxu1 %vm9711_vm1, %v15056_v47  ;;  %8650 = vmatprep.mubr.msk.f32.mxu0 %vm9711_vm1, %v15056_v47  ;;  %v1009_v54 = vsel %vm1006_vm5, %v1007_v34, %v1008_v50  ;;  %v1267_v34 = vrot.slane %v10800_v12, 2 }
 0x1af   : > { %v10796_v11 = vsel %vm1572_vm8, %v1538_v17, %v1402_v7  ;;  %v1539_v25 = vsel %vm1520_vm7, %v10274_v21, %v1147_v45  ;;  %9698 = vset.pattern.permute.xlu1 %v9716_v56  ;;  %9697 = vset.pattern.permute.xlu0 %v9716_v56  ;;  %v1360_v21 = vsel %vm1263_vm6, %v1357_v33, %v1359_v40  ;;  %v1265_v17 = vrot.slane %v10772_v37, 2 }
 0x1b0   : > { %8342 = vmatmul.mubr.msk.f32.gmra.mrb[54].mxu1 %vm1649_vm9, %v10796_v11  ;;  %8651 = vmatmul.mubr.msk.f32.gmra.mrb[98].mxu0 %vm1649_vm9, %v10796_v11  ;;  %v1010_v7 = vrot.slane %v10800_v12, 1  ;;  %v1264_v33 = vrot.slane %v10784_v24, 2 }
 0x1b1   : > { %1459 = vrot.lane.b32.xlu1 %v1358_v8, %s9715_s20  ;;  %1204 = vrot.lane.b32.xlu0 %v1103_v61, %s9714_s19 }
 0x1b2   : > { %v1404_v26 = vpop.permute.xlu1 %1403  ;;  %v1149_v32 = vpop.permute.xlu0 %1148  ;;  %8344 = vmatprep.mubr.msk.f32.mxu1 %vm9711_vm1, %v15056_v47  ;;  %8653 = vmatprep.mubr.msk.f32.mxu0 %vm9711_vm1, %v15056_v47 }
 0x1b3   : > { %v10819_v20 = vsel %vm1572_vm8, %v1539_v25, %v1404_v26  ;;  %v1540_v45 = vsel %vm1520_vm7, %v10283_v35, %v1149_v32  ;;  %v10845_v26 = vadd.f32 %v10718_v28, %v10262_v1  ;;  %v1266_v35 = vsel %vm1263_vm6, %v1264_v33, %v1265_v17 }
 0x1b4   : > { %8345 = vmatmul.mubr.msk.f32.gmra.mrb[56].mxu1 %vm1649_vm9, %v10819_v20  ;;  %8654 = vmatmul.mubr.msk.f32.gmra.mrb[100].mxu0 %vm1649_vm9, %v10819_v20  ;;  %v1011_v32 = vsel %vm1006_vm5, %v1008_v50, %v1010_v7  ;;  %v10867_v50 = vadd.f32 %v10718_v28, %v10333_v5 }
 0x1b5   : > { %1461 = vrot.lane.b32.xlu1 %v1360_v21, %s9715_s20  ;;  %1110 = vrot.lane.b32.xlu0 %v1009_v54, %s9714_s19 }
 0x1b6   : > { %v1406_v61 = vpop.permute.xlu1 %1405  ;;  %v1151_v8 = vpop.permute.xlu0 %1150  ;;  %8347 = vmatprep.mubr.msk.f32.mxu1 %vm9711_vm1, %v15056_v47  ;;  %8656 = vmatprep.mubr.msk.f32.mxu0 %vm9711_vm1, %v15056_v47 }
 0x1b7   : > { %v10841_v25 = vsel %vm1572_vm8, %v1540_v45, %v1406_v61  ;;  %v1541_v1 = vsel %vm1520_vm7, %v10292_v51, %v1151_v8  ;;  %v1268_v51 = vsel %vm1263_vm6, %v1265_v17, %v1267_v34  ;;  %v15060_v45 = vrot.slane %v10107_v36, 1 }
 0x1b8   : > { %8348 = vmatmul.mubr.msk.f32.gmra.mrb[58].mxu1 %vm1649_vm9, %v10841_v25  ;;  %8657 = vmatmul.mubr.msk.f32.gmra.mrb[102].mxu0 %vm1649_vm9, %v10841_v25  ;;  %v1104_v8 = vrot.slane %v10845_v26, 1 }
 0x1b9   : > { %1367 = vrot.lane.b32.xlu1 %v1266_v35, %s9715_s20  ;;  %1112 = vrot.lane.b32.xlu0 %v1011_v32, %s9714_s19  ;;  %v1013_v61 = vsel %vm1006_vm5, %v1010_v7, %v15060_v45  ;;  %v1106_v7 = vrot.slane %v10867_v50, 1  ;;  %v10915_v45 = vrot.slane %v15056_v47, 1 }
 0x1ba   : > { %v1408_v56 = vpop.permute.xlu1 %1407  ;;  %v1153_v21 = vpop.permute.xlu0 %1152  ;;  %8350 = vmatprep.mubr.msk.f32.mxu1 %vm9711_vm1, %v15056_v47  ;;  %8659 = vmatprep.mubr.msk.f32.mxu0 %vm9711_vm1, %v15056_v47  ;;  %v1105_v32 = vsel %vm1006_vm5, %v1102_v58, %v1104_v8 }
 0x1bb   : > { %v10863_v54 = vsel %vm1572_vm8, %v1541_v1, %v1408_v56  ;;  %v1542_v5 = vsel %vm1520_vm7, %v10301_v2, %v1153_v21  ;;  %v15061_v2 = vrot.slane %v10107_v36, 2  ;;  %v1361_v1 = vrot.slane %v10845_v26, 2  ;;  %15062 = vst [vmem:[#allocation9_spill] sm:$0xff] %v10915_v45 }
 0x1bc   : > { %8351 = vmatmul.mubr.msk.f32.gmra.mrb[60].mxu1 %vm1649_vm9, %v10863_v54  ;;  %8660 = vmatmul.mubr.msk.f32.gmra.mrb[104].mxu0 %vm1649_vm9, %v10863_v54  ;;  %v1107_v58 = vsel %vm1006_vm5, %v1104_v8, %v1106_v7 }
 0x1bd   : > { %1369 = vrot.lane.b32.xlu1 %v1268_v51, %s9715_s20  ;;  %1114 = vrot.lane.b32.xlu0 %v1013_v61, %s9714_s19  ;;  %v1270_v35 = vsel %vm1263_vm6, %v1267_v34, %v15061_v2  ;;  %v1363_v34 = vrot.slane %v10867_v50, 2  ;;  %v10939_v2 = vrot.slane %v15056_v47, 2 }
 0x1be   : > { %v1410_v28 = vpop.permute.xlu1 %1409  ;;  %v1155_v33 = vpop.permute.xlu0 %1154  ;;  %8353 = vmatprep.mubr.msk.f32.mxu1 %vm9711_vm1, %v15056_v47  ;;  %8662 = vmatprep.mubr.msk.f32.mxu0 %vm9711_vm1, %v15056_v47 }
 0x1bf   : > { %v10887_v17 = vsel %vm1572_vm8, %v1542_v5, %v1410_v28  ;;  %v1543_v56 = vsel %vm1520_vm7, %v10310_v19, %v1155_v33  ;;  %v1362_v19 = vsel %vm1263_vm6, %v1359_v40, %v1361_v1  ;;  %v1364_v40 = vsel %vm1263_vm6, %v1361_v1, %v1363_v34  ;;  %15063 = vst [vmem:[#allocation10_spill] sm:$0xff] %v10939_v2 }
 0x1c0   : > { %8354 = vmatmul.mubr.msk.f32.gmra.mrb[62].mxu1 %vm1649_vm9, %v10887_v17  ;;  %8663 = vmatmul.mubr.msk.f32.gmra.mrb[106].mxu0 %vm1649_vm9, %v10887_v17  ;;  %v1109_v33 = vsel %vm1006_vm5, %v1106_v7, %v10915_v45  ;;  %v1366_v1 = vsel %vm1263_vm6, %v1363_v34, %v10939_v2  ;;  %v2784_v34 = vld [vmem:[%s15007_s1 + $0x8] sm:$0xff] }
 0x1c1   : > { %1371 = vrot.lane.b32.xlu1 %v1270_v35, %s9715_s20  ;;  %1206 = vrot.lane.b32.xlu0 %v1105_v32, %s9714_s19 }
 0x1c2   : > { %v1412_v21 = vpop.permute.xlu1 %1411  ;;  %v1157_v51 = vpop.permute.xlu0 %1156  ;;  %8356 = vmatprep.mubr.msk.f32.mxu1 %vm9711_vm1, %v15056_v47  ;;  %8665 = vmatprep.mubr.msk.f32.mxu0 %vm9711_vm1, %v15056_v47 }
 0x1c3   : > { %v10910_v36 = vsel %vm1572_vm8, %v1543_v56, %v1412_v21  ;;  %v1544_v61 = vsel %vm1520_vm7, %v10319_v39, %v1157_v51  ;;  %v2783_v56 = vld [vmem:[%s15007_s1] sm:$0xff] }
 0x1c4   : > { %8357 = vmatmul.mubr.msk.f32.gmra.mrb[64].mxu1 %vm1649_vm9, %v10910_v36  ;;  %8666 = vmatmul.mubr.msk.f32.gmra.mrb[108].mxu0 %vm1649_vm9, %v10910_v36 }
 0x1c5   : > { %1463 = vrot.lane.b32.xlu1 %v1362_v19, %s9715_s20  ;;  %8359 = vmatprep.mubr.msk.f32.mxu1 %vm9711_vm1, %v15056_v47  ;;  %v2786_v19 = vld [vmem:[%s15007_s1 + $0x18] sm:$0xff] }
 0x1c6   : > { %v1414_v8 = vpop.permute.xlu1 %1413  ;;  %v1159_v5 = vpop.permute.xlu0 %1158  ;;  %8668 = vmatprep.mubr.msk.f32.mxu0 %vm9711_vm1, %v15056_v47  ;;  %1208 = vrot.lane.b32.xlu0 %v1107_v58, %s9714_s19 }
 0x1c7   : > { %v10933_v28 = vsel %vm1572_vm8, %v1544_v61, %v1414_v8  ;;  %v1545_v39 = vsel %vm1520_vm7, %v10328_v55, %v1159_v5 }
 0x1c8   : > { %8360 = vmatmul.mubr.msk.f32.gmra.mrb[66].mxu1 %vm1649_vm9, %v10933_v28  ;;  %8669 = vmatmul.mubr.msk.f32.gmra.mrb[110].mxu0 %vm1649_vm9, %v10933_v28 }
 0x1c9   : > { %8362 = vmatprep.mubr.msk.f32.mxu1 %vm9711_vm1, %v15056_v47  ;;  %8671 = vmatprep.mubr.msk.f32.mxu0 %vm9711_vm1, %v15056_v47 }
 0x1ca   : > { %v1416_v35 = vpop.permute.xlu1 %1415  ;;  %v1161_v7 = vpop.permute.xlu0 %1160  ;;  %1465 = vrot.lane.b32.xlu1 %v1364_v40, %s9715_s20  ;;  %1210 = vrot.lane.b32.xlu0 %v1109_v33, %s9714_s19  ;;  %v2785_v40 = vld [vmem:[%s15007_s1 + $0x10] sm:$0xff]  ;;  %v2788_v33 = vld [vmem:[%s15007_s1 + $0x28] sm:$0xff] }
 0x1cb   : > { %v10954_v32 = vsel %vm1572_vm8, %v1545_v39, %v1416_v35  ;;  %v1546_v55 = vsel %vm1520_vm7, %v10339_v16, %v1161_v7 }
 0x1cc   : > { %8363 = vmatmul.mubr.msk.f32.gmra.mrb[68].mxu1 %vm1649_vm9, %v10954_v32  ;;  %8672 = vmatmul.mubr.msk.f32.gmra.mrb[112].mxu0 %vm1649_vm9, %v10954_v32 }
 0x1cd   : > { %8365 = vmatprep.mubr.msk.f32.mxu1 %vm9711_vm1, %v15056_v47  ;;  %8674 = vmatprep.mubr.msk.f32.mxu0 %vm9711_vm1, %v15056_v47 }
 0x1ce   : > { %v1418_v21 = vpop.permute.xlu1 %1417  ;;  %v1163_v51 = vpop.permute.xlu0 %1162  ;;  %1467 = vrot.lane.b32.xlu1 %v1366_v1, %s9715_s20  ;;  %2830 = vperm.xlu0 %9697, %v2783_v56   ;;  %v2787_v1 = vld [vmem:[%s15007_s1 + $0x20] sm:$0xff]  ;;  %v2790_v56 = vld [vmem:[%s15007_s1 + $0x38] sm:$0xff] }
 0x1cf   : > { %v10973_v58 = vsel %vm1572_vm8, %v1546_v55, %v1418_v21  ;;  %v1547_v16 = vsel %vm1520_vm7, %v10348_v31, %v1163_v51 }
 0x1d0   : > { %8366 = vmatmul.mubr.msk.f32.gmra.mrb[70].mxu1 %vm1649_vm9, %v10973_v58  ;;  %8675 = vmatmul.mubr.msk.f32.gmra.mrb[114].mxu0 %vm1649_vm9, %v10973_v58 }
 0x1d1   : > { %8368 = vmatprep.mubr.msk.f32.mxu1 %vm9711_vm1, %v15056_v47  ;;  %8677 = vmatprep.mubr.msk.f32.mxu0 %vm9711_vm1, %v15056_v47 }
 0x1d2   : > { %v1420_v61 = vpop.permute.xlu1 %1419  ;;  %v1165_v8 = vpop.permute.xlu0 %1164  ;;  %2835 = vperm.xlu1 %9698, %v2784_v34   ;;  %2845 = vperm.xlu0 %9697, %v2786_v19   ;;  %v2789_v34 = vld [vmem:[%s15007_s1 + $0x30] sm:$0xff]  ;;  %v2792_v19 = vld [vmem:[%s15007_s1 + $0x48] sm:$0xff] }
 0x1d3   : > { %v10992_v5 = vsel %vm1572_vm8, %v1547_v16, %v1420_v61  ;;  %v1548_v31 = vsel %vm1520_vm7, %v10357_v59, %v1165_v8 }
 0x1d4   : > { %8369 = vmatmul.mubr.msk.f32.gmra.mrb[72].mxu1 %vm1649_vm9, %v10992_v5  ;;  %8678 = vmatmul.mubr.msk.f32.gmra.mrb[116].mxu0 %vm1649_vm9, %v10992_v5 }
 0x1d5   : > { %8371 = vmatprep.mubr.msk.f32.mxu1 %vm9711_vm1, %v15056_v47  ;;  %8680 = vmatprep.mubr.msk.f32.mxu0 %vm9711_vm1, %v15056_v47 }
 0x1d6   : > { %v1422_v39 = vpop.permute.xlu1 %1421  ;;  %v1167_v35 = vpop.permute.xlu0 %1166  ;;  %2840 = vperm.xlu1 %9698, %v2785_v40   ;;  %2855 = vperm.xlu0 %9697, %v2788_v33   ;;  %v2791_v40 = vld [vmem:[%s15007_s1 + $0x40] sm:$0xff]  ;;  %v2794_v33 = vld [vmem:[%s15007_s1 + $0x58] sm:$0xff] }
 0x1d7   : > { %v11011_v7 = vsel %vm1572_vm8, %v1548_v31, %v1422_v39  ;;  %v1549_v59 = vsel %vm1520_vm7, %v10366_v18, %v1167_v35 }
 0x1d8   : > { %8372 = vmatmul.mubr.msk.f32.gmra.mrb[74].mxu1 %vm1649_vm9, %v11011_v7  ;;  %8681 = vmatmul.mubr.msk.f32.gmra.mrb[118].mxu0 %vm1649_vm9, %v11011_v7 }
 0x1d9   : > { %8374 = vmatprep.mubr.msk.f32.mxu1 %vm9711_vm1, %v15056_v47  ;;  %8683 = vmatprep.mubr.msk.f32.mxu0 %vm9711_vm1, %v15056_v47 }
 0x1da   : > { %v1424_v55 = vpop.permute.xlu1 %1423  ;;  %v1169_v21 = vpop.permute.xlu0 %1168  ;;  %2850 = vperm.xlu1 %9698, %v2787_v1   ;;  %2865 = vperm.xlu0 %9697, %v2790_v56   ;;  %v2793_v1 = vld [vmem:[%s15007_s1 + $0x50] sm:$0xff]  ;;  %v2796_v56 = vld [vmem:[%s15007_s1 + $0x68] sm:$0xff] }
 0x1db   : > { %v11030_v51 = vsel %vm1572_vm8, %v1549_v59, %v1424_v55  ;;  %v1550_v18 = vsel %vm1520_vm7, %v10375_v42, %v1169_v21 }
 0x1dc   : > { %8375 = vmatmul.mubr.msk.f32.gmra.mrb[76].mxu1 %vm1649_vm9, %v11030_v51  ;;  %8684 = vmatmul.mubr.msk.f32.gmra.mrb[120].mxu0 %vm1649_vm9, %v11030_v51 }
 0x1dd   : > { %8377 = vmatprep.mubr.msk.f32.mxu1 %vm9711_vm1, %v15056_v47  ;;  %8686 = vmatprep.mubr.msk.f32.mxu0 %vm9711_vm1, %v15056_v47 }
 0x1de   : > { %v1426_v16 = vpop.permute.xlu1 %1425  ;;  %v1171_v61 = vpop.permute.xlu0 %1170  ;;  %2860 = vperm.xlu1 %9698, %v2789_v34   ;;  %2875 = vperm.xlu0 %9697, %v2792_v19   ;;  %v2795_v19 = vld [vmem:[%s15007_s1 + $0x60] sm:$0xff] }
 0x1df   : > { %v11049_v8 = vsel %vm1572_vm8, %v1550_v18, %v1426_v16  ;;  %v1551_v42 = vsel %vm1520_vm7, %v10384_v63, %v1171_v61  ;;  %v15064_v63 = vld [vmem:[#allocation2_spill] sm:$0xff]  ;;  %v2798_v18 = vld [vmem:[%s15007_s1 + $0x78] sm:$0xff]  ;;  %v15065_v16 = vld [vmem:[#allocation3_spill] sm:$0xff] }
 0x1e0   : > { %8378 = vmatmul.mubr.msk.f32.gmra.mrb[78].mxu1 %vm1649_vm9, %v11049_v8  ;;  %8687 = vmatmul.mubr.msk.f32.gmra.mrb[122].mxu0 %vm1649_vm9, %v11049_v8 }
 0x1e1   : > { %8380 = vmatprep.mubr.msk.f32.mxu1 %vm9711_vm1, %v15056_v47  ;;  %8689 = vmatprep.mubr.msk.f32.mxu0 %vm9711_vm1, %v15056_v47 }
 0x1e2   : > { %v1428_v31 = vpop.permute.xlu1 %1427  ;;  %v1173_v39 = vpop.permute.xlu0 %1172  ;;  %2870 = vperm.xlu1 %9698, %v2791_v40   ;;  %2885 = vperm.xlu0 %9697, %v2794_v33  }
 0x1e3   : > { %v11068_v35 = vsel %vm1572_vm8, %v1551_v42, %v1428_v31  ;;  %v1552_v59 = vsel %vm1520_vm7, %v15064_v63, %v1173_v39  ;;  %v2797_v31 = vld [vmem:[%s15007_s1 + $0x70] sm:$0xff]  ;;  %v2800_v39 = vld [vmem:[%s15007_s1 + $0x88] sm:$0xff] }
 0x1e4   : > { %8381 = vmatmul.mubr.msk.f32.gmra.mrb[80].mxu1 %vm1649_vm9, %v11068_v35  ;;  %8690 = vmatmul.mubr.msk.f32.gmra.mrb[124].mxu0 %vm1649_vm9, %v11068_v35 }
 0x1e5   : > { %8383 = vmatprep.mubr.msk.f32.mxu1 %vm9711_vm1, %v15056_v47  ;;  %8692 = vmatprep.mubr.msk.f32.mxu0 %vm9711_vm1, %v15056_v47 }
 0x1e6   : > { %v1430_v55 = vpop.permute.xlu1 %1429  ;;  %v1175_v21 = vpop.permute.xlu0 %1174  ;;  %2880 = vperm.xlu1 %9698, %v2793_v1   ;;  %2895 = vperm.xlu0 %9697, %v2796_v56   ;;  %v15066_v1 = vld [vmem:[#allocation4_spill] sm:$0xff] }
 0x1e7   : > { %v11087_v34 = vsel %vm1572_vm8, %v1552_v59, %v1430_v55  ;;  %v1553_v61 = vsel %vm1520_vm7, %v15065_v16, %v1175_v21  ;;  %v2799_v21 = vld [vmem:[%s15007_s1 + $0x80] sm:$0xff] }
 0x1e8   : > { %8384 = vmatmul.mubr.msk.f32.gmra.mrb[82].mxu1 %vm1649_vm9, %v11087_v34  ;;  %8693 = vmatmul.mubr.msk.f32.gmra.mrb[126].mxu0 %vm1649_vm9, %v11087_v34 }
 0x1e9   : > { %8386 = vmatprep.mubr.msk.f32.mxu1 %vm9711_vm1, %v15056_v47  ;;  %8695 = vmatprep.mubr.msk.f32.mxu0 %vm9711_vm1, %v15056_v47 }
 0x1ea   : > { %v1432_v40 = vpop.permute.xlu1 %1431  ;;  %2890 = vperm.xlu1 %9698, %v2795_v19   ;;  %2905 = vperm.xlu0 %9697, %v2798_v18   ;;  %v2802_v19 = vld [vmem:[%s15007_s1 + $0x98] sm:$0xff] }
 0x1eb   : > { %v11106_v33 = vsel %vm1572_vm8, %v1553_v61, %v1432_v40  ;;  %v1177_v42 = vpop.permute.xlu0 %1176  ;;  %v15067_v18 = vld [vmem:[#allocation5_spill] sm:$0xff] }
 0x1ec   : > { %8387 = vmatmul.mubr.msk.f32.gmra.mrb[84].mxu1 %vm1649_vm9, %v11106_v33  ;;  %8696 = vmatmul.mubr.msk.f32.gmra.mrb[128].mxu0 %vm1649_vm9, %v11106_v33  ;;  %v1554_v56 = vsel %vm1520_vm7, %v15066_v1, %v1177_v42 }
 0x1ed   : > { %8389 = vmatprep.mubr.msk.f32.mxu1 %vm9711_vm1, %v15056_v47  ;;  %8698 = vmatprep.mubr.msk.f32.mxu0 %vm9711_vm1, %v15056_v47 }
 0x1ee   : > { %v1434_v63 = vpop.permute.xlu1 %1433  ;;  %2900 = vperm.xlu1 %9698, %v2797_v31   ;;  %2915 = vperm.xlu0 %9697, %v2800_v39   ;;  %v2801_v31 = vld [vmem:[%s15007_s1 + $0x90] sm:$0xff]  ;;  %v2804_v39 = vld [vmem:[%s15007_s1 + $0xa8] sm:$0xff] }
 0x1ef   : > { %v11125_v59 = vsel %vm1572_vm8, %v1554_v56, %v1434_v63  ;;  %v1179_v55 = vpop.permute.xlu0 %1178 }
 0x1f0   : > { %8390 = vmatmul.mubr.msk.f32.gmra.mrb[86].mxu1 %vm1649_vm9, %v11125_v59  ;;  %8699 = vmatmul.mubr.msk.f32.gmra.mrb[130].mxu0 %vm1649_vm9, %v11125_v59  ;;  %v1555_v16 = vsel %vm1520_vm7, %v15067_v18, %v1179_v55 }
 0x1f1   : > { %8392 = vmatprep.mubr.msk.f32.mxu1 %vm9711_vm1, %v15056_v47  ;;  %8701 = vmatprep.mubr.msk.f32.mxu0 %vm9711_vm1, %v15056_v47 }
 0x1f2   : > { %v1436_v61 = vpop.permute.xlu1 %1435  ;;  %2910 = vperm.xlu1 %9698, %v2799_v21   ;;  %2925 = vperm.xlu0 %9697, %v2802_v19   ;;  %v2803_v21 = vld [vmem:[%s15007_s1 + $0xa0] sm:$0xff]  ;;  %v2806_v19 = vld [vmem:[%s15007_s1 + $0xb8] sm:$0xff] }
 0x1f3   : > { %v11144_v40 = vsel %vm1572_vm8, %v1555_v16, %v1436_v61  ;;  %v1181_v42 = vpop.permute.xlu0 %1180 }
 0x1f4   : > { %8393 = vmatmul.mubr.msk.f32.gmra.mrb[88].mxu1 %vm1649_vm9, %v11144_v40  ;;  %8702 = vmatmul.mubr.msk.f32.gmra.mrb[132].mxu0 %vm1649_vm9, %v11144_v40  ;;  %v1556_v1 = vsel %vm1520_vm7, %v10449_v30, %v1181_v42  ;;  %v2805_v42 = vld [vmem:[%s15007_s1 + $0xb0] sm:$0xff] }
 0x1f5   : > { %8395 = vmatprep.mubr.msk.f32.mxu1 %vm9711_vm1, %v15056_v47  ;;  %8704 = vmatprep.mubr.msk.f32.mxu0 %vm9711_vm1, %v15056_v47 }
 0x1f6   : > { %2920 = vperm.xlu1 %9698, %v2801_v31   ;;  %2935 = vperm.xlu0 %9697, %v2804_v39   ;;  %v2808_v31 = vld [vmem:[%s15007_s1 + $0xc8] sm:$0xff] }
 0x1f7   : > { %v1438_v56 = vpop.permute.xlu1 %1437  ;;  %v1183_v63 = vpop.permute.xlu0 %1182 }
 0x1f8   : > { %v11163_v55 = vsel %vm1572_vm8, %v1556_v1, %v1438_v56  ;;  %v1557_v30 = vsel %vm1520_vm7, %v10473_v6, %v1183_v63  ;;  %v2807_v63 = vld [vmem:[%s15007_s1 + $0xc0] sm:$0xff] }
 0x1f9   : > { %8396 = vmatmul.mubr.msk.f32.gmra.mrb[90].mxu1 %vm1649_vm9, %v11163_v55  ;;  %8705 = vmatmul.mubr.msk.f32.gmra.mrb[134].mxu0 %vm1649_vm9, %v11163_v55 }
 0x1fa   : > { %8398 = vmatprep.mubr.msk.f32.mxu1 %vm9711_vm1, %v15056_v47  ;;  %8707 = vmatprep.mubr.msk.f32.mxu0 %vm9711_vm1, %v15056_v47 }
 0x1fb   : > { %v1440_v18 = vpop.permute.xlu1 %1439  ;;  %v1185_v16 = vpop.permute.xlu0 %1184  ;;  %2930 = vperm.xlu1 %9698, %v2803_v21   ;;  %2945 = vperm.xlu0 %9697, %v2806_v19   ;;  %v2810_v21 = vld [vmem:[%s15007_s1 + $0xd8] sm:$0xff] }
 0x1fc   : > { %v11182_v61 = vsel %vm1572_vm8, %v1557_v30, %v1440_v18  ;;  %v1558_v6 = vsel %vm1520_vm7, %v10496_v48, %v1185_v16  ;;  %v2809_v16 = vld [vmem:[%s15007_s1 + $0xd0] sm:$0xff] }
 0x1fd   : > { %8399 = vmatmul.mubr.msk.f32.gmra.mrb[92].mxu1 %vm1649_vm9, %v11182_v61  ;;  %8708 = vmatmul.mubr.msk.f32.gmra.mrb[136].mxu0 %vm1649_vm9, %v11182_v61 }
 0x1fe   : > { %8401 = vmatprep.mubr.msk.f32.mxu1 %vm9711_vm1, %v15056_v47  ;;  %8710 = vmatprep.mubr.msk.f32.mxu0 %vm9711_vm1, %v15056_v47 }
 0x1ff   : > { %v1442_v39 = vpop.permute.xlu1 %1441  ;;  %v1187_v1 = vpop.permute.xlu0 %1186  ;;  %2940 = vperm.xlu1 %9698, %v2805_v42   ;;  %2955 = vperm.xlu0 %9697, %v2808_v31   ;;  %v2812_v42 = vld [vmem:[%s15007_s1 + $0xe8] sm:$0xff] }
 0x200   : > { %v11201_v56 = vsel %vm1572_vm8, %v1558_v6, %v1442_v39  ;;  %v1559_v48 = vsel %vm1520_vm7, %v10487_v60, %v1187_v1  ;;  %v2811_v1 = vld [vmem:[%s15007_s1 + $0xe0] sm:$0xff] }
 0x201   : > { %8402 = vmatmul.mubr.msk.f32.gmra.mrb[94].mxu1 %vm1649_vm9, %v11201_v56  ;;  %8711 = vmatmul.mubr.msk.f32.gmra.mrb[138].mxu0 %vm1649_vm9, %v11201_v56 }
 0x202   : > { %8404 = vmatprep.mubr.msk.f32.mxu1 %vm9711_vm1, %v15056_v47  ;;  %8713 = vmatprep.mubr.msk.f32.mxu0 %vm9711_vm1, %v15056_v47 }
 0x203   : > { %v1444_v19 = vpop.permute.xlu1 %1443  ;;  %v1189_v30 = vpop.permute.xlu0 %1188  ;;  %2950 = vperm.xlu1 %9698, %v2807_v63   ;;  %2965 = vperm.xlu0 %9697, %v2810_v21   ;;  %v2814_v63 = vld [vmem:[%s15007_s1 + $0xf8] sm:$0xff] }
 0x204   : > { %v11220_v18 = vsel %vm1572_vm8, %v1559_v48, %v1444_v19  ;;  %v1560_v60 = vsel %vm1520_vm7, %v10516_v53, %v1189_v30  ;;  %v2813_v30 = vld [vmem:[%s15007_s1 + $0xf0] sm:$0xff] }
 0x205   : > { %8405 = vmatmul.mubr.msk.f32.gmra.mrb[96].mxu1 %vm1649_vm9, %v11220_v18  ;;  %8714 = vmatmul.mubr.msk.f32.gmra.mrb[140].mxu0 %vm1649_vm9, %v11220_v18 }
 0x206   : > { %8407 = vmatprep.mubr.msk.f32.mxu1 %vm9711_vm1, %v15056_v47  ;;  %8716 = vmatprep.mubr.msk.f32.mxu0 %vm9711_vm1, %v15056_v47 }
 0x207   : > { %v1446_v31 = vpop.permute.xlu1 %1445  ;;  %v1191_v6 = vpop.permute.xlu0 %1190  ;;  %2960 = vperm.xlu1 %9698, %v2809_v16   ;;  %2975 = vperm.xlu0 %9697, %v2812_v42   ;;  %v2816_v16 = vld [vmem:[%s15007_s1 + $0x108] sm:$0xff] }
 0x208   : > { %v11239_v39 = vsel %vm1572_vm8, %v1560_v60, %v1446_v31  ;;  %v1561_v53 = vsel %vm1520_vm7, %v10541_v29, %v1191_v6  ;;  %v2815_v6 = vld [vmem:[%s15007_s1 + $0x100] sm:$0xff] }
 0x209   : > { %8408 = vmatmul.mubr.msk.f32.gmra.mrb[98].mxu1 %vm1649_vm9, %v11239_v39  ;;  %8717 = vmatmul.mubr.msk.f32.gmra.mrb[142].mxu0 %vm1649_vm9, %v11239_v39 }
 0x20a   : > { %8410 = vmatprep.mubr.msk.f32.mxu1 %vm9711_vm1, %v15056_v47  ;;  %8719 = vmatprep.mubr.msk.f32.mxu0 %vm9711_vm1, %v15056_v47 }
 0x20b   : > { %v1448_v21 = vpop.permute.xlu1 %1447  ;;  %v1193_v48 = vpop.permute.xlu0 %1192  ;;  %2970 = vperm.xlu1 %9698, %v2811_v1   ;;  %2985 = vperm.xlu0 %9697, %v2814_v63   ;;  %v2818_v1 = vld [vmem:[%s15007_s1 + $0x118] sm:$0xff] }
 0x20c   : > { %v11258_v19 = vsel %vm1572_vm8, %v1561_v53, %v1448_v21  ;;  %v1562_v29 = vsel %vm1520_vm7, %v10570_v0, %v1193_v48  ;;  %v2817_v48 = vld [vmem:[%s15007_s1 + $0x110] sm:$0xff] }
 0x20d   : > { %8411 = vmatmul.mubr.msk.f32.gmra.mrb[100].mxu1 %vm1649_vm9, %v11258_v19  ;;  %8720 = vmatmul.mubr.msk.f32.gmra.mrb[144].mxu0 %vm1649_vm9, %v11258_v19 }
 0x20e   : > { %8413 = vmatprep.mubr.msk.f32.mxu1 %vm9711_vm1, %v15056_v47  ;;  %8722 = vmatprep.mubr.msk.f32.mxu0 %vm9711_vm1, %v15056_v47 }
 0x20f   : > { %v1450_v42 = vpop.permute.xlu1 %1449  ;;  %v1195_v60 = vpop.permute.xlu0 %1194  ;;  %2980 = vperm.xlu1 %9698, %v2813_v30   ;;  %2995 = vperm.xlu0 %9697, %v2816_v16   ;;  %v2820_v30 = vld [vmem:[%s15007_s1 + $0x128] sm:$0xff] }
 0x210   : > { %v11277_v31 = vsel %vm1572_vm8, %v1562_v29, %v1450_v42  ;;  %v1563_v0 = vsel %vm1520_vm7, %v10594_v3, %v1195_v60  ;;  %v2819_v60 = vld [vmem:[%s15007_s1 + $0x120] sm:$0xff] }
 0x211   : > { %8414 = vmatmul.mubr.msk.f32.gmra.mrb[102].mxu1 %vm1649_vm9, %v11277_v31  ;;  %8723 = vmatmul.mubr.msk.f32.gmra.mrb[146].mxu0 %vm1649_vm9, %v11277_v31 }
 0x212   : > { %8416 = vmatprep.mubr.msk.f32.mxu1 %vm9711_vm1, %v15056_v47  ;;  %8725 = vmatprep.mubr.msk.f32.mxu0 %vm9711_vm1, %v15056_v47 }
 0x213   : > { %v1452_v63 = vpop.permute.xlu1 %1451  ;;  %v1197_v53 = vpop.permute.xlu0 %1196  ;;  %2990 = vperm.xlu1 %9698, %v2815_v6   ;;  %3005 = vperm.xlu0 %9697, %v2818_v1   ;;  %v2822_v6 = vld [vmem:[%s15007_s1 + $0x138] sm:$0xff] }
 0x214   : > { %v11296_v21 = vsel %vm1572_vm8, %v1563_v0, %v1452_v63  ;;  %v1564_v3 = vsel %vm1520_vm7, %v10623_v44, %v1197_v53  ;;  %v2821_v53 = vld [vmem:[%s15007_s1 + $0x130] sm:$0xff] }
 0x215   : > { %8417 = vmatmul.mubr.msk.f32.gmra.mrb[104].mxu1 %vm1649_vm9, %v11296_v21  ;;  %8726 = vmatmul.mubr.msk.f32.gmra.mrb[148].mxu0 %vm1649_vm9, %v11296_v21 }
 0x216   : > { %8419 = vmatprep.mubr.msk.f32.mxu1 %vm9711_vm1, %v15056_v47  ;;  %8728 = vmatprep.mubr.msk.f32.mxu0 %vm9711_vm1, %v15056_v47 }
 0x217   : > { %v1454_v16 = vpop.permute.xlu1 %1453  ;;  %v1199_v29 = vpop.permute.xlu0 %1198  ;;  %3000 = vperm.xlu1 %9698, %v2817_v48   ;;  %3015 = vperm.xlu0 %9697, %v2820_v30   ;;  %v2824_v48 = vld [vmem:[%s15007_s1 + $0x148] sm:$0xff] }
 0x218   : > { %v11315_v42 = vsel %vm1572_vm8, %v1564_v3, %v1454_v16  ;;  %v1565_v44 = vsel %vm1520_vm7, %v10647_v38, %v1199_v29  ;;  %v2823_v29 = vld [vmem:[%s15007_s1 + $0x140] sm:$0xff] }
 0x219   : > { %8420 = vmatmul.mubr.msk.f32.gmra.mrb[106].mxu1 %vm1649_vm9, %v11315_v42  ;;  %8729 = vmatmul.mubr.msk.f32.gmra.mrb[150].mxu0 %vm1649_vm9, %v11315_v42 }
 0x21a   : > { %8422 = vmatprep.mubr.msk.f32.mxu1 %vm9711_vm1, %v15056_v47  ;;  %8731 = vmatprep.mubr.msk.f32.mxu0 %vm9711_vm1, %v15056_v47 }
 0x21b   : > { %v1456_v1 = vpop.permute.xlu1 %1455  ;;  %v1201_v0 = vpop.permute.xlu0 %1200  ;;  %3010 = vperm.xlu1 %9698, %v2819_v60   ;;  %3025 = vperm.xlu0 %9697, %v2822_v6   ;;  %v2826_v60 = vld [vmem:[%s15007_s1 + $0x158] sm:$0xff] }
 0x21c   : > { %v11334_v63 = vsel %vm1572_vm8, %v1565_v44, %v1456_v1  ;;  %v1566_v38 = vsel %vm1520_vm7, %v10670_v27, %v1201_v0  ;;  %v2825_v0 = vld [vmem:[%s15007_s1 + $0x150] sm:$0xff] }
 0x21d   : > { %8423 = vmatmul.mubr.msk.f32.gmra.mrb[108].mxu1 %vm1649_vm9, %v11334_v63  ;;  %8732 = vmatmul.mubr.msk.f32.gmra.mrb[152].mxu0 %vm1649_vm9, %v11334_v63 }
 0x21e   : > { %8425 = vmatprep.mubr.msk.f32.mxu1 %vm9711_vm1, %v15056_v47  ;;  %8734 = vmatprep.mubr.msk.f32.mxu0 %vm9711_vm1, %v15056_v47 }
 0x21f   : > { %v1458_v30 = vpop.permute.xlu1 %1457  ;;  %v1203_v3 = vpop.permute.xlu0 %1202  ;;  %3020 = vperm.xlu1 %9698, %v2821_v53   ;;  %3035 = vperm.xlu0 %9697, %v2824_v48  }
 0x220   : > { %v1618_v16 = vsel %vm1572_vm8, %v1566_v38, %v1458_v30  ;;  %v1567_v27 = vsel %vm1520_vm7, %v10694_v4, %v1203_v3  ;;  %v2827_v30 = vld [vmem:[%s15007_s1 + $0x160] sm:$0xff] }
 0x221   : > { %8426 = vmatmul.mubr.msk.f32.gmra.mrb[110].mxu1 %vm1649_vm9, %v1618_v16  ;;  %8735 = vmatmul.mubr.msk.f32.gmra.mrb[154].mxu0 %vm1649_vm9, %v1618_v16 }
 0x222   : > { %8428 = vmatprep.mubr.msk.f32.mxu1 %vm9711_vm1, %v15056_v47  ;;  %8737 = vmatprep.mubr.msk.f32.mxu0 %vm9711_vm1, %v15056_v47 }
 0x223   : > { %v1460_v6 = vpop.permute.xlu1 %1459  ;;  %v1205_v44 = vpop.permute.xlu0 %1204  ;;  %3030 = vperm.xlu1 %9698, %v2823_v29   ;;  %3045 = vperm.xlu0 %9697, %v2826_v60  }
 0x224   : > { %v1619_v1 = vsel %vm1572_vm8, %v1567_v27, %v1460_v6  ;;  %v1568_v4 = vsel %vm1520_vm7, %v10722_v15, %v1205_v44 }
 0x225   : > { %8429 = vmatmul.mubr.msk.f32.gmra.mrb[112].mxu1 %vm1649_vm9, %v1619_v1  ;;  %8738 = vmatmul.mubr.msk.f32.gmra.mrb[156].mxu0 %vm1649_vm9, %v1619_v1 }
 0x226   : > { %8431 = vmatprep.mubr.msk.f32.mxu1 %vm9711_vm1, %v15056_v47  ;;  %8740 = vmatprep.mubr.msk.f32.mxu0 %vm9711_vm1, %v15056_v47 }
 0x227   : > { %v1462_v53 = vpop.permute.xlu1 %1461  ;;  %v1111_v48 = vpop.permute.xlu0 %1110  ;;  %3040 = vperm.xlu1 %9698, %v2825_v0  }
 0x228   : > { %v1620_v38 = vsel %vm1572_vm8, %v1568_v4, %v1462_v53  ;;  %v1521_v15 = vsel %vm1520_vm7, %v10784_v24, %v1111_v48 }
 0x229   : > { %8432 = vmatmul.mubr.msk.f32.gmra.mrb[114].mxu1 %vm1649_vm9, %v1620_v38  ;;  %8741 = vmatmul.mubr.msk.f32.gmra.mrb[158].mxu0 %vm1649_vm9, %v1620_v38 }
 0x22a   : > { %8458 = vmatprep.mubr.msk.f32.mxu1 %vm9711_vm1, %v15056_v47  ;;  %8743 = vmatprep.mubr.msk.f32.mxu0 %vm9711_vm1, %v15056_v47 }
 0x22b   : > { %v1368_v3 = vpop.permute.xlu1 %1367  ;;  %v1113_v16 = vpop.permute.xlu0 %1112  ;;  %3050 = vperm.xlu1 %9698, %v2827_v30   ;;  %v15068_v30 = vld [vmem:[#allocation6_spill] sm:$0xff] }
 0x22c   : > { %v1573_v29 = vsel %vm1572_vm8, %v1521_v15, %v1368_v3  ;;  %v1522_v60 = vsel %vm1520_vm7, %v10772_v37, %v1113_v16  ;;  %v15069_v3 = vld [vmem:[#allocation7_spill] sm:$0xff] }
 0x22d   : > { %8459 = vmatmul.mubr.msk.f32.vlgmr.msra.gmra.mrb[116].mxu1 %vm1649_vm9, %v1573_v29 }
 0x22e   : > { %8461 = vmatprep.mubr.msk.f32.mxu1 %vm9711_vm1, %v15056_v47 }
 0x22f   : > { %v1370_v27 = vpop.permute.xlu1 %1369  ;;  %v1115_v6 = vpop.permute.xlu0 %1114 }
 0x230   : > { %v1574_v44 = vsel %vm1572_vm8, %v1522_v60, %v1370_v27  ;;  %v1523_v24 = vsel %vm1520_vm7, %v10800_v12, %v1115_v6  ;;  %v15070_v60 = vld [vmem:[#allocation8_spill] sm:$0xff] }
 0x231   : > { %8462 = vmatmul.mubr.msk.f32.gmra.mrb[118].mxu1 %vm1649_vm9, %v1574_v44 }
 0x232   : > { %8464 = vmatprep.mubr.msk.f32.mxu1 %vm9711_vm1, %v15056_v47 }
 0x233   : > { %v1372_v1 = vpop.permute.xlu1 %1371  ;;  %v1207_v4 = vpop.permute.xlu0 %1206 }
 0x234   : > { %v1575_v0 = vsel %vm1572_vm8, %v1523_v24, %v1372_v1  ;;  %v1569_v37 = vsel %vm1520_vm7, %v10745_v22, %v1207_v4  ;;  %v7340_v1 = vld [vmem:[%s15012_s6 + $0x68] sm:$0xff] }
 0x235   : > { %8465 = vmatmul.mubr.msk.f32.gmra.mrb[120].mxu1 %vm1649_vm9, %v1575_v0 }
 0x236   : > { %8467 = vmatprep.mubr.msk.f32.mxu1 %vm9711_vm1, %v15056_v47 }
 0x237   : > { %v1464_v53 = vpop.permute.xlu1 %1463 }
 0x238   : > { %v1621_v48 = vsel %vm1572_vm8, %v1569_v37, %v1464_v53  ;;  %v1209_v38 = vpop.permute.xlu0 %1208 }
 0x239   : > { %8468 = vmatmul.mubr.msk.f32.gmra.mrb[122].mxu1 %vm1649_vm9, %v15068_v30  ;;  %8744 = vmatmul.mubr.msk.f32.gmra.mrb[160].mxu0 %vm1649_vm9, %v1621_v48  ;;  %v1570_v12 = vsel %vm1520_vm7, %v10845_v26, %v1209_v38 }
 0x23a   : > { %8470 = vmatprep.mubr.msk.f32.mxu1 %vm9711_vm1, %v15056_v47  ;;  %8746 = vmatprep.mubr.msk.f32.mxu0 %vm9711_vm1, %v15056_v47 }
 0x23c   : > { %v1466_v15 = vpop.permute.xlu1 %1465  ;;  %v1211_v22 = vpop.permute.xlu0 %1210 }
 0x23d   : > { %8471 = vmatmul.mubr.msk.f32.gmra.mrb[124].mxu1 %vm1649_vm9, %v15069_v3  ;;  %v1622_v16 = vsel %vm1572_vm8, %v1570_v12, %v1466_v15  ;;  %v1571_v29 = vsel %vm1520_vm7, %v10867_v50, %v1211_v22 }
 0x23e   : > { %8473 = vmatprep.mubr.msk.f32.mxu1 %vm9711_vm1, %v15056_v47  ;;  %8747 = vmatmul.mubr.msk.f32.gmra.mrb[162].mxu0 %vm1649_vm9, %v1622_v16 }
 0x23f   : > { %8749 = vmatprep.mubr.msk.f32.mxu0 %vm9711_vm1, %v15056_v47 }
 0x240   : > { %v1468_v26 = vpop.permute.xlu1 %1467 }
 0x241   : > { %8474 = vmatmul.mubr.msk.f32.gmra.mrb[126].mxu1 %vm1649_vm9, %v15070_v60  ;;  %v1623_v27 = vsel %vm1572_vm8, %v1571_v29, %v1468_v26 }
 0x242   : > { %8476 = vmatprep.mubr.msk.f32.mxu1 %vm9711_vm1, %v15056_v47  ;;  %8750 = vmatmul.mubr.msk.f32.gmra.mrb[164].mxu0 %vm1649_vm9, %v1623_v27 }
 0x243   : > { %8935 = vmatprep.mubr.msk.f32.mxu0 %vm9711_vm1, %v15056_v47 }
 0x245   : > { %8477 = vmatmul.mubr.msk.f32.gmra.mrb[128].mxu1 %vm1649_vm9, %v10520_v41 }
 0x246   : > { %8479 = vmatprep.mubr.msk.f32.mxu1 %vm9711_vm1, %v15056_v47 }
 0x249   : > { %8480 = vmatmul.mubr.msk.f32.gmra.mrb[130].mxu1 %vm1649_vm9, %v10545_v14 }
 0x24a   : > { %8482 = vmatprep.mubr.msk.f32.mxu1 %vm9711_vm1, %v15056_v47 }
 0x24b   : > { %v11445_v50 = vpop.f32.mrb[26].mxu1 }
 0x24c   : > { %v8301_v6 = vpop.f32.mrb[27].mxu1 }
 0x24d   : > { %8483 = vmatmul.mubr.msk.f32.gmra.mrb[132].mxu1 %vm1649_vm9, %v10574_v43  ;;  %v7339_v43 = vld [vmem:[%s15012_s6 + $0x60] sm:$0xff] }
 0x24e   : > { %8485 = vmatprep.mubr.msk.f32.mxu1 %vm9711_vm1, %v15056_v47 }
 0x24f   : > { %v11451_v44 = vpop.f32.mrb[28].mxu1 }
 0x250   : > { %v8304_v41 = vpop.f32.mrb[29].mxu1 }
 0x251   : > { %8486 = vmatmul.mubr.msk.f32.gmra.mrb[134].mxu1 %vm1649_vm9, %v10598_v23  ;;  %v9370_v23 = vpack.c.bf16 %v7340_v1, %v7339_v43 }
 0x252   : > { %8488 = vmatprep.mubr.msk.f32.mxu1 %vm9711_vm1, %v15056_v47 }
 0x253   : > { %v11457_v14 = vpop.f32.mrb[30].mxu1  ;;  %9371 = vmatpush3.bf16.msra.mxu1 %v9370_v23 }
 0x254   : > { %v8307_v24 = vpop.f32.mrb[31].mxu1  ;;  %9372 = vmatprep.subr.bf16.mxu1 %v15057_v52 }
 0x255   : > { %8489 = vmatmul.mubr.msk.f32.gmra.mrb[136].mxu1 %vm1649_vm9, %v10627_v62 }
 0x256   : > { %8491 = vmatprep.mubr.msk.f32.mxu1 %vm9711_vm1, %v15056_v47 }
 0x257   : > { %v11469_v0 = vpop.f32.mrb[32].mxu1  ;;  %v11471_v4 = vpop.f32.mrb[76].mxu0 }
 0x258   : > { %v8310_v37 = vpop.f32.mrb[33].mxu1  ;;  %v8619_v53 = vpop.f32.mrb[77].mxu0 }
 0x259   : > { %8492 = vmatmul.mubr.msk.f32.gmra.mrb[138].mxu1 %vm1649_vm9, %v10651_v57 }
 0x25a   : > { %8494 = vmatprep.mubr.msk.f32.mxu1 %vm9711_vm1, %v15056_v47 }
 0x25b   : > { %v11478_v62 = vpop.f32.mrb[34].mxu1  ;;  %v11480_v48 = vpop.f32.mrb[78].mxu0 }
 0x25c   : > { %v8313_v38 = vpop.f32.mrb[35].mxu1  ;;  %v8622_v30 = vpop.f32.mrb[79].mxu0 }
 0x25d   : > { %8495 = vmatmul.mubr.msk.f32.gmra.mrb[140].mxu1 %vm1649_vm9, %v10674_v13  ;;  %v7341_v30 = vld [vmem:[%s15012_s6 + $0x70] sm:$0xff] }
 0x25e   : > { %8497 = vmatprep.mubr.msk.f32.mxu1 %vm9711_vm1, %v15056_v47 }
 0x25f   : > { %v11486_v12 = vpop.f32.mrb[36].mxu1  ;;  %v11488_v57 = vpop.f32.mrb[80].mxu0 }
 0x260   : > { %v8316_v15 = vpop.f32.mrb[37].mxu1  ;;  %v8625_v22 = vpop.f32.mrb[81].mxu0 }
 0x261   : > { %8498 = vmatmul.mubr.msk.f32.gmra.mrb[142].mxu1 %vm1649_vm9, %v10698_v49  ;;  %v7342_v15 = vld [vmem:[%s15012_s6 + $0x78] sm:$0xff] }
 0x262   : > { %8500 = vmatprep.mubr.msk.f32.mxu1 %vm9711_vm1, %v15056_v47 }
 0x263   : > { %v11494_v3 = vpop.f32.mrb[38].mxu1  ;;  %v11496_v16 = vpop.f32.mrb[82].mxu0 }
 0x264   : > { %v8319_v13 = vpop.f32.mrb[39].mxu1  ;;  %v8628_v29 = vpop.f32.mrb[83].mxu0 }
 0x265   : > { %8501 = vmatmul.mubr.msk.f32.gmra.mrb[144].mxu1 %vm1649_vm9, %v10726_v9 }
 0x266   : > { %8503 = vmatprep.mubr.msk.f32.mxu1 %vm9711_vm1, %v15056_v47 }
 0x267   : > { %v11502_v26 = vpop.f32.mrb[40].mxu1  ;;  %v11504_v60 = vpop.f32.mrb[84].mxu0 }
 0x268   : > { %v8322_v49 = vpop.f32.mrb[41].mxu1  ;;  %v8631_v27 = vpop.f32.mrb[85].mxu0 }
 0x269   : > { %8504 = vmatmul.mubr.msk.f32.gmra.mrb[146].mxu1 %vm1649_vm9, %v10749_v10 }
 0x26a   : > { %8506 = vmatprep.mubr.msk.f32.mxu1 %vm9711_vm1, %v15056_v47 }
 0x26b   : > { %v11510_v6 = vpop.f32.mrb[42].mxu1  ;;  %v11512_v41 = vpop.f32.mrb[86].mxu0 }
 0x26c   : > { %v8325_v9 = vpop.f32.mrb[43].mxu1  ;;  %v8634_v24 = vpop.f32.mrb[87].mxu0 }
 0x26d   : > { %8507 = vmatmul.mubr.msk.f32.gmra.mrb[148].mxu1 %vm1649_vm9, %v10768_v46 }
 0x26e   : > { %8509 = vmatprep.mubr.msk.f32.mxu1 %vm9711_vm1, %v15056_v47 }
 0x26f   : > { %v11518_v43 = vpop.f32.mrb[44].mxu1  ;;  %v11520_v1 = vpop.f32.mrb[88].mxu0 }
 0x270   : > { %v8328_v10 = vpop.f32.mrb[45].mxu1  ;;  %v8637_v23 = vpop.f32.mrb[89].mxu0 }
 0x271   : > { %8510 = vmatmul.mubr.msk.f32.gmra.mrb[150].mxu1 %vm1649_vm9, %v10796_v11  ;;  %v9373_v11 = vpack.c.bf16 %v7342_v15, %v7341_v30 }
 0x272   : > { %8512 = vmatprep.mubr.msk.f32.mxu1 %vm9711_vm1, %v15056_v47 }
 0x273   : > { %v11526_v37 = vpop.f32.mrb[46].mxu1  ;;  %v11528_v53 = vpop.f32.mrb[90].mxu0  ;;  %9374 = vmatpush3.bf16.msra.mxu1 %v9373_v11 }
 0x274   : > { %v8331_v46 = vpop.f32.mrb[47].mxu1  ;;  %v8640_v38 = vpop.f32.mrb[91].mxu0  ;;  %9375 = vmatprep.subr.bf16.mxu1 %v15057_v52 }
 0x275   : > { %8513 = vmatmul.mubr.msk.f32.gmra.mrb[152].mxu1 %vm1649_vm9, %v10819_v20 }
 0x276   : > { %8515 = vmatprep.mubr.msk.f32.mxu1 %vm9711_vm1, %v15056_v47 }
 0x277   : > { %v11540_v22 = vpop.f32.mrb[48].mxu1  ;;  %v11542_v13 = vpop.f32.mrb[92].mxu0 }
 0x278   : > { %v8334_v29 = vpop.f32.mrb[49].mxu1  ;;  %v8643_v49 = vpop.f32.mrb[93].mxu0 }
 0x279   : > { %8516 = vmatmul.mubr.msk.f32.gmra.mrb[154].mxu1 %vm1649_vm9, %v10841_v25 }
 0x27a   : > { %8518 = vmatprep.mubr.msk.f32.mxu1 %vm9711_vm1, %v15056_v47 }
 0x27b   : > { %v11549_v20 = vpop.f32.mrb[50].mxu1  ;;  %v11551_v27 = vpop.f32.mrb[94].mxu0 }
 0x27c   : > { %v8337_v9 = vpop.f32.mrb[51].mxu1  ;;  %v8646_v24 = vpop.f32.mrb[95].mxu0 }
 0x27d   : > { %8519 = vmatmul.mubr.msk.f32.gmra.mrb[156].mxu1 %vm1649_vm9, %v10863_v54 }
 0x27e   : > { %8521 = vmatprep.mubr.msk.f32.mxu1 %vm9711_vm1, %v15056_v47 }
 0x27f   : > { %v11557_v10 = vpop.f32.mrb[52].mxu1  ;;  %v11559_v23 = vpop.f32.mrb[96].mxu0 }
 0x280   : > { %v8340_v25 = vpop.f32.mrb[53].mxu1  ;;  %v8649_v46 = vpop.f32.mrb[97].mxu0 }
 0x281   : > { %8522 = vmatmul.mubr.msk.f32.gmra.mrb[158].mxu1 %vm1649_vm9, %v10887_v17 }
 0x282   : > { %8524 = vmatprep.mubr.msk.f32.mxu1 %vm9711_vm1, %v15056_v47 }
 0x283   : > { %v11565_v38 = vpop.f32.mrb[54].mxu1  ;;  %v11567_v30 = vpop.f32.mrb[98].mxu0 }
 0x284   : > { %v8343_v54 = vpop.f32.mrb[55].mxu1  ;;  %v8652_v15 = vpop.f32.mrb[99].mxu0 }
 0x285   : > { %8525 = vmatmul.mubr.msk.f32.gmra.mrb[160].mxu1 %vm1649_vm9, %v10910_v36 }
 0x286   : > { %8527 = vmatprep.mubr.msk.f32.mxu1 %vm9711_vm1, %v15056_v47 }
 0x287   : > { %v11573_v11 = vpop.f32.mrb[56].mxu1  ;;  %v11575_v29 = vpop.f32.mrb[100].mxu0 }
 0x288   : > { %v8346_v17 = vpop.f32.mrb[57].mxu1  ;;  %v8655_v49 = vpop.f32.mrb[101].mxu0 }
 0x289   : > { %8528 = vmatmul.mubr.msk.f32.gmra.mrb[162].mxu1 %vm1649_vm9, %v10933_v28 }
 0x28a   : > { %8530 = vmatprep.mubr.msk.f32.mxu1 %vm9711_vm1, %v15056_v47 }
 0x28b   : > { %v11581_v9 = vpop.f32.mrb[58].mxu1  ;;  %v11583_v24 = vpop.f32.mrb[102].mxu0 }
 0x28c   : > { %v8349_v36 = vpop.f32.mrb[59].mxu1  ;;  %v8658_v25 = vpop.f32.mrb[103].mxu0 }
 0x28d   : > { %8531 = vmatmul.mubr.msk.f32.gmra.mrb[164].mxu1 %vm1649_vm9, %v10954_v32 }
 0x28e   : > { %8533 = vmatprep.mubr.msk.f32.mxu1 %vm9711_vm1, %v15056_v47 }
 0x28f   : > { %v11589_v46 = vpop.f32.mrb[60].mxu1  ;;  %v11591_v54 = vpop.f32.mrb[104].mxu0 }
 0x290   : > { %v8352_v28 = vpop.f32.mrb[61].mxu1  ;;  %v8661_v15 = vpop.f32.mrb[105].mxu0 }
 0x291   : > { %8534 = vmatmul.mubr.msk.f32.gmra.mrb[166].mxu1 %vm1649_vm9, %v10973_v58 }
 0x292   : > { %8536 = vmatprep.mubr.msk.f32.mxu1 %vm9711_vm1, %v15056_v47 }
 0x293   : > { %v11597_v17 = vpop.f32.mrb[62].mxu1  ;;  %v11599_v49 = vpop.f32.mrb[106].mxu0 }
 0x294   : > { %v8355_v32 = vpop.f32.mrb[63].mxu1  ;;  %v8664_v36 = vpop.f32.mrb[107].mxu0 }
 0x295   : > { %8537 = vmatmul.mubr.msk.f32.gmra.mrb[168].mxu1 %vm1649_vm9, %v10992_v5  ;;  %v7343_v32 = vld [vmem:[%s15012_s6 + $0x80] sm:$0xff]  ;;  %v7344_v5 = vld [vmem:[%s15012_s6 + $0x88] sm:$0xff] }
 0x296   : > { %8539 = vmatprep.mubr.msk.f32.mxu1 %vm9711_vm1, %v15056_v47  ;;  %v9376_v36 = vpack.c.bf16 %v7344_v5, %v7343_v32 }
 0x297   : > { %v11605_v25 = vpop.f32.mrb[64].mxu1  ;;  %v11607_v28 = vpop.f32.mrb[108].mxu0 }
 0x298   : > { %15071 = vst [vmem:[#allocation2_spill] sm:$0xff] %v11605_v25  ;;  %v8358_v58 = vpop.f32.mrb[65].mxu1  ;;  %v8667_v15 = vpop.f32.mrb[109].mxu0  ;;  %9377 = vmatpush3.bf16.msra.mxu1 %v9376_v36 }
 0x299   : > { %8540 = vmatmul.mubr.msk.f32.gmra.mrb[170].mxu1 %vm1649_vm9, %v11011_v7  ;;  %9378 = vmatprep.subr.bf16.mxu1 %v15057_v52 }
 0x29a   : > { %8542 = vmatprep.mubr.msk.f32.mxu1 %vm9711_vm1, %v15056_v47 }
 0x29b   : > { %v11619_v45 = vpop.f32.mrb[66].mxu1  ;;  %v11621_v2 = vpop.f32.mrb[110].mxu0 }
 0x29c   : > { %v8361_v58 = vpop.f32.mrb[67].mxu1  ;;  %v8670_v15 = vpop.f32.mrb[111].mxu0 }
 0x29d   : > { %8543 = vmatmul.mubr.msk.f32.gmra.mrb[172].mxu1 %vm1649_vm9, %v11030_v51 }
 0x29e   : > { %8545 = vmatprep.mubr.msk.f32.mxu1 %vm9711_vm1, %v15056_v47 }
 0x29f   : > { %v11628_v7 = vpop.f32.mrb[68].mxu1  ;;  %v11630_v25 = vpop.f32.mrb[112].mxu0 }
 0x2a0   : > { %15072 = vst [vmem:[#allocation3_spill] sm:$0xff] %v11628_v7  ;;  %v8364_v32 = vpop.f32.mrb[69].mxu1  ;;  %v8673_v5 = vpop.f32.mrb[113].mxu0 }
 0x2a1   : > { %8546 = vmatmul.mubr.msk.f32.gmra.mrb[174].mxu1 %vm1649_vm9, %v11049_v8 }
 0x2a2   : > { %8548 = vmatprep.mubr.msk.f32.mxu1 %vm9711_vm1, %v15056_v47 }
 0x2a3   : > { %v11636_v36 = vpop.f32.mrb[70].mxu1  ;;  %v11638_v51 = vpop.f32.mrb[114].mxu0 }
 0x2a4   : > { %15073 = vst [vmem:[#allocation4_spill] sm:$0xff] %v11636_v36  ;;  %v8367_v58 = vpop.f32.mrb[71].mxu1  ;;  %v8676_v15 = vpop.f32.mrb[115].mxu0 }
 0x2a5   : > { %8549 = vmatmul.mubr.msk.f32.gmra.mrb[176].mxu1 %vm1649_vm9, %v11068_v35 }
 0x2a6   : > { %8551 = vmatprep.mubr.msk.f32.mxu1 %vm9711_vm1, %v15056_v47 }
 0x2a7   : > { %v11644_v32 = vpop.f32.mrb[72].mxu1  ;;  %v11646_v5 = vpop.f32.mrb[116].mxu0 }
 0x2a8   : > { %15074 = vst [vmem:[#allocation5_spill] sm:$0xff] %v11644_v32  ;;  %v8370_v8 = vpop.f32.mrb[73].mxu1  ;;  %v8679_v7 = vpop.f32.mrb[117].mxu0 }
 0x2a9   : > { %8552 = vmatmul.mubr.msk.f32.gmra.mrb[178].mxu1 %vm1649_vm9, %v11087_v34 }
 0x2aa   : > { %8554 = vmatprep.mubr.msk.f32.mxu1 %vm9711_vm1, %v15056_v47 }
 0x2ab   : > { %v11652_v58 = vpop.f32.mrb[74].mxu1  ;;  %v11654_v15 = vpop.f32.mrb[118].mxu0 }
 0x2ac   : > { %15075 = vst [vmem:[#allocation6_spill] sm:$0xff] %v11652_v58  ;;  %v8373_v35 = vpop.f32.mrb[75].mxu1  ;;  %v8682_v36 = vpop.f32.mrb[119].mxu0 }
 0x2ad   : > { %8555 = vmatmul.mubr.msk.f32.gmra.mrb[180].mxu1 %vm1649_vm9, %v11106_v33 }
 0x2ae   : > { %8557 = vmatprep.mubr.msk.f32.mxu1 %vm9711_vm1, %v15056_v47 }
 0x2af   : > { %v11660_v8 = vpop.f32.mrb[76].mxu1  ;;  %v11662_v7 = vpop.f32.mrb[120].mxu0 }
 0x2b0   : > { %15076 = vst [vmem:[#allocation7_spill] sm:$0xff] %v11660_v8  ;;  %v8376_v34 = vpop.f32.mrb[77].mxu1  ;;  %v8685_v32 = vpop.f32.mrb[121].mxu0 }
 0x2b1   : > { %8558 = vmatmul.mubr.msk.f32.gmra.mrb[182].mxu1 %vm1649_vm9, %v11125_v59 }
 0x2b2   : > { %8560 = vmatprep.mubr.msk.f32.mxu1 %vm9711_vm1, %v15056_v47 }
 0x2b3   : > { %v11668_v35 = vpop.f32.mrb[78].mxu1  ;;  %v11670_v36 = vpop.f32.mrb[122].mxu0 }
 0x2b4   : > { %15077 = vst [vmem:[#allocation8_spill] sm:$0xff] %v11668_v35  ;;  %v8379_v33 = vpop.f32.mrb[79].mxu1  ;;  %v8688_v58 = vpop.f32.mrb[123].mxu0 }
 0x2b5   : > { %8561 = vmatmul.mubr.msk.f32.gmra.mrb[184].mxu1 %vm1649_vm9, %v11144_v40  ;;  %v7345_v33 = vld [vmem:[%s15012_s6 + $0x90] sm:$0xff]  ;;  %v7346_v40 = vld [vmem:[%s15012_s6 + $0x98] sm:$0xff] }
 0x2b6   : > { %8563 = vmatprep.mubr.msk.f32.mxu1 %vm9711_vm1, %v15056_v47  ;;  %v9379_v58 = vpack.c.bf16 %v7346_v40, %v7345_v33 }
 0x2b7   : > { %v11676_v34 = vpop.f32.mrb[80].mxu1  ;;  %v11678_v32 = vpop.f32.mrb[124].mxu0 }
 0x2b8   : > { %15078 = vst [vmem:[#allocation11_spill] sm:$0xff] %v11676_v34  ;;  %15079 = vst [vmem:[#allocation12_spill] sm:$0xff] %v11678_v32  ;;  %v8382_v59 = vpop.f32.mrb[81].mxu1  ;;  %v8691_v8 = vpop.f32.mrb[125].mxu0  ;;  %9380 = vmatpush3.bf16.msra.mxu1 %v9379_v58 }
 0x2b9   : > { %8564 = vmatmul.mubr.msk.f32.gmra.mrb[186].mxu1 %vm1649_vm9, %v11163_v55  ;;  %9381 = vmatprep.subr.bf16.mxu1 %v15057_v52 }
 0x2ba   : > { %8566 = vmatprep.mubr.msk.f32.mxu1 %vm9711_vm1, %v15056_v47 }
 0x2bb   : > { %v11690_v34 = vpop.f32.mrb[82].mxu1  ;;  %v11692_v35 = vpop.f32.mrb[126].mxu0 }
 0x2bc   : > { %15080 = vst [vmem:[#allocation13_spill] sm:$0xff] %v11690_v34  ;;  %15081 = vst [vmem:[#allocation14_spill] sm:$0xff] %v11692_v35  ;;  %v8385_v8 = vpop.f32.mrb[83].mxu1  ;;  %v8694_v59 = vpop.f32.mrb[127].mxu0 }
 0x2bd   : > { %8567 = vmatmul.mubr.msk.f32.gmra.mrb[188].mxu1 %vm1649_vm9, %v11182_v61 }
 0x2be   : > { %8569 = vmatprep.mubr.msk.f32.mxu1 %vm9711_vm1, %v15056_v47 }
 0x2bf   : > { %v11699_v55 = vpop.f32.mrb[84].mxu1  ;;  %v11701_v32 = vpop.f32.mrb[128].mxu0 }
 0x2c0   : > { %15082 = vst [vmem:[#allocation15_spill] sm:$0xff] %v11699_v55  ;;  %15083 = vst [vmem:[#allocation16_spill] sm:$0xff] %v11701_v32  ;;  %v8388_v33 = vpop.f32.mrb[85].mxu1  ;;  %v8697_v40 = vpop.f32.mrb[129].mxu0 }
 0x2c1   : > { %8570 = vmatmul.mubr.msk.f32.gmra.mrb[190].mxu1 %vm1649_vm9, %v11201_v56 }
 0x2c2   : > { %8572 = vmatprep.mubr.msk.f32.mxu1 %vm9711_vm1, %v15056_v47 }
 0x2c3   : > { %v11707_v58 = vpop.f32.mrb[86].mxu1  ;;  %v11709_v61 = vpop.f32.mrb[130].mxu0 }
 0x2c4   : > { %15084 = vst [vmem:[#allocation17_spill] sm:$0xff] %v11707_v58  ;;  %15085 = vst [vmem:[#allocation18_spill] sm:$0xff] %v11709_v61  ;;  %v8391_v8 = vpop.f32.mrb[87].mxu1  ;;  %v8700_v59 = vpop.f32.mrb[131].mxu0 }
 0x2c5   : > { %8573 = vmatmul.mubr.msk.f32.gmra.mrb[192].mxu1 %vm1649_vm9, %v11220_v18 }
 0x2c6   : > { %8575 = vmatprep.mubr.msk.f32.mxu1 %vm9711_vm1, %v15056_v47 }
 0x2c7   : > { %v11715_v33 = vpop.f32.mrb[88].mxu1  ;;  %v11717_v40 = vpop.f32.mrb[132].mxu0 }
 0x2c8   : > { %15086 = vst [vmem:[#allocation19_spill] sm:$0xff] %v11715_v33  ;;  %15087 = vst [vmem:[#allocation20_spill] sm:$0xff] %v11717_v40  ;;  %v8394_v56 = vpop.f32.mrb[89].mxu1  ;;  %v8703_v55 = vpop.f32.mrb[133].mxu0 }
 0x2c9   : > { %8576 = vmatmul.mubr.msk.f32.gmra.mrb[194].mxu1 %vm1649_vm9, %v11239_v39 }
 0x2ca   : > { %8578 = vmatprep.mubr.msk.f32.mxu1 %vm9711_vm1, %v15056_v47 }
 0x2cc   : > { %v11723_v8 = vpop.f32.mrb[90].mxu1  ;;  %v11725_v59 = vpop.f32.mrb[134].mxu0 }
 0x2cd   : > { %15088 = vst [vmem:[#allocation21_spill] sm:$0xff] %v11723_v8  ;;  %15089 = vst [vmem:[#allocation22_spill] sm:$0xff] %v11725_v59  ;;  %v8397_v18 = vpop.f32.mrb[91].mxu1  ;;  %8579 = vmatmul.mubr.msk.f32.gmra.mrb[196].mxu1 %vm1649_vm9, %v11258_v19  ;;  %v8706_v58 = vpop.f32.mrb[135].mxu0 }
 0x2ce   : > { %8581 = vmatprep.mubr.msk.f32.mxu1 %vm9711_vm1, %v15056_v47 }
 0x2d0   : > { %v11731_v56 = vpop.f32.mrb[92].mxu1  ;;  %v11733_v55 = vpop.f32.mrb[136].mxu0 }
 0x2d1   : > { %15090 = vst [vmem:[#allocation23_spill] sm:$0xff] %v11731_v56  ;;  %15091 = vst [vmem:[#allocation24_spill] sm:$0xff] %v11733_v55  ;;  %v8400_v39 = vpop.f32.mrb[93].mxu1  ;;  %8582 = vmatmul.mubr.msk.f32.gmra.mrb[198].mxu1 %vm1649_vm9, %v11277_v31  ;;  %v8709_v33 = vpop.f32.mrb[137].mxu0  ;;  %v7348_v31 = vld [vmem:[%s15012_s6 + $0xa8] sm:$0xff] }
 0x2d2   : > { %8584 = vmatprep.mubr.msk.f32.mxu1 %vm9711_vm1, %v15056_v47  ;;  %v7347_v39 = vld [vmem:[%s15012_s6 + $0xa0] sm:$0xff] }
 0x2d3   : > { %v9382_v33 = vpack.c.bf16 %v7348_v31, %v7347_v39 }
 0x2d4   : > { %v11739_v18 = vpop.f32.mrb[94].mxu1  ;;  %v11741_v8 = vpop.f32.mrb[138].mxu0 }
 0x2d5   : > { %15092 = vst [vmem:[#allocation25_spill] sm:$0xff] %v11739_v18  ;;  %15093 = vst [vmem:[#allocation26_spill] sm:$0xff] %v11741_v8  ;;  %v8403_v19 = vpop.f32.mrb[95].mxu1  ;;  %8585 = vmatmul.mubr.msk.f32.gmra.mrb[200].mxu1 %vm1649_vm9, %v11296_v21  ;;  %v8712_v58 = vpop.f32.mrb[139].mxu0 }
 0x2d6   : > { %8587 = vmatprep.mubr.msk.f32.mxu1 %vm9711_vm1, %v15056_v47  ;;  %9383 = vmatpush3.bf16.msra.mxu1 %v9382_v33 }
 0x2d7   : > { %9384 = vmatprep.subr.bf16.mxu1 %v15057_v52 }
 0x2d8   : > { %v11753_v18 = vpop.f32.mrb[96].mxu1  ;;  %v11755_v56 = vpop.f32.mrb[140].mxu0 }
 0x2d9   : > { %15094 = vst [vmem:[#allocation27_spill] sm:$0xff] %v11753_v18  ;;  %15095 = vst [vmem:[#allocation28_spill] sm:$0xff] %v11755_v56  ;;  %v8406_v19 = vpop.f32.mrb[97].mxu1  ;;  %8588 = vmatmul.mubr.msk.f32.gmra.mrb[202].mxu1 %vm1649_vm9, %v11315_v42  ;;  %v8715_v21 = vpop.f32.mrb[141].mxu0 }
 0x2da   : > { %8590 = vmatprep.mubr.msk.f32.mxu1 %vm9711_vm1, %v15056_v47 }
 0x2dc   : > { %v11762_v58 = vpop.f32.mrb[98].mxu1  ;;  %v11764_v8 = vpop.f32.mrb[142].mxu0 }
 0x2dd   : > { %15096 = vst [vmem:[#allocation29_spill] sm:$0xff] %v11762_v58  ;;  %15097 = vst [vmem:[#allocation30_spill] sm:$0xff] %v11764_v8  ;;  %v8409_v39 = vpop.f32.mrb[99].mxu1  ;;  %8591 = vmatmul.mubr.msk.f32.gmra.mrb[204].mxu1 %vm1649_vm9, %v11334_v63  ;;  %v8718_v31 = vpop.f32.mrb[143].mxu0 }
 0x2de   : > { %8776 = vmatprep.mubr.msk.f32.mxu1 %vm9711_vm1, %v15056_v47 }
 0x2e0   : > { %v11770_v33 = vpop.f32.mrb[100].mxu1  ;;  %v11772_v42 = vpop.f32.mrb[144].mxu0 }
 0x2e1   : > { %15098 = vst [vmem:[#allocation31_spill] sm:$0xff] %v11770_v33  ;;  %15099 = vst [vmem:[#allocation32_spill] sm:$0xff] %v11772_v42  ;;  %v8412_v19 = vpop.f32.mrb[101].mxu1  ;;  %v8721_v21 = vpop.f32.mrb[145].mxu0 }
 0x2e4   : > { %v11774_v18 = vpop.f32.mrb[102].mxu1  ;;  %v11776_v56 = vpop.f32.mrb[146].mxu0 }
 0x2e5   : > { %15100 = vst [vmem:[#allocation33_spill] sm:$0xff] %v11774_v18  ;;  %15101 = vst [vmem:[#allocation34_spill] sm:$0xff] %v11776_v56  ;;  %v8415_v58 = vpop.f32.mrb[103].mxu1  ;;  %v8724_v8 = vpop.f32.mrb[147].mxu0 }
 0x2e8   : > { %v11778_v39 = vpop.f32.mrb[104].mxu1  ;;  %v11780_v55 = vpop.f32.mrb[148].mxu0 }
 0x2e9   : > { %15102 = vst [vmem:[#allocation35_spill] sm:$0xff] %v11778_v39  ;;  %15103 = vst [vmem:[#allocation36_spill] sm:$0xff] %v11780_v55  ;;  %v8418_v63 = vpop.f32.mrb[105].mxu1  ;;  %v8727_v31 = vpop.f32.mrb[149].mxu0 }
 0x2ea   : > { %v7349_v63 = vld [vmem:[%s15012_s6 + $0xb0] sm:$0xff] }
 0x2ec   : > { %v11782_v59 = vpop.f32.mrb[106].mxu1  ;;  %v11784_v47 = vpop.f32.mrb[150].mxu0 }
 0x2ed   : > { %15104 = vst [vmem:[#allocation37_spill] sm:$0xff] %v11782_v59  ;;  %15105 = vst [vmem:[#allocation38_spill] sm:$0xff] %v11784_v47  ;;  %v8421_v33 = vpop.f32.mrb[107].mxu1  ;;  %v8730_v42 = vpop.f32.mrb[151].mxu0 }
 0x2ee   : > { %v7350_v33 = vld [vmem:[%s15012_s6 + $0xb8] sm:$0xff] }
 0x2ef   : > { %v9385_v42 = vpack.c.bf16 %v7350_v33, %v7349_v63  ;;  %v2831_v33 = vpop.permute.xlu0 %2830 }
 0x2f0   : > { %v11786_v19 = vpop.f32.mrb[108].mxu1  ;;  %v11788_v21 = vpop.f32.mrb[152].mxu0 }
 0x2f1   : > { %15106 = vst [vmem:[#allocation39_spill] sm:$0xff] %v11786_v19  ;;  %15107 = vst [vmem:[#allocation40_spill] sm:$0xff] %v11788_v21  ;;  %v8424_v18 = vpop.f32.mrb[109].mxu1  ;;  %v8733_v56 = vpop.f32.mrb[153].mxu0  ;;  %9386 = vmatpush3.bf16.msra.mxu1 %v9385_v42  ;;  %v11813_v42 = vld [vmem:[%s15011_s5] ss:$0 sm:$0xff] }
 0x2f2   : > { %9405 = vmatprep.subr.bf16.mxu1 %v15057_v52 }
 0x2f4   : > { %v11790_v58 = vpop.f32.mrb[110].mxu1  ;;  %v11792_v8 = vpop.f32.mrb[154].mxu0 }
 0x2f5   : > { %15108 = vst [vmem:[#allocation41_spill] sm:$0xff] %v11790_v58  ;;  %15109 = vst [vmem:[#allocation42_spill] sm:$0xff] %v11792_v8  ;;  %v8427_v39 = vpop.f32.mrb[111].mxu1  ;;  %v8736_v55 = vpop.f32.mrb[155].mxu0 }
 0x2f6   : > { %v2836_v8 = vpop.permute.xlu1 %2835 }
 0x2f8   : > { %v11800_v31 = vpop.f32.mrb[112].mxu1  ;;  %v11802_v19 = vpop.f32.mrb[156].mxu0 }
 0x2f9   : > { %15110 = vst [vmem:[#allocation43_spill] sm:$0xff] %v11800_v31  ;;  %15111 = vst [vmem:[#allocation44_spill] sm:$0xff] %v11802_v19  ;;  %v8430_v56 = vpop.f32.mrb[113].mxu1  ;;  %v8739_v18 = vpop.f32.mrb[157].mxu0 }
 0x2fa   : > { %v2841_v18 = vpop.permute.xlu1 %2840 }
 0x2fc   : > { %v11805_v39 = vpop.f32.mrb[114].mxu1  ;;  %v11807_v55 = vpop.f32.mrb[158].mxu0 }
 0x2fd   : > { %15112 = vst [vmem:[#allocation45_spill] sm:$0xff] %v11805_v39  ;;  %15113 = vst [vmem:[#allocation46_spill] sm:$0xff] %v11807_v55  ;;  %v8433_v58 = vpop.f32.mrb[115].mxu1  ;;  %v8742_v59 = vpop.f32.mrb[159].mxu0 }
 0x2fe   : > { %v2851_v32 = vpop.permute.xlu1 %2850 }
 0x300   : > { %v2150_v21 = vpop.f32.mrb[116].mxu1 }
 0x301   : > { %v2151_v47 = vadd.f32 %v2150_v21, %v11445_v50  ;;  %v8460_v63 = vpop.f32.mrb[117].mxu1  ;;  %v2846_v50 = vpop.permute.xlu0 %2845 }
 0x303   : > { %v2686_v56 = vadd.f32 %v11471_v4, %v2151_v47 }
 0x304   : > { %v2155_v31 = vpop.f32.mrb[118].mxu1 }
 0x305   : > { %v2738_v39 = vadd.f32 %v11813_v42, %v2686_v56  ;;  %v2156_v58 = vadd.f32 %v2155_v31, %v11451_v44  ;;  %v8463_v59 = vpop.f32.mrb[119].mxu1 }
 0x307   : > { %v3053_v55 = vmul.f32 %v2831_v33, %v2738_v39  ;;  %v2687_v19 = vadd.f32 %v11480_v48, %v2156_v58 }
 0x308   : > { %v2160_v21 = vpop.f32.mrb[120].mxu1 }
 0x309   : > { %v3144_v63 = vrot.slane %v3053_v55, 7  ;;  %v2739_v40 = vadd.f32 %v11813_v42, %v2687_v19  ;;  %v2161_v34 = vadd.f32 %v2160_v21, %v11457_v14  ;;  %v8466_v61 = vpop.f32.mrb[121].mxu1  ;;  %v2856_v14 = vpop.permute.xlu0 %2855 }
 0x30b   : > { %v3054_v47 = vmul.f32 %v2836_v8, %v2739_v40  ;;  %v2688_v4 = vadd.f32 %v11488_v57, %v2161_v34  ;;  %v11827_v19 = vsel %vm3143_vm10, 0.0, %v3144_v63  ;;  %v11833_v57 = vpop.permute.xlu1 %2860 }
 0x30c   : > { %v2165_v56 = vpop.f32.mrb[122].mxu1  ;;  %v11822_v35 = vpop.f32.mrb[160].mxu0  ;;  %v15037_v8 = vrot.slane %v11827_v19, 2 }
 0x30d   : > { %v3145_v44 = vrot.slane %v3054_v47, 7  ;;  %v2740_v31 = vadd.f32 %v11813_v42, %v2688_v4  ;;  %v2166_v48 = vadd.f32 %v2165_v56, %v11469_v0  ;;  %v8469_v39 = vpop.f32.mrb[123].mxu1  ;;  %v8745_v55 = vpop.f32.mrb[161].mxu0  ;;  %v15038_v0 = vrot.slane %v11827_v19, 1  ;;  %v3856_v56 = vld [vmem:[%s15012_s6 + $0x8] sm:$0xff] }
 0x30f   : > { %v3055_v61 = vmul.f32 %v2841_v18, %v2740_v31  ;;  %v2689_v33 = vadd.f32 %v11496_v16, %v2166_v48  ;;  %v11831_v40 = vsel %vm3143_vm10, %v3144_v63, %v3145_v44  ;;  %v3855_v63 = vld [vmem:[%s15012_s6] sm:$0xff] }
 0x310   : > { %v2170_v34 = vpop.f32.mrb[124].mxu1  ;;  %v3524_v58 = vrot.slane %v11831_v40, 2  ;;  %v3286_v59 = vrot.slane %v11831_v40, 1  ;;  %v9388_v39 = vpack.c.bf16 %v3856_v56, %v3855_v63 }
 0x311   : > { %v3147_v21 = vrot.slane %v3055_v61, 7  ;;  %v2741_v47 = vadd.f32 %v11813_v42, %v2689_v33  ;;  %v2171_v18 = vadd.f32 %v2170_v34, %v11478_v62  ;;  %v8472_v16 = vpop.f32.mrb[125].mxu1  ;;  %v11841_v4 = vpop.f32.mrb[162].mxu0 }
 0x312   : > { %15114 = vst [vmem:[#allocation47_spill] sm:$0xff] %v11841_v4  ;;  %v3525_v31 = vsel %vm1263_vm6, %v15037_v8, %v3524_v58  ;;  %v3287_v48 = vsel %vm1006_vm5, %v15038_v0, %v3286_v59  ;;  %v8748_v62 = vpop.f32.mrb[163].mxu0  ;;  %v2866_v34 = vpop.permute.xlu0 %2865  ;;  %9389 = vmatpush3.bf16.msra.mxu0 %v9388_v39 }
 0x313   : > { %v3056_v55 = vmul.f32 %v2846_v50, %v2741_v47  ;;  %v2690_v61 = vadd.f32 %v11504_v60, %v2171_v18  ;;  %3619 = vrot.lane.b32.xlu0 %v3525_v31, %s9715_s20  ;;  %3381 = vrot.lane.b32.xlu1 %v3287_v48, %s9714_s19  ;;  %v11859_v33 = vsel %vm3143_vm10, %v3145_v44, %v3147_v21  ;;  %v11868_v18 = vpop.permute.xlu1 %2870 }
 0x314   : > { %v2175_v16 = vpop.f32.mrb[126].mxu1  ;;  %v3526_v8 = vrot.slane %v11859_v33, 2  ;;  %v3288_v4 = vrot.slane %v11859_v33, 1  ;;  %9390 = vmatprep.subr.bf16.mxu0 %v15057_v52 }
 0x315   : > { %v3149_v0 = vrot.slane %v3056_v55, 7  ;;  %v2742_v63 = vadd.f32 %v11813_v42, %v2690_v61  ;;  %v2176_v50 = vadd.f32 %v2175_v16, %v11486_v12  ;;  %v8475_v60 = vpop.f32.mrb[127].mxu1  ;;  %v11865_v47 = vpop.f32.mrb[164].mxu0 }
 0x316   : > { %v3527_v44 = vsel %vm1263_vm6, %v3524_v58, %v3526_v8  ;;  %v3289_v56 = vsel %vm1006_vm5, %v3286_v59, %v3288_v4  ;;  %v8751_v31 = vpop.f32.mrb[165].mxu0 }
 0x317   : > { %v3057_v48 = vmul.f32 %v2851_v32, %v2742_v63  ;;  %v2691_v62 = vadd.f32 %v11512_v41, %v2176_v50  ;;  %3621 = vrot.lane.b32.xlu1 %v3527_v44, %s9715_s20  ;;  %3383 = vrot.lane.b32.xlu0 %v3289_v56, %s9714_s19  ;;  %v11876_v12 = vsel %vm3143_vm10, %v3147_v21, %v3149_v0  ;;  %v11884_v50 = vpop.permute.xlu0 %2875  ;;  %v11892_v56 = vpop.permute.xlu1 %2880 }
 0x318   : > { %v2180_v39 = vpop.f32.mrb[128].mxu1  ;;  %v3528_v55 = vrot.slane %v11876_v12, 2  ;;  %v3290_v61 = vrot.slane %v11876_v12, 1 }
 0x319   : > { %v3151_v16 = vrot.slane %v3057_v48, 7  ;;  %v2743_v58 = vadd.f32 %v11813_v42, %v2691_v62  ;;  %v2181_v59 = vadd.f32 %v2180_v39, %v11494_v3  ;;  %v8478_v32 = vpop.f32.mrb[129].mxu1 }
 0x31a   : > { %v3529_v41 = vsel %vm1263_vm6, %v3526_v8, %v3528_v55  ;;  %v3291_v63 = vsel %vm1006_vm5, %v3288_v4, %v3290_v61 }
 0x31b   : > { %v3058_v60 = vmul.f32 %v2856_v14, %v2743_v58  ;;  %v2692_v21 = vadd.f32 %v11520_v1, %v2181_v59  ;;  %3623 = vrot.lane.b32.xlu0 %v3529_v41, %s9715_s20  ;;  %3385 = vrot.lane.b32.xlu1 %v3291_v63, %s9714_s19  ;;  %v11890_v44 = vsel %vm3143_vm10, %v3149_v0, %v3151_v16  ;;  %v11909_v63 = vpop.permute.xlu0 %2885 }
 0x31c   : > { %v2185_v3 = vpop.f32.mrb[130].mxu1  ;;  %v3530_v31 = vrot.slane %v11890_v44, 2  ;;  %v3292_v8 = vrot.slane %v11890_v44, 1 }
 0x31d   : > { %v3153_v4 = vrot.slane %v3058_v60, 7  ;;  %v2744_v48 = vadd.f32 %v11813_v42, %v2692_v21  ;;  %v2186_v14 = vadd.f32 %v2185_v3, %v11502_v26  ;;  %v8481_v1 = vpop.f32.mrb[131].mxu1  ;;  %v11913_v60 = vpop.permute.xlu1 %2890 }
 0x31e   : > { %v3531_v62 = vsel %vm1263_vm6, %v3528_v55, %v3530_v31  ;;  %v3293_v39 = vsel %vm1006_vm5, %v3290_v61, %v3292_v8 }
 0x31f   : > { %v3059_v0 = vmul.f32 %v11833_v57, %v2744_v48  ;;  %v2693_v58 = vadd.f32 %v11528_v53, %v2186_v14  ;;  %3625 = vrot.lane.b32.xlu1 %v3531_v62, %s9715_s20  ;;  %3387 = vrot.lane.b32.xlu0 %v3293_v39, %s9714_s19  ;;  %v11905_v59 = vsel %vm3143_vm10, %v3151_v16, %v3153_v4 }
 0x320   : > { %v2190_v32 = vpop.f32.mrb[132].mxu1  ;;  %v3532_v41 = vrot.slane %v11905_v59, 2  ;;  %v3294_v26 = vrot.slane %v11905_v59, 1 }
 0x321   : > { %v3155_v55 = vrot.slane %v3059_v0, 7  ;;  %v2745_v61 = vadd.f32 %v11813_v42, %v2693_v58  ;;  %v2191_v57 = vadd.f32 %v2190_v32, %v11510_v6  ;;  %v8484_v53 = vpop.f32.mrb[133].mxu1  ;;  %v11929_v58 = vpop.permute.xlu0 %2895 }
 0x322   : > { %v3533_v21 = vsel %vm1263_vm6, %v3530_v31, %v3532_v41  ;;  %v3295_v16 = vsel %vm1006_vm5, %v3292_v8, %v3294_v26 }
 0x323   : > { %v3060_v3 = vmul.f32 %v2866_v34, %v2745_v61  ;;  %v2694_v48 = vadd.f32 %v11542_v13, %v2191_v57  ;;  %3627 = vrot.lane.b32.xlu0 %v3533_v21, %s9715_s20  ;;  %3389 = vrot.lane.b32.xlu1 %v3295_v16, %s9714_s19  ;;  %v11921_v14 = vsel %vm3143_vm10, %v3153_v4, %v3155_v55  ;;  %v11938_v57 = vpop.permute.xlu1 %2900 }
 0x324   : > { %v2195_v1 = vpop.f32.mrb[134].mxu1  ;;  %v3534_v6 = vrot.slane %v11921_v14, 2  ;;  %v3296_v62 = vrot.slane %v11921_v14, 1 }
 0x325   : > { %v3157_v39 = vrot.slane %v3060_v3, 7  ;;  %v2746_v31 = vadd.f32 %v11813_v42, %v2694_v48  ;;  %v2196_v8 = vadd.f32 %v2195_v1, %v11518_v43  ;;  %v8487_v34 = vpop.f32.mrb[135].mxu1 }
 0x326   : > { %v3535_v13 = vsel %vm1263_vm6, %v3532_v41, %v3534_v6  ;;  %v3297_v0 = vsel %vm1006_vm5, %v3294_v26, %v3296_v62  ;;  %v11955_v34 = vpop.permute.xlu0 %2905 }
 0x327   : > { %v3061_v4 = vmul.f32 %v11868_v18, %v2746_v31  ;;  %v2695_v32 = vadd.f32 %v11551_v27, %v2196_v8  ;;  %3629 = vrot.lane.b32.xlu1 %v3535_v13, %s9715_s20  ;;  %3391 = vrot.lane.b32.xlu0 %v3297_v0, %s9714_s19  ;;  %v11936_v61 = vsel %vm3143_vm10, %v3155_v55, %v3157_v39  ;;  %v3857_v13 = vld [vmem:[%s15012_s6 + $0x10] sm:$0xff]  ;;  %v11965_v0 = vpop.permute.xlu1 %2910 }
 0x328   : > { %v2200_v43 = vpop.f32.mrb[136].mxu1  ;;  %v3536_v41 = vrot.slane %v11936_v61, 2  ;;  %v3298_v26 = vrot.slane %v11936_v61, 1 }
 0x329   : > { %v3159_v53 = vrot.slane %v3061_v4, 7  ;;  %v2747_v21 = vadd.f32 %v11813_v42, %v2695_v32  ;;  %v2201_v18 = vadd.f32 %v2200_v43, %v11526_v37  ;;  %v8490_v27 = vpop.f32.mrb[137].mxu1 }
 0x32a   : > { %v3537_v16 = vsel %vm1263_vm6, %v3534_v6, %v3536_v41  ;;  %v3299_v3 = vsel %vm1006_vm5, %v3296_v62, %v3298_v26 }
 0x32b   : > { %v3062_v55 = vmul.f32 %v11884_v50, %v2747_v21  ;;  %v2696_v48 = vadd.f32 %v11559_v23, %v2201_v18  ;;  %3631 = vrot.lane.b32.xlu0 %v3537_v16, %s9715_s20  ;;  %3393 = vrot.lane.b32.xlu1 %v3299_v3, %s9714_s19  ;;  %v11951_v1 = vsel %vm3143_vm10, %v3157_v39, %v3159_v53  ;;  %v3858_v39 = vld [vmem:[%s15012_s6 + $0x18] sm:$0xff] }
 0x32c   : > { %v2205_v31 = vpop.f32.mrb[138].mxu1  ;;  %v3538_v8 = vrot.slane %v11951_v1, 2  ;;  %v3300_v37 = vrot.slane %v11951_v1, 1  ;;  %v9391_v43 = vpack.c.bf16 %v3858_v39, %v3857_v13 }
 0x32d   : > { %v3161_v6 = vrot.slane %v3062_v55, 7  ;;  %v2748_v62 = vadd.f32 %v11813_v42, %v2696_v48  ;;  %v2206_v50 = vadd.f32 %v2205_v31, %v11540_v22  ;;  %v8493_v23 = vpop.f32.mrb[139].mxu1 }
 0x32e   : > { %v3539_v4 = vsel %vm1263_vm6, %v3536_v41, %v3538_v8  ;;  %v3301_v32 = vsel %vm1006_vm5, %v3298_v26, %v3300_v37  ;;  %9392 = vmatpush3.bf16.msra.mxu0 %v9391_v43 }
 0x32f   : > { %v3063_v21 = vmul.f32 %v11892_v56, %v2748_v62  ;;  %v2697_v22 = vadd.f32 %v11567_v30, %v2206_v50  ;;  %3633 = vrot.lane.b32.xlu1 %v3539_v4, %s9715_s20  ;;  %3395 = vrot.lane.b32.xlu0 %v3301_v32, %s9714_s19  ;;  %v11974_v18 = vsel %vm3143_vm10, %v3159_v53, %v3161_v6  ;;  %v11983_v53 = vpop.permute.xlu0 %2915 }
 0x330   : > { %v2210_v27 = vpop.f32.mrb[140].mxu1  ;;  %v3540_v16 = vrot.slane %v11974_v18, 2  ;;  %v3302_v3 = vrot.slane %v11974_v18, 1  ;;  %9393 = vmatprep.subr.bf16.mxu0 %v15057_v52 }
 0x331   : > { %v3163_v41 = vrot.slane %v3063_v21, 7  ;;  %v2749_v26 = vadd.f32 %v11813_v42, %v2697_v22  ;;  %v2211_v56 = vadd.f32 %v2210_v27, %v11549_v20  ;;  %v8496_v55 = vpop.f32.mrb[141].mxu1  ;;  %v11992_v20 = vpop.permute.xlu1 %2920 }
 0x332   : > { %v3541_v30 = vsel %vm1263_vm6, %v3538_v8, %v3540_v16  ;;  %v3303_v48 = vsel %vm1006_vm5, %v3300_v37, %v3302_v3 }
 0x333   : > { %v3064_v31 = vmul.f32 %v11909_v63, %v2749_v26  ;;  %v2698_v62 = vadd.f32 %v11575_v29, %v2211_v56  ;;  %3635 = vrot.lane.b32.xlu0 %v3541_v30, %s9715_s20  ;;  %3397 = vrot.lane.b32.xlu1 %v3303_v48, %s9714_s19  ;;  %v11990_v50 = vsel %vm3143_vm10, %v3161_v6, %v3163_v41  ;;  %v12009_v26 = vpop.permute.xlu0 %2925 }
 0x334   : > { %v2215_v23 = vpop.f32.mrb[142].mxu1  ;;  %v3542_v8 = vrot.slane %v11990_v50, 2  ;;  %v3304_v37 = vrot.slane %v11990_v50, 1 }
 0x335   : > { %v3165_v13 = vrot.slane %v3064_v31, 7  ;;  %v2750_v39 = vadd.f32 %v11813_v42, %v2698_v62  ;;  %v2216_v63 = vadd.f32 %v2215_v23, %v11557_v10  ;;  %v8499_v29 = vpop.f32.mrb[143].mxu1  ;;  %v12013_v56 = vpop.permute.xlu1 %2930 }
 0x336   : > { %v3543_v4 = vsel %vm1263_vm6, %v3540_v16, %v3542_v8  ;;  %v3305_v32 = vsel %vm1006_vm5, %v3302_v3, %v3304_v37 }
 0x337   : > { %v3065_v6 = vmul.f32 %v11913_v60, %v2750_v39  ;;  %v2699_v43 = vadd.f32 %v11583_v24, %v2216_v63  ;;  %3637 = vrot.lane.b32.xlu1 %v3543_v4, %s9715_s20  ;;  %3399 = vrot.lane.b32.xlu0 %v3305_v32, %s9714_s19  ;;  %v12005_v21 = vsel %vm3143_vm10, %v3163_v41, %v3165_v13  ;;  %v12030_v29 = vpop.permute.xlu0 %2935 }
 0x338   : > { %v2220_v22 = vpop.f32.mrb[144].mxu1  ;;  %v3544_v27 = vrot.slane %v12005_v21, 2  ;;  %v3306_v10 = vrot.slane %v12005_v21, 1 }
 0x339   : > { %v3167_v16 = vrot.slane %v3065_v6, 7  ;;  %v2751_v3 = vadd.f32 %v11813_v42, %v2699_v43  ;;  %v2221_v60 = vadd.f32 %v2220_v22, %v11565_v38  ;;  %v8502_v24 = vpop.f32.mrb[145].mxu1  ;;  %v12039_v6 = vpop.permute.xlu1 %2940 }
 0x33a   : > { %v3545_v55 = vsel %vm1263_vm6, %v3542_v8, %v3544_v27  ;;  %v3307_v41 = vsel %vm1006_vm5, %v3304_v37, %v3306_v10 }
 0x33b   : > { %v3066_v30 = vmul.f32 %v11929_v58, %v2751_v3  ;;  %v2700_v48 = vadd.f32 %v11591_v54, %v2221_v60  ;;  %3639 = vrot.lane.b32.xlu0 %v3545_v55, %s9715_s20  ;;  %3401 = vrot.lane.b32.xlu1 %v3307_v41, %s9714_s19  ;;  %v12022_v31 = vsel %vm3143_vm10, %v3165_v13, %v3167_v16 }
 0x33c   : > { %v2225_v62 = vpop.f32.mrb[146].mxu1  ;;  %v3546_v38 = vrot.slane %v12022_v31, 2  ;;  %v3308_v23 = vrot.slane %v12022_v31, 1 }
 0x33d   : > { %v3169_v39 = vrot.slane %v3066_v30, 7  ;;  %v2752_v8 = vadd.f32 %v11813_v42, %v2700_v48  ;;  %v2226_v37 = vadd.f32 %v2225_v62, %v11573_v11  ;;  %v8505_v58 = vpop.f32.mrb[147].mxu1  ;;  %v12056_v48 = vpop.permute.xlu0 %2945 }
 0x33e   : > { %v3547_v54 = vsel %vm1263_vm6, %v3544_v27, %v3546_v38  ;;  %v3309_v63 = vsel %vm1006_vm5, %v3306_v10, %v3308_v23 }
 0x33f   : > { %v3067_v13 = vmul.f32 %v11938_v57, %v2752_v8  ;;  %v2701_v4 = vadd.f32 %v11599_v49, %v2226_v37  ;;  %3641 = vrot.lane.b32.xlu1 %v3547_v54, %s9715_s20  ;;  %3403 = vrot.lane.b32.xlu0 %v3309_v63, %s9714_s19  ;;  %v12037_v32 = vsel %vm3143_vm10, %v3167_v16, %v3169_v39  ;;  %v12066_v8 = vpop.permute.xlu1 %2950 }
 0x340   : > { %v2230_v11 = vpop.f32.mrb[148].mxu1  ;;  %v3548_v43 = vrot.slane %v12037_v32, 2  ;;  %v3310_v22 = vrot.slane %v12037_v32, 1 }
 0x341   : > { %v3171_v27 = vrot.slane %v3067_v13, 7  ;;  %v2753_v10 = vadd.f32 %v11813_v42, %v2701_v4  ;;  %v2231_v57 = vadd.f32 %v2230_v11, %v11581_v9  ;;  %v8508_v49 = vpop.f32.mrb[149].mxu1 }
 0x342   : > { %v3549_v3 = vsel %vm1263_vm6, %v3546_v38, %v3548_v43  ;;  %v3311_v60 = vsel %vm1006_vm5, %v3308_v23, %v3310_v22  ;;  %v3859_v23 = vld [vmem:[%s15012_s6 + $0x20] sm:$0xff] }
 0x343   : > { %v3068_v16 = vmul.f32 %v11955_v34, %v2753_v10  ;;  %v2702_v24 = vadd.f32 %v11607_v28, %v2231_v57  ;;  %3643 = vrot.lane.b32.xlu0 %v3549_v3, %s9715_s20  ;;  %3405 = vrot.lane.b32.xlu1 %v3311_v60, %s9714_s19  ;;  %v12052_v55 = vsel %vm3143_vm10, %v3169_v39, %v3171_v27  ;;  %v3860_v39 = vld [vmem:[%s15012_s6 + $0x28] sm:$0xff] }
 0x344   : > { %v2235_v41 = vpop.f32.mrb[150].mxu1  ;;  %v3550_v30 = vrot.slane %v12052_v55, 2  ;;  %v3312_v9 = vrot.slane %v12052_v55, 1  ;;  %v9394_v54 = vpack.c.bf16 %v3860_v39, %v3859_v23 }
 0x345   : > { %v3173_v62 = vrot.slane %v3068_v16, 7  ;;  %v2754_v38 = vadd.f32 %v11813_v42, %v2702_v24  ;;  %v2236_v34 = vadd.f32 %v2235_v41, %v11589_v46  ;;  %v8511_v28 = vpop.f32.mrb[151].mxu1 }
 0x346   : > { %v3551_v37 = vsel %vm1263_vm6, %v3548_v43, %v3550_v30  ;;  %v3313_v58 = vsel %vm1006_vm5, %v3310_v22, %v3312_v9  ;;  %9395 = vmatpush3.bf16.msra.mxu0 %v9394_v54 }
 0x347   : > { %v3069_v63 = vmul.f32 %v11965_v0, %v2754_v38  ;;  %v2703_v46 = vadd.f32 %v11621_v2, %v2236_v34  ;;  %3645 = vrot.lane.b32.xlu1 %v3551_v37, %s9715_s20  ;;  %3407 = vrot.lane.b32.xlu0 %v3313_v58, %s9714_s19  ;;  %v12075_v13 = vsel %vm3143_vm10, %v3171_v27, %v3173_v62  ;;  %v12084_v27 = vpop.permute.xlu0 %2955 }
 0x348   : > { %v2240_v4 = vpop.f32.mrb[152].mxu1  ;;  %v3552_v11 = vrot.slane %v12075_v13, 2  ;;  %v3314_v10 = vrot.slane %v12075_v13, 1  ;;  %9396 = vmatprep.subr.bf16.mxu0 %v15057_v52 }
 0x349   : > { %v3175_v43 = vrot.slane %v3069_v63, 7  ;;  %v2755_v22 = vadd.f32 %v11813_v42, %v2703_v46  ;;  %v2241_v0 = vadd.f32 %v2240_v4, %v11597_v17  ;;  %v8514_v57 = vpop.f32.mrb[153].mxu1  ;;  %v12093_v17 = vpop.permute.xlu1 %2960 }
 0x34a   : > { %v3553_v2 = vsel %vm1263_vm6, %v3550_v30, %v3552_v11  ;;  %v3315_v49 = vsel %vm1006_vm5, %v3312_v9, %v3314_v10 }
 0x34b   : > { %v3070_v3 = vmul.f32 %v11983_v53, %v2755_v22  ;;  %v2704_v60 = vadd.f32 %v11630_v25, %v2241_v0  ;;  %3647 = vrot.lane.b32.xlu0 %v3553_v2, %s9715_s20  ;;  %3409 = vrot.lane.b32.xlu1 %v3315_v49, %s9714_s19  ;;  %v12091_v16 = vsel %vm3143_vm10, %v3173_v62, %v3175_v43  ;;  %v15115_v53 = vld [vmem:[#allocation2_spill] sm:$0xff]  ;;  %v12110_v46 = vpop.permute.xlu0 %2965 }
 0x34c   : > { %v2245_v24 = vpop.f32.mrb[154].mxu1  ;;  %v3554_v41 = vrot.slane %v12091_v16, 2  ;;  %v3316_v30 = vrot.slane %v12091_v16, 1 }
 0x34d   : > { %v3177_v9 = vrot.slane %v3070_v3, 7  ;;  %v2756_v38 = vadd.f32 %v11813_v42, %v2704_v60  ;;  %v2246_v34 = vadd.f32 %v2245_v24, %v15115_v53  ;;  %v8517_v25 = vpop.f32.mrb[155].mxu1 }
 0x34e   : > { %v3555_v28 = vsel %vm1263_vm6, %v3552_v11, %v3554_v41  ;;  %v3317_v23 = vsel %vm1006_vm5, %v3314_v10, %v3316_v30  ;;  %v12114_v10 = vpop.permute.xlu1 %2970 }
 0x34f   : > { %v3071_v62 = vmul.f32 %v11992_v20, %v2756_v38  ;;  %v2705_v39 = vadd.f32 %v11638_v51, %v2246_v34  ;;  %3649 = vrot.lane.b32.xlu1 %v3555_v28, %s9715_s20  ;;  %3411 = vrot.lane.b32.xlu0 %v3317_v23, %s9714_s19  ;;  %v12106_v37 = vsel %vm3143_vm10, %v3175_v43, %v3177_v9  ;;  %v12131_v53 = vpop.permute.xlu0 %2975 }
 0x350   : > { %v2250_v58 = vpop.f32.mrb[156].mxu1  ;;  %v3556_v54 = vrot.slane %v12106_v37, 2  ;;  %v3318_v63 = vrot.slane %v12106_v37, 1 }
 0x351   : > { %v3179_v4 = vrot.slane %v3071_v62, 7  ;;  %v2757_v11 = vadd.f32 %v11813_v42, %v2705_v39  ;;  %v2251_v20 = vadd.f32 %v2250_v58, %v11619_v45  ;;  %v8520_v51 = vpop.f32.mrb[157].mxu1 }
 0x352   : > { %v3557_v22 = vsel %vm1263_vm6, %v3554_v41, %v3556_v54  ;;  %v3319_v43 = vsel %vm1006_vm5, %v3316_v30, %v3318_v63  ;;  %v15116_v41 = vld [vmem:[#allocation3_spill] sm:$0xff]  ;;  %v12140_v28 = vpop.permute.xlu1 %2980 }
 0x353   : > { %v3072_v0 = vmul.f32 %v12009_v26, %v2757_v11  ;;  %v2706_v57 = vadd.f32 %v11646_v5, %v2251_v20  ;;  %3651 = vrot.lane.b32.xlu0 %v3557_v22, %s9715_s20  ;;  %3413 = vrot.lane.b32.xlu1 %v3319_v43, %s9714_s19  ;;  %v12123_v2 = vsel %vm3143_vm10, %v3177_v9, %v3179_v4 }
 0x354   : > { %v2255_v49 = vpop.f32.mrb[158].mxu1  ;;  %v3558_v45 = vrot.slane %v12123_v2, 2  ;;  %v3320_v3 = vrot.slane %v12123_v2, 1 }
 0x355   : > { %v3181_v60 = vrot.slane %v3072_v0, 7  ;;  %v2758_v24 = vadd.f32 %v11813_v42, %v2706_v57  ;;  %v2256_v30 = vadd.f32 %v2255_v49, %v15116_v41  ;;  %v8523_v26 = vpop.f32.mrb[159].mxu1  ;;  %v12157_v49 = vpop.permute.xlu0 %2985 }
 0x356   : > { %v3559_v5 = vsel %vm1263_vm6, %v3556_v54, %v3558_v45  ;;  %v3321_v38 = vsel %vm1006_vm5, %v3318_v63, %v3320_v3  ;;  %v12161_v41 = vpop.permute.xlu1 %2990 }
 0x357   : > { %v3073_v9 = vmul.f32 %v12013_v56, %v2758_v24  ;;  %v2707_v34 = vadd.f32 %v11654_v15, %v2256_v30  ;;  %3653 = vrot.lane.b32.xlu1 %v3559_v5, %s9715_s20  ;;  %3415 = vrot.lane.b32.xlu0 %v3321_v38, %s9714_s19  ;;  %v12138_v25 = vsel %vm3143_vm10, %v3179_v4, %v3181_v60  ;;  %v15117_v56 = vld [vmem:[#allocation4_spill] sm:$0xff] }
 0x358   : > { %v2260_v23 = vpop.f32.mrb[160].mxu1  ;;  %v3560_v62 = vrot.slane %v12138_v25, 2  ;;  %v3322_v39 = vrot.slane %v12138_v25, 1 }
 0x359   : > { %v3183_v58 = vrot.slane %v3073_v9, 7  ;;  %v2759_v54 = vadd.f32 %v11813_v42, %v2707_v34  ;;  %v2261_v63 = vadd.f32 %v2260_v23, %v15117_v56  ;;  %v8526_v15 = vpop.f32.mrb[161].mxu1 }
 0x35a   : > { %v3561_v11 = vsel %vm1263_vm6, %v3558_v45, %v3560_v62  ;;  %v3323_v20 = vsel %vm1006_vm5, %v3320_v3, %v3322_v39  ;;  %v3862_v15 = vld [vmem:[%s15012_s6 + $0x38] sm:$0xff] }
 0x35b   : > { %v3074_v4 = vmul.f32 %v12030_v29, %v2759_v54  ;;  %v2708_v51 = vadd.f32 %v11662_v7, %v2261_v63  ;;  %3655 = vrot.lane.b32.xlu0 %v3561_v11, %s9715_s20  ;;  %3417 = vrot.lane.b32.xlu1 %v3323_v20, %s9714_s19  ;;  %v12153_v22 = vsel %vm3143_vm10, %v3181_v60, %v3183_v58  ;;  %v15119_v29 = vld [vmem:[#allocation5_spill] sm:$0xff]  ;;  %v12184_v11 = vpop.permute.xlu0 %2995 }
 0x35c   : > { %15118 = vst [vmem:[#allocation2_spill] sm:$0xff] %v12153_v22  ;;  %v2265_v43 = vpop.f32.mrb[162].mxu1  ;;  %v3562_v0 = vrot.slane %v12153_v22, 2  ;;  %v3324_v57 = vrot.slane %v12153_v22, 1 }
 0x35d   : > { %v3185_v45 = vrot.slane %v3074_v4, 7  ;;  %v2760_v3 = vadd.f32 %v11813_v42, %v2708_v51  ;;  %v2266_v24 = vadd.f32 %v2265_v43, %v15119_v29  ;;  %v8529_v7 = vpop.f32.mrb[163].mxu1  ;;  %v15122_v4 = vld [vmem:[#allocation12_spill] sm:$0xff] }
 0x35e   : > { %v3563_v30 = vsel %vm1263_vm6, %v3560_v62, %v3562_v0  ;;  %v3325_v60 = vsel %vm1006_vm5, %v3322_v39, %v3324_v57  ;;  %v15121_v39 = vld [vmem:[#allocation6_spill] sm:$0xff] }
 0x35f   : > { %v3075_v26 = vmul.f32 %v12039_v6, %v2760_v3  ;;  %v2709_v5 = vadd.f32 %v11670_v36, %v2266_v24  ;;  %3657 = vrot.lane.b32.xlu1 %v3563_v30, %s9715_s20  ;;  %3419 = vrot.lane.b32.xlu0 %v3325_v60, %s9714_s19  ;;  %v12170_v38 = vsel %vm3143_vm10, %v3183_v58, %v3185_v45  ;;  %v3861_v58 = vld [vmem:[%s15012_s6 + $0x30] sm:$0xff]  ;;  %v15124_v30 = vld [vmem:[#allocation7_spill] sm:$0xff] }
 0x360   : > { %15120 = vst [vmem:[#allocation3_spill] sm:$0xff] %v12170_v38  ;;  %v2270_v9 = vpop.f32.mrb[164].mxu1  ;;  %v3564_v34 = vrot.slane %v12170_v38, 2  ;;  %v3326_v23 = vrot.slane %v12170_v38, 1  ;;  %v9397_v24 = vpack.c.bf16 %v3862_v15, %v3861_v58  ;;  %v15127_v58 = vld [vmem:[#allocation8_spill] sm:$0xff]  ;;  %v15148_v38 = vld [vmem:[#allocation30_spill] sm:$0xff] }
 0x361   : > { %v3187_v54 = vrot.slane %v3075_v26, 7  ;;  %v2761_v62 = vadd.f32 %v11813_v42, %v2709_v5  ;;  %v2271_v56 = vadd.f32 %v2270_v9, %v15121_v39  ;;  %v8532_v6 = vpop.f32.mrb[165].mxu1 }
 0x362   : > { %v3565_v36 = vsel %vm1263_vm6, %v3562_v0, %v3564_v34  ;;  %v3327_v63 = vsel %vm1006_vm5, %v3324_v57, %v3326_v23  ;;  %v12193_v0 = vpop.permute.xlu1 %3000  ;;  %9398 = vmatpush3.bf16.msra.mxu0 %v9397_v24  ;;  %v15128_v24 = vld [vmem:[#allocation16_spill] sm:$0xff] }
 0x363   : > { %v3076_v20 = vmul.f32 %v12056_v48, %v2761_v62  ;;  %v2710_v51 = vadd.f32 %v15122_v4, %v2271_v56  ;;  %3659 = vrot.lane.b32.xlu0 %v3565_v36, %s9715_s20  ;;  %3421 = vrot.lane.b32.xlu1 %v3327_v63, %s9714_s19  ;;  %v12191_v43 = vsel %vm3143_vm10, %v3185_v45, %v3187_v54  ;;  %v15125_v62 = vld [vmem:[#allocation14_spill] sm:$0xff] }
 0x364   : > { %15123 = vst [vmem:[#allocation4_spill] sm:$0xff] %v12191_v43  ;;  %v2275_v57 = vpop.f32.mrb[166].mxu1  ;;  %v3566_v3 = vrot.slane %v12191_v43, 2  ;;  %v3328_v29 = vrot.slane %v12191_v43, 1  ;;  %9399 = vmatprep.subr.bf16.mxu0 %v15057_v52 }
 0x365   : > { %v3189_v7 = vrot.slane %v3076_v20, 7  ;;  %v2762_v48 = vadd.f32 %v11813_v42, %v2710_v51  ;;  %v2276_v60 = vadd.f32 %v2275_v57, %v15124_v30  ;;  %v8535_v26 = vpop.f32.mrb[167].mxu1 }
 0x366   : > { %v3567_v5 = vsel %vm1263_vm6, %v3564_v34, %v3566_v3  ;;  %v3329_v9 = vsel %vm1006_vm5, %v3326_v23, %v3328_v29  ;;  %v12211_v34 = vpop.permute.xlu0 %3005  ;;  %v12215_v4 = vpop.permute.xlu1 %3010 }
 0x367   : > { %v3077_v45 = vmul.f32 %v12066_v8, %v2762_v48  ;;  %v2711_v39 = vadd.f32 %v15125_v62, %v2276_v60  ;;  %3661 = vrot.lane.b32.xlu1 %v3567_v5, %s9715_s20  ;;  %3423 = vrot.lane.b32.xlu0 %v3329_v9, %s9714_s19  ;;  %v12206_v56 = vsel %vm3143_vm10, %v3187_v54, %v3189_v7 }
 0x368   : > { %15126 = vst [vmem:[#allocation5_spill] sm:$0xff] %v12206_v56  ;;  %v2280_v6 = vpop.f32.mrb[168].mxu1  ;;  %v3568_v36 = vrot.slane %v12206_v56, 2  ;;  %v3330_v63 = vrot.slane %v12206_v56, 1 }
 0x369   : > { %v3191_v23 = vrot.slane %v3077_v45, 7  ;;  %v2763_v8 = vadd.f32 %v11813_v42, %v2711_v39  ;;  %v2281_v15 = vadd.f32 %v2280_v6, %v15127_v58  ;;  %v8538_v20 = vpop.f32.mrb[169].mxu1 }
 0x36a   : > { %v3569_v54 = vsel %vm1263_vm6, %v3566_v3, %v3568_v36  ;;  %v3331_v51 = vsel %vm1006_vm5, %v3328_v29, %v3330_v63  ;;  %v15130_v29 = vld [vmem:[#allocation11_spill] sm:$0xff]  ;;  %v12232_v6 = vpop.permute.xlu0 %3015  ;;  %v12241_v20 = vpop.permute.xlu1 %3020 }
 0x36b   : > { %v3078_v57 = vmul.f32 %v12084_v27, %v2763_v8  ;;  %v2712_v48 = vadd.f32 %v15128_v24, %v2281_v15  ;;  %3663 = vrot.lane.b32.xlu0 %v3569_v54, %s9715_s20  ;;  %3425 = vrot.lane.b32.xlu1 %v3331_v51, %s9714_s19  ;;  %v12224_v30 = vsel %vm3143_vm10, %v3189_v7, %v3191_v23  ;;  %v15131_v8 = vld [vmem:[#allocation18_spill] sm:$0xff] }
 0x36c   : > { %15129 = vst [vmem:[#allocation6_spill] sm:$0xff] %v12224_v30  ;;  %v2285_v60 = vpop.f32.mrb[170].mxu1  ;;  %v3570_v26 = vrot.slane %v12224_v30, 2  ;;  %v3332_v5 = vrot.slane %v12224_v30, 1 }
 0x36d   : > { %v3193_v9 = vrot.slane %v3078_v57, 7  ;;  %v2764_v3 = vadd.f32 %v11813_v42, %v2712_v48  ;;  %v2286_v45 = vadd.f32 %v2285_v60, %v15130_v29  ;;  %v8541_v27 = vpop.f32.mrb[171].mxu1  ;;  %v15134_v29 = vld [vmem:[#allocation20_spill] sm:$0xff] }
 0x36e   : > { %v3571_v62 = vsel %vm1263_vm6, %v3568_v36, %v3570_v26  ;;  %v3333_v39 = vsel %vm1006_vm5, %v3330_v63, %v3332_v5 }
 0x36f   : > { %v3079_v7 = vmul.f32 %v12093_v17, %v2764_v3  ;;  %v2713_v58 = vadd.f32 %v15131_v8, %v2286_v45  ;;  %3665 = vrot.lane.b32.xlu1 %v3571_v62, %s9715_s20  ;;  %3427 = vrot.lane.b32.xlu0 %v3333_v39, %s9714_s19  ;;  %v12239_v15 = vsel %vm3143_vm10, %v3191_v23, %v3193_v9  ;;  %v15133_v17 = vld [vmem:[#allocation13_spill] sm:$0xff]  ;;  %v12258_v8 = vpop.permute.xlu0 %3025 }
 0x370   : > { %15132 = vst [vmem:[#allocation12_spill] sm:$0xff] %v12239_v15  ;;  %v2290_v54 = vpop.f32.mrb[172].mxu1  ;;  %v3572_v36 = vrot.slane %v12239_v15, 2  ;;  %v3334_v63 = vrot.slane %v12239_v15, 1 }
 0x371   : > { %v3195_v51 = vrot.slane %v3079_v7, 7  ;;  %v2765_v57 = vadd.f32 %v11813_v42, %v2713_v58  ;;  %v2291_v24 = vadd.f32 %v2290_v54, %v15133_v17  ;;  %v8544_v48 = vpop.f32.mrb[173].mxu1 }
 0x372   : > { %v3573_v60 = vsel %vm1263_vm6, %v3570_v26, %v3572_v36  ;;  %v3335_v3 = vsel %vm1006_vm5, %v3332_v5, %v3334_v63  ;;  %v15137_v48 = vld [vmem:[#allocation22_spill] sm:$0xff] }
 0x373   : > { %v3080_v23 = vmul.f32 %v12110_v46, %v2765_v57  ;;  %v2714_v45 = vadd.f32 %v15134_v29, %v2291_v24  ;;  %3667 = vrot.lane.b32.xlu0 %v3573_v60, %s9715_s20  ;;  %3429 = vrot.lane.b32.xlu1 %v3335_v3, %s9714_s19  ;;  %v12254_v27 = vsel %vm3143_vm10, %v3193_v9, %v3195_v51  ;;  %v15136_v46 = vld [vmem:[#allocation15_spill] sm:$0xff]  ;;  %v12262_v57 = vpop.permute.xlu1 %3030 }
 0x374   : > { %15135 = vst [vmem:[#allocation7_spill] sm:$0xff] %v12254_v27  ;;  %v2295_v62 = vpop.f32.mrb[174].mxu1  ;;  %v3574_v39 = vrot.slane %v12254_v27, 2  ;;  %v3336_v7 = vrot.slane %v12254_v27, 1 }
 0x375   : > { %v3197_v26 = vrot.slane %v3080_v23, 7  ;;  %v2766_v5 = vadd.f32 %v11813_v42, %v2714_v45  ;;  %v2296_v58 = vadd.f32 %v2295_v62, %v15136_v46  ;;  %v8547_v54 = vpop.f32.mrb[175].mxu1 }
 0x376   : > { %v3575_v17 = vsel %vm1263_vm6, %v3572_v36, %v3574_v39  ;;  %v3337_v9 = vsel %vm1006_vm5, %v3334_v63, %v3336_v7  ;;  %v15139_v63 = vld [vmem:[#allocation17_spill] sm:$0xff]  ;;  %v12279_v54 = vpop.permute.xlu0 %3035 }
 0x377   : > { %v3081_v24 = vmul.f32 %v12114_v10, %v2766_v5  ;;  %v2715_v60 = vadd.f32 %v15137_v48, %v2296_v58  ;;  %3669 = vrot.lane.b32.xlu1 %v3575_v17, %s9715_s20  ;;  %3431 = vrot.lane.b32.xlu0 %v3337_v9, %s9714_s19  ;;  %v12271_v3 = vsel %vm3143_vm10, %v3195_v51, %v3197_v26  ;;  %v15140_v17 = vld [vmem:[#allocation24_spill] sm:$0xff]  ;;  %v12288_v48 = vpop.permute.xlu1 %3040 }
 0x378   : > { %15138 = vst [vmem:[#allocation14_spill] sm:$0xff] %v12271_v3  ;;  %v2300_v23 = vpop.f32.mrb[176].mxu1  ;;  %v3576_v29 = vrot.slane %v12271_v3, 2  ;;  %v3338_v45 = vrot.slane %v12271_v3, 1 }
 0x379   : > { %v3199_v62 = vrot.slane %v3081_v24, 7  ;;  %v2767_v36 = vadd.f32 %v11813_v42, %v2715_v60  ;;  %v2301_v46 = vadd.f32 %v2300_v23, %v15139_v63  ;;  %v8550_v10 = vpop.f32.mrb[177].mxu1 }
 0x37a   : > { %v3577_v5 = vsel %vm1263_vm6, %v3574_v39, %v3576_v29  ;;  %v3339_v58 = vsel %vm1006_vm5, %v3336_v7, %v3338_v45 }
 0x37b   : > { %v3082_v51 = vmul.f32 %v12131_v53, %v2767_v36  ;;  %v2716_v9 = vadd.f32 %v15140_v17, %v2301_v46  ;;  %3671 = vrot.lane.b32.xlu1 %v3577_v5, %s9715_s20  ;;  %3433 = vrot.lane.b32.xlu0 %v3339_v58, %s9714_s19  ;;  %v12286_v24 = vsel %vm3143_vm10, %v3197_v26, %v3199_v62  ;;  %v15142_v53 = vld [vmem:[#allocation19_spill] sm:$0xff]  ;;  %v15143_v58 = vld [vmem:[#allocation26_spill] sm:$0xff] }
 0x37c   : > { %15141 = vst [vmem:[#allocation8_spill] sm:$0xff] %v12286_v24  ;;  %v2305_v60 = vpop.f32.mrb[178].mxu1  ;;  %v3578_v39 = vrot.slane %v12286_v24, 2  ;;  %v3340_v7 = vrot.slane %v12286_v24, 1 }
 0x37d   : > { %v3201_v23 = vrot.slane %v3082_v51, 7  ;;  %v2768_v63 = vadd.f32 %v11813_v42, %v2716_v9  ;;  %v2306_v36 = vadd.f32 %v2305_v60, %v15142_v53  ;;  %v8553_v46 = vpop.f32.mrb[179].mxu1  ;;  %v12305_v53 = vpop.permute.xlu0 %3045 }
 0x37e   : > { %v3579_v10 = vsel %vm1263_vm6, %v3576_v29, %v3578_v39  ;;  %v3341_v5 = vsel %vm1006_vm5, %v3338_v45, %v3340_v7  ;;  %v12309_v46 = vpop.permute.xlu1 %3050 }
 0x37f   : > { %v3083_v26 = vmul.f32 %v12140_v28, %v2768_v63  ;;  %v2717_v17 = vadd.f32 %v15143_v58, %v2306_v36  ;;  %3673 = vrot.lane.b32.xlu1 %v3579_v10, %s9715_s20  ;;  %3435 = vrot.lane.b32.xlu0 %v3341_v5, %s9714_s19  ;;  %v12301_v24 = vsel %vm3143_vm10, %v3199_v62, %v3201_v23  ;;  %v15145_v28 = vld [vmem:[#allocation21_spill] sm:$0xff]  ;;  %v3863_v5 = vld [vmem:[%s15012_s6 + $0x40] sm:$0xff]  ;;  %v3864_v58 = vld [vmem:[%s15012_s6 + $0x48] sm:$0xff] }
 0x380   : > { %15144 = vst [vmem:[#allocation16_spill] sm:$0xff] %v12301_v24  ;;  %v2310_v51 = vpop.f32.mrb[180].mxu1  ;;  %v3580_v9 = vrot.slane %v12301_v24, 2  ;;  %v3342_v60 = vrot.slane %v12301_v24, 1 }
 0x381   : > { %v3203_v29 = vrot.slane %v3083_v26, 7  ;;  %v2769_v45 = vadd.f32 %v11813_v42, %v2717_v17  ;;  %v2311_v63 = vadd.f32 %v2310_v51, %v15145_v28  ;;  %v8556_v36 = vpop.f32.mrb[181].mxu1  ;;  %v15146_v17 = vld [vmem:[#allocation28_spill] sm:$0xff]  ;;  %v7442_v51 = vld [vmem:[%s15012_s6 + $0xc8] sm:$0xff] }
 0x382   : > { %v3581_v10 = vsel %vm1263_vm6, %v3578_v39, %v3580_v9  ;;  %v3343_v62 = vsel %vm1006_vm5, %v3340_v7, %v3342_v60  ;;  %v7441_v7 = vld [vmem:[%s15012_s6 + $0xc0] sm:$0xff] }
 0x383   : > { %v3084_v26 = vmul.f32 %v12157_v49, %v2769_v45  ;;  %v2718_v24 = vadd.f32 %v15146_v17, %v2311_v63  ;;  %3675 = vrot.lane.b32.xlu1 %v3581_v10, %s9715_s20  ;;  %3437 = vrot.lane.b32.xlu0 %v3343_v62, %s9714_s19  ;;  %v12324_v39 = vsel %vm3143_vm10, %v3201_v23, %v3203_v29  ;;  %v15147_v62 = vld [vmem:[#allocation23_spill] sm:$0xff] }
 0x384   : > { %v2315_v28 = vpop.f32.mrb[182].mxu1  ;;  %v3582_v49 = vrot.slane %v12324_v39, 2  ;;  %v3344_v45 = vrot.slane %v12324_v39, 1  ;;  %v9400_v63 = vpack.c.bf16 %v3864_v58, %v3863_v5  ;;  %v9406_v56 = vpack.c.bf16 %v7442_v51, %v7441_v7 }
 0x385   : > { %v3205_v36 = vrot.slane %v3084_v26, 7  ;;  %v2770_v10 = vadd.f32 %v11813_v42, %v2718_v24  ;;  %v2316_v23 = vadd.f32 %v2315_v28, %v15147_v62  ;;  %v8559_v17 = vpop.f32.mrb[183].mxu1  ;;  %v3620_v3 = vpop.permute.xlu0 %3619  ;;  %v7443_v42 = vld [vmem:[%s15012_s6 + $0xd0] sm:$0xff]  ;;  %v7444_v24 = vld [vmem:[%s15012_s6 + $0xd8] sm:$0xff]  ;;  %v15150_v51 = vmov 0.0  }
 0x386   : > { %v3382_v27 = vpop.permute.xlu1 %3381  ;;  %v3583_v15 = vsel %vm1263_vm6, %v3580_v9, %v3582_v49  ;;  %v3345_v30 = vsel %vm1006_vm5, %v3342_v60, %v3344_v45  ;;  %9401 = vmatpush3.bf16.msra.mxu0 %v9400_v63  ;;  %v15149_v60 = vld [vmem:[#allocation25_spill] sm:$0xff] }
 0x387   : > { %v3085_v43 = vmul.f32 %v12161_v41, %v2770_v10  ;;  %v2719_v22 = vadd.f32 %v15148_v38, %v2316_v23  ;;  %v3761_v5 = vsel %vm1520_vm7, %v11827_v19, %v3382_v27  ;;  %3677 = vrot.lane.b32.xlu1 %v3583_v15, %s9715_s20  ;;  %3439 = vrot.lane.b32.xlu0 %v3345_v30, %s9714_s19  ;;  %v12360_v30 = vld [vmem:[%s15011_s5] ss:$0 sm:$0xff]  ;;  %v15151_v10 = vld [vmem:[#allocation32_spill] sm:$0xff] }
 0x388   : > { %v12351_v9 = vsel %vm1572_vm8, %v3761_v5, %v3620_v3  ;;  %v2320_v41 = vpop.f32.mrb[184].mxu1  ;;  %v12354_v38 = vsel %vm3143_vm10, %v3203_v29, %v3205_v36  ;;  %9402 = vmatprep.subr.bf16.mxu0 %v15057_v52 }
 0x389   : > { %v3207_v15 = vrot.slane %v3085_v43, 7  ;;  %v2771_v27 = vadd.f32 %v12360_v30, %v2719_v22  ;;  %v2321_v58 = vadd.f32 %v2320_v41, %v15149_v60  ;;  %8777 = vmatmul.mubr.msk.f32.vlgmr.msra.gmra.mrb[206].mxu1 %vm1649_vm9, %v12351_v9  ;;  %v8562_v3 = vpop.f32.mrb[185].mxu1  ;;  %v3384_v26 = vpop.permute.xlu0 %3383  ;;  %v3584_v29 = vrot.slane %v12354_v38, 2  ;;  %v15152_v41 = vld [vmem:[#allocation27_spill] sm:$0xff] }
 0x38a   : > { %v3622_v7 = vpop.permute.xlu1 %3621  ;;  %v3762_v43 = vsel %vm1520_vm7, %v11831_v40, %v3384_v26  ;;  %9407 = vmatpush3.bf16.msra.mxu1 %v9406_v56  ;;  %8779 = vmatprep.mubr.msk.f32.mxu1 %vm9711_vm1, %v15150_v51  ;;  %v3346_v28 = vrot.slane %v12354_v38, 1  ;;  %v9409_v22 = vpack.c.bf16 %v7444_v24, %v7443_v42  ;;  %v7445_v40 = vld [vmem:[%s15012_s6 + $0xe0] sm:$0xff]  ;;  %v7446_v56 = vld [vmem:[%s15012_s6 + $0xe8] sm:$0xff] }
 0x38b   : > { %v3086_v63 = vmul.f32 %v12184_v11, %v2771_v27  ;;  %v2720_v62 = vadd.f32 %v15151_v10, %v2321_v58  ;;  %v3585_v23 = vsel %vm1263_vm6, %v3582_v49, %v3584_v29  ;;  %v12376_v17 = vsel %vm1572_vm8, %v3762_v43, %v3622_v7  ;;  %9408 = vmatprep.subr.bf16.mxu1 %v15057_v52  ;;  %v15153_v43 = vld [vmem:[#allocation34_spill] sm:$0xff] }
 0x38c   : > { %3679 = vrot.lane.b32.xlu1 %v3585_v23, %s9715_s20  ;;  %v3347_v11 = vsel %vm1006_vm5, %v3344_v45, %v3346_v28  ;;  %v2325_v5 = vpop.f32.mrb[186].mxu1  ;;  %v12388_v49 = vsel %vm3143_vm10, %v3205_v36, %v3207_v15  ;;  %v9412_v36 = vpack.c.bf16 %v7446_v56, %v7445_v40  ;;  %v7447_v23 = vld [vmem:[%s15012_s6 + $0xf0] sm:$0xff] }
 0x38d   : > { %v3209_v42 = vrot.slane %v3086_v63, 7  ;;  %v2772_v24 = vadd.f32 %v12360_v30, %v2720_v62  ;;  %3441 = vrot.lane.b32.xlu0 %v3347_v11, %s9714_s19  ;;  %v2326_v27 = vadd.f32 %v2325_v5, %v15152_v41  ;;  %8780 = vmatmul.mubr.msk.f32.gmra.mrb[208].mxu1 %vm1649_vm9, %v12376_v17  ;;  %v8565_v60 = vpop.f32.mrb[187].mxu1  ;;  %v3624_v58 = vpop.permute.xlu0 %3623  ;;  %v3586_v3 = vrot.slane %v12388_v49, 2  ;;  %v15154_v5 = vld [vmem:[#allocation29_spill] sm:$0xff] }
 0x38e   : > { %v3386_v26 = vpop.permute.xlu1 %3385  ;;  %8782 = vmatprep.mubr.msk.f32.mxu1 %vm9711_vm1, %v15150_v51  ;;  %v3348_v45 = vrot.slane %v12388_v49, 1  ;;  %9410 = vmatpush3.bf16.msra.mxu1 %v9409_v22  ;;  %v7448_v22 = vld [vmem:[%s15012_s6 + $0xf8] sm:$0xff] }
 0x38f   : > { %v3087_v7 = vmul.f32 %v12193_v0, %v2772_v24  ;;  %v2721_v63 = vadd.f32 %v15153_v43, %v2326_v27  ;;  %v3763_v10 = vsel %vm1520_vm7, %v11859_v33, %v3386_v26  ;;  %v3587_v62 = vsel %vm1263_vm6, %v3584_v29, %v3586_v3  ;;  %9411 = vmatprep.subr.bf16.mxu1 %v15057_v52  ;;  %v15155_v43 = vld [vmem:[#allocation36_spill] sm:$0xff] }
 0x390   : > { %3681 = vrot.lane.b32.xlu1 %v3587_v62, %s9715_s20  ;;  %v3349_v0 = vsel %vm1006_vm5, %v3346_v28, %v3348_v45  ;;  %v2330_v40 = vpop.f32.mrb[188].mxu1  ;;  %v12414_v56 = vsel %vm1572_vm8, %v3763_v10, %v3624_v58  ;;  %v12417_v33 = vsel %vm3143_vm10, %v3207_v15, %v3209_v42  ;;  %v9415_v26 = vpack.c.bf16 %v7448_v22, %v7447_v23 }
 0x391   : > { %v3211_v29 = vrot.slane %v3087_v7, 7  ;;  %v2773_v11 = vadd.f32 %v12360_v30, %v2721_v63  ;;  %3443 = vrot.lane.b32.xlu0 %v3349_v0, %s9714_s19  ;;  %v2331_v24 = vadd.f32 %v2330_v40, %v15154_v5  ;;  %8783 = vmatmul.mubr.msk.f32.gmra.mrb[210].mxu1 %vm1649_vm9, %v12414_v56  ;;  %v8568_v41 = vpop.f32.mrb[189].mxu1  ;;  %v3388_v27 = vpop.permute.xlu0 %3387  ;;  %v3588_v28 = vrot.slane %v12417_v33, 2  ;;  %v15156_v40 = vld [vmem:[#allocation31_spill] sm:$0xff] }
 0x392   : > { %v3626_v60 = vpop.permute.xlu1 %3625  ;;  %v3764_v58 = vsel %vm1520_vm7, %v11876_v12, %v3388_v27  ;;  %8785 = vmatprep.mubr.msk.f32.mxu1 %vm9711_vm1, %v15150_v51  ;;  %v3350_v15 = vrot.slane %v12417_v33, 1  ;;  %9413 = vmatpush3.bf16.msra.mxu1 %v9412_v36  ;;  %v7449_v12 = vld [vmem:[%s15012_s6 + $0x100] sm:$0xff]  ;;  %v7450_v36 = vld [vmem:[%s15012_s6 + $0x108] sm:$0xff] }
 0x393   : > { %v3088_v7 = vmul.f32 %v12211_v34, %v2773_v11  ;;  %v2722_v63 = vadd.f32 %v15155_v43, %v2331_v24  ;;  %v3589_v10 = vsel %vm1263_vm6, %v3586_v3, %v3588_v28  ;;  %v12434_v62 = vsel %vm1572_vm8, %v3764_v58, %v3626_v60  ;;  %9414 = vmatprep.subr.bf16.mxu1 %v15057_v52  ;;  %v15157_v58 = vld [vmem:[#allocation38_spill] sm:$0xff] }
 0x394   : > { %3683 = vrot.lane.b32.xlu1 %v3589_v10, %s9715_s20  ;;  %v3351_v34 = vsel %vm1006_vm5, %v3348_v45, %v3350_v15  ;;  %v2335_v23 = vpop.f32.mrb[190].mxu1  ;;  %v12446_v3 = vsel %vm3143_vm10, %v3209_v42, %v3211_v29  ;;  %v9418_v45 = vpack.c.bf16 %v7450_v36, %v7449_v12 }
 0x395   : > { %v3213_v22 = vrot.slane %v3088_v7, 7  ;;  %v2774_v0 = vadd.f32 %v12360_v30, %v2722_v63  ;;  %3445 = vrot.lane.b32.xlu0 %v3351_v34, %s9714_s19  ;;  %v2336_v11 = vadd.f32 %v2335_v23, %v15156_v40  ;;  %8786 = vmatmul.mubr.msk.f32.gmra.mrb[212].mxu1 %vm1649_vm9, %v12434_v62  ;;  %v8571_v5 = vpop.f32.mrb[191].mxu1  ;;  %v3628_v24 = vpop.permute.xlu0 %3627  ;;  %v3590_v41 = vrot.slane %v12446_v3, 2 }
 0x396   : > { %v3390_v27 = vpop.permute.xlu1 %3389  ;;  %8788 = vmatprep.mubr.msk.f32.mxu1 %vm9711_vm1, %v15150_v51  ;;  %v3352_v42 = vrot.slane %v12446_v3, 1  ;;  %9416 = vmatpush3.bf16.msra.mxu1 %v9415_v26 }
 0x397   : > { %v3089_v60 = vmul.f32 %v12215_v4, %v2774_v0  ;;  %v2723_v7 = vadd.f32 %v15157_v58, %v2336_v11  ;;  %v3765_v43 = vsel %vm1520_vm7, %v11890_v44, %v3390_v27  ;;  %v3591_v63 = vsel %vm1263_vm6, %v3588_v28, %v3590_v41  ;;  %9417 = vmatprep.subr.bf16.mxu1 %v15057_v52  ;;  %v15158_v44 = vld [vmem:[#allocation33_spill] sm:$0xff] }
 0x398   : > { %3685 = vrot.lane.b32.xlu1 %v3591_v63, %s9715_s20  ;;  %v3353_v10 = vsel %vm1006_vm5, %v3350_v15, %v3352_v42  ;;  %v2340_v34 = vpop.f32.mrb[192].mxu1  ;;  %v12466_v23 = vsel %vm1572_vm8, %v3765_v43, %v3628_v24  ;;  %v12469_v26 = vsel %vm3143_vm10, %v3211_v29, %v3213_v22  ;;  %v15159_v24 = vld [vmem:[#allocation40_spill] sm:$0xff]  ;;  %v15160_v63 = vld [vmem:[#allocation35_spill] sm:$0xff] }
 0x399   : > { %v3215_v4 = vrot.slane %v3089_v60, 7  ;;  %v2775_v12 = vadd.f32 %v12360_v30, %v2723_v7  ;;  %3447 = vrot.lane.b32.xlu0 %v3353_v10, %s9714_s19  ;;  %v2341_v28 = vadd.f32 %v2340_v34, %v15158_v44  ;;  %8789 = vmatmul.mubr.msk.f32.gmra.mrb[214].mxu1 %vm1649_vm9, %v12466_v23  ;;  %v8574_v36 = vpop.f32.mrb[193].mxu1  ;;  %v3392_v0 = vpop.permute.xlu0 %3391  ;;  %v3592_v15 = vrot.slane %v12469_v26, 2 }
 0x39a   : > { %v3630_v40 = vpop.permute.xlu1 %3629  ;;  %v3766_v11 = vsel %vm1520_vm7, %v11905_v59, %v3392_v0  ;;  %8791 = vmatprep.mubr.msk.f32.mxu1 %vm9711_vm1, %v15150_v51  ;;  %v3354_v29 = vrot.slane %v12469_v26, 1  ;;  %9419 = vmatpush3.bf16.msra.mxu1 %v9418_v45 }
 0x39b   : > { %v3090_v5 = vmul.f32 %v12232_v6, %v2775_v12  ;;  %v2724_v27 = vadd.f32 %v15159_v24, %v2341_v28  ;;  %v3593_v60 = vsel %vm1263_vm6, %v3590_v41, %v3592_v15  ;;  %v12486_v58 = vsel %vm1572_vm8, %v3766_v11, %v3630_v40  ;;  %9420 = vmatprep.subr.bf16.mxu1 %v15057_v52  ;;  %v15161_v28 = vld [vmem:[#allocation42_spill] sm:$0xff] }
 0x39c   : > { %3687 = vrot.lane.b32.xlu1 %v3593_v60, %s9715_s20  ;;  %v3355_v59 = vsel %vm1006_vm5, %v3352_v42, %v3354_v29  ;;  %v2345_v7 = vpop.f32.mrb[194].mxu1  ;;  %v12492_v43 = vsel %vm3143_vm10, %v3213_v22, %v3215_v4 }
 0x39d   : > { %v3217_v45 = vrot.slane %v3090_v5, 7  ;;  %v2776_v6 = vadd.f32 %v12360_v30, %v2724_v27  ;;  %3449 = vrot.lane.b32.xlu0 %v3355_v59, %s9714_s19  ;;  %v2346_v41 = vadd.f32 %v2345_v7, %v15160_v63  ;;  %8792 = vmatmul.mubr.msk.f32.gmra.mrb[216].mxu1 %vm1649_vm9, %v12486_v58  ;;  %v8577_v10 = vpop.f32.mrb[195].mxu1  ;;  %v3632_v34 = vpop.permute.xlu0 %3631  ;;  %v3594_v12 = vrot.slane %v12492_v43, 2  ;;  %v15162_v59 = vld [vmem:[#allocation37_spill] sm:$0xff] }
 0x39e   : > { %v3394_v44 = vpop.permute.xlu1 %3393  ;;  %8794 = vmatprep.mubr.msk.f32.mxu1 %vm9711_vm1, %v15150_v51  ;;  %v3356_v22 = vrot.slane %v12492_v43, 1 }
 0x39f   : > { %v3091_v42 = vmul.f32 %v12241_v20, %v2776_v6  ;;  %v2725_v36 = vadd.f32 %v15161_v28, %v2346_v41  ;;  %v3767_v0 = vsel %vm1520_vm7, %v11921_v14, %v3394_v44  ;;  %v3595_v40 = vsel %vm1263_vm6, %v3592_v15, %v3594_v12  ;;  %v3865_v6 = vld [vmem:[%s15012_s6 + $0x50] sm:$0xff] }
 0x3a0   : > { %3689 = vrot.lane.b32.xlu1 %v3595_v40, %s9715_s20  ;;  %v3357_v11 = vsel %vm1006_vm5, %v3354_v29, %v3356_v22  ;;  %v2350_v5 = vpop.f32.mrb[196].mxu1  ;;  %v12511_v24 = vsel %vm1572_vm8, %v3767_v0, %v3632_v34  ;;  %v12514_v27 = vsel %vm3143_vm10, %v3215_v4, %v3217_v45  ;;  %v3866_v4 = vld [vmem:[%s15012_s6 + $0x58] sm:$0xff]  ;;  %v7451_v44 = vld [vmem:[%s15012_s6 + $0x110] sm:$0xff] }
 0x3a1   : > { %v3219_v60 = vrot.slane %v3091_v42, 7  ;;  %v2777_v20 = vadd.f32 %v12360_v30, %v2725_v36  ;;  %3451 = vrot.lane.b32.xlu0 %v3357_v11, %s9714_s19  ;;  %v2351_v14 = vadd.f32 %v2350_v5, %v15162_v59  ;;  %8795 = vmatmul.mubr.msk.f32.gmra.mrb[218].mxu1 %vm1649_vm9, %v12511_v24  ;;  %v8580_v15 = vpop.f32.mrb[197].mxu1  ;;  %v3396_v7 = vpop.permute.xlu0 %3395  ;;  %v3596_v29 = vrot.slane %v12514_v27, 2  ;;  %v7452_v42 = vld [vmem:[%s15012_s6 + $0x118] sm:$0xff]  ;;  %v15163_v36 = vld [vmem:[#allocation44_spill] sm:$0xff] }
 0x3a2   : > { %v3634_v63 = vpop.permute.xlu1 %3633  ;;  %v3768_v41 = vsel %vm1520_vm7, %v11936_v61, %v3396_v7  ;;  %8797 = vmatprep.mubr.msk.f32.mxu1 %vm9711_vm1, %v15150_v51  ;;  %v3358_v10 = vrot.slane %v12514_v27, 1  ;;  %v9403_v34 = vpack.c.bf16 %v3866_v4, %v3865_v6  ;;  %v9421_v15 = vpack.c.bf16 %v7452_v42, %v7451_v44 }
 0x3a3   : > { %v3092_v28 = vmul.f32 %v12258_v8, %v2777_v20  ;;  %v2726_v0 = vadd.f32 %v15163_v36, %v2351_v14  ;;  %v3597_v61 = vsel %vm1263_vm6, %v3594_v12, %v3596_v29  ;;  %v12543_v40 = vsel %vm1572_vm8, %v3768_v41, %v3634_v63  ;;  %v15164_v20 = vld [vmem:[#allocation39_spill] sm:$0xff]  ;;  %v15165_v41 = vld [vmem:[#allocation46_spill] sm:$0xff] }
 0x3a4   : > { %3691 = vrot.lane.b32.xlu1 %v3597_v61, %s9715_s20  ;;  %v3359_v11 = vsel %vm1006_vm5, %v3356_v22, %v3358_v10  ;;  %v2355_v5 = vpop.f32.mrb[198].mxu1  ;;  %v12548_v59 = vsel %vm3143_vm10, %v3217_v45, %v3219_v60  ;;  %9404 = vmatpush3.bf16.msra.mxu0 %v9403_v34 }
 0x3a5   : > { %v3221_v7 = vrot.slane %v3092_v28, 7  ;;  %v2778_v8 = vadd.f32 %v12360_v30, %v2726_v0  ;;  %3453 = vrot.lane.b32.xlu0 %v3359_v11, %s9714_s19  ;;  %v2356_v12 = vadd.f32 %v2355_v5, %v15164_v20  ;;  %8798 = vmatmul.mubr.msk.f32.gmra.mrb[220].mxu1 %vm1649_vm9, %v12543_v40  ;;  %v8583_v14 = vpop.f32.mrb[199].mxu1  ;;  %v3636_v6 = vpop.permute.xlu0 %3635  ;;  %v3598_v22 = vrot.slane %v12548_v59, 2 }
 0x3a6   : > { %v3398_v4 = vpop.permute.xlu1 %3397  ;;  %8800 = vmatprep.mubr.msk.f32.mxu1 %vm9711_vm1, %v15150_v51  ;;  %v3360_v45 = vrot.slane %v12548_v59, 1  ;;  %9422 = vmatpush3.bf16.msra.mxu1 %v9421_v15 }
 0x3a7   : > { %v3093_v63 = vmul.f32 %v12262_v57, %v2778_v8  ;;  %v2727_v34 = vadd.f32 %v15165_v41, %v2356_v12  ;;  %v3769_v44 = vsel %vm1520_vm7, %v11951_v1, %v3398_v4  ;;  %v3599_v42 = vsel %vm1263_vm6, %v3596_v29, %v3598_v22  ;;  %9423 = vmatprep.subr.bf16.mxu0 %v15057_v52  ;;  %v15166_v1 = vld [vmem:[#allocation41_spill] sm:$0xff] }
 0x3a8   : > { %3693 = vrot.lane.b32.xlu1 %v3599_v42, %s9715_s20  ;;  %v3361_v28 = vsel %vm1006_vm5, %v3358_v10, %v3360_v45  ;;  %v2360_v36 = vpop.f32.mrb[200].mxu1  ;;  %v12568_v0 = vsel %vm1572_vm8, %v3769_v44, %v3636_v6  ;;  %v12571_v61 = vsel %vm3143_vm10, %v3219_v60, %v3221_v7 }
 0x3a9   : > { %v3223_v57 = vrot.slane %v3093_v63, 7  ;;  %v2779_v11 = vadd.f32 %v12360_v30, %v2727_v34  ;;  %3455 = vrot.lane.b32.xlu0 %v3361_v28, %s9714_s19  ;;  %v2361_v29 = vadd.f32 %v2360_v36, %v15166_v1  ;;  %8801 = vmatmul.mubr.msk.f32.gmra.mrb[222].mxu1 %vm1649_vm9, %v12568_v0  ;;  %v8586_v5 = vpop.f32.mrb[201].mxu1  ;;  %v3400_v15 = vpop.permute.xlu0 %3399  ;;  %v3600_v10 = vrot.slane %v12571_v61, 2 }
 0x3aa   : > { %v3638_v8 = vpop.permute.xlu1 %3637  ;;  %v3770_v20 = vsel %vm1520_vm7, %v11974_v18, %v3400_v15  ;;  %8803 = vmatprep.mubr.msk.f32.mxu1 %vm9711_vm1, %v15150_v51  ;;  %v3362_v60 = vrot.slane %v12571_v61, 1 }
 0x3ab   : > { %v3094_v12 = vmul.f32 %v12279_v54, %v2779_v11  ;;  %v2728_v14 = vadd.f32 %v11822_v35, %v2361_v29  ;;  %v3601_v6 = vsel %vm1263_vm6, %v3598_v22, %v3600_v10  ;;  %v12588_v4 = vsel %vm1572_vm8, %v3770_v20, %v3638_v8  ;;  %v15167_v54 = vld [vmem:[#allocation43_spill] sm:$0xff] }
 0x3ac   : > { %3695 = vrot.lane.b32.xlu1 %v3601_v6, %s9715_s20  ;;  %v3363_v63 = vsel %vm1006_vm5, %v3360_v45, %v3362_v60  ;;  %v2365_v41 = vpop.f32.mrb[202].mxu1  ;;  %v12593_v18 = vsel %vm3143_vm10, %v3221_v7, %v3223_v57  ;;  %v15168_v11 = vld [vmem:[#allocation47_spill] sm:$0xff]  ;;  %v15169_v6 = vld [vmem:[#allocation45_spill] sm:$0xff] }
 0x3ad   : > { %v3225_v34 = vrot.slane %v3094_v12, 7  ;;  %v2780_v44 = vadd.f32 %v12360_v30, %v2728_v14  ;;  %3457 = vrot.lane.b32.xlu0 %v3363_v63, %s9714_s19  ;;  %v2366_v35 = vadd.f32 %v2365_v41, %v15167_v54  ;;  %8804 = vmatmul.mubr.msk.f32.gmra.mrb[224].mxu1 %vm1649_vm9, %v12588_v4  ;;  %v8589_v22 = vpop.f32.mrb[203].mxu1  ;;  %v3640_v42 = vpop.permute.xlu0 %3639  ;;  %v3602_v28 = vrot.slane %v12593_v18, 2 }
 0x3ae   : > { %v3402_v36 = vpop.permute.xlu1 %3401  ;;  %8806 = vmatprep.mubr.msk.f32.mxu1 %vm9711_vm1, %v15150_v51  ;;  %v3364_v7 = vrot.slane %v12593_v18, 1 }
 0x3af   : > { %v3095_v45 = vmul.f32 %v12288_v48, %v2780_v44  ;;  %v2729_v1 = vadd.f32 %v15168_v11, %v2366_v35  ;;  %v3771_v29 = vsel %vm1520_vm7, %v11990_v50, %v3402_v36  ;;  %v3603_v5 = vsel %vm1263_vm6, %v3600_v10, %v3602_v28 }
 0x3b0   : > { %3697 = vrot.lane.b32.xlu1 %v3603_v5, %s9715_s20  ;;  %v3365_v15 = vsel %vm1006_vm5, %v3362_v60, %v3364_v7  ;;  %v2370_v8 = vpop.f32.mrb[204].mxu1  ;;  %v12612_v20 = vsel %vm1572_vm8, %v3771_v29, %v3640_v42  ;;  %v12615_v12 = vsel %vm3143_vm10, %v3223_v57, %v3225_v34 }
 0x3b1   : > { %v3227_v14 = vrot.slane %v3095_v45, 7  ;;  %v2781_v48 = vadd.f32 %v12360_v30, %v2729_v1  ;;  %3459 = vrot.lane.b32.xlu0 %v3365_v15, %s9714_s19  ;;  %v2371_v50 = vadd.f32 %v2370_v8, %v15169_v6  ;;  %8807 = vmatmul.mubr.msk.f32.gmra.mrb[226].mxu1 %vm1649_vm9, %v12612_v20  ;;  %v8592_v10 = vpop.f32.mrb[205].mxu1  ;;  %v3404_v63 = vpop.permute.xlu0 %3403  ;;  %v3604_v60 = vrot.slane %v12615_v12, 2 }
 0x3b2   : > { %v3642_v41 = vpop.permute.xlu1 %3641  ;;  %v3772_v44 = vsel %vm1520_vm7, %v12005_v21, %v3404_v63  ;;  %8809 = vmatprep.mubr.msk.f32.mxu1 %vm9711_vm1, %v15150_v51  ;;  %v3366_v57 = vrot.slane %v12615_v12, 1 }
 0x3b3   : > { %v3096_v54 = vmul.f32 %v12305_v53, %v2781_v48  ;;  %v2730_v35 = vadd.f32 %v11865_v47, %v2371_v50  ;;  %v3605_v22 = vsel %vm1263_vm6, %v3602_v28, %v3604_v60  ;;  %v12632_v42 = vsel %vm1572_vm8, %v3772_v44, %v3642_v41 }
 0x3b4   : > { %3699 = vrot.lane.b32.xlu1 %v3605_v22, %s9715_s20  ;;  %v3367_v36 = vsel %vm1006_vm5, %v3364_v7, %v3366_v57  ;;  %v12637_v21 = vsel %vm3143_vm10, %v3225_v34, %v3227_v14 }
 0x3b5   : > { %v3229_v45 = vrot.slane %v3096_v54, 7  ;;  %v2782_v11 = vadd.f32 %v12360_v30, %v2730_v35  ;;  %3461 = vrot.lane.b32.xlu0 %v3367_v36, %s9714_s19  ;;  %8810 = vmatmul.mubr.msk.f32.gmra.mrb[228].mxu1 %vm1649_vm9, %v12632_v42  ;;  %v3644_v47 = vpop.permute.xlu0 %3643  ;;  %v3606_v53 = vrot.slane %v12637_v21, 2  ;;  %v3368_v28 = vrot.slane %v12637_v21, 1 }
 0x3b6   : > { %v3406_v1 = vpop.permute.xlu1 %3405  ;;  %8812 = vmatprep.mubr.msk.f32.mxu1 %vm9711_vm1, %v15150_v51 }
 0x3b7   : > { %v3097_v34 = vmul.f32 %v12309_v46, %v2782_v11  ;;  %v3773_v7 = vsel %vm1520_vm7, %v12022_v31, %v3406_v1  ;;  %v3607_v30 = vsel %vm1263_vm6, %v3604_v60, %v3606_v53  ;;  %v3369_v29 = vsel %vm1006_vm5, %v3366_v57, %v3368_v28 }
 0x3b8   : > { %3701 = vrot.lane.b32.xlu1 %v3607_v30, %s9715_s20  ;;  %v12654_v5 = vsel %vm1572_vm8, %v3773_v7, %v3644_v47  ;;  %v12657_v15 = vsel %vm3143_vm10, %v3227_v14, %v3229_v45 }
 0x3b9   : > { %v3231_v8 = vrot.slane %v3097_v34, 7  ;;  %3463 = vrot.lane.b32.xlu0 %v3369_v29, %s9714_s19  ;;  %8813 = vmatmul.mubr.msk.f32.gmra.mrb[230].mxu1 %vm1649_vm9, %v12654_v5  ;;  %v3408_v46 = vpop.permute.xlu0 %3407  ;;  %v3608_v31 = vrot.slane %v12657_v15, 2  ;;  %v3370_v48 = vrot.slane %v12657_v15, 1 }
 0x3ba   : > { %v3646_v6 = vpop.permute.xlu1 %3645  ;;  %v3774_v50 = vsel %vm1520_vm7, %v12037_v32, %v3408_v46  ;;  %8815 = vmatprep.mubr.msk.f32.mxu1 %vm9711_vm1, %v15150_v51 }
 0x3bb   : > { %v3609_v14 = vsel %vm1263_vm6, %v3606_v53, %v3608_v31  ;;  %v3371_v10 = vsel %vm1006_vm5, %v3368_v28, %v3370_v48  ;;  %v12671_v63 = vsel %vm1572_vm8, %v3774_v50, %v3646_v6  ;;  %v12674_v60 = vsel %vm3143_vm10, %v3231_v8, 0.0 }
 0x3bc   : > { %3703 = vrot.lane.b32.xlu1 %v3609_v14, %s9715_s20  ;;  %v12678_v41 = vsel %vm3143_vm10, %v3229_v45, %v3231_v8  ;;  %v3612_v45 = vrot.slane %v12674_v60, 2  ;;  %v3374_v47 = vrot.slane %v12674_v60, 1  ;;  %v15170_v8 = vld [vmem:[#allocation10_spill] sm:$0xff] }
 0x3bd   : > { %3465 = vrot.lane.b32.xlu0 %v3371_v10, %s9714_s19  ;;  %8816 = vmatmul.mubr.msk.f32.gmra.mrb[232].mxu1 %vm1649_vm9, %v12671_v63  ;;  %v3648_v32 = vpop.permute.xlu0 %3647  ;;  %v3610_v44 = vrot.slane %v12678_v41, 2  ;;  %v3372_v57 = vrot.slane %v12678_v41, 1 }
 0x3be   : > { %v3410_v54 = vpop.permute.xlu1 %3409  ;;  %8818 = vmatprep.mubr.msk.f32.mxu1 %vm9711_vm1, %v15150_v51 }
 0x3bf   : > { %v3775_v35 = vsel %vm1520_vm7, %v12052_v55, %v3410_v54  ;;  %v3611_v22 = vsel %vm1263_vm6, %v3608_v31, %v3610_v44  ;;  %v3373_v36 = vsel %vm1006_vm5, %v3370_v48, %v3372_v57  ;;  %v3613_v1 = vsel %vm1263_vm6, %v3610_v44, %v3612_v45  ;;  %v15171_v31 = vld [vmem:[#allocation9_spill] sm:$0xff] }
 0x3c0   : > { %3705 = vrot.lane.b32.xlu1 %v3611_v22, %s9715_s20  ;;  %v12694_v11 = vsel %vm1572_vm8, %v3775_v35, %v3648_v32  ;;  %v3375_v7 = vsel %vm1006_vm5, %v3372_v57, %v3374_v47  ;;  %v15173_v32 = vrot.slane %v11827_v19, 1  ;;  %v3614_v35 = vsel %vm1263_vm6, %v3612_v45, %v15170_v8 }
 0x3c1   : > { %3467 = vrot.lane.b32.xlu0 %v3373_v36, %s9714_s19  ;;  %8819 = vmatmul.mubr.msk.f32.gmra.mrb[234].mxu1 %vm1649_vm9, %v12694_v11  ;;  %v3412_v53 = vpop.permute.xlu0 %3411 }
 0x3c2   : > { %v3650_v55 = vpop.permute.xlu1 %3649  ;;  %v3776_v28 = vsel %vm1520_vm7, %v12075_v13, %v3412_v53  ;;  %8821 = vmatprep.mubr.msk.f32.mxu1 %vm9711_vm1, %v15150_v51  ;;  %v3285_v44 = vsel %vm1006_vm5, %v15171_v31, %v15173_v32 }
 0x3c3   : > { %v12706_v34 = vsel %vm1572_vm8, %v3776_v28, %v3650_v55  ;;  %v15174_v28 = vld [vmem:[#allocation2_spill] sm:$0xff] }
 0x3c4   : > { %3707 = vrot.lane.b32.xlu1 %v3613_v1, %s9715_s20 }
 0x3c5   : > { %3469 = vrot.lane.b32.xlu0 %v3375_v7, %s9714_s19  ;;  %8822 = vmatmul.mubr.msk.f32.gmra.mrb[236].mxu1 %vm1649_vm9, %v12706_v34  ;;  %v3652_v30 = vpop.permute.xlu0 %3651 }
 0x3c6   : > { %v3414_v29 = vpop.permute.xlu1 %3413  ;;  %8824 = vmatprep.mubr.msk.f32.mxu1 %vm9711_vm1, %v15150_v51 }
 0x3c7   : > { %v3777_v13 = vsel %vm1520_vm7, %v12091_v16, %v3414_v29  ;;  %v15172_v16 = vrot.slane %v11827_v19, 2  ;;  %v3376_v19 = vsel %vm1006_vm5, %v3374_v47, %v15171_v31  ;;  %v15175_v29 = vld [vmem:[#allocation3_spill] sm:$0xff] }
 0x3c8   : > { %3615 = vrot.lane.b32.xlu1 %v15170_v8, %s9715_s20  ;;  %v12720_v46 = vsel %vm1572_vm8, %v3777_v13, %v3652_v30 }
 0x3c9   : > { %3377 = vrot.lane.b32.xlu0 %v15171_v31, %s9714_s19  ;;  %8825 = vmatmul.mubr.msk.f32.gmra.mrb[238].mxu1 %vm1649_vm9, %v12720_v46  ;;  %v3416_v48 = vpop.permute.xlu0 %3415  ;;  %v3523_v14 = vsel %vm1263_vm6, %v15170_v8, %v15172_v16  ;;  %v15176_v16 = vld [vmem:[#allocation4_spill] sm:$0xff] }
 0x3ca   : > { %v3654_v6 = vpop.permute.xlu1 %3653  ;;  %v3778_v50 = vsel %vm1520_vm7, %v12106_v37, %v3416_v48  ;;  %8827 = vmatprep.mubr.msk.f32.mxu1 %vm9711_vm1, %v15150_v51 }
 0x3cb   : > { %v12735_v10 = vsel %vm1572_vm8, %v3778_v50, %v3654_v6 }
 0x3cc   : > { %3617 = vrot.lane.b32.xlu1 %v3523_v14, %s9715_s20 }
 0x3cd   : > { %3379 = vrot.lane.b32.xlu0 %v3285_v44, %s9714_s19  ;;  %8828 = vmatmul.mubr.msk.f32.gmra.mrb[240].mxu1 %vm1649_vm9, %v12735_v10  ;;  %v3656_v37 = vpop.permute.xlu0 %3655 }
 0x3ce   : > { %v3418_v57 = vpop.permute.xlu1 %3417  ;;  %8830 = vmatprep.mubr.msk.f32.mxu1 %vm9711_vm1, %v15150_v51 }
 0x3cf   : > { %v3779_v54 = vsel %vm1520_vm7, %v12123_v2, %v3418_v57  ;;  %v15177_v57 = vld [vmem:[#allocation5_spill] sm:$0xff] }
 0x3d0   : > { %3709 = vrot.lane.b32.xlu1 %v3614_v35, %s9715_s20  ;;  %v12755_v22 = vsel %vm1572_vm8, %v3779_v54, %v3656_v37 }
 0x3d1   : > { %3471 = vrot.lane.b32.xlu0 %v3376_v19, %s9714_s19  ;;  %8831 = vmatmul.mubr.msk.f32.gmra.mrb[242].mxu1 %vm1649_vm9, %v12755_v22  ;;  %v3420_v36 = vpop.permute.xlu0 %3419 }
 0x3d2   : > { %v3658_v53 = vpop.permute.xlu1 %3657  ;;  %v3780_v2 = vsel %vm1520_vm7, %v12138_v25, %v3420_v36  ;;  %8833 = vmatprep.mubr.msk.f32.mxu1 %vm9711_vm1, %v15150_v51 }
 0x3d3   : > { %v12765_v45 = vsel %vm1572_vm8, %v3780_v2, %v3658_v53  ;;  %v15178_v53 = vld [vmem:[#allocation6_spill] sm:$0xff] }
 0x3d5   : > { %8834 = vmatmul.mubr.msk.f32.gmra.mrb[244].mxu1 %vm1649_vm9, %v12765_v45  ;;  %v3660_v47 = vpop.permute.xlu0 %3659 }
 0x3d6   : > { %v3422_v55 = vpop.permute.xlu1 %3421  ;;  %8836 = vmatprep.mubr.msk.f32.mxu1 %vm9711_vm1, %v15150_v51 }
 0x3d7   : > { %v3781_v1 = vsel %vm1520_vm7, %v15174_v28, %v3422_v55 }
 0x3d8   : > { %v12774_v7 = vsel %vm1572_vm8, %v3781_v1, %v3660_v47  ;;  %v15179_v1 = vld [vmem:[#allocation12_spill] sm:$0xff] }
 0x3d9   : > { %8837 = vmatmul.mubr.msk.f32.gmra.mrb[246].mxu1 %vm1649_vm9, %v12774_v7  ;;  %v3424_v25 = vpop.permute.xlu0 %3423 }
 0x3da   : > { %v3662_v30 = vpop.permute.xlu1 %3661  ;;  %v3782_v13 = vsel %vm1520_vm7, %v15175_v29, %v3424_v25  ;;  %8839 = vmatprep.mubr.msk.f32.mxu1 %vm9711_vm1, %v15150_v51 }
 0x3db   : > { %v12783_v48 = vsel %vm1572_vm8, %v3782_v13, %v3662_v30 }
 0x3dd   : > { %8840 = vmatmul.mubr.msk.f32.gmra.mrb[248].mxu1 %vm1649_vm9, %v12783_v48  ;;  %v3664_v6 = vpop.permute.xlu0 %3663 }
 0x3de   : > { %v3426_v50 = vpop.permute.xlu1 %3425  ;;  %8842 = vmatprep.mubr.msk.f32.mxu1 %vm9711_vm1, %v15150_v51 }
 0x3df   : > { %v3783_v14 = vsel %vm1520_vm7, %v15176_v16, %v3426_v50 }
 0x3e0   : > { %v12792_v32 = vsel %vm1572_vm8, %v3783_v14, %v3664_v6  ;;  %v15180_v6 = vld [vmem:[#allocation7_spill] sm:$0xff] }
 0x3e1   : > { %8843 = vmatmul.mubr.msk.f32.gmra.mrb[250].mxu1 %vm1649_vm9, %v12792_v32  ;;  %v3428_v44 = vpop.permute.xlu0 %3427 }
 0x3e2   : > { %v3666_v37 = vpop.permute.xlu1 %3665  ;;  %v3784_v54 = vsel %vm1520_vm7, %v15177_v57, %v3428_v44  ;;  %8845 = vmatprep.mubr.msk.f32.mxu1 %vm9711_vm1, %v15150_v51 }
 0x3e3   : > { %v12801_v35 = vsel %vm1572_vm8, %v3784_v54, %v3666_v37  ;;  %v15181_v37 = vld [vmem:[#allocation14_spill] sm:$0xff] }
 0x3e5   : > { %8846 = vmatmul.mubr.msk.f32.gmra.mrb[252].mxu1 %vm1649_vm9, %v12801_v35  ;;  %v3668_v19 = vpop.permute.xlu0 %3667 }
 0x3e6   : > { %v3430_v36 = vpop.permute.xlu1 %3429  ;;  %8848 = vmatprep.mubr.msk.f32.mxu1 %vm9711_vm1, %v15150_v51 }
 0x3e7   : > { %v3785_v2 = vsel %vm1520_vm7, %v15178_v53, %v3430_v36  ;;  %v15182_v53 = vld [vmem:[#allocation8_spill] sm:$0xff] }
 0x3e8   : > { %v12810_v47 = vsel %vm1572_vm8, %v3785_v2, %v3668_v19 }
 0x3e9   : > { %8849 = vmatmul.mubr.msk.f32.gmra.mrb[254].mxu1 %vm1649_vm9, %v12810_v47  ;;  %v3432_v55 = vpop.permute.xlu0 %3431 }
 0x3ea   : > { %v3670_v28 = vpop.permute.xlu1 %3669  ;;  %v3786_v25 = vsel %vm1520_vm7, %v15179_v1, %v3432_v55  ;;  %8851 = vmatprep.mubr.msk.f32.mxu1 %vm9711_vm1, %v15150_v51 }
 0x3eb   : > { %v12819_v30 = vsel %vm1572_vm8, %v3786_v25, %v3670_v28  ;;  %v15183_v25 = vld [vmem:[#allocation16_spill] sm:$0xff] }
 0x3ed   : > { %8852 = vmatmul.mubr.msk.f32.gmra.mrb[0].mxu1 %vm1649_vm9, %v12819_v30  ;;  %v3434_v29 = vpop.permute.xlu0 %3433 }
 0x3ee   : > { %v3672_v13 = vpop.permute.xlu1 %3671  ;;  %v3787_v50 = vsel %vm1520_vm7, %v15180_v6, %v3434_v29  ;;  %8854 = vmatprep.mubr.msk.f32.mxu1 %vm9711_vm1, %v15150_v51 }
 0x3ef   : > { %v12828_v16 = vsel %vm1572_vm8, %v3787_v50, %v3672_v13 }
 0x3f1   : > { %8855 = vmatmul.mubr.msk.f32.gmra.mrb[2].mxu1 %vm1649_vm9, %v12828_v16  ;;  %v3436_v14 = vpop.permute.xlu0 %3435 }
 0x3f2   : > { %v3674_v44 = vpop.permute.xlu1 %3673  ;;  %v3788_v57 = vsel %vm1520_vm7, %v15181_v37, %v3436_v14  ;;  %8857 = vmatprep.mubr.msk.f32.mxu1 %vm9711_vm1, %v15150_v51 }
 0x3f3   : > { %v12837_v54 = vsel %vm1572_vm8, %v3788_v57, %v3674_v44 }
 0x3f5   : > { %8858 = vmatmul.mubr.msk.f32.gmra.mrb[4].mxu1 %vm1649_vm9, %v12837_v54  ;;  %v3438_v19 = vpop.permute.xlu0 %3437 }
 0x3f6   : > { %v3676_v36 = vpop.permute.xlu1 %3675  ;;  %v3789_v2 = vsel %vm1520_vm7, %v15182_v53, %v3438_v19  ;;  %8860 = vmatprep.mubr.msk.f32.mxu1 %vm9711_vm1, %v15150_v51 }
 0x3f7   : > { %v12846_v55 = vsel %vm1572_vm8, %v3789_v2, %v3676_v36 }
 0x3f9   : > { %8861 = vmatmul.mubr.msk.f32.gmra.mrb[6].mxu1 %vm1649_vm9, %v12846_v55  ;;  %v3440_v28 = vpop.permute.xlu0 %3439 }
 0x3fa   : > { %v3678_v1 = vpop.permute.xlu1 %3677  ;;  %v3790_v29 = vsel %vm1520_vm7, %v15183_v25, %v3440_v28  ;;  %8863 = vmatprep.mubr.msk.f32.mxu1 %vm9711_vm1, %v15150_v51 }
 0x3fb   : > { %v12855_v13 = vsel %vm1572_vm8, %v3790_v29, %v3678_v1 }
 0x3fd   : > { %8864 = vmatmul.mubr.msk.f32.gmra.mrb[8].mxu1 %vm1649_vm9, %v12855_v13 }
 0x3fe   : > { %v3680_v6 = vpop.permute.xlu1 %3679  ;;  %8866 = vmatprep.mubr.msk.f32.mxu1 %vm9711_vm1, %v15150_v51 }
 0x3ff   : > { %v3442_v50 = vpop.permute.xlu0 %3441 }
 0x400   : > { %v3791_v14 = vsel %vm1520_vm7, %v12324_v39, %v3442_v50 }
 0x401   : > { %v12864_v44 = vsel %vm1572_vm8, %v3791_v14, %v3680_v6 }
 0x402   : > { %8867 = vmatmul.mubr.msk.f32.gmra.mrb[10].mxu1 %vm1649_vm9, %v12864_v44  ;;  %v3682_v37 = vpop.permute.xlu1 %3681 }
 0x403   : > { %v3444_v57 = vpop.permute.xlu0 %3443  ;;  %8869 = vmatprep.mubr.msk.f32.mxu1 %vm9711_vm1, %v15150_v51 }
 0x404   : > { %v3792_v19 = vsel %vm1520_vm7, %v12354_v38, %v3444_v57 }
 0x405   : > { %v12873_v36 = vsel %vm1572_vm8, %v3792_v19, %v3682_v37 }
 0x406   : > { %8870 = vmatmul.mubr.msk.f32.gmra.mrb[12].mxu1 %vm1649_vm9, %v12873_v36  ;;  %v3684_v39 = vpop.permute.xlu1 %3683 }
 0x407   : > { %v3446_v53 = vpop.permute.xlu0 %3445  ;;  %8872 = vmatprep.mubr.msk.f32.mxu1 %vm9711_vm1, %v15150_v51 }
 0x408   : > { %v3793_v2 = vsel %vm1520_vm7, %v12388_v49, %v3446_v53 }
 0x409   : > { %v12882_v28 = vsel %vm1572_vm8, %v3793_v2, %v3684_v39 }
 0x40a   : > { %8873 = vmatmul.mubr.msk.f32.gmra.mrb[14].mxu1 %vm1649_vm9, %v12882_v28  ;;  %v3686_v38 = vpop.permute.xlu1 %3685 }
 0x40b   : > { %v3448_v1 = vpop.permute.xlu0 %3447  ;;  %8875 = vmatprep.mubr.msk.f32.mxu1 %vm9711_vm1, %v15150_v51 }
 0x40c   : > { %v3794_v25 = vsel %vm1520_vm7, %v12417_v33, %v3448_v1 }
 0x40d   : > { %v12891_v29 = vsel %vm1572_vm8, %v3794_v25, %v3686_v38 }
 0x40e   : > { %8876 = vmatmul.mubr.msk.f32.gmra.mrb[16].mxu1 %vm1649_vm9, %v12891_v29  ;;  %v3688_v49 = vpop.permute.xlu1 %3687 }
 0x40f   : > { %v3450_v6 = vpop.permute.xlu0 %3449  ;;  %8878 = vmatprep.mubr.msk.f32.mxu1 %vm9711_vm1, %v15150_v51 }
 0x410   : > { %v3795_v50 = vsel %vm1520_vm7, %v12446_v3, %v3450_v6 }
 0x411   : > { %v12900_v14 = vsel %vm1572_vm8, %v3795_v50, %v3688_v49 }
 0x412   : > { %8879 = vmatmul.mubr.msk.f32.gmra.mrb[18].mxu1 %vm1649_vm9, %v12900_v14  ;;  %v3690_v33 = vpop.permute.xlu1 %3689 }
 0x413   : > { %v3452_v37 = vpop.permute.xlu0 %3451  ;;  %8881 = vmatprep.mubr.msk.f32.mxu1 %vm9711_vm1, %v15150_v51 }
 0x414   : > { %v3796_v57 = vsel %vm1520_vm7, %v12469_v26, %v3452_v37 }
 0x415   : > { %v12909_v19 = vsel %vm1572_vm8, %v3796_v57, %v3690_v33 }
 0x416   : > { %8882 = vmatmul.mubr.msk.f32.gmra.mrb[20].mxu1 %vm1649_vm9, %v12909_v19  ;;  %v3692_v3 = vpop.permute.xlu1 %3691 }
 0x417   : > { %v3454_v39 = vpop.permute.xlu0 %3453  ;;  %8884 = vmatprep.mubr.msk.f32.mxu1 %vm9711_vm1, %v15150_v51 }
 0x418   : > { %v3797_v53 = vsel %vm1520_vm7, %v12492_v43, %v3454_v39 }
 0x419   : > { %v12918_v2 = vsel %vm1572_vm8, %v3797_v53, %v3692_v3 }
 0x41a   : > { %8885 = vmatmul.mubr.msk.f32.gmra.mrb[22].mxu1 %vm1649_vm9, %v12918_v2  ;;  %v3694_v26 = vpop.permute.xlu1 %3693 }
 0x41b   : > { %v3456_v38 = vpop.permute.xlu0 %3455  ;;  %8887 = vmatprep.mubr.msk.f32.mxu1 %vm9711_vm1, %v15150_v51 }
 0x41c   : > { %v3798_v1 = vsel %vm1520_vm7, %v12514_v27, %v3456_v38 }
 0x41d   : > { %v12927_v25 = vsel %vm1572_vm8, %v3798_v1, %v3694_v26 }
 0x41e   : > { %8888 = vmatmul.mubr.msk.f32.gmra.mrb[24].mxu1 %vm1649_vm9, %v12927_v25  ;;  %v3696_v43 = vpop.permute.xlu1 %3695 }
 0x41f   : > { %v3458_v49 = vpop.permute.xlu0 %3457  ;;  %8890 = vmatprep.mubr.msk.f32.mxu1 %vm9711_vm1, %v15150_v51 }
 0x420   : > { %v3799_v6 = vsel %vm1520_vm7, %v12548_v59, %v3458_v49 }
 0x421   : > { %v12936_v50 = vsel %vm1572_vm8, %v3799_v6, %v3696_v43 }
 0x422   : > { %8891 = vmatmul.mubr.msk.f32.gmra.mrb[26].mxu1 %vm1649_vm9, %v12936_v50  ;;  %v3698_v27 = vpop.permute.xlu1 %3697 }
 0x423   : > { %v3460_v33 = vpop.permute.xlu0 %3459  ;;  %8893 = vmatprep.mubr.msk.f32.mxu1 %vm9711_vm1, %v15150_v51 }
 0x424   : > { %v3800_v37 = vsel %vm1520_vm7, %v12571_v61, %v3460_v33 }
 0x425   : > { %v12945_v57 = vsel %vm1572_vm8, %v3800_v37, %v3698_v27 }
 0x426   : > { %8894 = vmatmul.mubr.msk.f32.gmra.mrb[28].mxu1 %vm1649_vm9, %v12945_v57  ;;  %v3700_v59 = vpop.permute.xlu1 %3699 }
 0x427   : > { %v3462_v3 = vpop.permute.xlu0 %3461  ;;  %8896 = vmatprep.mubr.msk.f32.mxu1 %vm9711_vm1, %v15150_v51 }
 0x428   : > { %v3801_v39 = vsel %vm1520_vm7, %v12593_v18, %v3462_v3 }
 0x429   : > { %v12954_v53 = vsel %vm1572_vm8, %v3801_v39, %v3700_v59 }
 0x42a   : > { %8897 = vmatmul.mubr.msk.f32.gmra.mrb[30].mxu1 %vm1649_vm9, %v12954_v53  ;;  %v3702_v61 = vpop.permute.xlu1 %3701 }
 0x42b   : > { %v3464_v26 = vpop.permute.xlu0 %3463  ;;  %8899 = vmatprep.mubr.msk.f32.mxu1 %vm9711_vm1, %v15150_v51 }
 0x42c   : > { %v3802_v38 = vsel %vm1520_vm7, %v12615_v12, %v3464_v26 }
 0x42d   : > { %v12963_v1 = vsel %vm1572_vm8, %v3802_v38, %v3702_v61 }
 0x42e   : > { %8900 = vmatmul.mubr.msk.f32.gmra.mrb[32].mxu1 %vm1649_vm9, %v12963_v1  ;;  %v3704_v18 = vpop.permute.xlu1 %3703 }
 0x42f   : > { %v3466_v43 = vpop.permute.xlu0 %3465  ;;  %8902 = vmatprep.mubr.msk.f32.mxu1 %vm9711_vm1, %v15150_v51 }
 0x430   : > { %v3803_v49 = vsel %vm1520_vm7, %v12637_v21, %v3466_v43 }
 0x431   : > { %v12972_v6 = vsel %vm1572_vm8, %v3803_v49, %v3704_v18 }
 0x432   : > { %8903 = vmatmul.mubr.msk.f32.gmra.mrb[34].mxu1 %vm1649_vm9, %v12972_v6  ;;  %v3706_v12 = vpop.permute.xlu1 %3705 }
 0x433   : > { %v3468_v27 = vpop.permute.xlu0 %3467  ;;  %8905 = vmatprep.mubr.msk.f32.mxu1 %vm9711_vm1, %v15150_v51 }
 0x434   : > { %v3804_v33 = vsel %vm1520_vm7, %v12657_v15, %v3468_v27 }
 0x435   : > { %v12981_v37 = vsel %vm1572_vm8, %v3804_v33, %v3706_v12  ;;  %v5452_v12 = vld [vmem:[%s15014_s8 + $0x8] sm:$0xff] }
 0x436   : > { %8906 = vmatmul.mubr.msk.f32.gmra.mrb[36].mxu1 %vm1649_vm9, %v12981_v37  ;;  %v3708_v21 = vpop.permute.xlu1 %3707 }
 0x437   : > { %v3470_v59 = vpop.permute.xlu0 %3469  ;;  %8908 = vmatprep.mubr.msk.f32.mxu1 %vm9711_vm1, %v15150_v51 }
 0x438   : > { %v3805_v3 = vsel %vm1520_vm7, %v12678_v41, %v3470_v59 }
 0x439   : > { %v12990_v39 = vsel %vm1572_vm8, %v3805_v3, %v3708_v21 }
 0x43a   : > { %8909 = vmatmul.mubr.msk.f32.gmra.mrb[38].mxu1 %vm1649_vm9, %v12990_v39  ;;  %v3616_v15 = vpop.permute.xlu1 %3615 }
 0x43b   : > { %v3378_v61 = vpop.permute.xlu0 %3377  ;;  %9094 = vmatprep.mubr.msk.f32.mxu1 %vm9711_vm1, %v15150_v51 }
 0x43c   : > { %v3759_v26 = vsel %vm1520_vm7, 0.0, %v3378_v61 }
 0x43d   : > { %v12998_v38 = vsel %vm1572_vm8, %v3759_v26, %v3616_v15 }
 0x43e   : > { %8936 = vmatmul.mubr.msk.f32.vlgmr.msra.gmra.mrb[166].mxu0 %vm1649_vm9, %v12998_v38  ;;  %9095 = vmatmul.mubr.msk.f32.vlgmr.msra.gmra.mrb[40].mxu1 %vm1649_vm9, %v12434_v62  ;;  %v3618_v18 = vpop.permute.xlu1 %3617 }
 0x43f   : > { %v3380_v41 = vpop.permute.xlu0 %3379  ;;  %8938 = vmatprep.mubr.msk.f32.mxu0 %vm9711_vm1, %v15150_v51  ;;  %9097 = vmatprep.mubr.msk.f32.mxu1 %vm9711_vm1, %v15150_v51 }
 0x440   : > { %v3760_v43 = vsel %vm1520_vm7, 0.0, %v3380_v41  ;;  %v5454_v41 = vld [vmem:[%s15014_s8 + $0x18] sm:$0xff] }
 0x441   : > { %v3808_v49 = vsel %vm1572_vm8, %v3760_v43, %v3618_v18 }
 0x442   : > { %8939 = vmatmul.mubr.msk.f32.gmra.mrb[168].mxu0 %vm1649_vm9, %v12998_v38  ;;  %9098 = vmatmul.mubr.msk.f32.gmra.mrb[42].mxu1 %vm1649_vm9, %v12466_v23 }
 0x443   : > { %8941 = vmatprep.mubr.msk.f32.mxu0 %vm9711_vm1, %v15150_v51  ;;  %9100 = vmatprep.mubr.msk.f32.mxu1 %vm9711_vm1, %v15150_v51 }
 0x446   : > { %8942 = vmatmul.mubr.msk.f32.gmra.mrb[170].mxu0 %vm1649_vm9, %v3808_v49  ;;  %9101 = vmatmul.mubr.msk.f32.gmra.mrb[44].mxu1 %vm1649_vm9, %v12486_v58 }
 0x447   : > { %8944 = vmatprep.mubr.msk.f32.mxu0 %vm9711_vm1, %v15150_v51  ;;  %9103 = vmatprep.mubr.msk.f32.mxu1 %vm9711_vm1, %v15150_v51 }
 0x44a   : > { %8945 = vmatmul.mubr.msk.f32.gmra.mrb[172].mxu0 %vm1649_vm9, %v12351_v9  ;;  %9104 = vmatmul.mubr.msk.f32.gmra.mrb[46].mxu1 %vm1649_vm9, %v12511_v24  ;;  %v5451_v9 = vld [vmem:[%s15014_s8] sm:$0xff] }
 0x44b   : > { %8947 = vmatprep.mubr.msk.f32.mxu0 %vm9711_vm1, %v15150_v51  ;;  %9106 = vmatprep.mubr.msk.f32.mxu1 %vm9711_vm1, %v15150_v51  ;;  %v9424_v27 = vpack.c.bf16 %v5452_v12, %v5451_v9 }
 0x44d   : > { %9425 = vmatpush3.bf16.msra.mxu0 %v9424_v27 }
 0x44e   : > { %8948 = vmatmul.mubr.msk.f32.gmra.mrb[174].mxu0 %vm1649_vm9, %v12376_v17  ;;  %9107 = vmatmul.mubr.msk.f32.gmra.mrb[48].mxu1 %vm1649_vm9, %v12543_v40 }
 0x44f   : > { %8950 = vmatprep.mubr.msk.f32.mxu0 %vm9711_vm1, %v15150_v51  ;;  %9109 = vmatprep.mubr.msk.f32.mxu1 %vm9711_vm1, %v15150_v51 }
 0x450   : > { %9426 = vmatprep.subr.bf16.mxu0 %v15057_v52 }
 0x452   : > { %8951 = vmatmul.mubr.msk.f32.gmra.mrb[176].mxu0 %vm1649_vm9, %v12414_v56  ;;  %9110 = vmatmul.mubr.msk.f32.gmra.mrb[50].mxu1 %vm1649_vm9, %v12568_v0 }
 0x453   : > { %8953 = vmatprep.mubr.msk.f32.mxu0 %vm9711_vm1, %v15150_v51  ;;  %9112 = vmatprep.mubr.msk.f32.mxu1 %vm9711_vm1, %v15150_v51 }
 0x456   : > { %8954 = vmatmul.mubr.msk.f32.gmra.mrb[178].mxu0 %vm1649_vm9, %v12434_v62  ;;  %9113 = vmatmul.mubr.msk.f32.gmra.mrb[52].mxu1 %vm1649_vm9, %v12588_v4 }
 0x457   : > { %8956 = vmatprep.mubr.msk.f32.mxu0 %vm9711_vm1, %v15150_v51  ;;  %9115 = vmatprep.mubr.msk.f32.mxu1 %vm9711_vm1, %v15150_v51 }
 0x45a   : > { %8957 = vmatmul.mubr.msk.f32.gmra.mrb[180].mxu0 %vm1649_vm9, %v12466_v23  ;;  %9116 = vmatmul.mubr.msk.f32.gmra.mrb[54].mxu1 %vm1649_vm9, %v12612_v20 }
 0x45b   : > { %8959 = vmatprep.mubr.msk.f32.mxu0 %vm9711_vm1, %v15150_v51  ;;  %9118 = vmatprep.mubr.msk.f32.mxu1 %vm9711_vm1, %v15150_v51 }
 0x45c   : > { %v13072_v17 = vpop.f32.mrb[206].mxu1 }
 0x45d   : > { %v8778_v56 = vpop.f32.mrb[207].mxu1 }
 0x45e   : > { %8960 = vmatmul.mubr.msk.f32.gmra.mrb[182].mxu0 %vm1649_vm9, %v12486_v58  ;;  %9119 = vmatmul.mubr.msk.f32.gmra.mrb[56].mxu1 %vm1649_vm9, %v12632_v42 }
 0x45f   : > { %8962 = vmatprep.mubr.msk.f32.mxu0 %vm9711_vm1, %v15150_v51  ;;  %9121 = vmatprep.mubr.msk.f32.mxu1 %vm9711_vm1, %v15150_v51 }
 0x460   : > { %v13082_v62 = vpop.f32.mrb[208].mxu1 }
 0x461   : > { %v8781_v23 = vpop.f32.mrb[209].mxu1 }
 0x462   : > { %8963 = vmatmul.mubr.msk.f32.gmra.mrb[184].mxu0 %vm1649_vm9, %v12511_v24  ;;  %9122 = vmatmul.mubr.msk.f32.gmra.mrb[58].mxu1 %vm1649_vm9, %v12654_v5 }
 0x463   : > { %8965 = vmatprep.mubr.msk.f32.mxu0 %vm9711_vm1, %v15150_v51  ;;  %9124 = vmatprep.mubr.msk.f32.mxu1 %vm9711_vm1, %v15150_v51 }
 0x464   : > { %v13092_v58 = vpop.f32.mrb[210].mxu1 }
 0x465   : > { %v8784_v33 = vpop.f32.mrb[211].mxu1 }
 0x466   : > { %8966 = vmatmul.mubr.msk.f32.gmra.mrb[186].mxu0 %vm1649_vm9, %v12543_v40  ;;  %9125 = vmatmul.mubr.msk.f32.gmra.mrb[60].mxu1 %vm1649_vm9, %v12671_v63 }
 0x467   : > { %8968 = vmatprep.mubr.msk.f32.mxu0 %vm9711_vm1, %v15150_v51  ;;  %9127 = vmatprep.mubr.msk.f32.mxu1 %vm9711_vm1, %v15150_v51 }
 0x468   : > { %v13102_v24 = vpop.f32.mrb[212].mxu1 }
 0x469   : > { %v8787_v21 = vpop.f32.mrb[213].mxu1 }
 0x46a   : > { %8969 = vmatmul.mubr.msk.f32.gmra.mrb[188].mxu0 %vm1649_vm9, %v12568_v0  ;;  %9128 = vmatmul.mubr.msk.f32.gmra.mrb[62].mxu1 %vm1649_vm9, %v12694_v11 }
 0x46b   : > { %8971 = vmatprep.mubr.msk.f32.mxu0 %vm9711_vm1, %v15150_v51  ;;  %9130 = vmatprep.mubr.msk.f32.mxu1 %vm9711_vm1, %v15150_v51 }
 0x46c   : > { %v13112_v40 = vpop.f32.mrb[214].mxu1 }
 0x46d   : > { %v8790_v59 = vpop.f32.mrb[215].mxu1 }
 0x46e   : > { %8972 = vmatmul.mubr.msk.f32.gmra.mrb[190].mxu0 %vm1649_vm9, %v12588_v4  ;;  %9131 = vmatmul.mubr.msk.f32.gmra.mrb[64].mxu1 %vm1649_vm9, %v12706_v34 }
 0x46f   : > { %8974 = vmatprep.mubr.msk.f32.mxu0 %vm9711_vm1, %v15150_v51  ;;  %9133 = vmatprep.mubr.msk.f32.mxu1 %vm9711_vm1, %v15150_v51 }
 0x470   : > { %v13122_v0 = vpop.f32.mrb[216].mxu1 }
 0x471   : > { %v8793_v3 = vpop.f32.mrb[217].mxu1 }
 0x472   : > { %8975 = vmatmul.mubr.msk.f32.gmra.mrb[192].mxu0 %vm1649_vm9, %v12612_v20  ;;  %9134 = vmatmul.mubr.msk.f32.gmra.mrb[66].mxu1 %vm1649_vm9, %v12720_v46 }
 0x473   : > { %8977 = vmatprep.mubr.msk.f32.mxu0 %vm9711_vm1, %v15150_v51  ;;  %9136 = vmatprep.mubr.msk.f32.mxu1 %vm9711_vm1, %v15150_v51 }
 0x474   : > { %v13132_v4 = vpop.f32.mrb[218].mxu1 }
 0x475   : > { %v8796_v15 = vpop.f32.mrb[219].mxu1 }
 0x476   : > { %8978 = vmatmul.mubr.msk.f32.gmra.mrb[194].mxu0 %vm1649_vm9, %v12632_v42  ;;  %9137 = vmatmul.mubr.msk.f32.gmra.mrb[68].mxu1 %vm1649_vm9, %v12735_v10 }
 0x477   : > { %8980 = vmatprep.mubr.msk.f32.mxu0 %vm9711_vm1, %v15150_v51  ;;  %9139 = vmatprep.mubr.msk.f32.mxu1 %vm9711_vm1, %v15150_v51 }
 0x478   : > { %v13142_v20 = vpop.f32.mrb[220].mxu1 }
 0x479   : > { %v8799_v61 = vpop.f32.mrb[221].mxu1 }
 0x47a   : > { %8981 = vmatmul.mubr.msk.f32.gmra.mrb[196].mxu0 %vm1649_vm9, %v12654_v5  ;;  %9140 = vmatmul.mubr.msk.f32.gmra.mrb[70].mxu1 %vm1649_vm9, %v12755_v22  ;;  %v5453_v5 = vld [vmem:[%s15014_s8 + $0x10] sm:$0xff] }
 0x47b   : > { %8983 = vmatprep.mubr.msk.f32.mxu0 %vm9711_vm1, %v15150_v51  ;;  %9142 = vmatprep.mubr.msk.f32.mxu1 %vm9711_vm1, %v15150_v51  ;;  %v9427_v18 = vpack.c.bf16 %v5454_v41, %v5453_v5  ;;  %v5456_v5 = vld [vmem:[%s15014_s8 + $0x28] sm:$0xff] }
 0x47c   : > { %v13152_v42 = vpop.f32.mrb[222].mxu1 }
 0x47d   : > { %v8802_v26 = vpop.f32.mrb[223].mxu1  ;;  %9428 = vmatpush3.bf16.msra.mxu0 %v9427_v18 }
 0x47e   : > { %8984 = vmatmul.mubr.msk.f32.gmra.mrb[198].mxu0 %vm1649_vm9, %v12671_v63  ;;  %9143 = vmatmul.mubr.msk.f32.gmra.mrb[72].mxu1 %vm1649_vm9, %v12765_v45 }
 0x47f   : > { %8986 = vmatprep.mubr.msk.f32.mxu0 %vm9711_vm1, %v15150_v51  ;;  %9145 = vmatprep.mubr.msk.f32.mxu1 %vm9711_vm1, %v15150_v51 }
 0x480   : > { %v13168_v43 = vpop.f32.mrb[224].mxu1  ;;  %9429 = vmatprep.subr.bf16.mxu0 %v15057_v52 }
 0x481   : > { %v8805_v63 = vpop.f32.mrb[225].mxu1 }
 0x482   : > { %8987 = vmatmul.mubr.msk.f32.gmra.mrb[200].mxu0 %vm1649_vm9, %v12694_v11  ;;  %9146 = vmatmul.mubr.msk.f32.gmra.mrb[74].mxu1 %vm1649_vm9, %v12774_v7  ;;  %v5457_v63 = vld [vmem:[%s15014_s8 + $0x30] sm:$0xff] }
 0x483   : > { %8989 = vmatprep.mubr.msk.f32.mxu0 %vm9711_vm1, %v15150_v51  ;;  %9148 = vmatprep.mubr.msk.f32.mxu1 %vm9711_vm1, %v15150_v51 }
 0x484   : > { %v13178_v49 = vpop.f32.mrb[226].mxu1 }
 0x485   : > { %v8808_v9 = vpop.f32.mrb[227].mxu1 }
 0x486   : > { %8990 = vmatmul.mubr.msk.f32.gmra.mrb[202].mxu0 %vm1649_vm9, %v12706_v34  ;;  %9149 = vmatmul.mubr.msk.f32.gmra.mrb[76].mxu1 %vm1649_vm9, %v12783_v48  ;;  %v5458_v9 = vld [vmem:[%s15014_s8 + $0x38] sm:$0xff] }
 0x487   : > { %8992 = vmatprep.mubr.msk.f32.mxu0 %vm9711_vm1, %v15150_v51  ;;  %9151 = vmatprep.mubr.msk.f32.mxu1 %vm9711_vm1, %v15150_v51 }
 0x488   : > { %v13189_v11 = vpop.f32.mrb[228].mxu1 }
 0x489   : > { %v8811_v12 = vpop.f32.mrb[229].mxu1 }
 0x48a   : > { %8993 = vmatmul.mubr.msk.f32.gmra.mrb[204].mxu0 %vm1649_vm9, %v12720_v46  ;;  %9152 = vmatmul.mubr.msk.f32.gmra.mrb[78].mxu1 %vm1649_vm9, %v12792_v32 }
 0x48b   : > { %8995 = vmatprep.mubr.msk.f32.mxu0 %vm9711_vm1, %v15150_v51  ;;  %9154 = vmatprep.mubr.msk.f32.mxu1 %vm9711_vm1, %v15150_v51 }
 0x48c   : > { %v13199_v34 = vpop.f32.mrb[230].mxu1 }
 0x48d   : > { %v8814_v27 = vpop.f32.mrb[231].mxu1 }
 0x48e   : > { %8996 = vmatmul.mubr.msk.f32.gmra.mrb[206].mxu0 %vm1649_vm9, %v12735_v10  ;;  %9155 = vmatmul.mubr.msk.f32.gmra.mrb[80].mxu1 %vm1649_vm9, %v12801_v35 }
 0x48f   : > { %8998 = vmatprep.mubr.msk.f32.mxu0 %vm9711_vm1, %v15150_v51  ;;  %9157 = vmatprep.mubr.msk.f32.mxu1 %vm9711_vm1, %v15150_v51 }
 0x490   : > { %v13209_v46 = vpop.f32.mrb[232].mxu1 }
 0x491   : > { %v8817_v56 = vpop.f32.mrb[233].mxu1 }
 0x492   : > { %8999 = vmatmul.mubr.msk.f32.gmra.mrb[208].mxu0 %vm1649_vm9, %v12755_v22  ;;  %9158 = vmatmul.mubr.msk.f32.gmra.mrb[82].mxu1 %vm1649_vm9, %v12810_v47 }
 0x493   : > { %9001 = vmatprep.mubr.msk.f32.mxu0 %vm9711_vm1, %v15150_v51  ;;  %9160 = vmatprep.mubr.msk.f32.mxu1 %vm9711_vm1, %v15150_v51 }
 0x494   : > { %v13219_v10 = vpop.f32.mrb[234].mxu1 }
 0x495   : > { %v8820_v23 = vpop.f32.mrb[235].mxu1 }
 0x496   : > { %9002 = vmatmul.mubr.msk.f32.gmra.mrb[210].mxu0 %vm1649_vm9, %v12765_v45  ;;  %9161 = vmatmul.mubr.msk.f32.gmra.mrb[84].mxu1 %vm1649_vm9, %v12819_v30 }
 0x497   : > { %9004 = vmatprep.mubr.msk.f32.mxu0 %vm9711_vm1, %v15150_v51  ;;  %9163 = vmatprep.mubr.msk.f32.mxu1 %vm9711_vm1, %v15150_v51 }
 0x498   : > { %v13229_v22 = vpop.f32.mrb[236].mxu1 }
 0x499   : > { %v8823_v33 = vpop.f32.mrb[237].mxu1 }
 0x49a   : > { %9005 = vmatmul.mubr.msk.f32.gmra.mrb[212].mxu0 %vm1649_vm9, %v12774_v7  ;;  %9164 = vmatmul.mubr.msk.f32.gmra.mrb[86].mxu1 %vm1649_vm9, %v12828_v16 }
 0x49b   : > { %9007 = vmatprep.mubr.msk.f32.mxu0 %vm9711_vm1, %v15150_v51  ;;  %9166 = vmatprep.mubr.msk.f32.mxu1 %vm9711_vm1, %v15150_v51 }
 0x49c   : > { %v13239_v45 = vpop.f32.mrb[238].mxu1 }
 0x49d   : > { %v8826_v21 = vpop.f32.mrb[239].mxu1 }
 0x49e   : > { %9008 = vmatmul.mubr.msk.f32.gmra.mrb[214].mxu0 %vm1649_vm9, %v12783_v48  ;;  %9167 = vmatmul.mubr.msk.f32.gmra.mrb[88].mxu1 %vm1649_vm9, %v12837_v54 }
 0x49f   : > { %9010 = vmatprep.mubr.msk.f32.mxu0 %vm9711_vm1, %v15150_v51  ;;  %9169 = vmatprep.mubr.msk.f32.mxu1 %vm9711_vm1, %v15150_v51 }
 0x4a0   : > { %v13249_v7 = vpop.f32.mrb[240].mxu1 }
 0x4a1   : > { %v8829_v59 = vpop.f32.mrb[241].mxu1 }
 0x4a2   : > { %9011 = vmatmul.mubr.msk.f32.gmra.mrb[216].mxu0 %vm1649_vm9, %v12792_v32  ;;  %9170 = vmatmul.mubr.msk.f32.gmra.mrb[90].mxu1 %vm1649_vm9, %v12846_v55 }
 0x4a3   : > { %9013 = vmatprep.mubr.msk.f32.mxu0 %vm9711_vm1, %v15150_v51  ;;  %9172 = vmatprep.mubr.msk.f32.mxu1 %vm9711_vm1, %v15150_v51 }
 0x4a4   : > { %v13259_v48 = vpop.f32.mrb[242].mxu1 }
 0x4a5   : > { %v8832_v3 = vpop.f32.mrb[243].mxu1 }
 0x4a6   : > { %9014 = vmatmul.mubr.msk.f32.gmra.mrb[218].mxu0 %vm1649_vm9, %v12801_v35  ;;  %9173 = vmatmul.mubr.msk.f32.gmra.mrb[92].mxu1 %vm1649_vm9, %v12855_v13 }
 0x4a7   : > { %9016 = vmatprep.mubr.msk.f32.mxu0 %vm9711_vm1, %v15150_v51  ;;  %9175 = vmatprep.mubr.msk.f32.mxu1 %vm9711_vm1, %v15150_v51 }
 0x4a8   : > { %v13269_v32 = vpop.f32.mrb[244].mxu1 }
 0x4a9   : > { %v8835_v15 = vpop.f32.mrb[245].mxu1 }
 0x4aa   : > { %9017 = vmatmul.mubr.msk.f32.gmra.mrb[220].mxu0 %vm1649_vm9, %v12810_v47  ;;  %9176 = vmatmul.mubr.msk.f32.gmra.mrb[94].mxu1 %vm1649_vm9, %v12864_v44 }
 0x4ab   : > { %9019 = vmatprep.mubr.msk.f32.mxu0 %vm9711_vm1, %v15150_v51  ;;  %9178 = vmatprep.mubr.msk.f32.mxu1 %vm9711_vm1, %v15150_v51 }
 0x4ac   : > { %v13279_v35 = vpop.f32.mrb[246].mxu1 }
 0x4ad   : > { %v8838_v61 = vpop.f32.mrb[247].mxu1 }
 0x4ae   : > { %9020 = vmatmul.mubr.msk.f32.gmra.mrb[222].mxu0 %vm1649_vm9, %v12819_v30  ;;  %9179 = vmatmul.mubr.msk.f32.gmra.mrb[96].mxu1 %vm1649_vm9, %v12873_v36  ;;  %v5455_v30 = vld [vmem:[%s15014_s8 + $0x20] sm:$0xff] }
 0x4af   : > { %9022 = vmatprep.mubr.msk.f32.mxu0 %vm9711_vm1, %v15150_v51  ;;  %9181 = vmatprep.mubr.msk.f32.mxu1 %vm9711_vm1, %v15150_v51 }
 0x4b0   : > { %v13289_v47 = vpop.f32.mrb[248].mxu1 }
 0x4b1   : > { %v8841_v26 = vpop.f32.mrb[249].mxu1 }
 0x4b2   : > { %9023 = vmatmul.mubr.msk.f32.gmra.mrb[224].mxu0 %vm1649_vm9, %v12828_v16  ;;  %9182 = vmatmul.mubr.msk.f32.gmra.mrb[98].mxu1 %vm1649_vm9, %v12882_v28  ;;  %v9430_v16 = vpack.c.bf16 %v5456_v5, %v5455_v30  ;;  %v3472_v30 = vpop.permute.xlu0 %3471 }
 0x4b3   : > { %9025 = vmatprep.mubr.msk.f32.mxu0 %vm9711_vm1, %v15150_v51  ;;  %9184 = vmatprep.mubr.msk.f32.mxu1 %vm9711_vm1, %v15150_v51  ;;  %v3806_v5 = vsel %vm1520_vm7, %v12674_v60, %v3472_v30 }
 0x4b4   : > { %v13305_v41 = vpop.f32.mrb[250].mxu1  ;;  %9431 = vmatpush3.bf16.msra.mxu0 %v9430_v16 }
 0x4b5   : > { %v8844_v18 = vpop.f32.mrb[251].mxu1  ;;  %9432 = vmatprep.subr.bf16.mxu0 %v15057_v52 }
 0x4b6   : > { %9026 = vmatmul.mubr.msk.f32.gmra.mrb[226].mxu0 %vm1649_vm9, %v12837_v54  ;;  %9185 = vmatmul.mubr.msk.f32.gmra.mrb[100].mxu1 %vm1649_vm9, %v12891_v29  ;;  %v9433_v54 = vpack.c.bf16 %v5458_v9, %v5457_v63 }
 0x4b7   : > { %9028 = vmatprep.mubr.msk.f32.mxu0 %vm9711_vm1, %v15150_v51  ;;  %9187 = vmatprep.mubr.msk.f32.mxu1 %vm9711_vm1, %v15150_v51 }
 0x4b8   : > { %v13321_v12 = vpop.f32.mrb[252].mxu1  ;;  %9434 = vmatpush3.bf16.msra.mxu0 %v9433_v54 }
 0x4b9   : > { %v8847_v27 = vpop.f32.mrb[253].mxu1 }
 0x4ba   : > { %9029 = vmatmul.mubr.msk.f32.gmra.mrb[228].mxu0 %vm1649_vm9, %v12846_v55  ;;  %9188 = vmatmul.mubr.msk.f32.gmra.mrb[102].mxu1 %vm1649_vm9, %v12900_v14 }
 0x4bb   : > { %9031 = vmatprep.mubr.msk.f32.mxu0 %vm9711_vm1, %v15150_v51  ;;  %9190 = vmatprep.mubr.msk.f32.mxu1 %vm9711_vm1, %v15150_v51 }
 0x4bc   : > { %v13332_v56 = vpop.f32.mrb[254].mxu1 }
 0x4bd   : > { %v8850_v23 = vpop.f32.mrb[255].mxu1 }
 0x4be   : > { %9032 = vmatmul.mubr.msk.f32.gmra.mrb[230].mxu0 %vm1649_vm9, %v12855_v13  ;;  %9191 = vmatmul.mubr.msk.f32.gmra.mrb[104].mxu1 %vm1649_vm9, %v12909_v19 }
 0x4bf   : > { %9034 = vmatprep.mubr.msk.f32.mxu0 %vm9711_vm1, %v15150_v51  ;;  %9193 = vmatprep.mubr.msk.f32.mxu1 %vm9711_vm1, %v15150_v51 }
 0x4c0   : > { %v13342_v52 = vpop.f32.mrb[0].mxu1 }
 0x4c1   : > { %v8853_v55 = vpop.f32.mrb[1].mxu1 }
 0x4c2   : > { %9035 = vmatmul.mubr.msk.f32.gmra.mrb[232].mxu0 %vm1649_vm9, %v12864_v44  ;;  %9194 = vmatmul.mubr.msk.f32.gmra.mrb[106].mxu1 %vm1649_vm9, %v12918_v2 }
 0x4c3   : > { %9037 = vmatprep.mubr.msk.f32.mxu0 %vm9711_vm1, %v15150_v51  ;;  %9196 = vmatprep.mubr.msk.f32.mxu1 %vm9711_vm1, %v15150_v51 }
 0x4c4   : > { %v13352_v13 = vpop.f32.mrb[2].mxu1 }
 0x4c5   : > { %v8856_v33 = vpop.f32.mrb[3].mxu1 }
 0x4c6   : > { %9038 = vmatmul.mubr.msk.f32.gmra.mrb[234].mxu0 %vm1649_vm9, %v12873_v36  ;;  %9197 = vmatmul.mubr.msk.f32.gmra.mrb[108].mxu1 %vm1649_vm9, %v12927_v25 }
 0x4c7   : > { %9040 = vmatprep.mubr.msk.f32.mxu0 %vm9711_vm1, %v15150_v51  ;;  %9199 = vmatprep.mubr.msk.f32.mxu1 %vm9711_vm1, %v15150_v51 }
 0x4c8   : > { %v13362_v44 = vpop.f32.mrb[4].mxu1 }
 0x4c9   : > { %v8859_v21 = vpop.f32.mrb[5].mxu1 }
 0x4ca   : > { %9041 = vmatmul.mubr.msk.f32.gmra.mrb[236].mxu0 %vm1649_vm9, %v12882_v28  ;;  %9200 = vmatmul.mubr.msk.f32.gmra.mrb[110].mxu1 %vm1649_vm9, %v12936_v50 }
 0x4cb   : > { %9043 = vmatprep.mubr.msk.f32.mxu0 %vm9711_vm1, %v15150_v51  ;;  %9202 = vmatprep.mubr.msk.f32.mxu1 %vm9711_vm1, %v15150_v51 }
 0x4cc   : > { %v13372_v36 = vpop.f32.mrb[6].mxu1 }
 0x4cd   : > { %v8862_v59 = vpop.f32.mrb[7].mxu1 }
 0x4ce   : > { %9044 = vmatmul.mubr.msk.f32.gmra.mrb[238].mxu0 %vm1649_vm9, %v12891_v29  ;;  %9203 = vmatmul.mubr.msk.f32.gmra.mrb[112].mxu1 %vm1649_vm9, %v12945_v57 }
 0x4cf   : > { %9046 = vmatprep.mubr.msk.f32.mxu0 %vm9711_vm1, %v15150_v51  ;;  %9205 = vmatprep.mubr.msk.f32.mxu1 %vm9711_vm1, %v15150_v51 }
 0x4d0   : > { %v13382_v28 = vpop.f32.mrb[8].mxu1 }
 0x4d1   : > { %v8865_v3 = vpop.f32.mrb[9].mxu1 }
 0x4d2   : > { %9047 = vmatmul.mubr.msk.f32.gmra.mrb[240].mxu0 %vm1649_vm9, %v12900_v14  ;;  %9206 = vmatmul.mubr.msk.f32.gmra.mrb[114].mxu1 %vm1649_vm9, %v12954_v53 }
 0x4d3   : > { %9049 = vmatprep.mubr.msk.f32.mxu0 %vm9711_vm1, %v15150_v51  ;;  %9208 = vmatprep.mubr.msk.f32.mxu1 %vm9711_vm1, %v15150_v51 }
 0x4d5   : > { %v13392_v29 = vpop.f32.mrb[10].mxu1 }
 0x4d6   : > { %v8868_v15 = vpop.f32.mrb[11].mxu1  ;;  %9050 = vmatmul.mubr.msk.f32.gmra.mrb[242].mxu0 %vm1649_vm9, %v12909_v19  ;;  %9209 = vmatmul.mubr.msk.f32.gmra.mrb[116].mxu1 %vm1649_vm9, %v12963_v1 }
 0x4d7   : > { %9052 = vmatprep.mubr.msk.f32.mxu0 %vm9711_vm1, %v15150_v51  ;;  %9211 = vmatprep.mubr.msk.f32.mxu1 %vm9711_vm1, %v15150_v51 }
 0x4d9   : > { %v13402_v14 = vpop.f32.mrb[12].mxu1 }
 0x4da   : > { %v8871_v61 = vpop.f32.mrb[13].mxu1  ;;  %9053 = vmatmul.mubr.msk.f32.gmra.mrb[244].mxu0 %vm1649_vm9, %v12918_v2  ;;  %9212 = vmatmul.mubr.msk.f32.gmra.mrb[118].mxu1 %vm1649_vm9, %v12972_v6  ;;  %v3710_v6 = vpop.permute.xlu1 %3709 }
 0x4db   : > { %9055 = vmatprep.mubr.msk.f32.mxu0 %vm9711_vm1, %v15150_v51  ;;  %9214 = vmatprep.mubr.msk.f32.mxu1 %vm9711_vm1, %v15150_v51 }
 0x4dd   : > { %v13412_v19 = vpop.f32.mrb[14].mxu1 }
 0x4de   : > { %v8874_v26 = vpop.f32.mrb[15].mxu1  ;;  %9056 = vmatmul.mubr.msk.f32.gmra.mrb[246].mxu0 %vm1649_vm9, %v12927_v25  ;;  %9215 = vmatmul.mubr.msk.f32.gmra.mrb[120].mxu1 %vm1649_vm9, %v12981_v37  ;;  %v3854_v25 = vsel %vm1572_vm8, %v3806_v5, %v3710_v6 }
 0x4df   : > { %9058 = vmatprep.mubr.msk.f32.mxu0 %vm9711_vm1, %v15150_v51  ;;  %9217 = vmatprep.mubr.msk.f32.mxu1 %vm9711_vm1, %v15150_v51 }
 0x4e1   : > { %v13422_v2 = vpop.f32.mrb[16].mxu1 }
 0x4e2   : > { %v8877_v16 = vpop.f32.mrb[17].mxu1  ;;  %9059 = vmatmul.mubr.msk.f32.gmra.mrb[248].mxu0 %vm1649_vm9, %v12936_v50  ;;  %9218 = vmatmul.mubr.msk.f32.gmra.mrb[122].mxu1 %vm1649_vm9, %v12990_v39 }
 0x4e3   : > { %9061 = vmatprep.mubr.msk.f32.mxu0 %vm9711_vm1, %v15150_v51  ;;  %9220 = vmatprep.mubr.msk.f32.mxu1 %vm9711_vm1, %v15150_v51 }
 0x4e5   : > { %v13435_v37 = vpop.f32.mrb[18].mxu1 }
 0x4e6   : > { %v8880_v18 = vpop.f32.mrb[19].mxu1  ;;  %9062 = vmatmul.mubr.msk.f32.gmra.mrb[250].mxu0 %vm1649_vm9, %v12945_v57  ;;  %9221 = vmatmul.mubr.msk.f32.gmra.mrb[124].mxu1 %vm1649_vm9, %v3854_v25 }
 0x4e7   : > { %9064 = vmatprep.mubr.msk.f32.mxu0 %vm9711_vm1, %v15150_v51  ;;  %9223 = vmatprep.mubr.msk.f32.mxu1 %vm9711_vm1, %v15150_v51 }
 0x4e9   : > { %v13444_v60 = vpop.f32.mrb[20].mxu1 }
 0x4ea   : > { %v8883_v50 = vpop.f32.mrb[21].mxu1  ;;  %9065 = vmatmul.mubr.msk.f32.gmra.mrb[252].mxu0 %vm1649_vm9, %v12954_v53  ;;  %9224 = vmatmul.mubr.msk.f32.gmra.mrb[126].mxu1 %vm1649_vm9, %v12998_v38 }
 0x4eb   : > { %9067 = vmatprep.mubr.msk.f32.mxu0 %vm9711_vm1, %v15150_v51  ;;  %9226 = vmatprep.mubr.msk.f32.mxu1 %vm9711_vm1, %v15150_v51  ;;  %v13482_v50 = vld [vmem:[%s15013_s7] ss:$0 sm:$0xff] }
 0x4ed   : > { %v13454_v57 = vpop.f32.mrb[22].mxu1 }
 0x4ee   : > { %v8886_v39 = vpop.f32.mrb[23].mxu1  ;;  %9068 = vmatmul.mubr.msk.f32.gmra.mrb[254].mxu0 %vm1649_vm9, %v12963_v1  ;;  %9227 = vmatmul.mubr.msk.f32.gmra.mrb[128].mxu1 %vm1649_vm9, %v12998_v38 }
 0x4ef   : > { %9245 = vmatprep.mubr.msk.f32.mxu0 %vm9711_vm1, %v15150_v51 }
 0x4f1   : > { %v13462_v53 = vpop.f32.mrb[24].mxu1 }
 0x4f2   : > { %v8889_v63 = vpop.f32.mrb[25].mxu1 }
 0x4f5   : > { %v13464_v9 = vpop.f32.mrb[26].mxu1 }
 0x4f6   : > { %v8892_v54 = vpop.f32.mrb[27].mxu1 }
 0x4f9   : > { %v13466_v27 = vpop.f32.mrb[28].mxu1 }
 0x4fa   : > { %v8895_v23 = vpop.f32.mrb[29].mxu1 }
 0x4fd   : > { %v13468_v55 = vpop.f32.mrb[30].mxu1 }
 0x4fe   : > { %15184 = vst [vmem:[#allocation11_spill] sm:$0xff] %v13468_v55  ;;  %v8898_v33 = vpop.f32.mrb[31].mxu1 }
 0x501   : > { %v13470_v21 = vpop.f32.mrb[32].mxu1 }
 0x502   : > { %15185 = vst [vmem:[#allocation18_spill] sm:$0xff] %v13470_v21  ;;  %v8901_v1 = vpop.f32.mrb[33].mxu1 }
 0x505   : > { %v13472_v59 = vpop.f32.mrb[34].mxu1 }
 0x506   : > { %15186 = vst [vmem:[#allocation13_spill] sm:$0xff] %v13472_v59  ;;  %v8904_v38 = vpop.f32.mrb[35].mxu1 }
 0x509   : > { %v13474_v3 = vpop.f32.mrb[36].mxu1 }
 0x50a   : > { %15187 = vst [vmem:[#allocation20_spill] sm:$0xff] %v13474_v3  ;;  %v8907_v15 = vpop.f32.mrb[37].mxu1 }
 0x50d   : > { %v13476_v61 = vpop.f32.mrb[38].mxu1 }
 0x50e   : > { %15188 = vst [vmem:[#allocation15_spill] sm:$0xff] %v13476_v61  ;;  %v8910_v26 = vpop.f32.mrb[39].mxu1 }
 0x511   : > { %v4377_v30 = vpop.f32.mrb[166].mxu0  ;;  %v4683_v6 = vpop.f32.mrb[40].mxu1 }
 0x512   : > { %v4378_v5 = vadd.f32 %v4377_v30, %v13072_v17  ;;  %v8937_v16 = vpop.f32.mrb[167].mxu0  ;;  %v9096_v25 = vpop.f32.mrb[41].mxu1 }
 0x514   : > { %v4907_v18 = vadd.f32 %v4683_v6, %v4378_v5 }
 0x515   : > { %v4382_v39 = vpop.f32.mrb[168].mxu0  ;;  %v4688_v63 = vpop.f32.mrb[42].mxu1 }
 0x516   : > { %v4383_v54 = vadd.f32 %v4382_v39, %v13082_v62  ;;  %v8940_v23 = vpop.f32.mrb[169].mxu0  ;;  %v9099_v33 = vpop.f32.mrb[43].mxu1  ;;  %v4959_v1 = vadd.f32 %v13482_v50, %v4907_v18 }
 0x518   : > { %v4908_v38 = vadd.f32 %v4688_v63, %v4383_v54  ;;  %v5049_v16 = vrot.slane %v4959_v1, 1  ;;  %v5229_v25 = vrot.slane %v4959_v1, 2 }
 0x519   : > { %v4387_v15 = vpop.f32.mrb[170].mxu0  ;;  %v4693_v26 = vpop.f32.mrb[44].mxu1 }
 0x51a   : > { %v4960_v17 = vadd.f32 %v13482_v50, %v4908_v38  ;;  %v4388_v30 = vadd.f32 %v4387_v15, %v13092_v58  ;;  %v8943_v6 = vpop.f32.mrb[171].mxu0  ;;  %v9102_v5 = vpop.f32.mrb[45].mxu1 }
 0x51c   : > { %v5050_v8 = vrot.slane %v4960_v17, 1  ;;  %v5230_v31 = vrot.slane %v4960_v17, 2  ;;  %v4909_v61 = vadd.f32 %v4693_v26, %v4388_v30 }
 0x51d   : > { %v4392_v3 = vpop.f32.mrb[172].mxu0  ;;  %v4698_v62 = vpop.f32.mrb[46].mxu1 }
 0x51e   : > { %v5051_v39 = vsel %vm1006_vm5, %v5049_v16, %v5050_v8  ;;  %v5231_v18 = vsel %vm1263_vm6, %v5229_v25, %v5230_v31  ;;  %v4961_v63 = vadd.f32 %v13482_v50, %v4909_v61  ;;  %v4393_v54 = vadd.f32 %v4392_v3, %v13102_v24  ;;  %v8946_v23 = vpop.f32.mrb[173].mxu0  ;;  %v9105_v33 = vpop.f32.mrb[47].mxu1 }
 0x51f   : > { %v5184_v58 = vmax.f32 %v4959_v1, %v5051_v39 }
 0x520   : > { %v5052_v38 = vrot.slane %v4961_v63, 1  ;;  %v5232_v15 = vrot.slane %v4961_v63, 2  ;;  %v4910_v6 = vadd.f32 %v4698_v62, %v4393_v54 }
 0x521   : > { %v13492_v5 = vmax.f32 %v5184_v58, %v5231_v18  ;;  %v4397_v59 = vpop.f32.mrb[174].mxu0  ;;  %v4703_v26 = vpop.f32.mrb[48].mxu1 }
 0x522   : > { %v5053_v30 = vsel %vm1006_vm5, %v5050_v8, %v5052_v38  ;;  %v5233_v16 = vsel %vm1263_vm6, %v5230_v31, %v5232_v15  ;;  %v4962_v25 = vadd.f32 %v13482_v50, %v4910_v6  ;;  %v4398_v61 = vadd.f32 %v4397_v59, %v13112_v40  ;;  %v8949_v21 = vpop.f32.mrb[175].mxu0  ;;  %v9108_v24 = vpop.f32.mrb[49].mxu1 }
 0x523   : > { %v5185_v3 = vmax.f32 %v4960_v17, %v5053_v30 }
 0x524   : > { %v5054_v23 = vrot.slane %v4962_v25, 1  ;;  %v5234_v1 = vrot.slane %v4962_v25, 2  ;;  %v4911_v39 = vadd.f32 %v4703_v26, %v4398_v61 }
 0x525   : > { %v13498_v33 = vmax.f32 %v5185_v3, %v5233_v16  ;;  %v4402_v62 = vpop.f32.mrb[176].mxu0  ;;  %v4708_v18 = vpop.f32.mrb[50].mxu1 }
 0x526   : > { %v5055_v54 = vsel %vm1006_vm5, %v5052_v38, %v5054_v23  ;;  %v5235_v8 = vsel %vm1263_vm6, %v5232_v15, %v5234_v1  ;;  %v4963_v31 = vadd.f32 %v13482_v50, %v4911_v39  ;;  %v4403_v58 = vadd.f32 %v4402_v62, %v13122_v0  ;;  %v8952_v6 = vpop.f32.mrb[177].mxu0  ;;  %v9111_v40 = vpop.f32.mrb[51].mxu1 }
 0x527   : > { %v5186_v21 = vmax.f32 %v4961_v63, %v5055_v54 }
 0x528   : > { %v5056_v59 = vrot.slane %v4963_v31, 1  ;;  %v5236_v17 = vrot.slane %v4963_v31, 2  ;;  %v4912_v30 = vadd.f32 %v4708_v18, %v4403_v58 }
 0x529   : > { %v13504_v24 = vmax.f32 %v5186_v21, %v5235_v8  ;;  %v4407_v26 = vpop.f32.mrb[178].mxu0  ;;  %v4713_v16 = vpop.f32.mrb[52].mxu1 }
 0x52a   : > { %v5057_v61 = vsel %vm1006_vm5, %v5054_v23, %v5056_v59  ;;  %v5237_v38 = vsel %vm1263_vm6, %v5234_v1, %v5236_v17  ;;  %v4964_v15 = vadd.f32 %v13482_v50, %v4912_v30  ;;  %v4408_v3 = vadd.f32 %v4407_v26, %v13132_v4  ;;  %v8955_v39 = vpop.f32.mrb[179].mxu0  ;;  %v9114_v0 = vpop.f32.mrb[53].mxu1 }
 0x52b   : > { %v5187_v62 = vmax.f32 %v4962_v25, %v5057_v61 }
 0x52c   : > { %v5058_v6 = vrot.slane %v4964_v15, 1  ;;  %v5238_v63 = vrot.slane %v4964_v15, 2  ;;  %v4913_v54 = vadd.f32 %v4713_v16, %v4408_v3 }
 0x52d   : > { %v5367_v40 = vmax.f32 %v5187_v62, %v5237_v38  ;;  %v4412_v18 = vpop.f32.mrb[180].mxu0  ;;  %v4718_v8 = vpop.f32.mrb[54].mxu1 }
 0x52e   : > { %v5059_v58 = vsel %vm1006_vm5, %v5056_v59, %v5058_v6  ;;  %v5239_v21 = vsel %vm1263_vm6, %v5236_v17, %v5238_v63  ;;  %v4965_v23 = vadd.f32 %v13482_v50, %v4913_v54  ;;  %v4413_v1 = vadd.f32 %v4412_v18, %v13142_v20  ;;  %v8958_v30 = vpop.f32.mrb[181].mxu0  ;;  %v9117_v55 = vpop.f32.mrb[55].mxu1 }
 0x52f   : > { %v5409_v4 = vmax.f32 %v13492_v5, %v5367_v40  ;;  %v5188_v26 = vmax.f32 %v4963_v31, %v5059_v58 }
 0x530   : > { %v5060_v25 = vrot.slane %v4965_v23, 1  ;;  %v5240_v61 = vrot.slane %v4965_v23, 2  ;;  %v4914_v39 = vadd.f32 %v4718_v8, %v4413_v1 }
 0x531   : > { %v5368_v16 = vmax.f32 %v5188_v26, %v5239_v21  ;;  %v4417_v38 = vpop.f32.mrb[182].mxu0  ;;  %v4723_v3 = vpop.f32.mrb[56].mxu1 }
 0x532   : > { %v5061_v0 = vsel %vm1006_vm5, %v5058_v6, %v5060_v25  ;;  %v5241_v59 = vsel %vm1263_vm6, %v5238_v63, %v5240_v61  ;;  %v4966_v17 = vadd.f32 %v13482_v50, %v4914_v39  ;;  %v4418_v62 = vadd.f32 %v4417_v38, %v13152_v42  ;;  %v8961_v20 = vpop.f32.mrb[183].mxu0  ;;  %v9120_v54 = vpop.f32.mrb[57].mxu1 }
 0x533   : > { %v5410_v55 = vmax.f32 %v13498_v33, %v5368_v16  ;;  %v5189_v5 = vmax.f32 %v4964_v15, %v5061_v0 }
 0x534   : > { %v5062_v31 = vrot.slane %v4966_v17, 1  ;;  %v5242_v40 = vrot.slane %v4966_v17, 2  ;;  %v4915_v18 = vadd.f32 %v4723_v3, %v4418_v62 }
 0x535   : > { %v5369_v8 = vmax.f32 %v5189_v5, %v5241_v59  ;;  %v4422_v58 = vpop.f32.mrb[184].mxu0  ;;  %v4728_v21 = vpop.f32.mrb[58].mxu1 }
 0x536   : > { %v5063_v1 = vsel %vm1006_vm5, %v5060_v25, %v5062_v31  ;;  %v5243_v6 = vsel %vm1263_vm6, %v5240_v61, %v5242_v40  ;;  %v4967_v63 = vadd.f32 %v13482_v50, %v4915_v18  ;;  %v4423_v30 = vadd.f32 %v4422_v58, %v13168_v43  ;;  %v8964_v42 = vpop.f32.mrb[185].mxu0  ;;  %v9123_v26 = vpop.f32.mrb[59].mxu1 }
 0x537   : > { %v5411_v39 = vmax.f32 %v13504_v24, %v5369_v8  ;;  %v5190_v33 = vmax.f32 %v4965_v23, %v5063_v1 }
 0x538   : > { %v5064_v15 = vrot.slane %v4967_v63, 1  ;;  %v5244_v16 = vrot.slane %v4967_v63, 2  ;;  %v4916_v38 = vadd.f32 %v4728_v21, %v4423_v30 }
 0x539   : > { %v13525_v3 = vmax.f32 %v5190_v33, %v5243_v6  ;;  %v4427_v0 = vpop.f32.mrb[186].mxu0  ;;  %v4733_v59 = vpop.f32.mrb[60].mxu1 }
 0x53a   : > { %v5065_v25 = vsel %vm1006_vm5, %v5062_v31, %v5064_v15  ;;  %v5245_v61 = vsel %vm1263_vm6, %v5242_v40, %v5244_v16  ;;  %v4968_v62 = vadd.f32 %v13482_v50, %v4916_v38  ;;  %v4428_v43 = vadd.f32 %v4427_v0, %v13178_v49  ;;  %v8967_v20 = vpop.f32.mrb[187].mxu0  ;;  %v9126_v54 = vpop.f32.mrb[61].mxu1 }
 0x53b   : > { %v5412_v24 = vmax.f32 %v5409_v4, %v13525_v3  ;;  %v5191_v23 = vmax.f32 %v4966_v17, %v5065_v25 }
 0x53c   : > { %v5066_v5 = vrot.slane %v4968_v62, 1  ;;  %v5246_v18 = vrot.slane %v4968_v62, 2  ;;  %v4917_v8 = vadd.f32 %v4733_v59, %v4428_v43 }
 0x53d   : > { %v13532_v58 = vmax.f32 %v5191_v23, %v5245_v61  ;;  %v4432_v21 = vpop.f32.mrb[188].mxu0  ;;  %v4738_v1 = vpop.f32.mrb[62].mxu1  ;;  %9246 = vmatmul.mubr.msk.f32.vlgmr.msra.gmra.mrb[0].mxu0 %vm1572_vm8, %v5412_v24 }
 0x53e   : > { %v5067_v31 = vsel %vm1006_vm5, %v5064_v15, %v5066_v5  ;;  %v5247_v40 = vsel %vm1263_vm6, %v5244_v16, %v5246_v18  ;;  %v4969_v49 = vadd.f32 %v13482_v50, %v4917_v8  ;;  %v4433_v6 = vadd.f32 %v4432_v21, %v13189_v11  ;;  %v8970_v30 = vpop.f32.mrb[189].mxu0  ;;  %v9129_v4 = vpop.f32.mrb[63].mxu1  ;;  %9248 = vmatprep.mubr.msk.f32.mxu0 %vm9711_vm1, %v15150_v51 }
 0x53f   : > { %v5413_v17 = vmax.f32 %v5410_v55, %v13532_v58  ;;  %v5192_v42 = vmax.f32 %v4967_v63, %v5067_v31 }
 0x540   : > { %v5068_v26 = vrot.slane %v4969_v49, 1  ;;  %v5248_v33 = vrot.slane %v4969_v49, 2  ;;  %v4918_v38 = vadd.f32 %v4738_v1, %v4433_v6 }
 0x541   : > { %v13542_v0 = vmax.f32 %v5192_v42, %v5247_v40  ;;  %v4437_v15 = vpop.f32.mrb[190].mxu0  ;;  %v4743_v59 = vpop.f32.mrb[64].mxu1  ;;  %9249 = vmatmul.mubr.msk.f32.gmra.mrb[2].mxu0 %vm1572_vm8, %v5413_v17 }
 0x542   : > { %v5069_v16 = vsel %vm1006_vm5, %v5066_v5, %v5068_v26  ;;  %v5249_v11 = vsel %vm1263_vm6, %v5246_v18, %v5248_v33  ;;  %v4970_v25 = vadd.f32 %v13482_v50, %v4918_v38  ;;  %v4438_v61 = vadd.f32 %v4437_v15, %v13199_v34  ;;  %v8973_v43 = vpop.f32.mrb[191].mxu0  ;;  %v9132_v55 = vpop.f32.mrb[65].mxu1  ;;  %9251 = vmatprep.mubr.msk.f32.mxu0 %vm9711_vm1, %v15150_v51 }
 0x543   : > { %v5414_v63 = vmax.f32 %v5411_v39, %v13542_v0  ;;  %v5193_v20 = vmax.f32 %v4968_v62, %v5069_v16 }
 0x544   : > { %v5070_v54 = vrot.slane %v4970_v25, 1  ;;  %v5250_v24 = vrot.slane %v4970_v25, 2  ;;  %v4919_v23 = vadd.f32 %v4743_v59, %v4438_v61 }
 0x545   : > { %v5373_v8 = vmax.f32 %v5193_v20, %v5249_v11  ;;  %v4442_v21 = vpop.f32.mrb[192].mxu0  ;;  %v4748_v5 = vpop.f32.mrb[66].mxu1  ;;  %9252 = vmatmul.mubr.msk.f32.gmra.mrb[4].mxu0 %vm1572_vm8, %v5414_v63 }
 0x546   : > { %v5071_v18 = vsel %vm1006_vm5, %v5068_v26, %v5070_v54  ;;  %v5251_v34 = vsel %vm1263_vm6, %v5248_v33, %v5250_v24  ;;  %v4971_v1 = vadd.f32 %v13482_v50, %v4919_v23  ;;  %v4443_v31 = vadd.f32 %v4442_v21, %v13209_v46  ;;  %v8976_v40 = vpop.f32.mrb[193].mxu0  ;;  %v9135_v6 = vpop.f32.mrb[67].mxu1  ;;  %9254 = vmatprep.mubr.msk.f32.mxu0 %vm9711_vm1, %v15150_v51 }
 0x547   : > { %v5415_v39 = vmax.f32 %v13525_v3, %v5373_v8  ;;  %v5194_v62 = vmax.f32 %v4969_v49, %v5071_v18 }
 0x548   : > { %v5072_v30 = vrot.slane %v4971_v1, 1  ;;  %v5252_v4 = vrot.slane %v4971_v1, 2  ;;  %v4920_v17 = vadd.f32 %v4748_v5, %v4443_v31 }
 0x549   : > { %v5374_v42 = vmax.f32 %v5194_v62, %v5251_v34  ;;  %v4447_v38 = vpop.f32.mrb[194].mxu0  ;;  %v4753_v26 = vpop.f32.mrb[68].mxu1 }
 0x54a   : > { %v5073_v33 = vsel %vm1006_vm5, %v5070_v54, %v5072_v30  ;;  %v5253_v15 = vsel %vm1263_vm6, %v5250_v24, %v5252_v4  ;;  %v4972_v46 = vadd.f32 %v13482_v50, %v4920_v17  ;;  %v4448_v59 = vadd.f32 %v4447_v38, %v13219_v10  ;;  %v8979_v16 = vpop.f32.mrb[195].mxu0  ;;  %v9138_v11 = vpop.f32.mrb[69].mxu1 }
 0x54b   : > { %v5416_v61 = vmax.f32 %v13532_v58, %v5374_v42  ;;  %v5195_v3 = vmax.f32 %v4970_v25, %v5073_v33 }
 0x54c   : > { %v5074_v49 = vrot.slane %v4972_v46, 1  ;;  %v5254_v43 = vrot.slane %v4972_v46, 2  ;;  %v4921_v55 = vadd.f32 %v4753_v26, %v4448_v59 }
 0x54d   : > { %v5375_v63 = vmax.f32 %v5195_v3, %v5253_v15  ;;  %v4452_v20 = vpop.f32.mrb[196].mxu0  ;;  %v4758_v23 = vpop.f32.mrb[70].mxu1 }
 0x54e   : > { %v5075_v8 = vsel %vm1006_vm5, %v5072_v30, %v5074_v49  ;;  %v5255_v54 = vsel %vm1263_vm6, %v5252_v4, %v5254_v43  ;;  %v4973_v24 = vadd.f32 %v13482_v50, %v4921_v55  ;;  %v4453_v21 = vadd.f32 %v4452_v20, %v13229_v22  ;;  %v8982_v10 = vpop.f32.mrb[197].mxu0  ;;  %v9141_v5 = vpop.f32.mrb[71].mxu1 }
 0x54f   : > { %v5417_v18 = vmax.f32 %v13542_v0, %v5375_v63  ;;  %v5196_v58 = vmax.f32 %v4971_v1, %v5075_v8 }
 0x550   : > { %v5076_v25 = vrot.slane %v4973_v24, 1  ;;  %v5256_v34 = vrot.slane %v4973_v24, 2  ;;  %v4922_v31 = vadd.f32 %v4758_v23, %v4453_v21 }
 0x551   : > { %v13570_v40 = vmax.f32 %v5196_v58, %v5255_v54  ;;  %v4457_v6 = vpop.f32.mrb[198].mxu0  ;;  %v4763_v62 = vpop.f32.mrb[72].mxu1 }
 0x552   : > { %v5077_v30 = vsel %vm1006_vm5, %v5074_v49, %v5076_v25  ;;  %v5257_v4 = vsel %vm1263_vm6, %v5254_v43, %v5256_v34  ;;  %v4974_v17 = vadd.f32 %v13482_v50, %v4922_v31  ;;  %v4458_v22 = vadd.f32 %v4457_v6, %v13239_v45  ;;  %v8985_v42 = vpop.f32.mrb[199].mxu0  ;;  %v9144_v38 = vpop.f32.mrb[73].mxu1 }
 0x553   : > { %v5418_v0 = vmax.f32 %v5415_v39, %v13570_v40  ;;  %v5197_v1 = vmax.f32 %v4972_v46, %v5077_v30 }
 0x554   : > { %v5078_v26 = vrot.slane %v4974_v17, 1  ;;  %v5258_v33 = vrot.slane %v4974_v17, 2  ;;  %v4923_v15 = vadd.f32 %v4763_v62, %v4458_v22 }
 0x555   : > { %v13577_v59 = vmax.f32 %v5197_v1, %v5257_v4  ;;  %v4462_v16 = vpop.f32.mrb[200].mxu0  ;;  %v4768_v11 = vpop.f32.mrb[74].mxu1  ;;  %9255 = vmatmul.mubr.msk.f32.gmra.mrb[6].mxu0 %vm1572_vm8, %v5418_v0 }
 0x556   : > { %v5079_v3 = vsel %vm1006_vm5, %v5076_v25, %v5078_v26  ;;  %v5259_v49 = vsel %vm1263_vm6, %v5256_v34, %v5258_v33  ;;  %v4975_v45 = vadd.f32 %v13482_v50, %v4923_v15  ;;  %v4463_v43 = vadd.f32 %v4462_v16, %v13249_v7  ;;  %v8988_v55 = vpop.f32.mrb[201].mxu0  ;;  %v9147_v39 = vpop.f32.mrb[75].mxu1  ;;  %9257 = vmatprep.mubr.msk.f32.mxu0 %vm9711_vm1, %v15150_v51 }
 0x557   : > { %v5419_v46 = vmax.f32 %v5416_v61, %v13577_v59  ;;  %v5198_v63 = vmax.f32 %v4973_v24, %v5079_v3 }
 0x558   : > { %v5080_v20 = vrot.slane %v4975_v45, 1  ;;  %v5260_v23 = vrot.slane %v4975_v45, 2  ;;  %v4924_v8 = vadd.f32 %v4768_v11, %v4463_v43 }
 0x559   : > { %v13587_v54 = vmax.f32 %v5198_v63, %v5259_v49  ;;  %v4467_v21 = vpop.f32.mrb[202].mxu0  ;;  %v4773_v10 = vpop.f32.mrb[76].mxu1  ;;  %9258 = vmatmul.mubr.msk.f32.gmra.mrb[8].mxu0 %vm1572_vm8, %v5419_v46 }
 0x55a   : > { %v5081_v5 = vsel %vm1006_vm5, %v5078_v26, %v5080_v20  ;;  %v5261_v7 = vsel %vm1263_vm6, %v5258_v33, %v5260_v23  ;;  %v4976_v58 = vadd.f32 %v13482_v50, %v4924_v8  ;;  %v4468_v25 = vadd.f32 %v4467_v21, %v13259_v48  ;;  %v8991_v34 = vpop.f32.mrb[203].mxu0  ;;  %v9150_v61 = vpop.f32.mrb[77].mxu1  ;;  %9260 = vmatprep.mubr.msk.f32.mxu0 %vm9711_vm1, %v15150_v51 }
 0x55b   : > { %v5420_v24 = vmax.f32 %v5417_v18, %v13587_v54  ;;  %v5199_v31 = vmax.f32 %v4974_v17, %v5081_v5 }
 0x55c   : > { %v5082_v6 = vrot.slane %v4976_v58, 1  ;;  %v5262_v62 = vrot.slane %v4976_v58, 2  ;;  %v4925_v30 = vadd.f32 %v4773_v10, %v4468_v25 }
 0x55d   : > { %v5379_v4 = vmax.f32 %v5199_v31, %v5261_v7  ;;  %v4472_v22 = vpop.f32.mrb[204].mxu0  ;;  %v4778_v42 = vpop.f32.mrb[78].mxu1  ;;  %9261 = vmatmul.mubr.msk.f32.gmra.mrb[10].mxu0 %vm1572_vm8, %v5420_v24 }
 0x55e   : > { %v5083_v38 = vsel %vm1006_vm5, %v5080_v20, %v5082_v6  ;;  %v5263_v48 = vsel %vm1263_vm6, %v5260_v23, %v5262_v62  ;;  %v4977_v0 = vadd.f32 %v13482_v50, %v4925_v30  ;;  %v4473_v1 = vadd.f32 %v4472_v22, %v13269_v32  ;;  %v8994_v26 = vpop.f32.mrb[205].mxu0  ;;  %v9153_v33 = vpop.f32.mrb[79].mxu1  ;;  %9263 = vmatprep.mubr.msk.f32.mxu0 %vm9711_vm1, %v15150_v51 }
 0x55f   : > { %v5421_v18 = vmax.f32 %v13570_v40, %v5379_v4  ;;  %v5200_v17 = vmax.f32 %v4975_v45, %v5083_v38 }
 0x560   : > { %v5084_v15 = vrot.slane %v4977_v0, 1  ;;  %v5264_v16 = vrot.slane %v4977_v0, 2  ;;  %v4926_v11 = vadd.f32 %v4778_v42, %v4473_v1 }
 0x561   : > { %v5380_v3 = vmax.f32 %v5200_v17, %v5263_v48  ;;  %v4477_v49 = vpop.f32.mrb[206].mxu0  ;;  %v4783_v43 = vpop.f32.mrb[80].mxu1 }
 0x562   : > { %v5085_v55 = vsel %vm1006_vm5, %v5082_v6, %v5084_v15  ;;  %v5265_v39 = vsel %vm1263_vm6, %v5262_v62, %v5264_v16  ;;  %v4978_v32 = vadd.f32 %v13482_v50, %v4926_v11  ;;  %v4478_v46 = vadd.f32 %v4477_v49, %v13279_v35  ;;  %v8997_v63 = vpop.f32.mrb[207].mxu0  ;;  %v9156_v20 = vpop.f32.mrb[81].mxu1 }
 0x563   : > { %v5422_v23 = vmax.f32 %v13577_v59, %v5380_v3  ;;  %v5201_v40 = vmax.f32 %v4976_v58, %v5085_v55 }
 0x564   : > { %v5086_v45 = vrot.slane %v4978_v32, 1  ;;  %v5266_v8 = vrot.slane %v4978_v32, 2  ;;  %v4927_v21 = vadd.f32 %v4783_v43, %v4478_v46 }
 0x565   : > { %v5381_v10 = vmax.f32 %v5201_v40, %v5265_v39  ;;  %v4482_v5 = vpop.f32.mrb[208].mxu0  ;;  %v4788_v7 = vpop.f32.mrb[82].mxu1 }
 0x566   : > { %v5087_v25 = vsel %vm1006_vm5, %v5084_v15, %v5086_v45  ;;  %v5267_v34 = vsel %vm1263_vm6, %v5264_v16, %v5266_v8  ;;  %v4979_v61 = vadd.f32 %v13482_v50, %v4927_v21  ;;  %v4483_v24 = vadd.f32 %v4482_v5, %v13289_v47  ;;  %v9000_v35 = vpop.f32.mrb[209].mxu0  ;;  %v9159_v31 = vpop.f32.mrb[83].mxu1 }
 0x567   : > { %v5423_v6 = vmax.f32 %v13587_v54, %v5381_v10  ;;  %v5202_v59 = vmax.f32 %v4977_v0, %v5087_v25 }
 0x568   : > { %v5088_v58 = vrot.slane %v4979_v61, 1  ;;  %v5268_v62 = vrot.slane %v4979_v61, 2  ;;  %v4928_v30 = vadd.f32 %v4788_v7, %v4483_v24 }
 0x569   : > { %v13615_v4 = vmax.f32 %v5202_v59, %v5267_v34  ;;  %v4487_v22 = vpop.f32.mrb[210].mxu0  ;;  %v4793_v42 = vpop.f32.mrb[84].mxu1 }
 0x56a   : > { %v5089_v38 = vsel %vm1006_vm5, %v5086_v45, %v5088_v58  ;;  %v5269_v48 = vsel %vm1263_vm6, %v5266_v8, %v5268_v62  ;;  %v4980_v1 = vadd.f32 %v13482_v50, %v4928_v30  ;;  %v4488_v47 = vadd.f32 %v4487_v22, %v13305_v41  ;;  %v9003_v26 = vpop.f32.mrb[211].mxu0  ;;  %v9162_v33 = vpop.f32.mrb[85].mxu1 }
 0x56b   : > { %v5424_v54 = vmax.f32 %v5421_v18, %v13615_v4  ;;  %v5203_v0 = vmax.f32 %v4978_v32, %v5089_v38 }
 0x56c   : > { %v5090_v17 = vrot.slane %v4980_v1, 1  ;;  %v5270_v15 = vrot.slane %v4980_v1, 2  ;;  %v4929_v16 = vadd.f32 %v4793_v42, %v4488_v47 }
 0x56d   : > { %v13622_v11 = vmax.f32 %v5203_v0, %v5269_v48  ;;  %v4492_v3 = vpop.f32.mrb[212].mxu0  ;;  %v4798_v49 = vpop.f32.mrb[86].mxu1  ;;  %9264 = vmatmul.mubr.msk.f32.gmra.mrb[12].mxu0 %vm1572_vm8, %v5424_v54 }
 0x56e   : > { %v5091_v43 = vsel %vm1006_vm5, %v5088_v58, %v5090_v17  ;;  %v5271_v55 = vsel %vm1263_vm6, %v5268_v62, %v5270_v15  ;;  %v4981_v41 = vadd.f32 %v13482_v50, %v4929_v16  ;;  %v4493_v39 = vadd.f32 %v4492_v3, %v13321_v12  ;;  %v9006_v46 = vpop.f32.mrb[213].mxu0  ;;  %v9165_v18 = vpop.f32.mrb[87].mxu1  ;;  %9266 = vmatprep.mubr.msk.f32.mxu0 %vm9711_vm1, %v15150_v51 }
 0x56f   : > { %v5425_v32 = vmax.f32 %v5422_v23, %v13622_v11  ;;  %v5204_v63 = vmax.f32 %v4979_v61, %v5091_v43 }
 0x570   : > { %v5092_v20 = vrot.slane %v4981_v41, 1  ;;  %v5272_v40 = vrot.slane %v4981_v41, 2  ;;  %v4930_v45 = vadd.f32 %v4798_v49, %v4493_v39 }
 0x571   : > { %v13632_v8 = vmax.f32 %v5204_v63, %v5271_v55  ;;  %v4497_v21 = vpop.f32.mrb[214].mxu0  ;;  %v4803_v10 = vpop.f32.mrb[88].mxu1  ;;  %9267 = vmatmul.mubr.msk.f32.gmra.mrb[14].mxu0 %vm1572_vm8, %v5425_v32 }
 0x572   : > { %v5093_v5 = vsel %vm1006_vm5, %v5090_v17, %v5092_v20  ;;  %v5273_v12 = vsel %vm1263_vm6, %v5270_v15, %v5272_v40  ;;  %v4982_v7 = vadd.f32 %v13482_v50, %v4930_v45  ;;  %v4498_v25 = vadd.f32 %v4497_v21, %v13332_v56  ;;  %v9009_v34 = vpop.f32.mrb[215].mxu0  ;;  %v9168_v23 = vpop.f32.mrb[89].mxu1  ;;  %9269 = vmatprep.mubr.msk.f32.mxu0 %vm9711_vm1, %v15150_v51 }
 0x573   : > { %v5426_v61 = vmax.f32 %v5423_v6, %v13632_v8  ;;  %v5205_v24 = vmax.f32 %v4980_v1, %v5093_v5 }
 0x574   : > { %v5094_v35 = vrot.slane %v4982_v7, 1  ;;  %v5274_v31 = vrot.slane %v4982_v7, 2  ;;  %v4931_v59 = vadd.f32 %v4803_v10, %v4498_v25 }
 0x575   : > { %v5385_v58 = vmax.f32 %v5205_v24, %v5273_v12  ;;  %v4502_v62 = vpop.f32.mrb[216].mxu0  ;;  %v4808_v30 = vpop.f32.mrb[90].mxu1  ;;  %9270 = vmatmul.mubr.msk.f32.gmra.mrb[16].mxu0 %vm1572_vm8, %v5426_v61 }
 0x576   : > { %v5095_v22 = vsel %vm1006_vm5, %v5092_v20, %v5094_v35  ;;  %v5275_v56 = vsel %vm1263_vm6, %v5272_v40, %v5274_v31  ;;  %v4983_v42 = vadd.f32 %v13482_v50, %v4931_v59  ;;  %v4503_v38 = vadd.f32 %v4502_v62, %v13342_v52  ;;  %v9012_v48 = vpop.f32.mrb[217].mxu0  ;;  %v9171_v47 = vpop.f32.mrb[91].mxu1  ;;  %9272 = vmatprep.mubr.msk.f32.mxu0 %vm9711_vm1, %v15150_v51 }
 0x577   : > { %v5427_v6 = vmax.f32 %v13615_v4, %v5385_v58  ;;  %v5206_v1 = vmax.f32 %v4981_v41, %v5095_v22 }
 0x578   : > { %v5096_v26 = vrot.slane %v4983_v42, 1  ;;  %v5276_v33 = vrot.slane %v4983_v42, 2  ;;  %v4932_v54 = vadd.f32 %v4808_v30, %v4503_v38 }
 0x579   : > { %v5386_v0 = vmax.f32 %v5206_v1, %v5275_v56  ;;  %v4507_v17 = vpop.f32.mrb[218].mxu0  ;;  %v4813_v15 = vpop.f32.mrb[92].mxu1 }
 0x57a   : > { %v5097_v16 = vsel %vm1006_vm5, %v5094_v35, %v5096_v26  ;;  %v5277_v3 = vsel %vm1263_vm6, %v5274_v31, %v5276_v33  ;;  %v4984_v52 = vadd.f32 %v13482_v50, %v4932_v54  ;;  %v4508_v49 = vadd.f32 %v4507_v17, %v13352_v13  ;;  %v9015_v43 = vpop.f32.mrb[219].mxu0  ;;  %v9174_v55 = vpop.f32.mrb[93].mxu1 }
 0x57b   : > { %v5428_v39 = vmax.f32 %v13622_v11, %v5386_v0  ;;  %v5207_v4 = vmax.f32 %v4982_v7, %v5097_v16 }
 0x57c   : > { %v5098_v41 = vrot.slane %v4984_v52, 1  ;;  %v5278_v46 = vrot.slane %v4984_v52, 2  ;;  %v4933_v18 = vadd.f32 %v4813_v15, %v4508_v49 }
 0x57d   : > { %v5387_v32 = vmax.f32 %v5207_v4, %v5277_v3  ;;  %v4512_v63 = vpop.f32.mrb[220].mxu0  ;;  %v4818_v20 = vpop.f32.mrb[94].mxu1 }
 0x57e   : > { %v5099_v40 = vsel %vm1006_vm5, %v5096_v26, %v5098_v41  ;;  %v5279_v45 = vsel %vm1263_vm6, %v5276_v33, %v5278_v46  ;;  %v4985_v21 = vadd.f32 %v13482_v50, %v4933_v18  ;;  %v4513_v10 = vadd.f32 %v4512_v63, %v13362_v44  ;;  %v9018_v13 = vpop.f32.mrb[221].mxu0  ;;  %v9177_v5 = vpop.f32.mrb[95].mxu1 }
 0x57f   : > { %v5429_v12 = vmax.f32 %v13632_v8, %v5387_v32  ;;  %v5208_v11 = vmax.f32 %v4983_v42, %v5099_v40 }
 0x580   : > { %v5100_v7 = vrot.slane %v4985_v21, 1  ;;  %v5280_v25 = vrot.slane %v4985_v21, 2  ;;  %v4934_v34 = vadd.f32 %v4818_v20, %v4513_v10 }
 0x581   : > { %v13660_v23 = vmax.f32 %v5208_v11, %v5279_v45  ;;  %v4517_v61 = vpop.f32.mrb[222].mxu0  ;;  %v4823_v24 = vpop.f32.mrb[96].mxu1 }
 0x582   : > { %v5101_v35 = vsel %vm1006_vm5, %v5098_v41, %v5100_v7  ;;  %v5281_v31 = vsel %vm1263_vm6, %v5278_v46, %v5280_v25  ;;  %v4986_v59 = vadd.f32 %v13482_v50, %v4934_v34  ;;  %v4518_v44 = vadd.f32 %v4517_v61, %v13372_v36  ;;  %v9021_v58 = vpop.f32.mrb[223].mxu0  ;;  %v9180_v62 = vpop.f32.mrb[97].mxu1 }
 0x583   : > { %v5430_v8 = vmax.f32 %v5427_v6, %v13660_v23  ;;  %v5209_v30 = vmax.f32 %v4984_v52, %v5101_v35 }
 0x584   : > { %v5102_v22 = vrot.slane %v4986_v59, 1  ;;  %v5282_v56 = vrot.slane %v4986_v59, 2  ;;  %v4935_v42 = vadd.f32 %v4823_v24, %v4518_v44 }
 0x585   : > { %v13667_v38 = vmax.f32 %v5209_v30, %v5281_v31  ;;  %v4522_v48 = vpop.f32.mrb[224].mxu0  ;;  %v4828_v47 = vpop.f32.mrb[98].mxu1  ;;  %9273 = vmatmul.mubr.msk.f32.gmra.mrb[18].mxu0 %vm1572_vm8, %v5430_v8 }
 0x586   : > { %v5103_v1 = vsel %vm1006_vm5, %v5100_v7, %v5102_v22  ;;  %v5283_v26 = vsel %vm1263_vm6, %v5280_v25, %v5282_v56  ;;  %v4987_v36 = vadd.f32 %v13482_v50, %v4935_v42  ;;  %v4523_v33 = vadd.f32 %v4522_v48, %v13382_v28  ;;  %v9024_v54 = vpop.f32.mrb[225].mxu0  ;;  %v9183_v6 = vpop.f32.mrb[99].mxu1  ;;  %9275 = vmatprep.mubr.msk.f32.mxu0 %vm9711_vm1, %v15150_v51 }
 0x587   : > { %v5431_v0 = vmax.f32 %v5428_v39, %v13667_v38  ;;  %v5210_v17 = vmax.f32 %v4985_v21, %v5103_v1 }
 0x588   : > { %v5104_v15 = vrot.slane %v4987_v36, 1  ;;  %v5284_v16 = vrot.slane %v4987_v36, 2  ;;  %v4936_v3 = vadd.f32 %v4828_v47, %v4523_v33 }
 0x589   : > { %v13677_v52 = vmax.f32 %v5210_v17, %v5283_v26  ;;  %v4527_v49 = vpop.f32.mrb[226].mxu0  ;;  %v4833_v43 = vpop.f32.mrb[100].mxu1  ;;  %9276 = vmatmul.mubr.msk.f32.gmra.mrb[20].mxu0 %vm1572_vm8, %v5431_v0 }
 0x58a   : > { %v5105_v55 = vsel %vm1006_vm5, %v5102_v22, %v5104_v15  ;;  %v5285_v28 = vsel %vm1263_vm6, %v5282_v56, %v5284_v16  ;;  %v4988_v4 = vadd.f32 %v13482_v50, %v4936_v3  ;;  %v4528_v41 = vadd.f32 %v4527_v49, %v13392_v29  ;;  %v9027_v46 = vpop.f32.mrb[227].mxu0  ;;  %v9186_v39 = vpop.f32.mrb[101].mxu1  ;;  %9278 = vmatprep.mubr.msk.f32.mxu0 %vm9711_vm1, %v15150_v51 }
 0x58b   : > { %v5432_v18 = vmax.f32 %v5429_v12, %v13677_v52  ;;  %v5211_v32 = vmax.f32 %v4986_v59, %v5105_v55 }
 0x58c   : > { %v5106_v63 = vrot.slane %v4988_v4, 1  ;;  %v5286_v20 = vrot.slane %v4988_v4, 2  ;;  %v4937_v40 = vadd.f32 %v4833_v43, %v4528_v41 }
 0x58d   : > { %v5391_v45 = vmax.f32 %v5211_v32, %v5285_v28  ;;  %v4532_v21 = vpop.f32.mrb[228].mxu0  ;;  %v4838_v10 = vpop.f32.mrb[102].mxu1  ;;  %9279 = vmatmul.mubr.msk.f32.gmra.mrb[22].mxu0 %vm1572_vm8, %v5432_v18 }
 0x58e   : > { %v5107_v13 = vsel %vm1006_vm5, %v5104_v15, %v5106_v63  ;;  %v5287_v29 = vsel %vm1263_vm6, %v5284_v16, %v5286_v20  ;;  %v4989_v5 = vadd.f32 %v13482_v50, %v4937_v40  ;;  %v4533_v11 = vadd.f32 %v4532_v21, %v13402_v14  ;;  %v9030_v7 = vpop.f32.mrb[229].mxu0  ;;  %v9189_v25 = vpop.f32.mrb[103].mxu1  ;;  %9281 = vmatprep.mubr.msk.f32.mxu0 %vm9711_vm1, %v15150_v51 }
 0x58f   : > { %v5433_v12 = vmax.f32 %v13660_v23, %v5391_v45  ;;  %v5212_v34 = vmax.f32 %v4987_v36, %v5107_v13 }
 0x590   : > { %v5108_v61 = vrot.slane %v4989_v5, 1  ;;  %v5288_v24 = vrot.slane %v4989_v5, 2  ;;  %v4938_v35 = vadd.f32 %v4838_v10, %v4533_v11 }
 0x591   : > { %v5392_v31 = vmax.f32 %v5212_v34, %v5287_v29  ;;  %v4537_v59 = vpop.f32.mrb[230].mxu0  ;;  %v4843_v44 = vpop.f32.mrb[104].mxu1 }
 0x592   : > { %v5109_v58 = vsel %vm1006_vm5, %v5106_v63, %v5108_v61  ;;  %v5289_v62 = vsel %vm1263_vm6, %v5286_v20, %v5288_v24  ;;  %v4990_v14 = vadd.f32 %v13482_v50, %v4938_v35  ;;  %v4538_v8 = vadd.f32 %v4537_v59, %v13412_v19  ;;  %v9033_v30 = vpop.f32.mrb[231].mxu0  ;;  %v9192_v22 = vpop.f32.mrb[105].mxu1 }
 0x593   : > { %v5434_v56 = vmax.f32 %v13667_v38, %v5392_v31  ;;  %v5213_v23 = vmax.f32 %v4988_v4, %v5109_v58 }
 0x594   : > { %v5110_v42 = vrot.slane %v4990_v14, 1  ;;  %v5290_v48 = vrot.slane %v4990_v14, 2  ;;  %v4939_v47 = vadd.f32 %v4843_v44, %v4538_v8 }
 0x595   : > { %v5393_v1 = vmax.f32 %v5213_v23, %v5289_v62  ;;  %v4542_v26 = vpop.f32.mrb[232].mxu0  ;;  %v4848_v36 = vpop.f32.mrb[106].mxu1 }
 0x596   : > { %v5111_v33 = vsel %vm1006_vm5, %v5108_v61, %v5110_v42  ;;  %v5291_v54 = vsel %vm1263_vm6, %v5288_v24, %v5290_v48  ;;  %v4991_v6 = vadd.f32 %v13482_v50, %v4939_v47  ;;  %v4543_v0 = vadd.f32 %v4542_v26, %v13422_v2  ;;  %v9036_v19 = vpop.f32.mrb[233].mxu0  ;;  %v9195_v17 = vpop.f32.mrb[107].mxu1  ;;  %v13738_v26 = vld [vmem:[%s15013_s7] ss:$0 sm:$0xff] }
 0x597   : > { %v5435_v15 = vmax.f32 %v13677_v52, %v5393_v1  ;;  %v5214_v38 = vmax.f32 %v4989_v5, %v5111_v33 }
 0x598   : > { %v5112_v16 = vrot.slane %v4991_v6, 1  ;;  %v5292_v3 = vrot.slane %v4991_v6, 2  ;;  %v4940_v49 = vadd.f32 %v4848_v36, %v4543_v0 }
 0x599   : > { %v13705_v43 = vmax.f32 %v5214_v38, %v5291_v54  ;;  %v4547_v55 = vpop.f32.mrb[234].mxu0  ;;  %v4853_v28 = vpop.f32.mrb[108].mxu1 }
 0x59a   : > { %v5113_v4 = vsel %vm1006_vm5, %v5110_v42, %v5112_v16  ;;  %v5293_v41 = vsel %vm1263_vm6, %v5290_v48, %v5292_v3  ;;  %v4992_v46 = vadd.f32 %v13482_v50, %v4940_v49  ;;  %v4548_v2 = vadd.f32 %v4547_v55, %v13435_v37  ;;  %v9039_v39 = vpop.f32.mrb[235].mxu0  ;;  %v9198_v18 = vpop.f32.mrb[109].mxu1 }
 0x59b   : > { %v5436_v52 = vmax.f32 %v5433_v12, %v13705_v43  ;;  %v5215_v32 = vmax.f32 %v4990_v14, %v5113_v4 }
 0x59c   : > { %v5114_v63 = vrot.slane %v4992_v46, 1  ;;  %v5294_v20 = vrot.slane %v4992_v46, 2  ;;  %v4941_v40 = vadd.f32 %v4853_v28, %v4548_v2 }
 0x59d   : > { %v13712_v45 = vmax.f32 %v5215_v32, %v5293_v41  ;;  %v4552_v21 = vpop.f32.mrb[236].mxu0  ;;  %v4858_v10 = vpop.f32.mrb[110].mxu1  ;;  %9282 = vmatmul.mubr.msk.f32.gmra.mrb[24].mxu0 %vm1572_vm8, %v5436_v52 }
 0x59e   : > { %v5115_v13 = vsel %vm1006_vm5, %v5112_v16, %v5114_v63  ;;  %v5295_v29 = vsel %vm1263_vm6, %v5292_v3, %v5294_v20  ;;  %v4993_v37 = vadd.f32 %v13482_v50, %v4941_v40  ;;  %v4553_v5 = vadd.f32 %v4552_v21, %v13444_v60  ;;  %v9042_v11 = vpop.f32.mrb[237].mxu0  ;;  %v9201_v7 = vpop.f32.mrb[111].mxu1  ;;  %9284 = vmatprep.mubr.msk.f32.mxu0 %vm9711_vm1, %v15150_v51 }
 0x59f   : > { %v5437_v25 = vmax.f32 %v5434_v56, %v13712_v45  ;;  %v5216_v12 = vmax.f32 %v4991_v6, %v5115_v13 }
 0x5a0   : > { %v5116_v34 = vrot.slane %v4993_v37, 1  ;;  %v5296_v61 = vrot.slane %v4993_v37, 2  ;;  %v4942_v24 = vadd.f32 %v4858_v10, %v4553_v5 }
 0x5a1   : > { %v13722_v35 = vmax.f32 %v5216_v12, %v5295_v29  ;;  %v4557_v31 = vpop.f32.mrb[238].mxu0  ;;  %v4863_v59 = vpop.f32.mrb[112].mxu1  ;;  %9285 = vmatmul.mubr.msk.f32.gmra.mrb[26].mxu0 %vm1572_vm8, %v5437_v25 }
 0x5a2   : > { %v5117_v44 = vsel %vm1006_vm5, %v5114_v63, %v5116_v34  ;;  %v5297_v60 = vsel %vm1263_vm6, %v5294_v20, %v5296_v61  ;;  %v4994_v58 = vadd.f32 %v13482_v50, %v4942_v24  ;;  %v4558_v62 = vadd.f32 %v4557_v31, %v13454_v57  ;;  %v9045_v14 = vpop.f32.mrb[239].mxu0  ;;  %v9204_v8 = vpop.f32.mrb[113].mxu1  ;;  %9287 = vmatprep.mubr.msk.f32.mxu0 %vm9711_vm1, %v15150_v51 }
 0x5a3   : > { %v5438_v30 = vmax.f32 %v5435_v15, %v13722_v35  ;;  %v5217_v22 = vmax.f32 %v4992_v46, %v5117_v44 }
 0x5a4   : > { %v5118_v56 = vrot.slane %v4994_v58, 1  ;;  %v5298_v23 = vrot.slane %v4994_v58, 2  ;;  %v4943_v42 = vadd.f32 %v4863_v59, %v4558_v62  ;;  %v15189_v59 = vld [vmem:[#allocation11_spill] sm:$0xff] }
 0x5a5   : > { %v5397_v48 = vmax.f32 %v5217_v22, %v5297_v60  ;;  %v4562_v47 = vpop.f32.mrb[240].mxu0  ;;  %v4868_v1 = vpop.f32.mrb[114].mxu1  ;;  %9288 = vmatmul.mubr.msk.f32.gmra.mrb[28].mxu0 %vm1572_vm8, %v5438_v30 }
 0x5a6   : > { %v5119_v50 = vsel %vm1006_vm5, %v5116_v34, %v5118_v56  ;;  %v5299_v57 = vsel %vm1263_vm6, %v5296_v61, %v5298_v23  ;;  %v4995_v36 = vadd.f32 %v13738_v26, %v4943_v42  ;;  %v4563_v33 = vadd.f32 %v4562_v47, %v13462_v53  ;;  %v9048_v54 = vpop.f32.mrb[241].mxu0  ;;  %v9207_v6 = vpop.f32.mrb[115].mxu1  ;;  %9290 = vmatprep.mubr.msk.f32.mxu0 %vm9711_vm1, %v15150_v51  ;;  %v15190_v47 = vld [vmem:[#allocation18_spill] sm:$0xff] }
 0x5a7   : > { %v5439_v0 = vmax.f32 %v13705_v43, %v5397_v48  ;;  %v5218_v19 = vmax.f32 %v4993_v37, %v5119_v50 }
 0x5a8   : > { %v5120_v17 = vrot.slane %v4995_v36, 1  ;;  %v5300_v15 = vrot.slane %v4995_v36, 2  ;;  %v4944_v38 = vadd.f32 %v4868_v1, %v4563_v33 }
 0x5a9   : > { %v5398_v16 = vmax.f32 %v5218_v19, %v5299_v57  ;;  %v4567_v3 = vpop.f32.mrb[242].mxu0  ;;  %v4873_v49 = vpop.f32.mrb[116].mxu1 }
 0x5aa   : > { %v5121_v55 = vsel %vm1006_vm5, %v5118_v56, %v5120_v17  ;;  %v5301_v28 = vsel %vm1263_vm6, %v5298_v23, %v5300_v15  ;;  %v4996_v53 = vadd.f32 %v13738_v26, %v4944_v38  ;;  %v4568_v4 = vadd.f32 %v4567_v3, %v13464_v9  ;;  %v9051_v41 = vpop.f32.mrb[243].mxu0  ;;  %v9210_v46 = vpop.f32.mrb[117].mxu1 }
 0x5ab   : > { %v5440_v2 = vmax.f32 %v13712_v45, %v5398_v16  ;;  %v5219_v43 = vmax.f32 %v4994_v58, %v5121_v55 }
 0x5ac   : > { %v5122_v39 = vrot.slane %v4996_v53, 1  ;;  %v5302_v18 = vrot.slane %v4996_v53, 2  ;;  %v4945_v52 = vadd.f32 %v4873_v49, %v4568_v4  ;;  %v15191_v49 = vld [vmem:[#allocation13_spill] sm:$0xff] }
 0x5ad   : > { %v5399_v32 = vmax.f32 %v5219_v43, %v5301_v28  ;;  %v4572_v63 = vpop.f32.mrb[244].mxu0  ;;  %v4878_v20 = vpop.f32.mrb[118].mxu1 }
 0x5ae   : > { %v5123_v40 = vsel %vm1006_vm5, %v5120_v17, %v5122_v39  ;;  %v5303_v21 = vsel %vm1263_vm6, %v5300_v15, %v5302_v18  ;;  %v4997_v10 = vadd.f32 %v13738_v26, %v4945_v52  ;;  %v4573_v13 = vadd.f32 %v4572_v63, %v13466_v27  ;;  %v9054_v9 = vpop.f32.mrb[245].mxu0  ;;  %v9213_v29 = vpop.f32.mrb[119].mxu1 }
 0x5af   : > { %v5441_v37 = vmax.f32 %v13722_v35, %v5399_v32  ;;  %v5220_v45 = vmax.f32 %v4995_v36, %v5123_v40  ;;  %v15192_v40 = vld [vmem:[#allocation20_spill] sm:$0xff] }
 0x5b0   : > { %v5124_v5 = vrot.slane %v4997_v10, 1  ;;  %v5304_v11 = vrot.slane %v4997_v10, 2  ;;  %v4946_v7 = vadd.f32 %v4878_v20, %v4573_v13 }
 0x5b1   : > { %v13755_v25 = vmax.f32 %v5220_v45, %v5303_v21  ;;  %v4577_v12 = vpop.f32.mrb[246].mxu0  ;;  %v4883_v34 = vpop.f32.mrb[120].mxu1 }
 0x5b2   : > { %v5125_v61 = vsel %vm1006_vm5, %v5122_v39, %v5124_v5  ;;  %v5305_v24 = vsel %vm1263_vm6, %v5302_v18, %v5304_v11  ;;  %v4998_v31 = vadd.f32 %v13738_v26, %v4946_v7  ;;  %v4578_v27 = vadd.f32 %v4577_v12, %v15189_v59  ;;  %v9057_v44 = vpop.f32.mrb[247].mxu0  ;;  %v9216_v60 = vpop.f32.mrb[121].mxu1 }
 0x5b3   : > { %v5442_v35 = vmax.f32 %v5439_v0, %v13755_v25  ;;  %v5221_v58 = vmax.f32 %v4996_v53, %v5125_v61 }
 0x5b4   : > { %v5126_v62 = vrot.slane %v4998_v31, 1  ;;  %v5306_v14 = vrot.slane %v4998_v31, 2  ;;  %v4947_v8 = vadd.f32 %v4883_v34, %v4578_v27 }
 0x5b5   : > { %v13762_v30 = vmax.f32 %v5221_v58, %v5305_v24  ;;  %v4582_v22 = vpop.f32.mrb[248].mxu0  ;;  %v4888_v56 = vpop.f32.mrb[122].mxu1  ;;  %9291 = vmatmul.mubr.msk.f32.gmra.mrb[30].mxu0 %vm1572_vm8, %v5442_v35 }
 0x5b6   : > { %v5127_v23 = vsel %vm1006_vm5, %v5124_v5, %v5126_v62  ;;  %v5307_v42 = vsel %vm1263_vm6, %v5304_v11, %v5306_v14  ;;  %v4999_v48 = vadd.f32 %v13738_v26, %v4947_v8  ;;  %v4583_v1 = vadd.f32 %v4582_v22, %v15190_v47  ;;  %v9060_v50 = vpop.f32.mrb[249].mxu0  ;;  %v9219_v57 = vpop.f32.mrb[123].mxu1  ;;  %9293 = vmatprep.mubr.msk.f32.mxu0 %vm9711_vm1, %v15150_v51 }
 0x5b7   : > { %v5443_v36 = vmax.f32 %v5440_v2, %v13762_v30  ;;  %v5222_v33 = vmax.f32 %v4997_v10, %v5127_v23 }
 0x5b8   : > { %v5128_v54 = vrot.slane %v4999_v48, 1  ;;  %v5308_v6 = vrot.slane %v4999_v48, 2  ;;  %v4948_v0 = vadd.f32 %v4888_v56, %v4583_v1 }
 0x5b9   : > { %v13772_v19 = vmax.f32 %v5222_v33, %v5307_v42  ;;  %v4587_v17 = vpop.f32.mrb[250].mxu0  ;;  %v4893_v15 = vpop.f32.mrb[124].mxu1  ;;  %9294 = vmatmul.mubr.msk.f32.gmra.mrb[32].mxu0 %vm1572_vm8, %v5443_v36 }
 0x5ba   : > { %v5129_v38 = vsel %vm1006_vm5, %v5126_v62, %v5128_v54  ;;  %v5309_v16 = vsel %vm1263_vm6, %v5306_v14, %v5308_v6  ;;  %v5000_v3 = vadd.f32 %v13738_v26, %v4948_v0  ;;  %v4588_v55 = vadd.f32 %v4587_v17, %v15191_v49  ;;  %v9063_v28 = vpop.f32.mrb[251].mxu0  ;;  %v9222_v53 = vpop.f32.mrb[125].mxu1  ;;  %9296 = vmatprep.mubr.msk.f32.mxu0 %vm9711_vm1, %v15150_v51  ;;  %v15195_v0 = vld [vmem:[#allocation10_spill] sm:$0xff] }
 0x5bb   : > { %v5444_v4 = vmax.f32 %v5441_v37, %v13772_v19  ;;  %v5223_v41 = vmax.f32 %v4998_v31, %v5129_v38  ;;  %v15193_v31 = vld [vmem:[#allocation15_spill] sm:$0xff]  ;;  %v7521_v49 = vld [vmem:[%s15016_s10 + $0x1e0] sm:$0xff]  ;;  %v7523_v28 = vld [vmem:[%s15016_s10 + $0x1f0] sm:$0xff] }
 0x5bc   : > { %v5130_v46 = vrot.slane %v5000_v3, 1  ;;  %v5310_v2 = vrot.slane %v5000_v3, 2  ;;  %v4949_v43 = vadd.f32 %v4893_v15, %v4588_v55  ;;  %v7526_v53 = vld [vmem:[%s15016_s10 + $0x208] sm:$0xff] }
 0x5bd   : > { %v5403_v39 = vmax.f32 %v5223_v41, %v5309_v16  ;;  %v4592_v18 = vpop.f32.mrb[252].mxu0  ;;  %v4898_v52 = vpop.f32.mrb[126].mxu1  ;;  %9297 = vmatmul.mubr.msk.f32.gmra.mrb[34].mxu0 %vm1572_vm8, %v5444_v4  ;;  %v7522_v16 = vld [vmem:[%s15016_s10 + $0x1e8] sm:$0xff]  ;;  %v7528_v4 = vld [vmem:[%s15016_s10 + $0x218] sm:$0xff]  ;;  %v9437_v41 = vpack.c.bf16 %v7523_v28, %v7521_v49  ;;  %v7563_v28 = vld [vmem:[%s15016_s10 + $0x330] sm:$0xff] }
 0x5be   : > { %v5131_v32 = vsel %vm1006_vm5, %v5128_v54, %v5130_v46  ;;  %v5311_v63 = vsel %vm1263_vm6, %v5308_v6, %v5310_v2  ;;  %v5001_v20 = vadd.f32 %v13738_v26, %v4949_v43  ;;  %v4593_v21 = vadd.f32 %v4592_v18, %v15192_v40  ;;  %v9066_v10 = vpop.f32.mrb[253].mxu0  ;;  %v9225_v13 = vpop.f32.mrb[127].mxu1  ;;  %9299 = vmatprep.mubr.msk.f32.mxu0 %vm9711_vm1, %v15150_v51  ;;  %v7527_v43 = vld [vmem:[%s15016_s10 + $0x210] sm:$0xff]  ;;  %v7530_v18 = vld [vmem:[%s15016_s10 + $0x228] sm:$0xff] }
 0x5bf   : > { %v5445_v9 = vmax.f32 %v13755_v25, %v5403_v39  ;;  %v5224_v29 = vmax.f32 %v4999_v48, %v5131_v32  ;;  %v7536_v10 = vld [vmem:[%s15016_s10 + $0x258] sm:$0xff] }
 0x5c0   : > { %v5132_v37 = vrot.slane %v5001_v20, 1  ;;  %v5312_v45 = vrot.slane %v5001_v20, 2  ;;  %v4950_v5 = vadd.f32 %v4898_v52, %v4593_v21  ;;  %v7532_v52 = vld [vmem:[%s15016_s10 + $0x238] sm:$0xff]  ;;  %v7534_v21 = vld [vmem:[%s15016_s10 + $0x248] sm:$0xff] }
 0x5c1   : > { %v5404_v11 = vmax.f32 %v5224_v29, %v5311_v63  ;;  %v4597_v7 = vpop.f32.mrb[254].mxu0  ;;  %v4903_v12 = vpop.f32.mrb[128].mxu1  ;;  %v9443_v32 = vpack.c.bf16 %v7532_v52, %v7530_v18  ;;  %v7529_v63 = vld [vmem:[%s15016_s10 + $0x220] sm:$0xff]  ;;  %v9447_v13 = vpack.c.bf16 %v7536_v10, %v7534_v21  ;;  %v7535_v29 = vld [vmem:[%s15016_s10 + $0x250] sm:$0xff]  ;;  %v7574_v10 = vld [vmem:[%s15016_s10 + $0x388] sm:$0xff] }
 0x5c2   : > { %v5133_v34 = vsel %vm1006_vm5, %v5130_v46, %v5132_v37  ;;  %v5313_v61 = vsel %vm1263_vm6, %v5310_v2, %v5312_v45  ;;  %v5002_v24 = vadd.f32 %v13738_v26, %v4950_v5  ;;  %v4598_v59 = vadd.f32 %v4597_v7, %v15193_v31  ;;  %v9069_v27 = vpop.f32.mrb[255].mxu0  ;;  %v9228_v44 = vpop.f32.mrb[129].mxu1  ;;  %v7525_v2 = vld [vmem:[%s15016_s10 + $0x200] sm:$0xff]  ;;  %v7540_v5 = vld [vmem:[%s15016_s10 + $0x278] sm:$0xff]  ;;  %v7567_v18 = vld [vmem:[%s15016_s10 + $0x350] sm:$0xff] }
 0x5c3   : > { %v5446_v60 = vmax.f32 %v13762_v30, %v5404_v11  ;;  %v5225_v25 = vmax.f32 %v5000_v3, %v5133_v34  ;;  %v15194_v30 = vld [vmem:[#allocation9_spill] sm:$0xff]  ;;  %v9439_v46 = vpack.c.bf16 %v7528_v4, %v7526_v53  ;;  %v9441_v39 = vpack.c.bf16 %v7527_v43, %v7525_v2  ;;  %v7537_v7 = vld [vmem:[%s15016_s10 + $0x260] sm:$0xff]  ;;  %v7543_v27 = vld [vmem:[%s15016_s10 + $0x290] sm:$0xff] }
 0x5c4   : > { %v5134_v35 = vrot.slane %v5002_v24, 1  ;;  %v5314_v58 = vrot.slane %v5002_v24, 2  ;;  %v4951_v62 = vadd.f32 %v4903_v12, %v4598_v59  ;;  %v7524_v3 = vld [vmem:[%s15016_s10 + $0x1f8] sm:$0xff]  ;;  %v7539_v12 = vld [vmem:[%s15016_s10 + $0x270] sm:$0xff]  ;;  %v7541_v59 = vld [vmem:[%s15016_s10 + $0x280] sm:$0xff] }
 0x5c5   : > { %v5405_v14 = vmax.f32 %v5225_v25, %v5313_v61  ;;  %v9435_v55 = vpack.c.bf16 %v7524_v3, %v7522_v16  ;;  %v9453_v34 = vpack.c.bf16 %v7539_v12, %v7537_v7  ;;  %v7542_v61 = vld [vmem:[%s15016_s10 + $0x288] sm:$0xff]  ;;  %v9457_v44 = vpack.c.bf16 %v7543_v27, %v7541_v59  ;;  %v7548_v25 = vld [vmem:[%s15016_s10 + $0x2b8] sm:$0xff]  ;;  %v7571_v21 = vld [vmem:[%s15016_s10 + $0x370] sm:$0xff] }
 0x5c6   : > { %v5135_v8 = vsel %vm1006_vm5, %v5132_v37, %v5134_v35  ;;  %v5315_v22 = vsel %vm1263_vm6, %v5312_v45, %v5314_v58  ;;  %v5003_v56 = vadd.f32 %v13738_v26, %v4951_v62  ;;  %v7538_v45 = vld [vmem:[%s15016_s10 + $0x268] sm:$0xff]  ;;  %v7547_v62 = vld [vmem:[%s15016_s10 + $0x2b0] sm:$0xff]  ;;  %v7564_v16 = vld [vmem:[%s15016_s10 + $0x338] sm:$0xff] }
 0x5c7   : > { %v5226_v23 = vmax.f32 %v5001_v20, %v5135_v8  ;;  %v5447_v42 = vmax.f32 %v13772_v19, %v5405_v14  ;;  %9436 = vmatprep.subr.bf16.mxu0 %v9435_v55  ;;  %v7531_v20 = vld [vmem:[%s15016_s10 + $0x230] sm:$0xff]  ;;  %v9451_v11 = vpack.c.bf16 %v7540_v5, %v7538_v45  ;;  %v7550_v14 = vld [vmem:[%s15016_s10 + $0x2c8] sm:$0xff]  ;;  %v7552_v8 = vld [vmem:[%s15016_s10 + $0x2d8] sm:$0xff] }
 0x5c8   : > { %v5136_v48 = vrot.slane %v5003_v56, 1  ;;  %v5316_v47 = vrot.slane %v5003_v56, 2  ;;  %9438 = vmatpush1.bf16.msra.mxu0 %v9437_v41  ;;  %v9445_v40 = vpack.c.bf16 %v7531_v20, %v7529_v63  ;;  %v7561_v55 = vld [vmem:[%s15016_s10 + $0x320] sm:$0xff]  ;;  %v7566_v41 = vld [vmem:[%s15016_s10 + $0x348] sm:$0xff]  ;;  %v7572_v63 = vld [vmem:[%s15016_s10 + $0x378] sm:$0xff] }
 0x5c9   : > { %v5406_v1 = vmax.f32 %v5226_v23, %v5315_v22  ;;  %9440 = vmatprep.subr.bf16.mxu0 %v9439_v46  ;;  %v7549_v23 = vld [vmem:[%s15016_s10 + $0x2c0] sm:$0xff]  ;;  %v9477_v53 = vpack.c.bf16 %v7563_v28, %v7561_v55  ;;  %v7568_v46 = vld [vmem:[%s15016_s10 + $0x358] sm:$0xff]  ;;  %v7578_v12 = vld [vmem:[%s15016_s10 + $0x3a8] sm:$0xff] }
 0x5ca   : > { %v5137_v50 = vsel %vm1006_vm5, %v5134_v35, %v5136_v48  ;;  %v5138_v57 = vsel %vm1006_vm5, %v5136_v48, %v15194_v30  ;;  %v5317_v36 = vsel %vm1263_vm6, %v5314_v58, %v5316_v47  ;;  %v5318_v17 = vsel %vm1263_vm6, %v5316_v47, %v15195_v0  ;;  %v7545_v35 = vld [vmem:[%s15016_s10 + $0x2a0] sm:$0xff]  ;;  %v7554_v47 = vld [vmem:[%s15016_s10 + $0x2e8] sm:$0xff] }
 0x5cb   : > { %v5448_v33 = vmax.f32 %v5445_v9, %v5406_v1  ;;  %v5227_v54 = vmax.f32 %v5002_v24, %v5137_v50  ;;  %v5228_v6 = vmax.f32 %v5003_v56, %v5138_v57  ;;  %v7533_v9 = vld [vmem:[%s15016_s10 + $0x240] sm:$0xff]  ;;  %v7544_v24 = vld [vmem:[%s15016_s10 + $0x298] sm:$0xff]  ;;  %v9461_v22 = vpack.c.bf16 %v7547_v62, %v7545_v35  ;;  %v7555_v57 = vld [vmem:[%s15016_s10 + $0x2f0] sm:$0xff] }
 0x5cc   : > { %9442 = vmatpush1.bf16.msra.mxu0 %v9441_v39  ;;  %v9449_v37 = vpack.c.bf16 %v7535_v29, %v7533_v9  ;;  %v9455_v31 = vpack.c.bf16 %v7544_v24, %v7542_v61  ;;  %v9463_v56 = vpack.c.bf16 %v7552_v8, %v7550_v14  ;;  %v7556_v1 = vld [vmem:[%s15016_s10 + $0x2f8] sm:$0xff]  ;;  %v7553_v30 = vld [vmem:[%s15016_s10 + $0x2e0] sm:$0xff]  ;;  %v9479_v43 = vpack.c.bf16 %v7568_v46, %v7566_v41 }
 0x5cd   : > { %v5407_v26 = vmax.f32 %v5227_v54, %v5317_v36  ;;  %v5408_v15 = vmax.f32 %v5228_v6, %v5318_v17  ;;  %9300 = vmatmul.mubr.msk.f32.gmra.mrb[36].mxu0 %vm1572_vm8, %v5448_v33  ;;  %9444 = vmatprep.subr.bf16.mxu0 %v9443_v32  ;;  %v9467_v50 = vpack.c.bf16 %v7556_v1, %v7554_v47  ;;  %v7558_v33 = vld [vmem:[%s15016_s10 + $0x308] sm:$0xff]  ;;  %v7560_v54 = vld [vmem:[%s15016_s10 + $0x318] sm:$0xff]  ;;  %v7557_v17 = vld [vmem:[%s15016_s10 + $0x300] sm:$0xff] }
 0x5ce   : > { %9302 = vmatprep.mubr.msk.f32.mxu0 %vm9711_vm1, %v15150_v51  ;;  %v9469_v36 = vpack.c.bf16 %v7555_v57, %v7553_v30  ;;  %v9471_v6 = vpack.c.bf16 %v7560_v54, %v7558_v33  ;;  %v7565_v39 = vld [vmem:[%s15016_s10 + $0x340] sm:$0xff]  ;;  %v7570_v32 = vld [vmem:[%s15016_s10 + $0x368] sm:$0xff] }
 0x5cf   : > { %v5449_v19 = vmax.f32 %v5446_v60, %v5407_v26  ;;  %v5450_v38 = vmax.f32 %v5447_v42, %v5408_v15  ;;  %v7546_v60 = vld [vmem:[%s15016_s10 + $0x2a8] sm:$0xff]  ;;  %v7551_v42 = vld [vmem:[%s15016_s10 + $0x2d0] sm:$0xff]  ;;  %v9481_v52 = vpack.c.bf16 %v7567_v18, %v7565_v39  ;;  %v7569_v20 = vld [vmem:[%s15016_s10 + $0x360] sm:$0xff] }
 0x5d0   : > { %9446 = vmatpush1.bf16.msra.mxu0 %v9445_v40  ;;  %v9459_v58 = vpack.c.bf16 %v7548_v25, %v7546_v60  ;;  %v9465_v48 = vpack.c.bf16 %v7551_v42, %v7549_v23  ;;  %v7559_v26 = vld [vmem:[%s15016_s10 + $0x310] sm:$0xff]  ;;  %v9483_v40 = vpack.c.bf16 %v7572_v63, %v7570_v32  ;;  %v9485_v29 = vpack.c.bf16 %v7571_v21, %v7569_v20  ;;  %v7573_v5 = vld [vmem:[%s15016_s10 + $0x380] sm:$0xff] }
 0x5d1   : > { %9303 = vmatmul.mubr.msk.f32.gmra.mrb[38].mxu0 %vm1572_vm8, %v5449_v19  ;;  %9448 = vmatprep.subr.bf16.mxu0 %v9447_v13  ;;  %v9473_v15 = vpack.c.bf16 %v7559_v26, %v7557_v17  ;;  %v7576_v13 = vld [vmem:[%s15016_s10 + $0x398] sm:$0xff]  ;;  %v7577_v24 = vld [vmem:[%s15016_s10 + $0x3a0] sm:$0xff] }
 0x5d2   : > { %9305 = vmatprep.mubr.msk.f32.mxu0 %vm9711_vm1, %v15150_v51  ;;  %v9487_v45 = vpack.c.bf16 %v7576_v13, %v7574_v10  ;;  %v14001_v60 = vld [vmem:[%s15015_s9] ss:$0 sm:$0xff]  ;;  %v5976_v13 = vld [vmem:[%s15016_s10 + $0x8] sm:$0xff] }
 0x5d4   : > { %9450 = vmatpush1.bf16.msra.mxu0 %v9449_v37 }
 0x5d5   : > { %9306 = vmatmul.mubr.msk.f32.gmra.mrb[40].mxu0 %vm1572_vm8, %v5450_v38  ;;  %9452 = vmatprep.subr.bf16.mxu0 %v9451_v11  ;;  %v7562_v38 = vld [vmem:[%s15016_s10 + $0x328] sm:$0xff]  ;;  %v7575_v11 = vld [vmem:[%s15016_s10 + $0x390] sm:$0xff] }
 0x5d6   : > { %v9475_v49 = vpack.c.bf16 %v7564_v16, %v7562_v38  ;;  %v9489_v7 = vpack.c.bf16 %v7575_v11, %v7573_v5 }
 0x5d8   : > { %9454 = vmatpush1.bf16.msra.mxu0 %v9453_v34  ;;  %v7580_v34 = vld [vmem:[%s15016_s10 + $0x3b8] sm:$0xff] }
 0x5d9   : > { %9456 = vmatprep.subr.bf16.mxu0 %v9455_v31  ;;  %v9491_v61 = vpack.c.bf16 %v7580_v34, %v7578_v12  ;;  %v7579_v31 = vld [vmem:[%s15016_s10 + $0x3b0] sm:$0xff] }
 0x5da   : > { %v9493_v59 = vpack.c.bf16 %v7579_v31, %v7577_v24 }
 0x5dc   : > { %9458 = vmatpush1.bf16.msra.mxu0 %v9457_v44 }
 0x5dd   : > { %9460 = vmatprep.subr.bf16.mxu0 %v9459_v58 }
 0x5e0   : > { %9462 = vmatpush1.bf16.msra.mxu0 %v9461_v22 }
 0x5e1   : > { %9464 = vmatprep.subr.bf16.mxu0 %v9463_v56 }
 0x5e4   : > { %9466 = vmatpush1.bf16.msra.mxu0 %v9465_v48 }
 0x5e5   : > { %9468 = vmatprep.subr.bf16.mxu0 %v9467_v50 }
 0x5e8   : > { %9470 = vmatpush1.bf16.msra.mxu0 %v9469_v36 }
 0x5e9   : > { %9472 = vmatprep.subr.bf16.mxu0 %v9471_v6 }
 0x5ec   : > { %9474 = vmatpush1.bf16.msra.mxu0 %v9473_v15 }
 0x5ed   : > { %9476 = vmatprep.subr.bf16.mxu0 %v9475_v49 }
 0x5f0   : > { %9478 = vmatpush1.bf16.msra.mxu0 %v9477_v53 }
 0x5f1   : > { %9480 = vmatprep.subr.bf16.mxu0 %v9479_v43 }
 0x5f4   : > { %9482 = vmatpush1.bf16.msra.mxu0 %v9481_v52 }
 0x5f5   : > { %9484 = vmatprep.subr.bf16.mxu0 %v9483_v40 }
 0x5f8   : > { %9486 = vmatpush1.bf16.msra.mxu0 %v9485_v29  ;;  %v5978_v29 = vld [vmem:[%s15016_s10 + $0x18] sm:$0xff] }
 0x5f9   : > { %9488 = vmatprep.subr.bf16.mxu0 %v9487_v45  ;;  %v9495_v45 = vpack.c.bf16 %v5978_v29, %v5976_v13 }
 0x5fc   : > { %9490 = vmatpush1.bf16.msra.mxu0 %v9489_v7 }
 0x5fd   : > { %9492 = vmatprep.subr.bf16.mxu0 %v9491_v61 }
 0x600   : > { %9494 = vmatpush1.bf16.msra.mxu0 %v9493_v59 }
 0x601   : > { %9496 = vmatprep.subr.bf16.mxu0 %v9495_v45 }
 0x610   : > { %v13932_v19 = vpop.f32.mrb[0].mxu0 }
 0x611   : > { %v9247_v3 = vpop.f32.mrb[1].mxu0 }
 0x614   : > { %v13946_v4 = vpop.f32.mrb[2].mxu0 }
 0x615   : > { %v9250_v2 = vpop.f32.mrb[3].mxu0 }
 0x618   : > { %v13978_v9 = vpop.f32.mrb[4].mxu0 }
 0x619   : > { %v9253_v37 = vpop.f32.mrb[5].mxu0 }
 0x628   : > { %v5610_v27 = vpop.f32.mrb[6].mxu0 }
 0x629   : > { %v9256_v44 = vpop.f32.mrb[7].mxu0  ;;  %v14004_v25 = vadd.f32 %v14001_v60, %v5610_v27 }
 0x62b   : > { %v5725_v14 = vrot.slane %v14004_v25, 2  ;;  %v5831_v8 = vrot.slane %v14004_v25, 4 }
 0x62c   : > { %v5615_v35 = vpop.f32.mrb[8].mxu0 }
 0x62d   : > { %v14007_v58 = vadd.f32 %v14001_v60, %v5615_v35  ;;  %v9259_v62 = vpop.f32.mrb[9].mxu0 }
 0x62f   : > { %v5727_v22 = vrot.slane %v14007_v58, 2  ;;  %v5833_v56 = vrot.slane %v14007_v58, 4 }
 0x630   : > { %v5620_v23 = vpop.f32.mrb[10].mxu0 }
 0x631   : > { %v14014_v42 = vadd.f32 %v14001_v60, %v5620_v23  ;;  %v9262_v48 = vpop.f32.mrb[11].mxu0  ;;  %v5834_v47 = vsel %vm5825_vm11, %v5831_v8, %v5833_v56  ;;  %v5728_v1 = vsel %vm1263_vm6, %v5725_v14, %v5727_v22 }
 0x632   : > { %5875 = vrot.lane.b32.xlu1 %v5834_v47, %s9714_s19  ;;  %5768 = vrot.lane.b32.xlu0 %v5728_v1, %s9717_s25 }
 0x633   : > { %v5729_v50 = vrot.slane %v14014_v42, 2  ;;  %v5835_v30 = vrot.slane %v14014_v42, 4 }
 0x635   : > { %v5836_v57 = vsel %vm5825_vm11, %v5833_v56, %v5835_v30  ;;  %v5730_v36 = vsel %vm1263_vm6, %v5727_v22, %v5729_v50 }
 0x636   : > { %5877 = vrot.lane.b32.xlu1 %v5836_v57, %s9714_s19  ;;  %5770 = vrot.lane.b32.xlu0 %v5730_v36, %s9717_s25 }
 0x640   : > { %v5625_v33 = vpop.f32.mrb[12].mxu0 }
 0x641   : > { %v14031_v54 = vadd.f32 %v14001_v60, %v5625_v33  ;;  %v9265_v6 = vpop.f32.mrb[13].mxu0 }
 0x643   : > { %v5731_v17 = vrot.slane %v14031_v54, 2  ;;  %v5837_v26 = vrot.slane %v14031_v54, 4 }
 0x644   : > { %v5630_v15 = vpop.f32.mrb[14].mxu0 }
 0x645   : > { %v14036_v38 = vadd.f32 %v14001_v60, %v5630_v15  ;;  %v9268_v16 = vpop.f32.mrb[15].mxu0  ;;  %v5838_v3 = vsel %vm5825_vm11, %v5835_v30, %v5837_v26  ;;  %v5732_v49 = vsel %vm1263_vm6, %v5729_v50, %v5731_v17 }
 0x646   : > { %5879 = vrot.lane.b32.xlu1 %v5838_v3, %s9714_s19  ;;  %5772 = vrot.lane.b32.xlu0 %v5732_v49, %s9717_s25 }
 0x647   : > { %v5733_v55 = vrot.slane %v14036_v38, 2  ;;  %v5839_v28 = vrot.slane %v14036_v38, 4 }
 0x648   : > { %v5635_v53 = vpop.f32.mrb[16].mxu0 }
 0x649   : > { %v14045_v41 = vadd.f32 %v14001_v60, %v5635_v53  ;;  %v9271_v46 = vpop.f32.mrb[17].mxu0  ;;  %v5840_v2 = vsel %vm5825_vm11, %v5837_v26, %v5839_v28  ;;  %v5734_v43 = vsel %vm1263_vm6, %v5731_v17, %v5733_v55 }
 0x64a   : > { %5881 = vrot.lane.b32.xlu1 %v5840_v2, %s9714_s19  ;;  %5774 = vrot.lane.b32.xlu0 %v5734_v43, %s9717_s25 }
 0x64b   : > { %v5735_v39 = vrot.slane %v14045_v41, 2  ;;  %v5841_v18 = vrot.slane %v14045_v41, 4 }
 0x64d   : > { %v5842_v52 = vsel %vm5825_vm11, %v5839_v28, %v5841_v18  ;;  %v5736_v32 = vsel %vm1263_vm6, %v5733_v55, %v5735_v39 }
 0x64e   : > { %5883 = vrot.lane.b32.xlu1 %v5842_v52, %s9714_s19  ;;  %5776 = vrot.lane.b32.xlu0 %v5736_v32, %s9717_s25 }
 0x658   : > { %v5640_v63 = vpop.f32.mrb[18].mxu0 }
 0x659   : > { %v14058_v20 = vadd.f32 %v14001_v60, %v5640_v63  ;;  %v9274_v40 = vpop.f32.mrb[19].mxu0 }
 0x65b   : > { %v5737_v21 = vrot.slane %v14058_v20, 2  ;;  %v5843_v10 = vrot.slane %v14058_v20, 4 }
 0x65c   : > { %v5645_v37 = vpop.f32.mrb[20].mxu0 }
 0x65d   : > { %v14069_v5 = vadd.f32 %v14001_v60, %v5645_v37  ;;  %v9277_v11 = vpop.f32.mrb[21].mxu0  ;;  %v5844_v7 = vsel %vm5825_vm11, %v5841_v18, %v5843_v10  ;;  %v5738_v12 = vsel %vm1263_vm6, %v5735_v39, %v5737_v21 }
 0x65e   : > { %5885 = vrot.lane.b32.xlu1 %v5844_v7, %s9714_s19  ;;  %5778 = vrot.lane.b32.xlu0 %v5738_v12, %s9717_s25 }
 0x65f   : > { %v5739_v34 = vrot.slane %v14069_v5, 2  ;;  %v5845_v61 = vrot.slane %v14069_v5, 4 }
 0x660   : > { %v5650_v24 = vpop.f32.mrb[22].mxu0 }
 0x661   : > { %v14078_v31 = vadd.f32 %v14001_v60, %v5650_v24  ;;  %v9280_v59 = vpop.f32.mrb[23].mxu0  ;;  %v5846_v27 = vsel %vm5825_vm11, %v5843_v10, %v5845_v61  ;;  %v5740_v44 = vsel %vm1263_vm6, %v5737_v21, %v5739_v34 }
 0x662   : > { %5887 = vrot.lane.b32.xlu1 %v5846_v27, %s9714_s19  ;;  %5780 = vrot.lane.b32.xlu0 %v5740_v44, %s9717_s25  ;;  %v14146_v44 = vadd.f32 %v14001_v60, %v13946_v4  ;;  %v5982_v4 = vld [vmem:[%s15016_s10 + $0x38] sm:$0xff] }
 0x663   : > { %v5741_v35 = vrot.slane %v14078_v31, 2  ;;  %v5847_v62 = vrot.slane %v14078_v31, 4 }
 0x665   : > { %v5848_v22 = vsel %vm5825_vm11, %v5845_v61, %v5847_v62  ;;  %v5742_v56 = vsel %vm1263_vm6, %v5739_v34, %v5741_v35 }
 0x666   : > { %5889 = vrot.lane.b32.xlu1 %v5848_v22, %s9714_s19  ;;  %5782 = vrot.lane.b32.xlu0 %v5742_v56, %s9717_s25 }
 0x670   : > { %v5655_v23 = vpop.f32.mrb[24].mxu0 }
 0x671   : > { %v14091_v48 = vadd.f32 %v14001_v60, %v5655_v23  ;;  %v9283_v47 = vpop.f32.mrb[25].mxu0  ;;  %v5977_v23 = vld [vmem:[%s15016_s10 + $0x10] sm:$0xff] }
 0x672   : > { %v5980_v47 = vld [vmem:[%s15016_s10 + $0x28] sm:$0xff] }
 0x673   : > { %v5743_v1 = vrot.slane %v14091_v48, 2  ;;  %v5849_v50 = vrot.slane %v14091_v48, 4 }
 0x674   : > { %v5660_v30 = vpop.f32.mrb[26].mxu0 }
 0x675   : > { %v14096_v57 = vadd.f32 %v14001_v60, %v5660_v30  ;;  %v9286_v36 = vpop.f32.mrb[27].mxu0  ;;  %v5850_v33 = vsel %vm5825_vm11, %v5847_v62, %v5849_v50  ;;  %v5744_v6 = vsel %vm1263_vm6, %v5741_v35, %v5743_v1  ;;  %v5975_v62 = vld [vmem:[%s15016_s10] sm:$0xff] }
 0x676   : > { %5891 = vrot.lane.b32.xlu1 %v5850_v33, %s9714_s19  ;;  %5784 = vrot.lane.b32.xlu0 %v5744_v6, %s9717_s25  ;;  %v5827_v36 = vrot.slane %v14146_v44, 4  ;;  %v14172_v33 = vadd.f32 %v14001_v60, %v13978_v9 }
 0x677   : > { %v5745_v17 = vrot.slane %v14096_v57, 2  ;;  %v5851_v26 = vrot.slane %v14096_v57, 4 }
 0x678   : > { %v5665_v15 = vpop.f32.mrb[28].mxu0 }
 0x679   : > { %v14105_v16 = vadd.f32 %v14001_v60, %v5665_v15  ;;  %v9289_v3 = vpop.f32.mrb[29].mxu0  ;;  %v5852_v49 = vsel %vm5825_vm11, %v5849_v50, %v5851_v26  ;;  %v5746_v55 = vsel %vm1263_vm6, %v5743_v1, %v5745_v17  ;;  %v14165_v1 = vadd.f32 %v14001_v60, %v13932_v19 }
 0x67a   : > { %5893 = vrot.lane.b32.xlu1 %v5852_v49, %s9714_s19  ;;  %5786 = vrot.lane.b32.xlu0 %v5746_v55, %s9717_s25  ;;  %v9499_v15 = vpack.c.bf16 %v5982_v4, %v5980_v47  ;;  %v5987_v4 = vld [vmem:[%s15016_s10 + $0x60] sm:$0xff] }
 0x67b   : > { %v5747_v28 = vrot.slane %v14105_v16, 2  ;;  %v5853_v53 = vrot.slane %v14105_v16, 4 }
 0x67d   : > { %v5854_v46 = vsel %vm5825_vm11, %v5851_v26, %v5853_v53  ;;  %v5748_v2 = vsel %vm1263_vm6, %v5745_v17, %v5747_v28  ;;  %v9497_v26 = vpack.c.bf16 %v5977_v23, %v5975_v62 }
 0x67e   : > { %5895 = vrot.lane.b32.xlu1 %v5854_v46, %s9714_s19  ;;  %5788 = vrot.lane.b32.xlu0 %v5748_v2, %s9717_s25  ;;  %v5826_v46 = vrot.slane %v14165_v1, 4  ;;  %v5721_v2 = vrot.slane %v14146_v44, 2 }
 0x688   : > { %v5670_v43 = vpop.f32.mrb[30].mxu0 }
 0x689   : > { %v14118_v39 = vadd.f32 %v14001_v60, %v5670_v43  ;;  %v9292_v18 = vpop.f32.mrb[31].mxu0 }
 0x68a   : > { %v5984_v18 = vld [vmem:[%s15016_s10 + $0x48] sm:$0xff] }
 0x68b   : > { %v5749_v52 = vrot.slane %v14118_v39, 2  ;;  %v5855_v32 = vrot.slane %v14118_v39, 4 }
 0x68c   : > { %v5675_v63 = vpop.f32.mrb[32].mxu0 }
 0x68d   : > { %v14123_v40 = vadd.f32 %v14001_v60, %v5675_v63  ;;  %v9295_v21 = vpop.f32.mrb[33].mxu0  ;;  %v5856_v10 = vsel %vm5825_vm11, %v5853_v53, %v5855_v32  ;;  %v5750_v13 = vsel %vm1263_vm6, %v5747_v28, %v5749_v52  ;;  %v5979_v28 = vld [vmem:[%s15016_s10 + $0x20] sm:$0xff]  ;;  %v5981_v53 = vld [vmem:[%s15016_s10 + $0x30] sm:$0xff] }
 0x68e   : > { %5897 = vrot.lane.b32.xlu1 %v5856_v10, %s9714_s19  ;;  %5790 = vrot.lane.b32.xlu0 %v5750_v13, %s9717_s25  ;;  %v5828_v10 = vsel %vm5825_vm11, %v5826_v46, %v5827_v36  ;;  %v9501_v13 = vpack.c.bf16 %v5981_v53, %v5979_v28  ;;  %v5991_v53 = vld [vmem:[%s15016_s10 + $0x80] sm:$0xff]  ;;  %v5993_v46 = vld [vmem:[%s15016_s10 + $0x90] sm:$0xff] }
 0x68f   : > { %v5751_v29 = vrot.slane %v14123_v40, 2  ;;  %v5857_v37 = vrot.slane %v14123_v40, 4 }
 0x690   : > { %v5680_v45 = vpop.f32.mrb[34].mxu0 }
 0x691   : > { %v14132_v11 = vadd.f32 %v14001_v60, %v5680_v45  ;;  %v9298_v7 = vpop.f32.mrb[35].mxu0  ;;  %v5858_v12 = vsel %vm5825_vm11, %v5855_v32, %v5857_v37  ;;  %v5752_v34 = vsel %vm1263_vm6, %v5749_v52, %v5751_v29  ;;  %v5986_v52 = vld [vmem:[%s15016_s10 + $0x58] sm:$0xff]  ;;  %v5720_v32 = vrot.slane %v14165_v1, 2 }
 0x692   : > { %5899 = vrot.lane.b32.xlu1 %v5858_v12, %s9714_s19  ;;  %5792 = vrot.lane.b32.xlu0 %v5752_v34, %s9717_s25  ;;  %v9503_v12 = vpack.c.bf16 %v5986_v52, %v5984_v18  ;;  %v5983_v34 = vld [vmem:[%s15016_s10 + $0x40] sm:$0xff]  ;;  %v9513_v18 = vpack.c.bf16 %v5993_v46, %v5991_v53 }
 0x693   : > { %v5753_v61 = vrot.slane %v14132_v11, 2  ;;  %v5859_v24 = vrot.slane %v14132_v11, 4 }
 0x695   : > { %v5860_v59 = vsel %vm5825_vm11, %v5857_v37, %v5859_v24  ;;  %v5754_v27 = vsel %vm1263_vm6, %v5751_v29, %v5753_v61  ;;  %v5829_v29 = vrot.slane %v14172_v33, 4 }
 0x696   : > { %5901 = vrot.lane.b32.xlu1 %v5860_v59, %s9714_s19  ;;  %5794 = vrot.lane.b32.xlu0 %v5754_v27, %s9717_s25  ;;  %v5988_v27 = vld [vmem:[%s15016_s10 + $0x68] sm:$0xff] }
 0x697   : > { %v5830_v23 = vsel %vm5825_vm11, %v5827_v36, %v5829_v29  ;;  %v5994_v36 = vld [vmem:[%s15016_s10 + $0x98] sm:$0xff] }
 0x6a0   : > { %v5685_v35 = vpop.f32.mrb[36].mxu0 }
 0x6a1   : > { %v14152_v22 = vadd.f32 %v14001_v60, %v5685_v35  ;;  %v9301_v56 = vpop.f32.mrb[37].mxu0  ;;  %v5990_v35 = vld [vmem:[%s15016_s10 + $0x78] sm:$0xff] }
 0x6a2   : > { %v9507_v47 = vpack.c.bf16 %v5990_v35, %v5988_v27  ;;  %v6004_v27 = vld [vmem:[%s15016_s10 + $0xe8] sm:$0xff]  ;;  %v6006_v35 = vld [vmem:[%s15016_s10 + $0xf8] sm:$0xff] }
 0x6a3   : > { %v5755_v50 = vrot.slane %v14152_v22, 2  ;;  %v5861_v30 = vrot.slane %v14152_v22, 4 }
 0x6a4   : > { %v5876_v6 = vpop.permute.xlu1 %5875  ;;  %v5769_v17 = vpop.permute.xlu0 %5768 }
 0x6a5   : > { %v14176_v19 = vsel %vm5932_vm12, %v14004_v25, %v5769_v17  ;;  %v14179_v3 = vsel %vm1520_vm7, %v5769_v17, %v5876_v6  ;;  %v5690_v49 = vpop.f32.mrb[38].mxu0  ;;  %v5862_v55 = vsel %vm5825_vm11, %v5859_v24, %v5861_v30  ;;  %v5756_v9 = vsel %vm1263_vm6, %v5753_v61, %v5755_v50  ;;  %v5985_v61 = vld [vmem:[%s15016_s10 + $0x50] sm:$0xff] }
 0x6a6   : > { %v9304_v43 = vpop.f32.mrb[39].mxu0  ;;  %7581 = vmatprep.mubr.msk.f32.mxu0 %vm6096_vm13, %v14179_v3  ;;  %5903 = vrot.lane.b32.xlu1 %v5862_v55, %s9714_s19  ;;  %v5723_v24 = vrot.slane %v14172_v33, 2  ;;  %v9505_v62 = vpack.c.bf16 %v5985_v61, %v5983_v34  ;;  %v14236_v56 = vadd.f32 %v14001_v60, %v5690_v49  ;;  %v5989_v6 = vld [vmem:[%s15016_s10 + $0x70] sm:$0xff] }
 0x6a7   : > { %5796 = vrot.lane.b32.xlu0 %v5756_v9, %s9717_s25  ;;  %6207 = vmatmul.mubr.f32.vlgmr.msra.gmra.mrb[42].mxu0 %v14176_v19  ;;  %v5832_v9 = vsel %vm5825_vm11, %v5829_v29, %v5831_v8  ;;  %v5996_v8 = vld [vmem:[%s15016_s10 + $0xa8] sm:$0xff]  ;;  %v5998_v43 = vld [vmem:[%s15016_s10 + $0xb8] sm:$0xff] }
 0x6a8   : > { %v5878_v63 = vpop.permute.xlu1 %5877  ;;  %v5771_v21 = vpop.permute.xlu0 %5770  ;;  %9498 = vmatpush1.bf16.msra.mxu0 %v9497_v26  ;;  %v5724_v17 = vsel %vm1263_vm6, %v5721_v2, %v5723_v24  ;;  %v5992_v26 = vld [vmem:[%s15016_s10 + $0x88] sm:$0xff]  ;;  %v5863_v49 = vrot.slane %v14236_v56, 4 }
 0x6a9   : > { %v14211_v37 = vsel %vm5932_vm12, %v14007_v58, %v5771_v21  ;;  %v14214_v45 = vsel %vm1520_vm7, %v5771_v21, %v5878_v63  ;;  %v5695_v7 = vpop.f32.mrb[40].mxu0  ;;  %9500 = vmatprep.subr.bf16.mxu0 %v9499_v15  ;;  %v5722_v58 = vsel %vm1263_vm6, %v5720_v32, %v5721_v2  ;;  %v9509_v15 = vpack.c.bf16 %v5989_v6, %v5987_v4  ;;  %v5995_v32 = vld [vmem:[%s15016_s10 + $0xa0] sm:$0xff]  ;;  %v5997_v63 = vld [vmem:[%s15016_s10 + $0xb0] sm:$0xff] }
 0x6aa   : > { %v9307_v59 = vpop.f32.mrb[41].mxu0  ;;  %7582 = vmatprep.mubr.msk.f32.mxu0 %vm6096_vm13, %v14214_v45  ;;  %5869 = vrot.lane.b32.xlu1 %v5828_v10, %s9714_s19  ;;  %v14256_v55 = vadd.f32 %v14001_v60, %v5695_v7  ;;  %v9511_v28 = vpack.c.bf16 %v5994_v36, %v5992_v26  ;;  %v5757_v2 = vrot.slane %v14236_v56, 2  ;;  %v5726_v60 = vsel %vm1263_vm6, %v5723_v24, %v5725_v14  ;;  %v6003_v36 = vld [vmem:[%s15016_s10 + $0xe0] sm:$0xff] }
 0x6ab   : > { %5762 = vrot.lane.b32.xlu0 %v5722_v58, %s9717_s25  ;;  %6213 = vmatmul.mubr.f32.gmra.mrb[44].mxu0 %v14211_v37  ;;  %v5864_v25 = vsel %vm5825_vm11, %v5861_v30, %v5863_v49  ;;  %v9515_v14 = vpack.c.bf16 %v5998_v43, %v5996_v8  ;;  %v6000_v30 = vld [vmem:[%s15016_s10 + $0xc8] sm:$0xff]  ;;  %v9517_v34 = vpack.c.bf16 %v5997_v63, %v5995_v32  ;;  %v5999_v58 = vld [vmem:[%s15016_s10 + $0xc0] sm:$0xff]  ;;  %v6013_v63 = vld [vmem:[%s15016_s10 + $0x130] sm:$0xff] }
 0x6ac   : > { %9502 = vmatpush1.bf16.msra.mxu0 %v9501_v13  ;;  %v5865_v52 = vrot.slane %v14256_v55, 4  ;;  %v5759_v21 = vrot.slane %v14256_v55, 2  ;;  %v5758_v10 = vsel %vm1263_vm6, %v5755_v50, %v5757_v2  ;;  %v6002_v13 = vld [vmem:[%s15016_s10 + $0xd8] sm:$0xff]  ;;  %v9523_v26 = vpack.c.bf16 %v6006_v35, %v6004_v27  ;;  %v6007_v43 = vld [vmem:[%s15016_s10 + $0x100] sm:$0xff]  ;;  %v6024_v27 = vld [vmem:[%s15016_s10 + $0x188] sm:$0xff] }
 0x6ad   : > { %9504 = vmatprep.subr.bf16.mxu0 %v9503_v12  ;;  %v14302_v12 = vrot.slane %v15150_v51, 4  ;;  %v9519_v59 = vpack.c.bf16 %v6002_v13, %v6000_v30  ;;  %v6001_v51 = vld [vmem:[%s15016_s10 + $0xd0] sm:$0xff]  ;;  %v6011_v32 = vld [vmem:[%s15016_s10 + $0x120] sm:$0xff]  ;;  %v6026_v35 = vld [vmem:[%s15016_s10 + $0x198] sm:$0xff] }
 0x6ae   : > { %5871 = vrot.lane.b32.xlu1 %v5830_v23, %s9714_s19  ;;  %v5866_v24 = vsel %vm5825_vm11, %v5863_v49, %v5865_v52  ;;  %v6008_v49 = vld [vmem:[%s15016_s10 + $0x108] sm:$0xff]  ;;  %v9533_v30 = vpack.c.bf16 %v6013_v63, %v6011_v32 }
 0x6af   : > { %5764 = vrot.lane.b32.xlu0 %v5724_v17, %s9717_s25  ;;  %v5868_v17 = vsel %vm5825_vm11, %v5865_v52, %v14302_v12  ;;  %v6014_v52 = vld [vmem:[%s15016_s10 + $0x138] sm:$0xff] }
 0x6b0   : > { %9506 = vmatpush1.bf16.msra.mxu0 %v9505_v62 }
 0x6b1   : > { %9508 = vmatprep.subr.bf16.mxu0 %v9507_v47  ;;  %v9521_v47 = vpack.c.bf16 %v6001_v51, %v5999_v58  ;;  %v6019_v51 = vld [vmem:[%s15016_s10 + $0x160] sm:$0xff] }
 0x6b2   : > { %5873 = vrot.lane.b32.xlu1 %v5832_v9, %s9714_s19  ;;  %v6010_v9 = vld [vmem:[%s15016_s10 + $0x118] sm:$0xff] }
 0x6b3   : > { %5766 = vrot.lane.b32.xlu0 %v5726_v60, %s9717_s25  ;;  %v9527_v8 = vpack.c.bf16 %v6010_v9, %v6008_v49  ;;  %v6030_v49 = vld [vmem:[%s15016_s10 + $0x1b8] sm:$0xff] }
 0x6b4   : > { %9510 = vmatpush1.bf16.msra.mxu0 %v9509_v15  ;;  %v6005_v15 = vld [vmem:[%s15016_s10 + $0xf0] sm:$0xff] }
 0x6b5   : > { %9512 = vmatprep.subr.bf16.mxu0 %v9511_v28  ;;  %v9525_v46 = vpack.c.bf16 %v6005_v15, %v6003_v36  ;;  %v9543_v36 = vpack.c.bf16 %v6026_v35, %v6024_v27  ;;  %v6023_v15 = vld [vmem:[%s15016_s10 + $0x180] sm:$0xff] }
 0x6b6   : > { %5905 = vrot.lane.b32.xlu1 %v5864_v25, %s9714_s19 }
 0x6b7   : > { %5798 = vrot.lane.b32.xlu0 %v5758_v10, %s9717_s25  ;;  %v6018_v10 = vld [vmem:[%s15016_s10 + $0x158] sm:$0xff] }
 0x6b8   : > { %v5880_v29 = vpop.permute.xlu1 %5879  ;;  %v5773_v7 = vpop.permute.xlu0 %5772  ;;  %9514 = vmatpush1.bf16.msra.mxu0 %v9513_v18  ;;  %v6009_v18 = vld [vmem:[%s15016_s10 + $0x110] sm:$0xff] }
 0x6b9   : > { %v14306_v50 = vsel %vm5932_vm12, %v14014_v42, %v5773_v7  ;;  %v14309_v61 = vsel %vm1520_vm7, %v5773_v7, %v5880_v29  ;;  %9516 = vmatprep.subr.bf16.mxu0 %v9515_v14  ;;  %v5760_v42 = vsel %vm1263_vm6, %v5757_v2, %v5759_v21  ;;  %v9529_v25 = vpack.c.bf16 %v6009_v18, %v6007_v43  ;;  %v6015_v29 = vld [vmem:[%s15016_s10 + $0x140] sm:$0xff]  ;;  %v6017_v7 = vld [vmem:[%s15016_s10 + $0x150] sm:$0xff] }
 0x6ba   : > { %7583 = vmatprep.mubr.msk.f32.mxu0 %vm6096_vm13, %v14309_v61  ;;  %5907 = vrot.lane.b32.xlu1 %v5866_v24, %s9714_s19  ;;  %v6022_v24 = vld [vmem:[%s15016_s10 + $0x178] sm:$0xff]  ;;  %v6027_v18 = vld [vmem:[%s15016_s10 + $0x1a0] sm:$0xff] }
 0x6bb   : > { %5800 = vrot.lane.b32.xlu0 %v5760_v42, %s9717_s25  ;;  %6219 = vmatmul.mubr.f32.gmra.mrb[46].mxu0 %v14306_v50  ;;  %v6021_v42 = vld [vmem:[%s15016_s10 + $0x170] sm:$0xff] }
 0x6bc   : > { %v5882_v62 = vpop.permute.xlu1 %5881  ;;  %v5775_v23 = vpop.permute.xlu0 %5774  ;;  %9518 = vmatpush1.bf16.msra.mxu0 %v9517_v34  ;;  %v6020_v34 = vld [vmem:[%s15016_s10 + $0x168] sm:$0xff] }
 0x6bd   : > { %v14332_v4 = vsel %vm5932_vm12, %v14031_v54, %v5775_v23  ;;  %v14335_v6 = vsel %vm1520_vm7, %v5775_v23, %v5882_v62  ;;  %9520 = vmatprep.subr.bf16.mxu0 %v9519_v59  ;;  %v5761_v54 = vsel %vm1263_vm6, %v5759_v21, %v15195_v0  ;;  %v6016_v21 = vld [vmem:[%s15016_s10 + $0x148] sm:$0xff]  ;;  %v9537_v59 = vpack.c.bf16 %v6017_v7, %v6015_v29  ;;  %v7614_v29 = vld [vmem:[%s15016_s10 + $0x3d8] sm:$0xff] }
 0x6be   : > { %7584 = vmatprep.mubr.msk.f32.mxu0 %vm6096_vm13, %v14335_v6  ;;  %5909 = vrot.lane.b32.xlu1 %v5868_v17, %s9714_s19  ;;  %v9535_v13 = vpack.c.bf16 %v6018_v10, %v6016_v21  ;;  %v9539_v58 = vpack.c.bf16 %v6022_v24, %v6020_v34  ;;  %s14914_s19 = scalar_lea.vmem %s15018_s12, %s9680_s17 }
 0x6bf   : > { %5802 = vrot.lane.b32.xlu0 %v5761_v54, %s9717_s25  ;;  %6225 = vmatmul.mubr.f32.gmra.mrb[48].mxu0 %v14332_v4  ;;  %v6025_v54 = vld [vmem:[%s15016_s10 + $0x190] sm:$0xff] }
 0x6c0   : > { %v5884_v28 = vpop.permute.xlu1 %5883  ;;  %v5777_v53 = vpop.permute.xlu0 %5776  ;;  %9522 = vmatpush1.bf16.msra.mxu0 %v9521_v47  ;;  %v9541_v47 = vpack.c.bf16 %v6021_v42, %v6019_v51 }
 0x6c1   : > { %v14360_v2 = vsel %vm5932_vm12, %v14036_v38, %v5777_v53  ;;  %v14363_v60 = vsel %vm1520_vm7, %v5777_v53, %v5884_v28  ;;  %9524 = vmatprep.subr.bf16.mxu0 %v9523_v26  ;;  %v6012_v38 = vld [vmem:[%s15016_s10 + $0x128] sm:$0xff]  ;;  %v9545_v53 = vpack.c.bf16 %v6025_v54, %v6023_v15 }
 0x6c2   : > { %7585 = vmatprep.mubr.msk.f32.mxu0 %vm6096_vm13, %v14363_v60  ;;  %v9531_v14 = vpack.c.bf16 %v6014_v52, %v6012_v38  ;;  %v6029_v38 = vld [vmem:[%s15016_s10 + $0x1b0] sm:$0xff]  ;;  %v6034_v52 = vld [vmem:[%s15016_s10 + $0x1d8] sm:$0xff] }
 0x6c3   : > { %6231 = vmatmul.mubr.f32.gmra.mrb[50].mxu0 %v14360_v2  ;;  %v9549_v32 = vpack.c.bf16 %v6029_v38, %v6027_v18 }
 0x6c4   : > { %9526 = vmatpush1.bf16.msra.mxu0 %v9525_v46 }
 0x6c5   : > { %9528 = vmatprep.subr.bf16.mxu0 %v9527_v8 }
 0x6c8   : > { %9530 = vmatpush1.bf16.msra.mxu0 %v9529_v25 }
 0x6c9   : > { %9532 = vmatprep.subr.bf16.mxu0 %v9531_v14 }
 0x6cc   : > { %9534 = vmatpush1.bf16.msra.mxu0 %v9533_v30  ;;  %v6031_v30 = vld [vmem:[%s15016_s10 + $0x1c0] sm:$0xff] }
 0x6cd   : > { %9536 = vmatprep.subr.bf16.mxu0 %v9535_v13  ;;  %v6033_v13 = vld [vmem:[%s15016_s10 + $0x1d0] sm:$0xff] }
 0x6ce   : > { %v9553_v7 = vpack.c.bf16 %v6033_v13, %v6031_v30 }
 0x6d0   : > { %v5886_v62 = vpop.permute.xlu1 %5885  ;;  %v5779_v23 = vpop.permute.xlu0 %5778  ;;  %9538 = vmatpush1.bf16.msra.mxu0 %v9537_v59 }
 0x6d1   : > { %v14418_v17 = vsel %vm5932_vm12, %v14045_v41, %v5779_v23  ;;  %v14421_v26 = vsel %vm1520_vm7, %v5779_v23, %v5886_v62  ;;  %9540 = vmatprep.subr.bf16.mxu0 %v9539_v58  ;;  %v6028_v41 = vld [vmem:[%s15016_s10 + $0x1a8] sm:$0xff] }
 0x6d2   : > { %7586 = vmatprep.mubr.msk.f32.mxu0 %vm6096_vm13, %v14421_v26  ;;  %v9547_v43 = vpack.c.bf16 %v6030_v49, %v6028_v41 }
 0x6d3   : > { %6237 = vmatmul.mubr.f32.gmra.mrb[52].mxu0 %v14418_v17 }
 0x6d4   : > { %v5888_v9 = vpop.permute.xlu1 %5887  ;;  %v5781_v28 = vpop.permute.xlu0 %5780  ;;  %9542 = vmatpush1.bf16.msra.mxu0 %v9541_v47 }
 0x6d5   : > { %v14440_v46 = vsel %vm5932_vm12, %v14058_v20, %v5781_v28  ;;  %v14443_v8 = vsel %vm1520_vm7, %v5781_v28, %v5888_v9  ;;  %9544 = vmatprep.subr.bf16.mxu0 %v9543_v36  ;;  %v6032_v20 = vld [vmem:[%s15016_s10 + $0x1c8] sm:$0xff] }
 0x6d6   : > { %7587 = vmatprep.mubr.msk.f32.mxu0 %vm6096_vm13, %v14443_v8  ;;  %v9551_v10 = vpack.c.bf16 %v6034_v52, %v6032_v20 }
 0x6d7   : > { %6243 = vmatmul.mubr.f32.gmra.mrb[54].mxu0 %v14440_v46 }
 0x6d8   : > { %v5890_v25 = vpop.permute.xlu1 %5889  ;;  %v5783_v14 = vpop.permute.xlu0 %5782  ;;  %9546 = vmatpush1.bf16.msra.mxu0 %v9545_v53 }
 0x6d9   : > { %v14462_v63 = vsel %vm5932_vm12, %v14069_v5, %v5783_v14  ;;  %v14465_v21 = vsel %vm1520_vm7, %v5783_v14, %v5890_v25  ;;  %9548 = vmatprep.subr.bf16.mxu0 %v9547_v43  ;;  %v7612_v5 = vld [vmem:[%s15016_s10 + $0x3c8] sm:$0xff]  ;;  %v7613_v25 = vld [vmem:[%s15016_s10 + $0x3d0] sm:$0xff] }
 0x6da   : > { %7588 = vmatprep.mubr.msk.f32.mxu0 %vm6096_vm13, %v14465_v21  ;;  %v9555_v34 = vpack.c.bf16 %v7614_v29, %v7612_v5  ;;  %v7616_v14 = vld [vmem:[%s15016_s10 + $0x3e8] sm:$0xff] }
 0x6db   : > { %6249 = vmatmul.mubr.f32.gmra.mrb[56].mxu0 %v14462_v63 }
 0x6dc   : > { %9550 = vmatpush1.bf16.msra.mxu0 %v9549_v32 }
 0x6dd   : > { %9552 = vmatprep.subr.bf16.mxu0 %v9551_v10 }
 0x6e0   : > { %9554 = vmatpush1.bf16.msra.mxu0 %v9553_v7  ;;  %v7615_v7 = vld [vmem:[%s15016_s10 + $0x3e0] sm:$0xff] }
 0x6e1   : > { %9556 = vmatprep.subr.bf16.mxu0 %v9555_v34  ;;  %v7617_v34 = vld [vmem:[%s15016_s10 + $0x3f0] sm:$0xff] }
 0x6e8   : > { %v5892_v24 = vpop.permute.xlu1 %5891  ;;  %v5785_v59 = vpop.permute.xlu0 %5784 }
 0x6e9   : > { %v14484_v58 = vsel %vm5932_vm12, %v14078_v31, %v5785_v59  ;;  %v14487_v51 = vsel %vm1520_vm7, %v5785_v59, %v5892_v24  ;;  %v7620_v24 = vld [vmem:[%s15016_s10 + $0x408] sm:$0xff] }
 0x6ea   : > { %7589 = vmatprep.mubr.msk.f32.mxu0 %vm6096_vm13, %v14487_v51 }
 0x6eb   : > { %6255 = vmatmul.mubr.f32.gmra.mrb[58].mxu0 %v14484_v58 }
 0x6ec   : > { %v5894_v42 = vpop.permute.xlu1 %5893  ;;  %v5787_v27 = vpop.permute.xlu0 %5786 }
 0x6ed   : > { %v14494_v35 = vsel %vm5932_vm12, %v14091_v48, %v5787_v27  ;;  %v14497_v62 = vsel %vm1520_vm7, %v5787_v27, %v5894_v42  ;;  %v9561_v27 = vpack.c.bf16 %v7617_v34, %v7615_v7  ;;  %v7634_v7 = vld [vmem:[%s15016_s10 + $0x478] sm:$0xff] }
 0x6ee   : > { %7590 = vmatprep.mubr.msk.f32.mxu0 %vm6096_vm13, %v14497_v62 }
 0x6ef   : > { %6261 = vmatmul.mubr.f32.gmra.mrb[60].mxu0 %v14494_v35 }
 0x6f0   : > { %v5896_v31 = vpop.permute.xlu1 %5895  ;;  %v5789_v23 = vpop.permute.xlu0 %5788 }
 0x6f1   : > { %v14504_v47 = vsel %vm5932_vm12, %v14096_v57, %v5789_v23  ;;  %v14507_v36 = vsel %vm1520_vm7, %v5789_v23, %v5896_v31 }
 0x6f2   : > { %7591 = vmatprep.mubr.msk.f32.mxu0 %vm6096_vm13, %v14507_v36 }
 0x6f3   : > { %6267 = vmatmul.mubr.f32.gmra.mrb[62].mxu0 %v14504_v47 }
 0x700   : > { %v5898_v48 = vpop.permute.xlu1 %5897  ;;  %v5791_v15 = vpop.permute.xlu0 %5790 }
 0x701   : > { %v14514_v54 = vsel %vm5932_vm12, %v14105_v16, %v5791_v15  ;;  %v14517_v41 = vsel %vm1520_vm7, %v5791_v15, %v5898_v48  ;;  %v7619_v15 = vld [vmem:[%s15016_s10 + $0x400] sm:$0xff] }
 0x702   : > { %7592 = vmatprep.mubr.msk.f32.mxu0 %vm6096_vm13, %v14517_v41 }
 0x703   : > { %6273 = vmatmul.mubr.f32.gmra.mrb[64].mxu0 %v14514_v54 }
 0x704   : > { %v5900_v57 = vpop.permute.xlu1 %5899  ;;  %v5793_v49 = vpop.permute.xlu0 %5792 }
 0x705   : > { %v14524_v9 = vsel %vm5932_vm12, %v14118_v39, %v5793_v49  ;;  %v14527_v28 = vsel %vm1520_vm7, %v5793_v49, %v5900_v57  ;;  %v7621_v57 = vld [vmem:[%s15016_s10 + $0x410] sm:$0xff]  ;;  %v7624_v49 = vld [vmem:[%s15016_s10 + $0x428] sm:$0xff] }
 0x706   : > { %7593 = vmatprep.mubr.msk.f32.mxu0 %vm6096_vm13, %v14527_v28 }
 0x707   : > { %6279 = vmatmul.mubr.f32.gmra.mrb[66].mxu0 %v14524_v9 }
 0x708   : > { %v5902_v16 = vpop.permute.xlu1 %5901  ;;  %v5795_v53 = vpop.permute.xlu0 %5794 }
 0x709   : > { %v14534_v43 = vsel %vm5932_vm12, %v14123_v40, %v5795_v53  ;;  %v14537_v18 = vsel %vm1520_vm7, %v5795_v53, %v5902_v16  ;;  %v7611_v40 = vld [vmem:[%s15016_s10 + $0x3c0] sm:$0xff] }
 0x70a   : > { %7594 = vmatprep.mubr.msk.f32.mxu0 %vm6096_vm13, %v14537_v18  ;;  %v9557_v30 = vpack.c.bf16 %v7613_v25, %v7611_v40 }
 0x70b   : > { %6285 = vmatmul.mubr.f32.gmra.mrb[68].mxu0 %v14534_v43 }
 0x718   : > { %v5904_v39 = vpop.permute.xlu1 %5903 }
 0x719   : > { %v5797_v38 = vpop.permute.xlu0 %5796 }
 0x71a   : > { %v14544_v20 = vsel %vm5932_vm12, %v14132_v11, %v5797_v38  ;;  %v14547_v52 = vsel %vm1520_vm7, %v5797_v38, %v5904_v39  ;;  %v7618_v11 = vld [vmem:[%s15016_s10 + $0x3f8] sm:$0xff]  ;;  %v9565_v39 = vpack.c.bf16 %v7621_v57, %v7619_v15  ;;  %v7639_v15 = vld [vmem:[%s15016_s10 + $0x4a0] sm:$0xff]  ;;  %v7641_v57 = vld [vmem:[%s15016_s10 + $0x4b0] sm:$0xff] }
 0x71b   : > { %7595 = vmatprep.mubr.msk.f32.mxu0 %vm6096_vm13, %v14547_v52  ;;  %v9559_v29 = vpack.c.bf16 %v7618_v11, %v7616_v14  ;;  %v7623_v14 = vld [vmem:[%s15016_s10 + $0x420] sm:$0xff]  ;;  %v7625_v11 = vld [vmem:[%s15016_s10 + $0x430] sm:$0xff] }
 0x71c   : > { %6291 = vmatmul.mubr.f32.gmra.mrb[70].mxu0 %v14544_v20  ;;  %v5870_v32 = vpop.permute.xlu1 %5869 }
 0x71d   : > { %v5763_v10 = vpop.permute.xlu0 %5762 }
 0x71e   : > { %v5933_v13 = vsel %vm5932_vm12, %v14165_v1, %v5763_v10  ;;  %v5954_v5 = vsel %vm1520_vm7, %v5763_v10, %v5870_v32  ;;  %v7622_v1 = vld [vmem:[%s15016_s10 + $0x418] sm:$0xff]  ;;  %v7628_v32 = vld [vmem:[%s15016_s10 + $0x448] sm:$0xff]  ;;  %v9569_v10 = vpack.c.bf16 %v7625_v11, %v7623_v14  ;;  %v7647_v11 = vld [vmem:[%s15016_s10 + $0x4e0] sm:$0xff] }
 0x71f   : > { %7596 = vmatprep.mubr.msk.f32.mxu0 %vm6096_vm13, %v5954_v5  ;;  %v9563_v48 = vpack.c.bf16 %v7622_v1, %v7620_v24  ;;  %v7629_v5 = vld [vmem:[%s15016_s10 + $0x450] sm:$0xff]  ;;  %v7631_v24 = vld [vmem:[%s15016_s10 + $0x460] sm:$0xff] }
 0x720   : > { %6371 = vmatmul.mubr.f32.vlgmr.msra.gmra.mrb[42].mxu0 %v5933_v13  ;;  %v5872_v59 = vpop.permute.xlu1 %5871  ;;  %v7627_v13 = vld [vmem:[%s15016_s10 + $0x440] sm:$0xff]  ;;  %v7633_v1 = vld [vmem:[%s15016_s10 + $0x470] sm:$0xff] }
 0x721   : > { %9558 = vmatpush1.bf16.msra.mxu0 %v9557_v30  ;;  %v5765_v42 = vpop.permute.xlu0 %5764 }
 0x722   : > { %v5934_v31 = vsel %vm5932_vm12, %v14146_v44, %v5765_v42  ;;  %v5955_v23 = vsel %vm1520_vm7, %v5765_v42, %v5872_v59  ;;  %9560 = vmatprep.subr.bf16.mxu0 %v9559_v29  ;;  %v7626_v44 = vld [vmem:[%s15016_s10 + $0x438] sm:$0xff]  ;;  %v7632_v29 = vld [vmem:[%s15016_s10 + $0x468] sm:$0xff] }
 0x723   : > { %7597 = vmatprep.mubr.msk.f32.mxu0 %vm6096_vm13, %v5955_v23  ;;  %v9567_v25 = vpack.c.bf16 %v7626_v44, %v7624_v49  ;;  %v9575_v34 = vpack.c.bf16 %v7634_v7, %v7632_v29  ;;  %v7636_v59 = vld [vmem:[%s15016_s10 + $0x488] sm:$0xff]  ;;  %v9585_v44 = vpack.c.bf16 %v7641_v57, %v7639_v15  ;;  %v7653_v29 = vld [vmem:[%s15016_s10 + $0x510] sm:$0xff]  ;;  %v7663_v57 = vld [vmem:[%s15016_s10 + $0x560] sm:$0xff] }
 0x724   : > { %6377 = vmatmul.mubr.f32.gmra.mrb[44].mxu0 %v5934_v31  ;;  %v5874_v16 = vpop.permute.xlu1 %5873  ;;  %v7637_v31 = vld [vmem:[%s15016_s10 + $0x490] sm:$0xff]  ;;  %v7640_v23 = vld [vmem:[%s15016_s10 + $0x4a8] sm:$0xff] }
 0x725   : > { %9562 = vmatpush1.bf16.msra.mxu0 %v9561_v27  ;;  %v5767_v53 = vpop.permute.xlu0 %5766  ;;  %v7635_v27 = vld [vmem:[%s15016_s10 + $0x480] sm:$0xff]  ;;  %v7644_v49 = vld [vmem:[%s15016_s10 + $0x4c8] sm:$0xff] }
 0x726   : > { %v5935_v38 = vsel %vm5932_vm12, %v14172_v33, %v5767_v53  ;;  %v5956_v40 = vsel %vm1520_vm7, %v5767_v53, %v5874_v16  ;;  %9564 = vmatprep.subr.bf16.mxu0 %v9563_v48  ;;  %v7630_v33 = vld [vmem:[%s15016_s10 + $0x458] sm:$0xff]  ;;  %v7643_v53 = vld [vmem:[%s15016_s10 + $0x4c0] sm:$0xff]  ;;  %v7656_v7 = vld [vmem:[%s15016_s10 + $0x528] sm:$0xff] }
 0x727   : > { %7598 = vmatprep.mubr.msk.f32.mxu0 %vm6096_vm13, %v5956_v40  ;;  %v9571_v30 = vpack.c.bf16 %v7630_v33, %v7628_v32  ;;  %v7650_v40 = vld [vmem:[%s15016_s10 + $0x4f8] sm:$0xff]  ;;  %v7649_v32 = vld [vmem:[%s15016_s10 + $0x4f0] sm:$0xff]  ;;  %v7652_v33 = vld [vmem:[%s15016_s10 + $0x508] sm:$0xff] }
 0x728   : > { %6383 = vmatmul.mubr.f32.gmra.mrb[46].mxu0 %v5935_v38  ;;  %v7648_v38 = vld [vmem:[%s15016_s10 + $0x4e8] sm:$0xff] }
 0x729   : > { %9566 = vmatpush1.bf16.msra.mxu0 %v9565_v39  ;;  %7599 = vmatprep.mubr.msk.f32.mxu0 %vm6096_vm13, %v14179_v3  ;;  %v9573_v3 = vpack.c.bf16 %v7629_v5, %v7627_v13  ;;  %v7645_v39 = vld [vmem:[%s15016_s10 + $0x4d0] sm:$0xff]  ;;  %v9591_v14 = vpack.c.bf16 %v7650_v40, %v7648_v38  ;;  %v7651_v5 = vld [vmem:[%s15016_s10 + $0x500] sm:$0xff] }
 0x72a   : > { %9568 = vmatprep.subr.bf16.mxu0 %v9567_v25  ;;  %v9589_v25 = vpack.c.bf16 %v7645_v39, %v7643_v53  ;;  %v7667_v39 = vld [vmem:[%s15016_s10 + $0x580] sm:$0xff]  ;;  %v7669_v38 = vld [vmem:[%s15016_s10 + $0x590] sm:$0xff] }
 0x72b   : > { %v9613_v40 = vpack.c.bf16 %v7669_v38, %v7667_v39 }
 0x72c   : > { %6389 = vmatmul.mubr.f32.gmra.mrb[48].mxu0 %v14176_v19  ;;  %v7638_v19 = vld [vmem:[%s15016_s10 + $0x498] sm:$0xff] }
 0x72d   : > { %9570 = vmatpush1.bf16.msra.mxu0 %v9569_v10  ;;  %7600 = vmatprep.mubr.msk.f32.mxu0 %vm6096_vm13, %v14214_v45  ;;  %v9577_v45 = vpack.c.bf16 %v7633_v1, %v7631_v24  ;;  %v9579_v42 = vpack.c.bf16 %v7638_v19, %v7636_v59  ;;  %v7654_v10 = vld [vmem:[%s15016_s10 + $0x518] sm:$0xff]  ;;  %v7655_v1 = vld [vmem:[%s15016_s10 + $0x520] sm:$0xff]  ;;  %v7657_v59 = vld [vmem:[%s15016_s10 + $0x530] sm:$0xff] }
 0x72e   : > { %9572 = vmatprep.subr.bf16.mxu0 %v9571_v30  ;;  %v9593_v30 = vpack.c.bf16 %v7649_v32, %v7647_v11  ;;  %v9595_v13 = vpack.c.bf16 %v7654_v10, %v7652_v33  ;;  %v7660_v19 = vld [vmem:[%s15016_s10 + $0x548] sm:$0xff] }
 0x730   : > { %6395 = vmatmul.mubr.f32.gmra.mrb[50].mxu0 %v14211_v37  ;;  %v7642_v37 = vld [vmem:[%s15016_s10 + $0x4b8] sm:$0xff] }
 0x731   : > { %9574 = vmatpush1.bf16.msra.mxu0 %v9573_v3  ;;  %7601 = vmatprep.mubr.msk.f32.mxu0 %vm6096_vm13, %v14309_v61  ;;  %v9581_v61 = vpack.c.bf16 %v7637_v31, %v7635_v27  ;;  %v9583_v48 = vpack.c.bf16 %v7642_v37, %v7640_v23  ;;  %v7658_v3 = vld [vmem:[%s15016_s10 + $0x538] sm:$0xff]  ;;  %v7659_v31 = vld [vmem:[%s15016_s10 + $0x540] sm:$0xff]  ;;  %v7661_v23 = vld [vmem:[%s15016_s10 + $0x550] sm:$0xff] }
 0x732   : > { %9576 = vmatprep.subr.bf16.mxu0 %v9575_v34  ;;  %v9597_v34 = vpack.c.bf16 %v7653_v29, %v7651_v5  ;;  %v9599_v24 = vpack.c.bf16 %v7658_v3, %v7656_v7  ;;  %v7664_v37 = vld [vmem:[%s15016_s10 + $0x568] sm:$0xff] }
 0x734   : > { %6401 = vmatmul.mubr.f32.gmra.mrb[52].mxu0 %v14306_v50  ;;  %v7646_v50 = vld [vmem:[%s15016_s10 + $0x4d8] sm:$0xff] }
 0x735   : > { %9578 = vmatpush1.bf16.msra.mxu0 %v9577_v45  ;;  %7602 = vmatprep.mubr.msk.f32.mxu0 %vm6096_vm13, %v14335_v6  ;;  %v9587_v16 = vpack.c.bf16 %v7646_v50, %v7644_v49  ;;  %v7662_v45 = vld [vmem:[%s15016_s10 + $0x558] sm:$0xff]  ;;  %v7665_v49 = vld [vmem:[%s15016_s10 + $0x570] sm:$0xff]  ;;  %v7668_v50 = vld [vmem:[%s15016_s10 + $0x588] sm:$0xff] }
 0x736   : > { %9580 = vmatprep.subr.bf16.mxu0 %v9579_v42  ;;  %v9601_v42 = vpack.c.bf16 %v7657_v59, %v7655_v1  ;;  %v9603_v27 = vpack.c.bf16 %v7662_v45, %v7660_v19 }
 0x738   : > { %6407 = vmatmul.mubr.f32.gmra.mrb[54].mxu0 %v14332_v4 }
 0x739   : > { %9582 = vmatpush1.bf16.msra.mxu0 %v9581_v61  ;;  %7603 = vmatprep.mubr.msk.f32.mxu0 %vm6096_vm13, %v14363_v60  ;;  %v7666_v61 = vld [vmem:[%s15016_s10 + $0x578] sm:$0xff] }
 0x73a   : > { %9584 = vmatprep.subr.bf16.mxu0 %v9583_v48  ;;  %v9605_v48 = vpack.c.bf16 %v7661_v23, %v7659_v31  ;;  %v9607_v15 = vpack.c.bf16 %v7666_v61, %v7664_v37 }
 0x73c   : > { %6413 = vmatmul.mubr.f32.gmra.mrb[56].mxu0 %v14360_v2 }
 0x73d   : > { %9586 = vmatpush1.bf16.msra.mxu0 %v9585_v44  ;;  %7604 = vmatprep.mubr.msk.f32.mxu0 %vm6096_vm13, %v14421_v26  ;;  %v7670_v44 = vld [vmem:[%s15016_s10 + $0x598] sm:$0xff] }
 0x73e   : > { %9588 = vmatprep.subr.bf16.mxu0 %v9587_v16  ;;  %v9609_v16 = vpack.c.bf16 %v7665_v49, %v7663_v57  ;;  %v9611_v53 = vpack.c.bf16 %v7670_v44, %v7668_v50 }
 0x740   : > { %6419 = vmatmul.mubr.f32.gmra.mrb[58].mxu0 %v14418_v17 }
 0x741   : > { %9590 = vmatpush1.bf16.msra.mxu0 %v9589_v25  ;;  %7605 = vmatprep.mubr.msk.f32.mxu0 %vm6096_vm13, %v14443_v8 }
 0x742   : > { %9592 = vmatprep.subr.bf16.mxu0 %v9591_v14 }
 0x744   : > { %6425 = vmatmul.mubr.f32.gmra.mrb[60].mxu0 %v14440_v46 }
 0x745   : > { %9594 = vmatpush1.bf16.msra.mxu0 %v9593_v30  ;;  %7606 = vmatprep.mubr.msk.f32.mxu0 %vm6096_vm13, %v14465_v21 }
 0x746   : > { %9596 = vmatprep.subr.bf16.mxu0 %v9595_v13 }
 0x748   : > { %6431 = vmatmul.mubr.f32.gmra.mrb[62].mxu0 %v14462_v63 }
 0x749   : > { %9598 = vmatpush1.bf16.msra.mxu0 %v9597_v34  ;;  %7607 = vmatprep.mubr.msk.f32.mxu0 %vm6096_vm13, %v14487_v51 }
 0x74a   : > { %9600 = vmatprep.subr.bf16.mxu0 %v9599_v24 }
 0x74c   : > { %6437 = vmatmul.mubr.f32.gmra.mrb[64].mxu0 %v14484_v58 }
 0x74d   : > { %9602 = vmatpush1.bf16.msra.mxu0 %v9601_v42  ;;  %7608 = vmatprep.mubr.msk.f32.mxu0 %vm6096_vm13, %v14497_v62 }
 0x74e   : > { %9604 = vmatprep.subr.bf16.mxu0 %v9603_v27 }
 0x750   : > { %6443 = vmatmul.mubr.f32.gmra.mrb[66].mxu0 %v14494_v35 }
 0x751   : > { %9606 = vmatpush1.bf16.msra.mxu0 %v9605_v48  ;;  %7609 = vmatprep.mubr.msk.f32.mxu0 %vm6096_vm13, %v14507_v36 }
 0x752   : > { %9608 = vmatprep.subr.bf16.mxu0 %v9607_v15 }
 0x754   : > { %6449 = vmatmul.mubr.f32.gmra.mrb[68].mxu0 %v14504_v47 }
 0x755   : > { %9610 = vmatpush1.bf16.msra.mxu0 %v9609_v16  ;;  %7610 = vmatprep.mubr.msk.f32.mxu0 %vm6096_vm13, %v14517_v41 }
 0x756   : > { %9612 = vmatprep.subr.bf16.mxu0 %v9611_v53 }
 0x758   : > { %6455 = vmatmul.mubr.f32.gmra.mrb[70].mxu0 %v14514_v54 }
 0x759   : > { %9614 = vmatpush1.bf16.msra.mxu0 %v9613_v40  ;;  %7671 = vmatprep.mubr.msk.f32.mxu0 %vm6096_vm13, %v14335_v6  ;;  %v5799_v6 = vpop.permute.xlu0 %5798 }
 0x75c   : > { %6596 = vmatmul.mubr.f32.vlgmr.msra.gmra.mrb[42].mxu0 %v14332_v4  ;;  %v5906_v4 = vpop.permute.xlu1 %5905 }
 0x75d   : > { %7672 = vmatprep.mubr.msk.f32.mxu0 %vm6096_vm13, %v14363_v60  ;;  %v5801_v60 = vpop.permute.xlu0 %5800 }
 0x760   : > { %6602 = vmatmul.mubr.f32.gmra.mrb[44].mxu0 %v14360_v2  ;;  %v5908_v2 = vpop.permute.xlu1 %5907 }
 0x761   : > { %7673 = vmatprep.mubr.msk.f32.mxu0 %vm6096_vm13, %v14421_v26  ;;  %v5951_v26 = vsel %vm5932_vm12, %v14152_v22, %v5799_v6  ;;  %v6718_v22 = vlaneseq }
 0x764   : > { %6608 = vmatmul.mubr.f32.gmra.mrb[46].mxu0 %v14418_v17  ;;  %v5972_v17 = vsel %vm1520_vm7, %v5799_v6, %v5906_v4 }
 0x765   : > { %7674 = vmatprep.mubr.msk.f32.mxu0 %vm6096_vm13, %v14443_v8  ;;  %v5910_v8 = vpop.permute.xlu1 %5909 }
 0x768   : > { %6614 = vmatmul.mubr.f32.gmra.mrb[48].mxu0 %v14440_v46  ;;  %v5973_v46 = vsel %vm1520_vm7, %v5801_v60, %v5908_v2 }
 0x769   : > { %7675 = vmatprep.mubr.msk.f32.mxu0 %vm6096_vm13, %v14465_v21  ;;  %v5952_v21 = vsel %vm5932_vm12, %v14236_v56, %v5801_v60 }
 0x76c   : > { %6620 = vmatmul.mubr.f32.gmra.mrb[50].mxu0 %v14462_v63  ;;  %v5803_v63 = vpop.permute.xlu0 %5802 }
 0x76d   : > { %7676 = vmatprep.mubr.msk.f32.mxu0 %vm6096_vm13, %v14487_v51  ;;  %v5953_v51 = vsel %vm5932_vm12, %v14256_v55, %v5803_v63 }
 0x770   : > { %6626 = vmatmul.mubr.f32.gmra.mrb[52].mxu0 %v14484_v58  ;;  %v5974_v58 = vsel %vm1520_vm7, %v5803_v63, %v5910_v8 }
 0x771   : > { %7677 = vmatprep.mubr.msk.f32.mxu0 %vm6096_vm13, %v14497_v62 }
 0x774   : > { %6632 = vmatmul.mubr.f32.gmra.mrb[54].mxu0 %v14494_v35  ;;  %v6719_v35 = vshrl.u32 %v6718_v22, 7 }
 0x775   : > { %7678 = vmatprep.mubr.msk.f32.mxu0 %vm6096_vm13, %v14507_v36 }
 0x776   : > { %v6720_v62 = vsub.s32 0, %v6719_v35  ;;  %v6724_v36 = vsub.s32 1, %v6719_v35 }
 0x778   : > { %6638 = vmatmul.mubr.f32.gmra.mrb[56].mxu0 %v14504_v47  ;;  %v6716_v47 = vld [vmem:[%s15017_s11] sm:$0x3] }
 0x779   : > { %7679 = vmatprep.mubr.msk.f32.mxu0 %vm6096_vm13, %v14517_v41  ;;  %v14827_v41 = vrot.slane %v6716_v47, %v6724_v36 }
 0x77c   : > { %6644 = vmatmul.mubr.f32.gmra.mrb[58].mxu0 %v14514_v54  ;;  %v14825_v54 = vrot.slane %v6716_v47, %v6720_v62 }
 0x77d   : > { %7680 = vmatprep.mubr.msk.f32.mxu0 %vm6096_vm13, %v14527_v28 }
 0x780   : > { %6650 = vmatmul.mubr.f32.gmra.mrb[60].mxu0 %v14524_v9 }
 0x781   : > { %7681 = vmatprep.mubr.msk.f32.mxu0 %vm6096_vm13, %v14537_v18 }
 0x784   : > { %6656 = vmatmul.mubr.f32.gmra.mrb[62].mxu0 %v14534_v43 }
 0x785   : > { %7682 = vmatprep.mubr.msk.f32.mxu0 %vm6096_vm13, %v14547_v52 }
 0x788   : > { %6662 = vmatmul.mubr.f32.gmra.mrb[64].mxu0 %v14544_v20 }
 0x789   : > { %7683 = vmatprep.mubr.msk.f32.mxu0 %vm6096_vm13, %v5972_v17 }
 0x78c   : > { %6668 = vmatmul.mubr.f32.gmra.mrb[66].mxu0 %v5951_v26 }
 0x78d   : > { %7684 = vmatprep.mubr.msk.f32.mxu0 %vm6096_vm13, %v5973_v46 }
 0x790   : > { %6674 = vmatmul.mubr.f32.gmra.mrb[68].mxu0 %v5952_v21 }
 0x791   : > { %7685 = vmatprep.mubr.msk.f32.mxu0 %vm6096_vm13, %v5974_v58 }
 0x794   : > { %6680 = vmatmul.mubr.f32.gmra.mrb[70].mxu0 %v5953_v51 }
 0x82f   : > { %v6597_v56 = vpop.f32.mrb[42].mxu0 }
 0x830   : > { %v6599_v9 = vpop.f32.mrb[43].mxu0  ;;  %v6728_v28 = vadd.f32 %v14825_v54, %v6597_v56 }
 0x831   : > { %v6729_v43 = vadd.f32 %v14827_v41, %v6599_v9 }
 0x832   : > { %v6788_v25 = vrot.slane %v6728_v28, 2  ;;  %v6908_v14 = vrot.slane %v6728_v28, 4 }
 0x833   : > { %v6603_v55 = vpop.f32.mrb[44].mxu0  ;;  %v6791_v33 = vrot.slane %v6729_v43, 2  ;;  %v6911_v10 = vrot.slane %v6729_v43, 4 }
 0x834   : > { %v6730_v18 = vadd.f32 %v14825_v54, %v6603_v55  ;;  %v6605_v20 = vpop.f32.mrb[45].mxu0 }
 0x835   : > { %v6731_v52 = vadd.f32 %v14827_v41, %v6605_v20 }
 0x836   : > { %v6789_v11 = vrot.slane %v6730_v18, 2  ;;  %v6909_v32 = vrot.slane %v6730_v18, 4 }
 0x837   : > { %v6792_v30 = vrot.slane %v6731_v52, 2  ;;  %v6912_v13 = vrot.slane %v6731_v52, 4  ;;  %v6609_v5 = vpop.f32.mrb[46].mxu0 }
 0x838   : > { %v6790_v29 = vsel %vm1263_vm6, %v6788_v25, %v6789_v11  ;;  %v6910_v7 = vsel %vm5825_vm11, %v6908_v14, %v6909_v32  ;;  %v6732_v3 = vadd.f32 %v14825_v54, %v6609_v5  ;;  %v6611_v34 = vpop.f32.mrb[47].mxu0 }
 0x839   : > { %v6878_v24 = vmax.f32 %v6728_v28, %v6790_v29  ;;  %v6793_v1 = vsel %vm1263_vm6, %v6791_v33, %v6792_v30  ;;  %v6913_v59 = vsel %vm5825_vm11, %v6911_v10, %v6912_v13  ;;  %v6733_v19 = vadd.f32 %v14827_v41, %v6611_v34 }
 0x83a   : > { %v6879_v45 = vmax.f32 %v6729_v43, %v6793_v1  ;;  %v6794_v42 = vrot.slane %v6732_v3, 2  ;;  %v6914_v27 = vrot.slane %v6732_v3, 4 }
 0x83b   : > { %v14839_v31 = vmax.f32 %v6878_v24, %v6910_v7  ;;  %v6796_v23 = vrot.slane %v6733_v19, 2  ;;  %v6916_v37 = vrot.slane %v6733_v19, 4  ;;  %v6615_v61 = vpop.f32.mrb[48].mxu0 }
 0x83c   : > { %v14841_v48 = vmax.f32 %v6879_v45, %v6913_v59  ;;  %v6795_v15 = vsel %vm1263_vm6, %v6789_v11, %v6794_v42  ;;  %v6915_v57 = vsel %vm5825_vm11, %v6909_v32, %v6914_v27  ;;  %v6734_v49 = vadd.f32 %v14825_v54, %v6615_v61  ;;  %v6617_v50 = vpop.f32.mrb[49].mxu0 }
 0x83d   : > { %v6880_v44 = vmax.f32 %v6730_v18, %v6795_v15  ;;  %v6797_v16 = vsel %vm1263_vm6, %v6792_v30, %v6796_v23  ;;  %v6917_v53 = vsel %vm5825_vm11, %v6912_v13, %v6916_v37  ;;  %v6735_v39 = vadd.f32 %v14827_v41, %v6617_v50 }
 0x83e   : > { %v6881_v38 = vmax.f32 %v6731_v52, %v6797_v16  ;;  %v6798_v40 = vrot.slane %v6734_v49, 2  ;;  %v6918_v4 = vrot.slane %v6734_v49, 4 }
 0x83f   : > { %v14849_v6 = vmax.f32 %v6880_v44, %v6915_v57  ;;  %v6800_v2 = vrot.slane %v6735_v39, 2  ;;  %v6920_v60 = vrot.slane %v6735_v39, 4  ;;  %v6621_v17 = vpop.f32.mrb[50].mxu0 }
 0x840   : > { %v14851_v26 = vmax.f32 %v6881_v38, %v6917_v53  ;;  %v6799_v46 = vsel %vm1263_vm6, %v6794_v42, %v6798_v40  ;;  %v6919_v8 = vsel %vm5825_vm11, %v6914_v27, %v6918_v4  ;;  %v6736_v63 = vadd.f32 %v14825_v54, %v6621_v17  ;;  %v6623_v21 = vpop.f32.mrb[51].mxu0 }
 0x841   : > { %v6882_v58 = vmax.f32 %v6732_v3, %v6799_v46  ;;  %v6801_v51 = vsel %vm1263_vm6, %v6796_v23, %v6800_v2  ;;  %v6921_v22 = vsel %vm5825_vm11, %v6916_v37, %v6920_v60  ;;  %v6737_v35 = vadd.f32 %v14827_v41, %v6623_v21 }
 0x842   : > { %v6883_v62 = vmax.f32 %v6733_v19, %v6801_v51  ;;  %v6802_v47 = vrot.slane %v6736_v63, 2  ;;  %v6922_v36 = vrot.slane %v6736_v63, 4 }
 0x843   : > { %v14859_v56 = vmax.f32 %v6882_v58, %v6919_v8  ;;  %v6804_v9 = vrot.slane %v6737_v35, 2  ;;  %v6924_v28 = vrot.slane %v6737_v35, 4  ;;  %v6627_v43 = vpop.f32.mrb[52].mxu0 }
 0x844   : > { %v14861_v55 = vmax.f32 %v6883_v62, %v6921_v22  ;;  %v6803_v18 = vsel %vm1263_vm6, %v6798_v40, %v6802_v47  ;;  %v6923_v20 = vsel %vm5825_vm11, %v6918_v4, %v6922_v36  ;;  %v6738_v52 = vadd.f32 %v14825_v54, %v6627_v43  ;;  %v6629_v25 = vpop.f32.mrb[53].mxu0 }
 0x845   : > { %v6884_v14 = vmax.f32 %v6734_v49, %v6803_v18  ;;  %v6805_v11 = vsel %vm1263_vm6, %v6800_v2, %v6804_v9  ;;  %v6925_v32 = vsel %vm5825_vm11, %v6920_v60, %v6924_v28  ;;  %v6739_v33 = vadd.f32 %v14827_v41, %v6629_v25 }
 0x846   : > { %v6885_v10 = vmax.f32 %v6735_v39, %v6805_v11  ;;  %v6806_v30 = vrot.slane %v6738_v52, 2  ;;  %v6926_v13 = vrot.slane %v6738_v52, 4 }
 0x847   : > { %v7004_v5 = vmax.f32 %v6884_v14, %v6923_v20  ;;  %v6808_v29 = vrot.slane %v6739_v33, 2  ;;  %v6928_v7 = vrot.slane %v6739_v33, 4  ;;  %v6633_v3 = vpop.f32.mrb[54].mxu0 }
 0x848   : > { %v14869_v34 = vmax.f32 %v6885_v10, %v6925_v32  ;;  %v6807_v24 = vsel %vm1263_vm6, %v6802_v47, %v6806_v30  ;;  %v6927_v1 = vsel %vm5825_vm11, %v6922_v36, %v6926_v13  ;;  %v6740_v59 = vadd.f32 %v14825_v54, %v6633_v3  ;;  %v6635_v19 = vpop.f32.mrb[55].mxu0 }
 0x849   : > { %v7028_v45 = vmax.f32 %v14839_v31, %v7004_v5  ;;  %v6886_v42 = vmax.f32 %v6736_v63, %v6807_v24  ;;  %v6809_v27 = vsel %vm1263_vm6, %v6804_v9, %v6808_v29  ;;  %v6929_v23 = vsel %vm5825_vm11, %v6924_v28, %v6928_v7 }
 0x84a   : > { %v7029_v37 = vmax.f32 %v14841_v48, %v14869_v34  ;;  %v6887_v61 = vmax.f32 %v6737_v35, %v6809_v27  ;;  %v6810_v15 = vrot.slane %v6740_v59, 2  ;;  %v6930_v57 = vrot.slane %v6740_v59, 4 }
 0x84b   : > { %v14879_v49 = vmax.f32 %v6886_v42, %v6927_v1  ;;  %v6741_v50 = vadd.f32 %v14827_v41, %v6635_v19  ;;  %v6639_v44 = vpop.f32.mrb[56].mxu0 }
 0x84c   : > { %v14882_v16 = vmax.f32 %v6887_v61, %v6929_v23  ;;  %v6811_v31 = vsel %vm1263_vm6, %v6806_v30, %v6810_v15  ;;  %v6931_v53 = vsel %vm5825_vm11, %v6926_v13, %v6930_v57  ;;  %v6742_v39 = vadd.f32 %v14825_v54, %v6639_v44  ;;  %v6641_v38 = vpop.f32.mrb[57].mxu0 }
 0x84d   : > { %v7030_v48 = vmax.f32 %v14849_v6, %v14879_v49  ;;  %v6888_v40 = vmax.f32 %v6738_v52, %v6811_v31  ;;  %v6812_v4 = vrot.slane %v6741_v50, 2  ;;  %v6932_v2 = vrot.slane %v6741_v50, 4 }
 0x84e   : > { %v7031_v60 = vmax.f32 %v14851_v26, %v14882_v16  ;;  %v6814_v17 = vrot.slane %v6742_v39, 2  ;;  %v6934_v46 = vrot.slane %v6742_v39, 4  ;;  %v6743_v8 = vadd.f32 %v14827_v41, %v6641_v38 }
 0x84f   : > { %v14892_v63 = vmax.f32 %v6888_v40, %v6931_v53  ;;  %v6813_v21 = vsel %vm1263_vm6, %v6808_v29, %v6812_v4  ;;  %v6933_v58 = vsel %vm5825_vm11, %v6928_v7, %v6932_v2  ;;  %v6645_v51 = vpop.f32.mrb[58].mxu0 }
 0x850   : > { %v6889_v22 = vmax.f32 %v6739_v33, %v6813_v21  ;;  %v6815_v6 = vsel %vm1263_vm6, %v6810_v15, %v6814_v17  ;;  %v6935_v35 = vsel %vm5825_vm11, %v6930_v57, %v6934_v46  ;;  %v6816_v62 = vrot.slane %v6743_v8, 2  ;;  %v6647_v47 = vpop.f32.mrb[59].mxu0 }
 0x851   : > { %v7032_v26 = vmax.f32 %v14859_v56, %v14892_v63  ;;  %v6890_v36 = vmax.f32 %v6740_v59, %v6815_v6  ;;  %v6936_v9 = vrot.slane %v6743_v8, 4  ;;  %v6744_v28 = vadd.f32 %v14825_v54, %v6645_v51 }
 0x852   : > { %v14902_v43 = vmax.f32 %v6889_v22, %v6933_v58  ;;  %v6817_v18 = vsel %vm1263_vm6, %v6812_v4, %v6816_v62  ;;  %v6745_v20 = vadd.f32 %v14827_v41, %v6647_v47 }
 0x853   : > { %v14906_v52 = vmax.f32 %v6890_v36, %v6935_v35  ;;  %v6891_v25 = vmax.f32 %v6741_v50, %v6817_v18  ;;  %v6937_v14 = vsel %vm5825_vm11, %v6932_v2, %v6936_v9  ;;  %v6818_v11 = vrot.slane %v6744_v28, 2  ;;  %v6651_v32 = vpop.f32.mrb[60].mxu0 }
 0x854   : > { %v7033_v56 = vmax.f32 %v14861_v55, %v14902_v43  ;;  %v6938_v33 = vrot.slane %v6744_v28, 4  ;;  %v6820_v10 = vrot.slane %v6745_v20, 2  ;;  %v6940_v30 = vrot.slane %v6745_v20, 4  ;;  %v6653_v13 = vpop.f32.mrb[61].mxu0 }
 0x855   : > { %v7034_v5 = vmax.f32 %v7028_v45, %v14906_v52  ;;  %v14917_v29 = vmax.f32 %v6891_v25, %v6937_v14  ;;  %v6819_v7 = vsel %vm1263_vm6, %v6814_v17, %v6818_v11  ;;  %v6746_v3 = vadd.f32 %v14825_v54, %v6651_v32 }
 0x856   : > { %v6892_v55 = vmax.f32 %v6742_v39, %v6819_v7  ;;  %v6939_v34 = vsel %vm5825_vm11, %v6934_v46, %v6938_v33  ;;  %v6821_v24 = vsel %vm1263_vm6, %v6816_v62, %v6820_v10  ;;  %v6941_v1 = vsel %vm5825_vm11, %v6936_v9, %v6940_v30 }
 0x857   : > { %7052 = vst [vmem:[%s14914_s19] sm:$0xff] %v7034_v5  ;;  %v7035_v59 = vmax.f32 %v7029_v37, %v14917_v29  ;;  %v6893_v19 = vmax.f32 %v6743_v8, %v6821_v24  ;;  %v6822_v42 = vrot.slane %v6746_v3, 2  ;;  %v6942_v45 = vrot.slane %v6746_v3, 4  ;;  %v6657_v27 = vpop.f32.mrb[62].mxu0 }
 0x858   : > { %v14926_v23 = vmax.f32 %v6892_v55, %v6939_v34  ;;  %v6747_v61 = vadd.f32 %v14827_v41, %v6653_v13  ;;  %v14930_v15 = vadd.f32 %v14825_v54, %v6657_v27  ;;  %v6659_v57 = vpop.f32.mrb[63].mxu0 }
 0x859   : > { %7053 = vst [vmem:[%s14914_s19 + $0x8] sm:$0xff] %v7035_v59  ;;  %v14933_v49 = vmax.f32 %v6893_v19, %v6941_v1  ;;  %v6823_v50 = vsel %vm1263_vm6, %v6818_v11, %v6822_v42  ;;  %v6943_v37 = vsel %vm5825_vm11, %v6938_v33, %v6942_v45  ;;  %v6749_v44 = vadd.f32 %v14827_v41, %v6659_v57 }
 0x85a   : > { %v7036_v16 = vmax.f32 %v7030_v48, %v14926_v23  ;;  %v6894_v31 = vmax.f32 %v6744_v28, %v6823_v50  ;;  %v6824_v53 = vrot.slane %v6747_v61, 2  ;;  %v6944_v39 = vrot.slane %v6747_v61, 4 }
 0x85b   : > { %v7037_v38 = vmax.f32 %v7031_v60, %v14933_v49  ;;  %v6826_v40 = vrot.slane %v14930_v15, 2  ;;  %v6946_v4 = vrot.slane %v14930_v15, 4  ;;  %v6828_v2 = vrot.slane %v6749_v44, 2  ;;  %v6663_v17 = vpop.f32.mrb[64].mxu0 }
 0x85c   : > { %7054 = vst [vmem:[%s14914_s19 + $0x10] sm:$0xff] %v7036_v16  ;;  %v14943_v46 = vmax.f32 %v6894_v31, %v6943_v37  ;;  %v6825_v8 = vsel %vm1263_vm6, %v6820_v10, %v6824_v53  ;;  %v6945_v63 = vsel %vm5825_vm11, %v6940_v30, %v6944_v39  ;;  %v6948_v48 = vrot.slane %v6749_v44, 4  ;;  %v6665_v21 = vpop.f32.mrb[65].mxu0 }
 0x85d   : > { %7055 = vst [vmem:[%s14914_s19 + $0x18] sm:$0xff] %v7037_v38  ;;  %v6895_v58 = vmax.f32 %v6745_v20, %v6825_v8  ;;  %v6827_v60 = vsel %vm1263_vm6, %v6822_v42, %v6826_v40  ;;  %v6947_v51 = vsel %vm5825_vm11, %v6942_v45, %v6946_v4  ;;  %v6829_v22 = vsel %vm1263_vm6, %v6824_v53, %v6828_v2 }
 0x85e   : > { %v7038_v6 = vmax.f32 %v7032_v26, %v14943_v46  ;;  %v6896_v35 = vmax.f32 %v6746_v3, %v6827_v60  ;;  %v6897_v62 = vmax.f32 %v6747_v61, %v6829_v22  ;;  %v6949_v47 = vsel %vm5825_vm11, %v6944_v39, %v6948_v48 }
 0x85f   : > { %v14953_v36 = vmax.f32 %v6895_v58, %v6945_v63  ;;  %v6750_v9 = vadd.f32 %v14825_v54, %v6663_v17  ;;  %v6751_v28 = vadd.f32 %v14827_v41, %v6665_v21  ;;  %v6669_v43 = vpop.f32.mrb[66].mxu0 }
 0x860   : > { %7056 = vst [vmem:[%s14914_s19 + $0x20] sm:$0xff] %v7038_v6  ;;  %v7016_v18 = vmax.f32 %v6896_v35, %v6947_v51  ;;  %v7017_v20 = vmax.f32 %v6897_v62, %v6949_v47  ;;  %v6752_v25 = vadd.f32 %v14825_v54, %v6669_v43  ;;  %v6671_v14 = vpop.f32.mrb[67].mxu0 }
 0x861   : > { %v7039_v26 = vmax.f32 %v7033_v56, %v14953_v36  ;;  %v6830_v11 = vrot.slane %v6750_v9, 2  ;;  %v6950_v32 = vrot.slane %v6750_v9, 4  ;;  %v6832_v33 = vrot.slane %v6751_v28, 2 }
 0x862   : > { %v7040_v10 = vmax.f32 %v14906_v52, %v7016_v18  ;;  %v7041_v30 = vmax.f32 %v14917_v29, %v7017_v20  ;;  %v6952_v13 = vrot.slane %v6751_v28, 4  ;;  %v6834_v5 = vrot.slane %v6752_v25, 2 }
 0x863   : > { %7057 = vst [vmem:[%s14914_s19 + $0x28] sm:$0xff] %v7039_v26  ;;  %v6831_v7 = vsel %vm1263_vm6, %v6826_v40, %v6830_v11  ;;  %v6951_v3 = vsel %vm5825_vm11, %v6946_v4, %v6950_v32  ;;  %v6833_v55 = vsel %vm1263_vm6, %v6828_v2, %v6832_v33  ;;  %v6954_v34 = vrot.slane %v6752_v25, 4  ;;  %v6675_v24 = vpop.f32.mrb[68].mxu0 }
 0x864   : > { %v6898_v56 = vmax.f32 %v14930_v15, %v6831_v7  ;;  %v6899_v1 = vmax.f32 %v6749_v44, %v6833_v55  ;;  %v6953_v59 = vsel %vm5825_vm11, %v6948_v48, %v6952_v13  ;;  %v6835_v52 = vsel %vm1263_vm6, %v6830_v11, %v6834_v5  ;;  %v6677_v19 = vpop.f32.mrb[69].mxu0 }
 0x865   : > { %v6900_v29 = vmax.f32 %v6750_v9, %v6835_v52  ;;  %v6955_v42 = vsel %vm5825_vm11, %v6950_v32, %v6954_v34  ;;  %v6753_v45 = vadd.f32 %v14827_v41, %v6671_v14  ;;  %v6754_v27 = vadd.f32 %v14825_v54, %v6675_v24 }
 0x866   : > { %v7018_v61 = vmax.f32 %v6898_v56, %v6951_v3  ;;  %v7019_v57 = vmax.f32 %v6899_v1, %v6953_v59  ;;  %v6755_v50 = vadd.f32 %v14827_v41, %v6677_v19 }
 0x867   : > { %v7020_v37 = vmax.f32 %v6900_v29, %v6955_v42  ;;  %v6836_v16 = vrot.slane %v6753_v45, 2  ;;  %v6956_v15 = vrot.slane %v6753_v45, 4  ;;  %v6838_v44 = vrot.slane %v6754_v27, 2  ;;  %v6681_v31 = vpop.f32.mrb[70].mxu0 }
 0x868   : > { %v7042_v53 = vmax.f32 %v14926_v23, %v7018_v61  ;;  %v7043_v39 = vmax.f32 %v14933_v49, %v7019_v57  ;;  %v6958_v38 = vrot.slane %v6754_v27, 4  ;;  %v6840_v40 = vrot.slane %v6755_v50, 2  ;;  %v6683_v4 = vpop.f32.mrb[71].mxu0 }
 0x869   : > { %v6837_v2 = vsel %vm1263_vm6, %v6832_v33, %v6836_v16  ;;  %v6957_v17 = vsel %vm5825_vm11, %v6952_v13, %v6956_v15  ;;  %v6839_v8 = vsel %vm1263_vm6, %v6834_v5, %v6838_v44  ;;  %v6960_v63 = vrot.slane %v6755_v50, 4 }
 0x86a   : > { %v6901_v48 = vmax.f32 %v6751_v28, %v6837_v2  ;;  %v6902_v21 = vmax.f32 %v6752_v25, %v6839_v8  ;;  %v6959_v58 = vsel %vm5825_vm11, %v6954_v34, %v6958_v38  ;;  %v6841_v60 = vsel %vm1263_vm6, %v6836_v16, %v6840_v40 }
 0x86b   : > { %v6903_v51 = vmax.f32 %v6753_v45, %v6841_v60  ;;  %v6961_v23 = vsel %vm5825_vm11, %v6956_v15, %v6960_v63  ;;  %v6756_v49 = vadd.f32 %v14825_v54, %v6681_v31  ;;  %v7044_v22 = vmax.f32 %v14943_v46, %v7020_v37 }
 0x86c   : > { %v7021_v6 = vmax.f32 %v6901_v48, %v6957_v17  ;;  %v7022_v35 = vmax.f32 %v6902_v21, %v6959_v58  ;;  %v6757_v62 = vadd.f32 %v14827_v41, %v6683_v4 }
 0x86d   : > { %v7023_v47 = vmax.f32 %v6903_v51, %v6961_v23  ;;  %v6842_v9 = vrot.slane %v6756_v49, 2  ;;  %v6962_v28 = vrot.slane %v6756_v49, 4 }
 0x86e   : > { %v7046_v43 = vmax.f32 %v7040_v10, %v7022_v35  ;;  %v6844_v18 = vrot.slane %v6757_v62, 2  ;;  %v6964_v20 = vrot.slane %v6757_v62, 4  ;;  %v7045_v25 = vmax.f32 %v14953_v36, %v7021_v6 }
 0x86f   : > { %v7047_v14 = vmax.f32 %v7041_v30, %v7023_v47  ;;  %v6843_v26 = vsel %vm1263_vm6, %v6838_v44, %v6842_v9  ;;  %v6846_v54 = vsel %vm1263_vm6, %v6842_v9, %v15195_v0  ;;  %v6963_v46 = vsel %vm5825_vm11, %v6958_v38, %v6962_v28 }
 0x870   : > { %7058 = vst [vmem:[%s14914_s19 + $0x30] sm:$0xff] %v7046_v43  ;;  %v6904_v11 = vmax.f32 %v6754_v27, %v6843_v26  ;;  %v6906_v41 = vmax.f32 %v6756_v49, %v6846_v54  ;;  %v6845_v32 = vsel %vm1263_vm6, %v6840_v40, %v6844_v18  ;;  %v6966_v33 = vsel %vm5825_vm11, %v6962_v28, %v14302_v12 }
 0x871   : > { %7059 = vst [vmem:[%s14914_s19 + $0x38] sm:$0xff] %v7047_v14  ;;  %v6847_v36 = vsel %vm1263_vm6, %v6844_v18, %v15195_v0  ;;  %v6905_v10 = vmax.f32 %v6755_v50, %v6845_v32  ;;  %v6965_v30 = vsel %vm5825_vm11, %v6960_v63, %v6964_v20  ;;  %v6967_v3 = vsel %vm5825_vm11, %v6964_v20, %v14302_v12 }
 0x872   : > { %v7024_v13 = vmax.f32 %v6904_v11, %v6963_v46  ;;  %v7026_v5 = vmax.f32 %v6906_v41, %v6966_v33  ;;  %v6907_v7 = vmax.f32 %v6757_v62, %v6847_v36 }
 0x873   : > { %v7025_v55 = vmax.f32 %v6905_v10, %v6965_v30 }
 0x874   : > { %v7048_v34 = vmax.f32 %v7042_v53, %v7024_v13  ;;  %v7050_v24 = vmax.f32 %v7044_v22, %v7026_v5  ;;  %v7027_v56 = vmax.f32 %v6907_v7, %v6967_v3 }
 0x875   : > { %v7049_v1 = vmax.f32 %v7043_v39, %v7025_v55 }
 0x876   : > { %7060 = vst [vmem:[%s14914_s19 + $0x40] sm:$0xff] %v7048_v34  ;;  %7062 = vst [vmem:[%s14914_s19 + $0x50] sm:$0xff] %v7050_v24  ;;  %v7051_v59 = vmax.f32 %v7045_v25, %v7027_v56 }
 0x877   : > { %7061 = vst [vmem:[%s14914_s19 + $0x48] sm:$0xff] %v7049_v1 }
 0x878   : > { %7063 = vst [vmem:[%s14914_s19 + $0x58] sm:$0xff] %v7051_v59 }
 0x879 PF: > { %s22_s21 = sadd.s32 1, %s9708_s21  }
 0x87a   : > { %p19_p4 = scmp.ge.s32.totalorder %s22_s21, 4  }
 0x87c   :  { %21 = sbr.rel (!%p19_p4) target bundleno = 1 (0x1), region = 104 }

</bundles_post_ra>
